<compile_context>
chip_gen: v7x
topology: tpu7x:2x2x1
jax: 0.10.0
libtpu: 0.0.40
codegen_flags: <defaults>
</compile_context>

<pallas_src>
import functools

import numpy as np
import jax
import jax.numpy as jnp
from jax import lax
from jax.experimental import pallas as pl
from jax.experimental.pallas import tpu as pltpu

GN_GROUPS = 16
GN_EPS = 1e-5


# ---------------------------------------------------------------------------
# Constants hoisted out of the kernel (built once in the wrapper)
# ---------------------------------------------------------------------------
def _gm_np(c, groups):
    g = np.arange(c) // (c // groups)
    return (g[:, None] == g[None, :]).astype(np.float32)


def _group_matrix(c, groups, hw):
    """[C, C] same-group matrix with 1/(HW * C_per_group) folded into the columns."""
    return jnp.asarray(_gm_np(c, groups) / float(hw * (c // groups)))


def _group_matrix_cat(ci, co, groups, hw):
    """Block-diagonal group matrix for the fused (conv1 | shortcut) GroupNorm."""
    m = np.zeros((ci + co, ci + co), np.float32)
    m[:ci, :ci] = _gm_np(ci, groups) / float(hw * (ci // groups))
    m[ci:, ci:] = _gm_np(co, groups) / float(hw * (co // groups))
    return jnp.asarray(m)


def _conv3x3_mask(h, w, nb):
    """[nb*H*W, 9] per-tap validity mask for the rolled 3x3 'same'-conv taps."""
    y = np.arange(h * w) // w
    x = np.arange(h * w) % w
    cols = []
    for dy in (-1, 0, 1):
        for dx in (-1, 0, 1):
            ok = (y + dy >= 0) & (y + dy < h) & (x + dx >= 0) & (x + dx < w)
            cols.append(ok.astype(np.float32)[:, None])
    m = np.concatenate(cols, axis=1)            # [H*W, 9]
    return jnp.asarray(np.tile(m, (nb, 1)))     # [nb*H*W, 9]


# ---------------------------------------------------------------------------
# In-kernel GroupNorm on [nb*HW, C] f32 activations (stats strictly per sample, in f32).
# gmat already carries the 1/(HW * C_per_group) factor; gamma/beta folded into one FMA.
# ---------------------------------------------------------------------------
def _group_norm(h, gmat, gamma, beta, nb, hw, eps=GN_EPS):
    p, c = h.shape
    if nb == 1:
        s = jnp.sum(h, axis=0, keepdims=True)          # [1, C]
        ss = jnp.sum(h * h, axis=0, keepdims=True)     # [1, C]
    else:
        h3 = h.reshape(nb, hw, c)                      # free reshape (HW % 8 == 0 enforced)
        s = jnp.sum(h3, axis=1)                        # [nb, C]
        ss = jnp.sum(h3 * h3, axis=1)                  # [nb, C]
    mean = jnp.dot(s, gmat, preferred_element_type=jnp.float32)
    ex2 = jnp.dot(ss, gmat, preferred_element_type=jnp.float32)
    var = jnp.maximum(ex2 - mean * mean, 0.0)          # guard single-pass cancellation
    scale = lax.rsqrt(var + eps) * gamma               # [nb, C]
    shift = beta - mean * scale                        # [nb, C]
    if nb == 1:
        return h * scale + shift
    return (h.reshape(nb, hw, c) * scale[:, None, :] + shift[:, None, :]).reshape(p, c)


# ---------------------------------------------------------------------------
# Fused ResBlock kernel (one grid step = nb samples, everything in VMEM)
# ---------------------------------------------------------------------------
def _resblock_kernel(x_ref, wcat_ref, gcat_ref, bcat_ref,
                     w2_ref, g2_ref, b2_ref,
                     w3_ref, g3_ref, b3_ref,
                     gmc_ref, gmi_ref, gmo_ref, mask_ref,
                     o_ref, *, H, W, nb, compute_dtype):
    HW = H * W
    P = nb * HW
    Cin = x_ref.shape[-1]
    Ci = w3_ref.shape[0]
    Co = w3_ref.shape[1]
    cdt = compute_dtype

    x = x_ref[...].reshape(P, Cin)                     # free reshape (last dim unchanged)

    # ---- stage 1 + shortcut, fused:  x @ [w1 | ws]  ->  block-diagonal GN  -------------
    hsc = jnp.dot(x.astype(cdt), wcat_ref[...], preferred_element_type=jnp.float32)
    hsc = _group_norm(hsc, gmc_ref[...], gcat_ref[...], bcat_ref[...], nb, HW)
    h = jnp.maximum(hsc[:, :Ci], 0.0)                  # main branch (ReLU)
    sc = hsc[:, Ci:]                                   # shortcut branch (no ReLU)

    # ---- stage 2: 3x3 conv (padding=1) as 3 accumulating im2col matmuls (per dy) --------
    # tap(dy,dx)[i] = h[i + dy*W + dx] (circular roll on the XLU); boundary / cross-sample
    # wrap is zeroed by the per-tap [P,1] mask broadcast.
    acc = None
    for g, dy in enumerate((-1, 0, 1)):
        taps = []
        for j, dx in enumerate((-1, 0, 1)):
            k = 3 * g + j
            shift = (-(dy * W + dx)) % P
            t = h if shift == 0 else pltpu.roll(h, shift, 0)
            if dy != 0 or dx != 0:                     # center tap mask is all-ones
                t = t * mask_ref[:, k:k + 1]
            taps.append(t)
        col = jnp.concatenate(taps, axis=1).astype(cdt)          # [P, 3*Ci]
        part = jnp.dot(col, w2_ref[g], preferred_element_type=jnp.float32)
        acc = part if acc is None else acc + part
    h = _group_norm(acc, gmi_ref[...], g2_ref[...], b2_ref[...], nb, HW)
    h = jnp.maximum(h, 0.0)

    # ---- stage 3: main 1x1 conv -> GN, residual add --------------------------------------
    main = jnp.dot(h.astype(cdt), w3_ref[...], preferred_element_type=jnp.float32)
    main = _group_norm(main, gmo_ref[...], g3_ref[...], b3_ref[...], nb, HW)

    # TODO(synk): lane-dense (nb*H, W*Co) store when Co < 128 (needs lane-crossing reshape).
    o_ref[...] = (main + sc).reshape(nb, HW, Co)


# ---------------------------------------------------------------------------
# pallas_call wrapper
# ---------------------------------------------------------------------------
def _vmem_limit_bytes():
    """~75% of this generation's physical per-core VMEM (v7x 64 MiB, v5e/v6e 128 MiB)."""
    cap = 64 * 1024 * 1024                       # conservative fallback (works on all gens)
    try:
        info = pltpu.get_tpu_info()
        cap = int(getattr(info, "vmem_capacity_bytes", cap) or cap)
    except Exception:
        pass
    return (cap * 3) // 4


def _pick_nb(n, hw, cin, ci, co, vmem_limit):
    """Samples per grid step: largest divisor of N whose live working set fits ~40% of the
    scoped VMEM limit; prefer an even grid length (v7x megacore on the 'parallel' axis)."""
    if hw % 8:                                   # keep per-sample reshapes layout-preserving
        return 1
    per_sample = 4 * hw * (cin + 3 * (ci + co) + 6 * ci) + 4096   # rough live bytes / sample
    budget = max(int(vmem_limit * 0.4), per_sample)
    fits = [nb for nb in range(1, n + 1) if n % nb == 0 and nb * per_sample <= budget]
    best = max(fits)
    even = [nb for nb in fits if (n // nb) % 2 == 0]
    if even and 2 * max(even) >= best:           # only pay <=2x smaller blocks for evenness
        best = max(even)
    return best


def _resblock_pallas(x_flat, p, *, H, W, nb, vmem_limit, matmul_dtype, groups=GN_GROUPS):
    N, HW, Cin = x_flat.shape
    Ci = p["w1"].shape[1]
    Co = p["w3"].shape[1]
    cdt = matmul_dtype

    # Weights pre-cast to the MXU compute dtype; GN constants stay f32.
    wcat = jnp.concatenate([p["w1"], p["ws"]], axis=1).astype(cdt)   # (Cin, Ci+Co)
    gcat = jnp.concatenate([p["g1"], p["gs"]], axis=1)               # (1, Ci+Co)
    bcat = jnp.concatenate([p["b1"], p["bs"]], axis=1)
    w2g = p["w2"].reshape(3, 3 * Ci, Ci).astype(cdt)                 # per-dy im2col weights
    w3 = p["w3"].astype(cdt)

    gm_c = _group_matrix_cat(Ci, Co, groups, HW)
    gm_i = _group_matrix(Ci, groups, HW)
    gm_o = _group_matrix(Co, groups, HW)
    mask = _conv3x3_mask(H, W, nb)                                   # (nb*HW, 9)

    ins = [x_flat, wcat, gcat, bcat, w2g, p["g2"], p["b2"],
           w3, p["g3"], p["b3"], gm_c, gm_i, gm_o, mask]

    def full_spec(a):
        return pl.BlockSpec(a.shape, lambda n, _nd=a.ndim: (0,) * _nd)

    batch_spec = pl.BlockSpec((nb, HW, Cin), lambda n: (n, 0, 0))
    out_spec = pl.BlockSpec((nb, HW, Co), lambda n: (n, 0, 0))
    in_specs = [batch_spec] + [full_spec(a) for a in ins[1:]]

    kern = functools.partial(_resblock_kernel, H=H, W=W, nb=nb, compute_dtype=cdt)

    return pl.pallas_call(
        kern,
        out_shape=jax.ShapeDtypeStruct((N, HW, Co), jnp.float32),
        grid=(N // nb,),
        in_specs=in_specs,
        out_specs=out_spec,
        compiler_params=pltpu.CompilerParams(
            dimension_semantics=("parallel",),
            vmem_limit_bytes=int(vmem_limit),
        ),
    )(*ins)


@functools.partial(jax.jit, static_argnames=("matmul_dtype",))
def resblock_forward(x_nchw, params, matmul_dtype=jnp.bfloat16):
    """Forward pass matching the PyTorch ResBlock. Input/output are NCHW float32."""
    N, Cin, H, W = x_nchw.shape
    Ci = params["w1"].shape[1]
    Co = params["w3"].shape[1]
    if Ci % GN_GROUPS or Co % GN_GROUPS:
        raise ValueError("GroupNorm(16) requires inner/out channels % 16 == 0")
    x = jnp.transpose(x_nchw, (0, 2, 3, 1)).reshape(N, H * W, Cin)   # NCHW -> (N, H*W, C)
    vmem_limit = _vmem_limit_bytes()
    nb = _pick_nb(N, H * W, Cin, Ci, Co, vmem_limit)
    out = _resblock_pallas(x, params, H=H, W=W, nb=nb,
                           vmem_limit=vmem_limit, matmul_dtype=matmul_dtype)
    return jnp.transpose(out.reshape(N, H, W, Co), (0, 3, 1, 2))     # -> NCHW


# ---------------------------------------------------------------------------
# Explicit conversion from native PyTorch parameter layouts
#   Conv2d.weight: [out, in, kh, kw]   GroupNorm.weight/bias: [C]
# ---------------------------------------------------------------------------
def params_from_torch_layout(tp):
    def c1x1(w):   # [out, in, 1, 1] -> [in, out]
        return jnp.transpose(w[:, :, 0, 0], (1, 0))

    def c3x3(w):   # [out, in, kh, kw] -> [kh, kw, in, out]
        return jnp.transpose(w, (2, 3, 1, 0))

    def vec(v):    # [C] -> [1, C]
        return v.reshape(1, -1)

    return {
        "w1": c1x1(tp["conv1_w"]), "g1": vec(tp["gn1_w"]), "b1": vec(tp["gn1_b"]),
        "w2": c3x3(tp["conv2_w"]), "g2": vec(tp["gn2_w"]), "b2": vec(tp["gn2_b"]),
        "w3": c1x1(tp["conv3_w"]), "g3": vec(tp["gn3_w"]), "b3": vec(tp["gn3_b"]),
        "ws": c1x1(tp["convs_w"]), "gs": vec(tp["gns_w"]), "bs": vec(tp["gns_b"]),
    }


# ---------------------------------------------------------------------------
# Pure-JAX reference (for the correctness check)
# ---------------------------------------------------------------------------
def _gn_ref(h, gamma, beta, groups=GN_GROUPS, eps=GN_EPS):
    N, H, W, C = h.shape
    hg = h.reshape(N, H, W, groups, C // groups)
    mean = hg.mean(axis=(1, 2, 4), keepdims=True)
    var = hg.var(axis=(1, 2, 4), keepdims=True)
    hn = ((hg - mean) / jnp.sqrt(var + eps)).reshape(N, H, W, C)
    return hn * gamma.reshape(1, 1, 1, C) + beta.reshape(1, 1, 1, C)


def resblock_reference(x_nchw, p):
    x = jnp.transpose(x_nchw, (0, 2, 3, 1))
    h = jnp.einsum("nhwc,cd->nhwd", x, p["w1"])
    h = jax.nn.relu(_gn_ref(h, p["g1"], p["b1"]))
    h = lax.conv_general_dilated(h, p["w2"], (1, 1), "SAME",
                                 dimension_numbers=("NHWC", "HWIO", "NHWC"))
    h = jax.nn.relu(_gn_ref(h, p["g2"], p["b2"]))
    h = jnp.einsum("nhwc,cd->nhwd", h, p["w3"])
    h = _gn_ref(h, p["g3"], p["b3"])
    s = jnp.einsum("nhwc,cd->nhwd", x, p["ws"])
    s = _gn_ref(s, p["gs"], p["bs"])
    return jnp.transpose(h + s, (0, 3, 1, 2))


# ---------------------------------------------------------------------------
if __name__ == "__main__":
    N, Cin, Cinner, Cout, H, W = 2, 16, 32, 32, 16, 16   # GN(16) needs inner/out % 16 == 0

    key = jax.random.PRNGKey(0)
    ks = jax.random.split(key, 13)
    # parameters generated directly in PyTorch's native layouts, then converted
    torch_params = {
        "conv1_w": 0.1 * jax.random.normal(ks[0], (Cinner, Cin, 1, 1), jnp.float32),
        "gn1_w": 1.0 + 0.1 * jax.random.normal(ks[1], (Cinner,), jnp.float32),
        "gn1_b": 0.1 * jax.random.normal(ks[2], (Cinner,), jnp.float32),
        "conv2_w": 0.1 * jax.random.normal(ks[3], (Cinner, Cinner, 3, 3), jnp.float32),
        "gn2_w": 1.0 + 0.1 * jax.random.normal(ks[4], (Cinner,), jnp.float32),
        "gn2_b": 0.1 * jax.random.normal(ks[5], (Cinner,), jnp.float32),
        "conv3_w": 0.1 * jax.random.normal(ks[6], (Cout, Cinner, 1, 1), jnp.float32),
        "gn3_w": 1.0 + 0.1 * jax.random.normal(ks[7], (Cout,), jnp.float32),
        "gn3_b": 0.1 * jax.random.normal(ks[8], (Cout,), jnp.float32),
        "convs_w": 0.1 * jax.random.normal(ks[9], (Cout, Cin, 1, 1), jnp.float32),
        "gns_w": 1.0 + 0.1 * jax.random.normal(ks[10], (Cout,), jnp.float32),
        "gns_b": 0.1 * jax.random.normal(ks[11], (Cout,), jnp.float32),
    }
    params = params_from_torch_layout(torch_params)

    x = jax.random.normal(ks[12], (N, Cin, H, W), jnp.float32)

    ref = jax.block_until_ready(resblock_reference(x, params))

    # f32 MXU path: tight correctness check of the kernel structure.
    out_f32 = jax.block_until_ready(resblock_forward(x, params, matmul_dtype=jnp.float32))
    assert out_f32.shape == (N, Cout, H, W), out_f32.shape
    err_f32 = float(jnp.max(jnp.abs(out_f32 - ref)))
    assert jnp.allclose(out_f32, ref, atol=1e-4, rtol=1e-4), err_f32

    # bf16 MXU path (default): loose sanity check vs the f32 reference.
    out_bf16 = jax.block_until_ready(resblock_forward(x, params))
    assert out_bf16.shape == (N, Cout, H, W), out_bf16.shape
    err_bf16 = float(jnp.max(jnp.abs(out_bf16 - ref)))
    assert jnp.allclose(out_bf16, ref, atol=2e-1, rtol=1e-1), err_bf16

    print("KERNEL_OK")
</pallas_src>

<mosaic_0001>
module attributes {stable_mosaic.version = 11 : i64} {
  func.func @_resblock_kernel(%arg0: i32, %arg1: memref<1x256x16xf32, #tpu.memory_space<vmem>>, %arg2: memref<16x64xf32, #tpu.memory_space<vmem>>, %arg3: memref<1x64xf32, #tpu.memory_space<vmem>>, %arg4: memref<1x64xf32, #tpu.memory_space<vmem>>, %arg5: memref<3x96x32xf32, #tpu.memory_space<vmem>>, %arg6: memref<1x32xf32, #tpu.memory_space<vmem>>, %arg7: memref<1x32xf32, #tpu.memory_space<vmem>>, %arg8: memref<32x32xf32, #tpu.memory_space<vmem>>, %arg9: memref<1x32xf32, #tpu.memory_space<vmem>>, %arg10: memref<1x32xf32, #tpu.memory_space<vmem>>, %arg11: memref<64x64xf32, #tpu.memory_space<vmem>>, %arg12: memref<32x32xf32, #tpu.memory_space<vmem>>, %arg13: memref<32x32xf32, #tpu.memory_space<vmem>>, %arg14: memref<256x9xf32, #tpu.memory_space<vmem>>, %arg15: memref<1x256x32xf32, #tpu.memory_space<vmem>>) attributes {dimension_semantics = [#tpu.dimension_semantics<parallel>], iteration_bounds = array<i64: 2>, scalar_prefetch = 0 : i64, scratch_operands = 0 : i64, tpu.core_type = #tpu.core_type<tc>, window_params = [{transform_indices = @transform_0, window_bounds = array<i64: 1, 256, 16>}, {pipeline_mode = #tpu.pipeline_mode<synchronous>, transform_indices = @transform_1, window_bounds = array<i64: 16, 64>}, {pipeline_mode = #tpu.pipeline_mode<synchronous>, transform_indices = @transform_2, window_bounds = array<i64: 1, 64>}, {pipeline_mode = #tpu.pipeline_mode<synchronous>, transform_indices = @transform_3, window_bounds = array<i64: 1, 64>}, {pipeline_mode = #tpu.pipeline_mode<synchronous>, transform_indices = @transform_4, window_bounds = array<i64: 3, 96, 32>}, {pipeline_mode = #tpu.pipeline_mode<synchronous>, transform_indices = @transform_5, window_bounds = array<i64: 1, 32>}, {pipeline_mode = #tpu.pipeline_mode<synchronous>, transform_indices = @transform_6, window_bounds = array<i64: 1, 32>}, {pipeline_mode = #tpu.pipeline_mode<synchronous>, transform_indices = @transform_7, window_bounds = array<i64: 32, 32>}, {pipeline_mode = #tpu.pipeline_mode<synchronous>, transform_indices = @transform_8, window_bounds = array<i64: 1, 32>}, {pipeline_mode = #tpu.pipeline_mode<synchronous>, transform_indices = @transform_9, window_bounds = array<i64: 1, 32>}, {pipeline_mode = #tpu.pipeline_mode<synchronous>, transform_indices = @transform_10, window_bounds = array<i64: 64, 64>}, {pipeline_mode = #tpu.pipeline_mode<synchronous>, transform_indices = @transform_11, window_bounds = array<i64: 32, 32>}, {pipeline_mode = #tpu.pipeline_mode<synchronous>, transform_indices = @transform_12, window_bounds = array<i64: 32, 32>}, {pipeline_mode = #tpu.pipeline_mode<synchronous>, transform_indices = @transform_13, window_bounds = array<i64: 256, 9>}, {transform_indices = @transform_14, window_bounds = array<i64: 1, 256, 32>}]} {
    %c0 = arith.constant 0 : index
    %c0_0 = arith.constant 0 : index
    %c0_1 = arith.constant 0 : index
    %0 = vector.load %arg1[%c0, %c0_0, %c0_1] : memref<1x256x16xf32, #tpu.memory_space<vmem>>, vector<1x256x16xf32>
    %1 = vector.shape_cast %0 : vector<1x256x16xf32> to vector<256x16xf32>
    %c0_2 = arith.constant 0 : index
    %c0_3 = arith.constant 0 : index
    %2 = vector.load %arg2[%c0_2, %c0_3] : memref<16x64xf32, #tpu.memory_space<vmem>>, vector<16x64xf32>
    %cst = arith.constant dense<0.000000e+00> : vector<256x64xf32>
    %3 = tpu.matmul %1, %2, %cst {dimension_numbers = #tpu.dot_dimension_numbers<[1], [0], [0], [1], [0, 0, 1, 1], [], []>} : vector<256x16xf32>, vector<16x64xf32>, vector<256x64xf32> -> vector<256x64xf32>
    %c0_4 = arith.constant 0 : index
    %c0_5 = arith.constant 0 : index
    %4 = vector.load %arg11[%c0_4, %c0_5] : memref<64x64xf32, #tpu.memory_space<vmem>>, vector<64x64xf32>
    %c0_6 = arith.constant 0 : index
    %c0_7 = arith.constant 0 : index
    %5 = vector.load %arg3[%c0_6, %c0_7] : memref<1x64xf32, #tpu.memory_space<vmem>>, vector<1x64xf32>
    %c0_8 = arith.constant 0 : index
    %c0_9 = arith.constant 0 : index
    %6 = vector.load %arg4[%c0_8, %c0_9] : memref<1x64xf32, #tpu.memory_space<vmem>>, vector<1x64xf32>
    %cst_10 = arith.constant dense<0.000000e+00> : vector<64xf32>
    %7 = vector.multi_reduction <add>, %3, %cst_10 [0] : vector<256x64xf32> to vector<64xf32>
    %8 = vector.shape_cast %7 : vector<64xf32> to vector<1x64xf32>
    %9 = arith.mulf %3, %3 : vector<256x64xf32>
    %cst_11 = arith.constant dense<0.000000e+00> : vector<64xf32>
    %10 = vector.multi_reduction <add>, %9, %cst_11 [0] : vector<256x64xf32> to vector<64xf32>
    %11 = vector.shape_cast %10 : vector<64xf32> to vector<1x64xf32>
    %cst_12 = arith.constant dense<0.000000e+00> : vector<1x64xf32>
    %12 = tpu.matmul %8, %4, %cst_12 {dimension_numbers = #tpu.dot_dimension_numbers<[1], [0], [0], [1], [0, 0, 1, 1], [], []>} : vector<1x64xf32>, vector<64x64xf32>, vector<1x64xf32> -> vector<1x64xf32>
    %cst_13 = arith.constant dense<0.000000e+00> : vector<1x64xf32>
    %13 = tpu.matmul %11, %4, %cst_13 {dimension_numbers = #tpu.dot_dimension_numbers<[1], [0], [0], [1], [0, 0, 1, 1], [], []>} : vector<1x64xf32>, vector<64x64xf32>, vector<1x64xf32> -> vector<1x64xf32>
    %14 = arith.mulf %12, %12 : vector<1x64xf32>
    %15 = arith.subf %13, %14 : vector<1x64xf32>
    %cst_14 = arith.constant 0.000000e+00 : f32
    %16 = vector.broadcast %cst_14 : f32 to vector<1x64xf32>
    %17 = arith.maximumf %15, %16 : vector<1x64xf32>
    %cst_15 = arith.constant 9.99999974E-6 : f32
    %18 = vector.broadcast %cst_15 : f32 to vector<1x64xf32>
    %19 = arith.addf %17, %18 : vector<1x64xf32>
    %20 = math.rsqrt %19 : vector<1x64xf32>
    %21 = arith.mulf %20, %5 : vector<1x64xf32>
    %22 = arith.mulf %12, %21 : vector<1x64xf32>
    %23 = arith.subf %6, %22 : vector<1x64xf32>
    %24 = vector.broadcast %21 : vector<1x64xf32> to vector<256x64xf32>
    %25 = arith.mulf %3, %24 : vector<256x64xf32>
    %26 = vector.broadcast %23 : vector<1x64xf32> to vector<256x64xf32>
    %27 = arith.addf %25, %26 : vector<256x64xf32>
    %28 = vector.extract_strided_slice %27 {offsets = [0, 0], sizes = [256, 32], strides = [1, 1]} : vector<256x64xf32> to vector<256x32xf32>
    %cst_16 = arith.constant 0.000000e+00 : f32
    %29 = vector.broadcast %cst_16 : f32 to vector<256x32xf32>
    %30 = arith.maximumf %28, %29 : vector<256x32xf32>
    %31 = vector.extract_strided_slice %27 {offsets = [0, 32], sizes = [256, 32], strides = [1, 1]} : vector<256x64xf32> to vector<256x32xf32>
    %c17_i32 = arith.constant 17 : i32
    %32 = tpu.dynamic_rotate %30 by %c17_i32 dim 0 : vector<256x32xf32>, i32 -> vector<256x32xf32>
    %c0_17 = arith.constant 0 : index
    %c0_18 = arith.constant 0 : index
    %33 = vector.load %arg14[%c0_17, %c0_18] : memref<256x9xf32, #tpu.memory_space<vmem>>, vector<256x1xf32>
    %34 = vector.broadcast %33 : vector<256x1xf32> to vector<256x32xf32>
    %35 = arith.mulf %32, %34 : vector<256x32xf32>
    %c16_i32 = arith.constant 16 : i32
    %36 = tpu.dynamic_rotate %30 by %c16_i32 dim 0 : vector<256x32xf32>, i32 -> vector<256x32xf32>
    %c0_19 = arith.constant 0 : index
    %c1 = arith.constant 1 : index
    %37 = vector.load %arg14[%c0_19, %c1] : memref<256x9xf32, #tpu.memory_space<vmem>>, vector<256x1xf32>
    %38 = vector.broadcast %37 : vector<256x1xf32> to vector<256x32xf32>
    %39 = arith.mulf %36, %38 : vector<256x32xf32>
    %c15_i32 = arith.constant 15 : i32
    %40 = tpu.dynamic_rotate %30 by %c15_i32 dim 0 : vector<256x32xf32>, i32 -> vector<256x32xf32>
    %c0_20 = arith.constant 0 : index
    %c2 = arith.constant 2 : index
    %41 = vector.load %arg14[%c0_20, %c2] : memref<256x9xf32, #tpu.memory_space<vmem>>, vector<256x1xf32>
    %42 = vector.broadcast %41 : vector<256x1xf32> to vector<256x32xf32>
    %43 = arith.mulf %40, %42 : vector<256x32xf32>
    %44 = tpu.concatenate %35, %39, %43 in 1 : vector<256x32xf32>, vector<256x32xf32>, vector<256x32xf32> -> vector<256x96xf32>
    %c0_21 = arith.constant 0 : index
    %c0_22 = arith.constant 0 : index
    %c0_23 = arith.constant 0 : index
    %45 = vector.load %arg5[%c0_21, %c0_22, %c0_23] : memref<3x96x32xf32, #tpu.memory_space<vmem>>, vector<1x96x32xf32>
    %46 = vector.shape_cast %45 : vector<1x96x32xf32> to vector<96x32xf32>
    %cst_24 = arith.constant dense<0.000000e+00> : vector<256x32xf32>
    %47 = tpu.matmul %44, %46, %cst_24 {dimension_numbers = #tpu.dot_dimension_numbers<[1], [0], [0], [1], [0, 0, 1, 1], [], []>} : vector<256x96xf32>, vector<96x32xf32>, vector<256x32xf32> -> vector<256x32xf32>
    %c1_i32 = arith.constant 1 : i32
    %48 = tpu.dynamic_rotate %30 by %c1_i32 dim 0 : vector<256x32xf32>, i32 -> vector<256x32xf32>
    %c0_25 = arith.constant 0 : index
    %c3 = arith.constant 3 : index
    %49 = vector.load %arg14[%c0_25, %c3] : memref<256x9xf32, #tpu.memory_space<vmem>>, vector<256x1xf32>
    %50 = vector.broadcast %49 : vector<256x1xf32> to vector<256x32xf32>
    %51 = arith.mulf %48, %50 : vector<256x32xf32>
    %c255_i32 = arith.constant 255 : i32
    %52 = tpu.dynamic_rotate %30 by %c255_i32 dim 0 : vector<256x32xf32>, i32 -> vector<256x32xf32>
    %c0_26 = arith.constant 0 : index
    %c5 = arith.constant 5 : index
    %53 = vector.load %arg14[%c0_26, %c5] : memref<256x9xf32, #tpu.memory_space<vmem>>, vector<256x1xf32>
    %54 = vector.broadcast %53 : vector<256x1xf32> to vector<256x32xf32>
    %55 = arith.mulf %52, %54 : vector<256x32xf32>
    %56 = tpu.concatenate %51, %30, %55 in 1 : vector<256x32xf32>, vector<256x32xf32>, vector<256x32xf32> -> vector<256x96xf32>
    %c1_27 = arith.constant 1 : index
    %c0_28 = arith.constant 0 : index
    %c0_29 = arith.constant 0 : index
    %57 = vector.load %arg5[%c1_27, %c0_28, %c0_29] : memref<3x96x32xf32, #tpu.memory_space<vmem>>, vector<1x96x32xf32>
    %58 = vector.shape_cast %57 : vector<1x96x32xf32> to vector<96x32xf32>
    %cst_30 = arith.constant dense<0.000000e+00> : vector<256x32xf32>
    %59 = tpu.matmul %56, %58, %cst_30 {dimension_numbers = #tpu.dot_dimension_numbers<[1], [0], [0], [1], [0, 0, 1, 1], [], []>} : vector<256x96xf32>, vector<96x32xf32>, vector<256x32xf32> -> vector<256x32xf32>
    %60 = arith.addf %47, %59 : vector<256x32xf32>
    %c241_i32 = arith.constant 241 : i32
    %61 = tpu.dynamic_rotate %30 by %c241_i32 dim 0 : vector<256x32xf32>, i32 -> vector<256x32xf32>
    %c0_31 = arith.constant 0 : index
    %c6 = arith.constant 6 : index
    %62 = vector.load %arg14[%c0_31, %c6] : memref<256x9xf32, #tpu.memory_space<vmem>>, vector<256x1xf32>
    %63 = vector.broadcast %62 : vector<256x1xf32> to vector<256x32xf32>
    %64 = arith.mulf %61, %63 : vector<256x32xf32>
    %c240_i32 = arith.constant 240 : i32
    %65 = tpu.dynamic_rotate %30 by %c240_i32 dim 0 : vector<256x32xf32>, i32 -> vector<256x32xf32>
    %c0_32 = arith.constant 0 : index
    %c7 = arith.constant 7 : index
    %66 = vector.load %arg14[%c0_32, %c7] : memref<256x9xf32, #tpu.memory_space<vmem>>, vector<256x1xf32>
    %67 = vector.broadcast %66 : vector<256x1xf32> to vector<256x32xf32>
    %68 = arith.mulf %65, %67 : vector<256x32xf32>
    %c239_i32 = arith.constant 239 : i32
    %69 = tpu.dynamic_rotate %30 by %c239_i32 dim 0 : vector<256x32xf32>, i32 -> vector<256x32xf32>
    %c0_33 = arith.constant 0 : index
    %c8 = arith.constant 8 : index
    %70 = vector.load %arg14[%c0_33, %c8] : memref<256x9xf32, #tpu.memory_space<vmem>>, vector<256x1xf32>
    %71 = vector.broadcast %70 : vector<256x1xf32> to vector<256x32xf32>
    %72 = arith.mulf %69, %71 : vector<256x32xf32>
    %73 = tpu.concatenate %64, %68, %72 in 1 : vector<256x32xf32>, vector<256x32xf32>, vector<256x32xf32> -> vector<256x96xf32>
    %c2_34 = arith.constant 2 : index
    %c0_35 = arith.constant 0 : index
    %c0_36 = arith.constant 0 : index
    %74 = vector.load %arg5[%c2_34, %c0_35, %c0_36] : memref<3x96x32xf32, #tpu.memory_space<vmem>>, vector<1x96x32xf32>
    %75 = vector.shape_cast %74 : vector<1x96x32xf32> to vector<96x32xf32>
    %cst_37 = arith.constant dense<0.000000e+00> : vector<256x32xf32>
    %76 = tpu.matmul %73, %75, %cst_37 {dimension_numbers = #tpu.dot_dimension_numbers<[1], [0], [0], [1], [0, 0, 1, 1], [], []>} : vector<256x96xf32>, vector<96x32xf32>, vector<256x32xf32> -> vector<256x32xf32>
    %77 = arith.addf %60, %76 : vector<256x32xf32>
    %c0_38 = arith.constant 0 : index
    %c0_39 = arith.constant 0 : index
    %78 = vector.load %arg12[%c0_38, %c0_39] : memref<32x32xf32, #tpu.memory_space<vmem>>, vector<32x32xf32>
    %c0_40 = arith.constant 0 : index
    %c0_41 = arith.constant 0 : index
    %79 = vector.load %arg6[%c0_40, %c0_41] : memref<1x32xf32, #tpu.memory_space<vmem>>, vector<1x32xf32>
    %c0_42 = arith.constant 0 : index
    %c0_43 = arith.constant 0 : index
    %80 = vector.load %arg7[%c0_42, %c0_43] : memref<1x32xf32, #tpu.memory_space<vmem>>, vector<1x32xf32>
    %cst_44 = arith.constant dense<0.000000e+00> : vector<32xf32>
    %81 = vector.multi_reduction <add>, %77, %cst_44 [0] : vector<256x32xf32> to vector<32xf32>
    %82 = vector.shape_cast %81 : vector<32xf32> to vector<1x32xf32>
    %83 = arith.mulf %77, %77 : vector<256x32xf32>
    %cst_45 = arith.constant dense<0.000000e+00> : vector<32xf32>
    %84 = vector.multi_reduction <add>, %83, %cst_45 [0] : vector<256x32xf32> to vector<32xf32>
    %85 = vector.shape_cast %84 : vector<32xf32> to vector<1x32xf32>
    %cst_46 = arith.constant dense<0.000000e+00> : vector<1x32xf32>
    %86 = tpu.matmul %82, %78, %cst_46 {dimension_numbers = #tpu.dot_dimension_numbers<[1], [0], [0], [1], [0, 0, 1, 1], [], []>} : vector<1x32xf32>, vector<32x32xf32>, vector<1x32xf32> -> vector<1x32xf32>
    %cst_47 = arith.constant dense<0.000000e+00> : vector<1x32xf32>
    %87 = tpu.matmul %85, %78, %cst_47 {dimension_numbers = #tpu.dot_dimension_numbers<[1], [0], [0], [1], [0, 0, 1, 1], [], []>} : vector<1x32xf32>, vector<32x32xf32>, vector<1x32xf32> -> vector<1x32xf32>
    %88 = arith.mulf %86, %86 : vector<1x32xf32>
    %89 = arith.subf %87, %88 : vector<1x32xf32>
    %cst_48 = arith.constant 0.000000e+00 : f32
    %90 = vector.broadcast %cst_48 : f32 to vector<1x32xf32>
    %91 = arith.maximumf %89, %90 : vector<1x32xf32>
    %cst_49 = arith.constant 9.99999974E-6 : f32
    %92 = vector.broadcast %cst_49 : f32 to vector<1x32xf32>
    %93 = arith.addf %91, %92 : vector<1x32xf32>
    %94 = math.rsqrt %93 : vector<1x32xf32>
    %95 = arith.mulf %94, %79 : vector<1x32xf32>
    %96 = arith.mulf %86, %95 : vector<1x32xf32>
    %97 = arith.subf %80, %96 : vector<1x32xf32>
    %98 = vector.broadcast %95 : vector<1x32xf32> to vector<256x32xf32>
    %99 = arith.mulf %77, %98 : vector<256x32xf32>
    %100 = vector.broadcast %97 : vector<1x32xf32> to vector<256x32xf32>
    %101 = arith.addf %99, %100 : vector<256x32xf32>
    %cst_50 = arith.constant 0.000000e+00 : f32
    %102 = vector.broadcast %cst_50 : f32 to vector<256x32xf32>
    %103 = arith.maximumf %101, %102 : vector<256x32xf32>
    %c0_51 = arith.constant 0 : index
    %c0_52 = arith.constant 0 : index
    %104 = vector.load %arg8[%c0_51, %c0_52] : memref<32x32xf32, #tpu.memory_space<vmem>>, vector<32x32xf32>
    %cst_53 = arith.constant dense<0.000000e+00> : vector<256x32xf32>
    %105 = tpu.matmul %103, %104, %cst_53 {dimension_numbers = #tpu.dot_dimension_numbers<[1], [0], [0], [1], [0, 0, 1, 1], [], []>} : vector<256x32xf32>, vector<32x32xf32>, vector<256x32xf32> -> vector<256x32xf32>
    %c0_54 = arith.constant 0 : index
    %c0_55 = arith.constant 0 : index
    %106 = vector.load %arg13[%c0_54, %c0_55] : memref<32x32xf32, #tpu.memory_space<vmem>>, vector<32x32xf32>
    %c0_56 = arith.constant 0 : index
    %c0_57 = arith.constant 0 : index
    %107 = vector.load %arg9[%c0_56, %c0_57] : memref<1x32xf32, #tpu.memory_space<vmem>>, vector<1x32xf32>
    %c0_58 = arith.constant 0 : index
    %c0_59 = arith.constant 0 : index
    %108 = vector.load %arg10[%c0_58, %c0_59] : memref<1x32xf32, #tpu.memory_space<vmem>>, vector<1x32xf32>
    %cst_60 = arith.constant dense<0.000000e+00> : vector<32xf32>
    %109 = vector.multi_reduction <add>, %105, %cst_60 [0] : vector<256x32xf32> to vector<32xf32>
    %110 = vector.shape_cast %109 : vector<32xf32> to vector<1x32xf32>
    %111 = arith.mulf %105, %105 : vector<256x32xf32>
    %cst_61 = arith.constant dense<0.000000e+00> : vector<32xf32>
    %112 = vector.multi_reduction <add>, %111, %cst_61 [0] : vector<256x32xf32> to vector<32xf32>
    %113 = vector.shape_cast %112 : vector<32xf32> to vector<1x32xf32>
    %cst_62 = arith.constant dense<0.000000e+00> : vector<1x32xf32>
    %114 = tpu.matmul %110, %106, %cst_62 {dimension_numbers = #tpu.dot_dimension_numbers<[1], [0], [0], [1], [0, 0, 1, 1], [], []>} : vector<1x32xf32>, vector<32x32xf32>, vector<1x32xf32> -> vector<1x32xf32>
    %cst_63 = arith.constant dense<0.000000e+00> : vector<1x32xf32>
    %115 = tpu.matmul %113, %106, %cst_63 {dimension_numbers = #tpu.dot_dimension_numbers<[1], [0], [0], [1], [0, 0, 1, 1], [], []>} : vector<1x32xf32>, vector<32x32xf32>, vector<1x32xf32> -> vector<1x32xf32>
    %116 = arith.mulf %114, %114 : vector<1x32xf32>
    %117 = arith.subf %115, %116 : vector<1x32xf32>
    %cst_64 = arith.constant 0.000000e+00 : f32
    %118 = vector.broadcast %cst_64 : f32 to vector<1x32xf32>
    %119 = arith.maximumf %117, %118 : vector<1x32xf32>
    %cst_65 = arith.constant 9.99999974E-6 : f32
    %120 = vector.broadcast %cst_65 : f32 to vector<1x32xf32>
    %121 = arith.addf %119, %120 : vector<1x32xf32>
    %122 = math.rsqrt %121 : vector<1x32xf32>
    %123 = arith.mulf %122, %107 : vector<1x32xf32>
    %124 = arith.mulf %114, %123 : vector<1x32xf32>
    %125 = arith.subf %108, %124 : vector<1x32xf32>
    %126 = vector.broadcast %123 : vector<1x32xf32> to vector<256x32xf32>
    %127 = arith.mulf %105, %126 : vector<256x32xf32>
    %128 = vector.broadcast %125 : vector<1x32xf32> to vector<256x32xf32>
    %129 = arith.addf %127, %128 : vector<256x32xf32>
    %130 = arith.addf %129, %31 : vector<256x32xf32>
    %131 = vector.shape_cast %130 : vector<256x32xf32> to vector<1x256x32xf32>
    %c0_66 = arith.constant 0 : index
    %c0_67 = arith.constant 0 : index
    %c0_68 = arith.constant 0 : index
    %132 = vector.load %arg15[%c0_66, %c0_67, %c0_68] : memref<1x256x32xf32, #tpu.memory_space<vmem>>, vector<1x256x32xf32>
    tpu.vector_store %arg15[%c0_66, %c0_67, %c0_68], %131 {strides = array<i32>} : memref<1x256x32xf32, #tpu.memory_space<vmem>>, vector<1x256x32xf32>,
    return
  }
  func.func @transform_0(%arg0: i32) -> (i32, i32, i32) {
    %c0_i32 = arith.constant 0 : i32
    %c0_i32_0 = arith.constant 0 : i32
    %c0_i32_1 = arith.constant 0 : i32
    return %arg0, %c0_i32, %c0_i32_0 : i32, i32, i32
  }
  func.func @transform_1(%arg0: i32) -> (i32, i32) {
    %c0_i32 = arith.constant 0 : i32
    %c0_i32_0 = arith.constant 0 : i32
    %c0_i32_1 = arith.constant 0 : i32
    return %c0_i32, %c0_i32_0 : i32, i32
  }
  func.func @transform_2(%arg0: i32) -> (i32, i32) {
    %c0_i32 = arith.constant 0 : i32
    %c0_i32_0 = arith.constant 0 : i32
    %c0_i32_1 = arith.constant 0 : i32
    return %c0_i32, %c0_i32_0 : i32, i32
  }
  func.func @transform_3(%arg0: i32) -> (i32, i32) {
    %c0_i32 = arith.constant 0 : i32
    %c0_i32_0 = arith.constant 0 : i32
    %c0_i32_1 = arith.constant 0 : i32
    return %c0_i32, %c0_i32_0 : i32, i32
  }
  func.func @transform_4(%arg0: i32) -> (i32, i32, i32) {
    %c0_i32 = arith.constant 0 : i32
    %c0_i32_0 = arith.constant 0 : i32
    %c0_i32_1 = arith.constant 0 : i32
    %c0_i32_2 = arith.constant 0 : i32
    return %c0_i32, %c0_i32_0, %c0_i32_1 : i32, i32, i32
  }
  func.func @transform_5(%arg0: i32) -> (i32, i32) {
    %c0_i32 = arith.constant 0 : i32
    %c0_i32_0 = arith.constant 0 : i32
    %c0_i32_1 = arith.constant 0 : i32
    return %c0_i32, %c0_i32_0 : i32, i32
  }
  func.func @transform_6(%arg0: i32) -> (i32, i32) {
    %c0_i32 = arith.constant 0 : i32
    %c0_i32_0 = arith.constant 0 : i32
    %c0_i32_1 = arith.constant 0 : i32
    return %c0_i32, %c0_i32_0 : i32, i32
  }
  func.func @transform_7(%arg0: i32) -> (i32, i32) {
    %c0_i32 = arith.constant 0 : i32
    %c0_i32_0 = arith.constant 0 : i32
    %c0_i32_1 = arith.constant 0 : i32
    return %c0_i32, %c0_i32_0 : i32, i32
  }
  func.func @transform_8(%arg0: i32) -> (i32, i32) {
    %c0_i32 = arith.constant 0 : i32
    %c0_i32_0 = arith.constant 0 : i32
    %c0_i32_1 = arith.constant 0 : i32
    return %c0_i32, %c0_i32_0 : i32, i32
  }
  func.func @transform_9(%arg0: i32) -> (i32, i32) {
    %c0_i32 = arith.constant 0 : i32
    %c0_i32_0 = arith.constant 0 : i32
    %c0_i32_1 = arith.constant 0 : i32
    return %c0_i32, %c0_i32_0 : i32, i32
  }
  func.func @transform_10(%arg0: i32) -> (i32, i32) {
    %c0_i32 = arith.constant 0 : i32
    %c0_i32_0 = arith.constant 0 : i32
    %c0_i32_1 = arith.constant 0 : i32
    return %c0_i32, %c0_i32_0 : i32, i32
  }
  func.func @transform_11(%arg0: i32) -> (i32, i32) {
    %c0_i32 = arith.constant 0 : i32
    %c0_i32_0 = arith.constant 0 : i32
    %c0_i32_1 = arith.constant 0 : i32
    return %c0_i32, %c0_i32_0 : i32, i32
  }
  func.func @transform_12(%arg0: i32) -> (i32, i32) {
    %c0_i32 = arith.constant 0 : i32
    %c0_i32_0 = arith.constant 0 : i32
    %c0_i32_1 = arith.constant 0 : i32
    return %c0_i32, %c0_i32_0 : i32, i32
  }
  func.func @transform_13(%arg0: i32) -> (i32, i32) {
    %c0_i32 = arith.constant 0 : i32
    %c0_i32_0 = arith.constant 0 : i32
    %c0_i32_1 = arith.constant 0 : i32
    return %c0_i32, %c0_i32_0 : i32, i32
  }
  func.func @transform_14(%arg0: i32) -> (i32, i32, i32) {
    %c0_i32 = arith.constant 0 : i32
    %c0_i32_0 = arith.constant 0 : i32
    %c0_i32_1 = arith.constant 0 : i32
    return %arg0, %c0_i32, %c0_i32_0 : i32, i32, i32
  }
}

</mosaic_0001>

<bundles_post_ra>
// kernel: resblock_forward.1
= control target key start
LH: loop header
LB: loop body
LE: loop exit
PB: predicated region body
PF: predicated region fallthrough
CT: control target
= control target key end

     0   :  { %s12066_s0 = inlined_call_operand.vmem [shape: f32[2,256,16], index: 0, kind: input, shape index: {}]   ;;  %s12067_s1 = inlined_call_operand.vmem [shape: f32[16,64], index: 1, kind: input, shape index: {}]   ;;  %s12068_s2 = inlined_call_operand.vmem [shape: f32[1,64], index: 2, kind: input, shape index: {}]   ;;  %s12069_s3 = inlined_call_operand.vmem [shape: f32[1,64], index: 3, kind: input, shape index: {}]   ;;  %s12070_s4 = inlined_call_operand.vmem [shape: f32[3,96,32], index: 4, kind: input, shape index: {}]   ;;  %s12071_s5 = inlined_call_operand.vmem [shape: f32[1,32], index: 5, kind: input, shape index: {}]   ;;  %s12072_s6 = inlined_call_operand.vmem [shape: f32[1,32], index: 6, kind: input, shape index: {}]   ;;  %s12073_s7 = inlined_call_operand.vmem [shape: f32[32,32], index: 7, kind: input, shape index: {}]   ;;  %s12074_s8 = inlined_call_operand.vmem [shape: f32[1,32], index: 8, kind: input, shape index: {}]   ;;  %s12075_s9 = inlined_call_operand.vmem [shape: f32[1,32], index: 9, kind: input, shape index: {}]   ;;  %s12076_s10 = inlined_call_operand.vmem [shape: f32[64,64], index: 10, kind: input, shape index: {}]   ;;  %s12077_s11 = inlined_call_operand.vmem [shape: f32[32,32], index: 11, kind: input, shape index: {}, may-alias: {11,12}]   ;;  %s12078_s12 = inlined_call_operand.vmem [shape: f32[32,32], index: 12, kind: input, shape index: {}, may-alias: {11,12}]   ;;  %s12079_s13 = inlined_call_operand.vmem [shape: f32[256,9], index: 13, kind: input, shape index: {}]   ;;  %s12080_s14 = inlined_call_operand.hbm [shape: f32[2,256,32], index: 14, kind: output, shape index: {}]  }
   0x1   :  { %12323 = sst [smem:[#allocation256_spill]] %s12066_s0 }
   0x2   :  { %12324 = sst [smem:[#allocation257_spill]] %s12067_s1 }
   0x3   :  { %12325 = sst [smem:[#allocation258_spill]] %s12068_s2 }
   0x4   :  { %19 = vsyncpa [#allocation3], 0 }
   0x5   :  { %21 = vsyncpa [#allocation3 + $0x1], 0  ;;  %s7586_s29 = smov 0   ;;  %s7588_s30 = smov 0  }
   0x6   :  { %s7590_s15 = smov 0   ;;  %s7592_s16 = smov 0  }
   0x7 LB: > { %s7607_s17 = sadd.s32 4294967295, %s7492_s16   ;;  %s6167_s18 = sadd.s32 4294967294, %s7492_s16   ;;  %s7492_s16 = sphi %s7592_s16, %s13058_s16   ;;  %s7488_s15 = sphi %s7590_s15, %s13057_s15   ;;  %s7484_s30 = sphi %s7588_s30, %s13056_s30   ;;  %s7480_s29 = sphi %s7586_s29, %s13055_s29  }
   0x8   : > { %s7611_s19 = sadd.s32 1, %s7492_s16   ;;  %s333_s20 = sadd.s32 1, %s7488_s15 }
   0x9   : > { %s330_s21 = ssub.s32 %s7492_s16, %s7611_s19  ;;  %p343_p0 = scmp.ne.s32.totalorder %s7488_s15, %s7484_s30 }
   0xa   : > { %p331_p1 = scmp.eq.s32.totalorder %s330_s21, 0  ;;  %p344_p2 = scmp.eq.s32.totalorder %s7607_s17, 1 }
   0xb   : > { %p349_p3 = scmp.ne.s32.totalorder %s7484_s30, %s7480_s29  ;;  %p350_p4 = scmp.eq.s32.totalorder %s6167_s18, 1 }
   0xc   : > { %s7622_s22 = scalar_select %p331_p1, %s7488_s15, %s333_s20  }
   0xd   : > { %p7624_p5 = por %p344_p2, %p343_p0  ;;  %p7628_p6 = por %p350_p4, %p349_p3 }
   0xe   : > { %p6170_p7 = scmp.ge.s32.totalorder %s7492_s16, 1  ;;  %p415_p8 = scmp.lt.s32.totalorder %s7492_s16, 3 }
  0x10   : > { %p416_p9 = pnand %p6170_p7, %p415_p8 }
  0x12   : > { %419 = sbr.rel (%p416_p9) target bundleno = 2470 (0x9a6), region = 76 }
  0x19   : > { %v7637_v0 = vld [vmem:[%s12079_s13 + $0x10] sm:$0xff]  ;;  %s12328_s1 = sld [smem:[#allocation257_spill]]  ;;  %p461_p10 = scmp.lt.s32.totalorder %s7607_s17, 1  ;;  %v7494_v3 = vmov 0   ;;  %v7651_v5 = vld [vmem:[%s12079_s13 + $0x18] sm:$0xff]  ;;  %vm500_vm0 = vcmask 130048  }
  0x1a   : > { %7281 = vset.pattern.permute.xlu1 %v7494_v3  ;;  %7280 = vset.pattern.permute.xlu0 %v7494_v3  ;;  %s12329_s0 = sld [smem:[#allocation256_spill]]  ;;  %v7666_v9 = vld [vmem:[%s12079_s13 + $0x28] sm:$0xff]  ;;  %v7676_v12 = vld [vmem:[%s12079_s13 + $0x38] sm:$0xff]  ;;  %v7696_v18 = vld [vmem:[%s12079_s13] sm:$0xff]  ;;  %v12085_v59 = vmov 1   ;;  %vm7499_vm1 = vmmov 0  }
  0x1b   : > { %1374 = vperm.xlu1 %7281, %v7637_v0   ;;  %s462_s21 = scalar_select %p461_p10, %s7607_s17, 1  ;;  %v7686_v15 = vld [vmem:[%s12079_s13 + $0x48] sm:$0xff]  ;;  %v7701_v19 = vld [vmem:[%s12079_s13 + $0x58] sm:$0xff]  ;;  %1364 = vperm.xlu0 %7280, %v7696_v18   ;;  %v7728_v26 = vld [vmem:[%s12079_s13 + $0x20] sm:$0xff]  ;;  %vm832_vm2 = vcmask 523264   ;;  %vm2195_vm5 = vcmask 261120  }
  0x1c   : > { %v7712_v22 = vld [vmem:[%s12079_s13 + $0x8] sm:$0xff]  ;;  %v7733_v27 = vld [vmem:[%s12079_s13 + $0x78] sm:$0xff]  ;;  %v7744_v30 = vld [vmem:[%s12079_s13 + $0x30] sm:$0xff]  ;;  %s12457_s2 = sld [smem:[#allocation258_spill]]  ;;  %s12165_s25 = smov 64   ;;  %vm2925_vm6 = vcmask 785408  }
  0x1d   : > { %s6369_s27 = sshll.u32 %s462_s21, 8  ;;  %v7717_v23 = vld [vmem:[%s12079_s13 + $0x68] sm:$0xff]  ;;  %v7760_v34 = vld [vmem:[%s12079_s13 + $0x40] sm:$0xff]  ;;  %v7765_v35 = vld [vmem:[%s12079_s13 + $0x98] sm:$0xff]  ;;  %s12286_s21 = smov 32  }
  0x1e   : > { %v7749_v31 = vld [vmem:[%s12079_s13 + $0x88] sm:$0xff]  ;;  %v7776_v38 = vld [vmem:[%s12079_s13 + $0x50] sm:$0xff]  ;;  %v7792_v42 = vld [vmem:[%s12079_s13 + $0x60] sm:$0xff]  ;;  %s12720_s28 = smov 32   ;;  %s7507_s26 = smov 96  }
  0x1f   : > { %v498_v1 = vld [vmem:[%s12328_s1] sm:$0xff]  ;;  %v499_v2 = vld [vmem:[%s12328_s1 + $0x8] sm:$0xff]  ;;  %1379 = vperm.xlu1 %7281, %v7651_v5   ;;  %1369 = vperm.xlu0 %7280, %v7712_v22   ;;  %v7797_v43 = vld [vmem:[%s12079_s13 + $0xb8] sm:$0xff] }
  0x20   : > { %v7017_v4 = vpack.c.bf16 %v499_v2, %v498_v1  ;;  %s7656_s20 = scalar_lea.vmem %s12329_s0, %s6369_s27  ;;  %v7781_v39 = vld [vmem:[%s12079_s13 + $0xa8] sm:$0xff]  ;;  %v7818_v49 = vld [vmem:[%s12079_s13 + $0xd8] sm:$0xff]  ;;  %v7856_v60 = vld [vmem:[%s12079_s13 + $0x70] sm:$0xff]  ;;  %v7496_v2 = vmov 5   ;;  %s458_s0 = sand.u32 1, %s7484_s30  }
  0x21   : > { %v466_v6 = vld [vmem:[%s7656_s20] sm:$0xff]  ;;  %v467_v7 = vld [vmem:[%s7656_s20 + $0x8] sm:$0xff]  ;;  %v468_v8 = vld [vmem:[%s7656_s20 + $0x10] sm:$0xff]  ;;  %s12025_s27 = scalar_lea.sflag [#allocation3], %s458_s0 }
  0x22   : > { %7018 = vmatprep.subr.bf16.mxu0 %v7017_v4  ;;  %6615 = vmatprep.mubr.msk.f32.mxu0 %vm500_vm0, %v466_v6  ;;  %v469_v10 = vld [vmem:[%s7656_s20 + $0x18] sm:$0xff]  ;;  %v470_v11 = vld [vmem:[%s7656_s20 + $0x20] sm:$0xff]  ;;  %v471_v13 = vld [vmem:[%s7656_s20 + $0x28] sm:$0xff] }
  0x23   : > { %7020 = vmatpush3.bf16.msra.mxu0 %v7017_v4  ;;  %1389 = vperm.xlu1 %7281, %v7666_v9   ;;  %v472_v14 = vld [vmem:[%s7656_s20 + $0x30] sm:$0xff]  ;;  %v473_v16 = vld [vmem:[%s7656_s20 + $0x38] sm:$0xff]  ;;  %v474_v17 = vld [vmem:[%s7656_s20 + $0x40] sm:$0xff] }
  0x24   : > { %v475_v20 = vld [vmem:[%s7656_s20 + $0x48] sm:$0xff]  ;;  %v476_v21 = vld [vmem:[%s7656_s20 + $0x50] sm:$0xff]  ;;  %v477_v24 = vld [vmem:[%s7656_s20 + $0x58] sm:$0xff]  ;;  %1384 = vperm.xlu0 %7280, %v7728_v26  }
  0x25   : > { %v478_v25 = vld [vmem:[%s7656_s20 + $0x60] sm:$0xff]  ;;  %v479_v28 = vld [vmem:[%s7656_s20 + $0x68] sm:$0xff]  ;;  %v480_v29 = vld [vmem:[%s7656_s20 + $0x70] sm:$0xff] }
  0x26   : > { %6616 = vmatmul.mubr.msk.f32.vlgmr.msra.gmra.mrb[0].mxu0 %vm500_vm0, %v467_v7  ;;  %v481_v32 = vld [vmem:[%s7656_s20 + $0x78] sm:$0xff]  ;;  %v482_v33 = vld [vmem:[%s7656_s20 + $0x80] sm:$0xff]  ;;  %v483_v36 = vld [vmem:[%s7656_s20 + $0x88] sm:$0xff] }
  0x27   : > { %6618 = vmatprep.mubr.msk.f32.mxu0 %vm500_vm0, %v468_v8  ;;  %1399 = vperm.xlu1 %7281, %v7676_v12   ;;  %v484_v37 = vld [vmem:[%s7656_s20 + $0x90] sm:$0xff]  ;;  %v485_v40 = vld [vmem:[%s7656_s20 + $0x98] sm:$0xff]  ;;  %v486_v41 = vld [vmem:[%s7656_s20 + $0xa0] sm:$0xff] }
  0x28   : > { %1394 = vperm.xlu0 %7280, %v7744_v30   ;;  %v487_v44 = vld [vmem:[%s7656_s20 + $0xa8] sm:$0xff]  ;;  %v488_v45 = vld [vmem:[%s7656_s20 + $0xb0] sm:$0xff]  ;;  %v489_v47 = vld [vmem:[%s7656_s20 + $0xb8] sm:$0xff] }
  0x29   : > { %v7808_v46 = vld [vmem:[%s12079_s13 + $0xc8] sm:$0xff]  ;;  %v490_v48 = vld [vmem:[%s7656_s20 + $0xc0] sm:$0xff]  ;;  %v492_v51 = vld [vmem:[%s7656_s20 + $0xd0] sm:$0xff] }
  0x2a   : > { %6619 = vmatmul.mubr.msk.f32.gmra.mrb[2].mxu0 %vm500_vm0, %v469_v10  ;;  %v491_v50 = vld [vmem:[%s7656_s20 + $0xc8] sm:$0xff]  ;;  %v493_v53 = vld [vmem:[%s7656_s20 + $0xd8] sm:$0xff]  ;;  %v494_v54 = vld [vmem:[%s7656_s20 + $0xe0] sm:$0xff] }
  0x2b   : > { %6621 = vmatprep.mubr.msk.f32.mxu0 %vm500_vm0, %v470_v11  ;;  %1409 = vperm.xlu1 %7281, %v7686_v15   ;;  %v7828_v52 = vld [vmem:[%s12079_s13 + $0xe8] sm:$0xff]  ;;  %v7838_v55 = vld [vmem:[%s12079_s13 + $0xf8] sm:$0xff]  ;;  %v496_v57 = vld [vmem:[%s7656_s20 + $0xf0] sm:$0xff] }
  0x2c   : > { %1404 = vperm.xlu0 %7280, %v7760_v34   ;;  %v495_v56 = vld [vmem:[%s7656_s20 + $0xe8] sm:$0xff]  ;;  %v497_v58 = vld [vmem:[%s7656_s20 + $0xf8] sm:$0xff]  ;;  %v7863_v61 = vld [vmem:[%s12079_s13 + $0x80] sm:$0xff]  ;;  %s12582_s20 = smov 64  }
  0x2d   : > { %v7870_v62 = vld [vmem:[%s12079_s13 + $0x90] sm:$0xff]  ;;  %v7877_v63 = vld [vmem:[%s12079_s13 + $0xa0] sm:$0xff] }
  0x2e   : > { %6622 = vmatmul.mubr.msk.f32.gmra.mrb[4].mxu0 %vm500_vm0, %v471_v13  ;;  %v7884_v1 = vld [vmem:[%s12079_s13 + $0xb0] sm:$0xff]  ;;  %v7891_v3 = vld [vmem:[%s12079_s13 + $0xc0] sm:$0xff] }
  0x2f   : > { %6624 = vmatprep.mubr.msk.f32.mxu0 %vm500_vm0, %v472_v14  ;;  %1419 = vperm.xlu1 %7281, %v7701_v19   ;;  %v7898_v4 = vld [vmem:[%s12079_s13 + $0xd0] sm:$0xff]  ;;  %v7905_v6 = vld [vmem:[%s12079_s13 + $0xe0] sm:$0xff] }
  0x30   : > { %1414 = vperm.xlu0 %7280, %v7776_v38   ;;  %v7912_v7 = vld [vmem:[%s12079_s13 + $0xf0] sm:$0xff] }
  0x32   : > { %6625 = vmatmul.mubr.msk.f32.gmra.mrb[6].mxu0 %vm500_vm0, %v473_v16 }
  0x33   : > { %6627 = vmatprep.mubr.msk.f32.mxu0 %vm500_vm0, %v474_v17  ;;  %1429 = vperm.xlu1 %7281, %v7717_v23   ;;  %v822_v17 = vld [vmem:[%s12076_s10] sm:$0xff] }
  0x34   : > { %1424 = vperm.xlu0 %7280, %v7792_v42  }
  0x36   : > { %6628 = vmatmul.mubr.msk.f32.gmra.mrb[8].mxu0 %vm500_vm0, %v475_v20  ;;  %v823_v20 = vld [vmem:[%s12076_s10 + $0x8] sm:$0xff] }
  0x37   : > { %6630 = vmatprep.mubr.msk.f32.mxu0 %vm500_vm0, %v476_v21  ;;  %1439 = vperm.xlu1 %7281, %v7733_v27   ;;  %v7954_v21 = vpack.c.bf16 %v823_v20, %v822_v17 }
  0x38   : > { %1434 = vperm.xlu0 %7280, %v7856_v60  }
  0x3a   : > { %6631 = vmatmul.mubr.msk.f32.gmra.mrb[10].mxu0 %vm500_vm0, %v477_v24 }
  0x3b   : > { %6633 = vmatprep.mubr.msk.f32.mxu0 %vm500_vm0, %v478_v25  ;;  %1449 = vperm.xlu1 %7281, %v7749_v31   ;;  %v12081_v25 = vmov 0.0|0.0  }
  0x3c   : > { %1444 = vperm.xlu0 %7280, %v7863_v61   ;;  %7021 = vmatprep.subr.bf16.mxu1 %v12081_v25 }
  0x3d   : > { %7023 = vmatpush3.bf16.msra.mxu1 %v7954_v21 }
  0x3e   : > { %6634 = vmatmul.mubr.msk.f32.gmra.mrb[12].mxu0 %vm500_vm0, %v479_v28  ;;  %7024 = vmatprep.subr.bf16.mxu1 %v12081_v25  ;;  %v824_v28 = vld [vmem:[%s12076_s10 + $0x10] sm:$0xff] }
  0x3f   : > { %6636 = vmatprep.mubr.msk.f32.mxu0 %vm500_vm0, %v480_v29  ;;  %1459 = vperm.xlu1 %7281, %v7765_v35   ;;  %v825_v29 = vld [vmem:[%s12076_s10 + $0x18] sm:$0xff] }
  0x40   : > { %1454 = vperm.xlu0 %7280, %v7870_v62  }
  0x42   : > { %6637 = vmatmul.mubr.msk.f32.gmra.mrb[14].mxu0 %vm500_vm0, %v481_v32  ;;  %v12089_v32 = vmov 3  }
  0x43   : > { %6639 = vmatprep.mubr.msk.f32.mxu0 %vm500_vm0, %v482_v33  ;;  %1469 = vperm.xlu1 %7281, %v7781_v39   ;;  %v7969_v33 = vpack.c.bf16 %v825_v29, %v824_v28 }
  0x44   : > { %1464 = vperm.xlu0 %7280, %v7877_v63  }
  0x45   : > { %7026 = vmatpush3.bf16.msra.mxu1 %v7969_v33 }
  0x46   : > { %6640 = vmatmul.mubr.msk.f32.gmra.mrb[16].mxu0 %vm500_vm0, %v483_v36  ;;  %7027 = vmatprep.subr.bf16.mxu1 %v12081_v25 }
  0x47   : > { %6642 = vmatprep.mubr.msk.f32.mxu0 %vm500_vm0, %v484_v37  ;;  %1479 = vperm.xlu1 %7281, %v7797_v43   ;;  %v826_v37 = vld [vmem:[%s12076_s10 + $0x20] sm:$0xff] }
  0x48   : > { %1474 = vperm.xlu0 %7280, %v7884_v1  }
  0x4a   : > { %6643 = vmatmul.mubr.msk.f32.gmra.mrb[18].mxu0 %vm500_vm0, %v485_v40  ;;  %v827_v40 = vld [vmem:[%s12076_s10 + $0x28] sm:$0xff] }
  0x4b   : > { %6645 = vmatprep.mubr.msk.f32.mxu0 %vm500_vm0, %v486_v41  ;;  %1489 = vperm.xlu1 %7281, %v7808_v46   ;;  %v7983_v41 = vpack.c.bf16 %v827_v40, %v826_v37 }
  0x4c   : > { %1484 = vperm.xlu0 %7280, %v7891_v3  }
  0x4d   : > { %7029 = vmatpush3.bf16.msra.mxu1 %v7983_v41 }
  0x4e   : > { %6646 = vmatmul.mubr.msk.f32.gmra.mrb[20].mxu0 %vm500_vm0, %v487_v44  ;;  %7030 = vmatprep.subr.bf16.mxu1 %v12081_v25 }
  0x4f   : > { %6648 = vmatprep.mubr.msk.f32.mxu0 %vm500_vm0, %v488_v45  ;;  %1499 = vperm.xlu1 %7281, %v7818_v49   ;;  %v828_v45 = vld [vmem:[%s12076_s10 + $0x30] sm:$0xff] }
  0x50   : > { %1494 = vperm.xlu0 %7280, %v7898_v4  }
  0x52   : > { %6649 = vmatmul.mubr.msk.f32.gmra.mrb[22].mxu0 %vm500_vm0, %v489_v47  ;;  %v829_v47 = vld [vmem:[%s12076_s10 + $0x38] sm:$0xff] }
  0x53   : > { %6651 = vmatprep.mubr.msk.f32.mxu0 %vm500_vm0, %v490_v48  ;;  %1509 = vperm.xlu1 %7281, %v7828_v52   ;;  %v7997_v48 = vpack.c.bf16 %v829_v47, %v828_v45 }
  0x54   : > { %1504 = vperm.xlu0 %7280, %v7905_v6  }
  0x55   : > { %7032 = vmatpush3.bf16.msra.mxu1 %v7997_v48 }
  0x56   : > { %6652 = vmatmul.mubr.msk.f32.gmra.mrb[24].mxu0 %vm500_vm0, %v491_v50  ;;  %7033 = vmatprep.subr.bf16.mxu1 %v12081_v25 }
  0x57   : > { %6654 = vmatprep.mubr.msk.f32.mxu0 %vm500_vm0, %v492_v51  ;;  %1519 = vperm.xlu1 %7281, %v7838_v55  }
  0x58   : > { %1514 = vperm.xlu0 %7280, %v7912_v7  }
  0x5a   : > { %6655 = vmatmul.mubr.msk.f32.gmra.mrb[26].mxu0 %vm500_vm0, %v493_v53  ;;  %v12083_v53 = vmov 0.0  }
  0x5b   : > { %6657 = vmatprep.mubr.msk.f32.mxu0 %vm500_vm0, %v494_v54  ;;  %7282 = vset.pattern.permute.xlu1 %v12085_v59  ;;  %v12087_v54 = vmov 2  }
  0x5c   : > { %1559 = vperm.xlu1 %7282, %v7712_v22   ;;  %7284 = vset.pattern.permute.xlu0 %v7496_v2 }
  0x5d   : > { %2437 = vperm.xlu0 %7284, %v7712_v22   ;;  %6679 = vmatprep.mubr.msk.f32.mxu1 %vm7499_vm1, %v12083_v53 }
  0x5e   : > { %6658 = vmatmul.mubr.msk.f32.gmra.mrb[28].mxu0 %vm500_vm0, %v495_v56 }
  0x5f   : > { %6660 = vmatprep.mubr.msk.f32.mxu0 %vm500_vm0, %v496_v57 }
  0x60   : > { %1563 = vperm.xlu1 %7282, %v7637_v0  }
  0x61   : > { %2449 = vperm.xlu0 %7284, %v7728_v26  }
  0x62   : > { %6661 = vmatmul.mubr.msk.f32.gmra.mrb[30].mxu0 %vm500_vm0, %v497_v58 }
  0x64   : > { %1571 = vperm.xlu1 %7282, %v7728_v26  }
  0x65   : > { %2457 = vperm.xlu0 %7284, %v7744_v30  }
  0x68   : > { %1579 = vperm.xlu1 %7282, %v7744_v30  }
  0x69   : > { %2465 = vperm.xlu0 %7284, %v7760_v34  }
  0x6c   : > { %1587 = vperm.xlu1 %7282, %v7760_v34  }
  0x6d   : > { %2473 = vperm.xlu0 %7284, %v7776_v38  }
  0x70   : > { %1595 = vperm.xlu1 %7282, %v7776_v38  }
  0x71   : > { %2481 = vperm.xlu0 %7284, %v7792_v42  }
  0x74   : > { %1603 = vperm.xlu1 %7282, %v7792_v42  }
  0x75   : > { %2489 = vperm.xlu0 %7284, %v7856_v60  }
  0x78   : > { %7283 = vset.pattern.permute.xlu1 %v7496_v2 }
  0x79   : > { %2433 = vperm.xlu1 %7283, %v7696_v18   ;;  %2497 = vperm.xlu0 %7284, %v7863_v61  }
  0x7d   : > { %2441 = vperm.xlu1 %7283, %v7637_v0   ;;  %2505 = vperm.xlu0 %7284, %v7870_v62  }
  0x81   : > { %2445 = vperm.xlu1 %7283, %v7651_v5   ;;  %2513 = vperm.xlu0 %7284, %v7877_v63  }
  0x85   : > { %2453 = vperm.xlu1 %7283, %v7666_v9   ;;  %2521 = vperm.xlu0 %7284, %v7884_v1  }
  0x89   : > { %2461 = vperm.xlu1 %7283, %v7676_v12   ;;  %2529 = vperm.xlu0 %7284, %v7891_v3  }
  0x8d   : > { %2469 = vperm.xlu1 %7283, %v7686_v15   ;;  %2537 = vperm.xlu0 %7284, %v7898_v4  }
  0x91   : > { %2477 = vperm.xlu1 %7283, %v7701_v19   ;;  %2545 = vperm.xlu0 %7284, %v7905_v6  }
  0x95   : > { %2485 = vperm.xlu1 %7283, %v7717_v23   ;;  %2549 = vperm.xlu0 %7284, %v7828_v52  }
  0x99   : > { %2493 = vperm.xlu1 %7283, %v7733_v27   ;;  %2553 = vperm.xlu0 %7284, %v7912_v7  }
  0x9a   : > { %v7924_v8 = vpop.permute.xlu1 %1374 }
  0x9b   : > { %12330 = vst [vmem:[#allocation5_spill] sm:$0xff] %v7924_v8 }
  0x9d   : > { %2501 = vperm.xlu1 %7283, %v7749_v31   ;;  %2557 = vperm.xlu0 %7284, %v7838_v55  }
  0x9e   : > { %v7928_v10 = vpop.permute.xlu1 %1379 }
  0x9f   : > { %12331 = vst [vmem:[#allocation6_spill] sm:$0xff] %v7928_v10 }
  0xa1   : > { %2509 = vperm.xlu1 %7283, %v7765_v35   ;;  %7288 = vset.pattern.permute.xlu0 %v12089_v32 }
  0xa2   : > { %v7932_v11 = vpop.permute.xlu1 %1389  ;;  %2293 = vperm.xlu0 %7288, %v7666_v9  }
  0xa3   : > { %12332 = vst [vmem:[#allocation7_spill] sm:$0xff] %v7932_v11 }
  0xa5   : > { %2517 = vperm.xlu1 %7283, %v7781_v39  }
  0xa6   : > { %v7936_v13 = vpop.permute.xlu1 %1399  ;;  %2297 = vperm.xlu0 %7288, %v7744_v30  }
  0xa7   : > { %12333 = vst [vmem:[#allocation8_spill] sm:$0xff] %v7936_v13  ;;  %v8105_v13 = vpop.permute.xlu0 %1364 }
  0xa8   : > { %12356 = vst [vmem:[#allocation30_spill] sm:$0xff] %v8105_v13 }
  0xa9   : > { %2525 = vperm.xlu1 %7283, %v7797_v43  }
  0xaa   : > { %v7940_v14 = vpop.permute.xlu1 %1409  ;;  %2305 = vperm.xlu0 %7288, %v7760_v34  }
  0xab   : > { %12334 = vst [vmem:[#allocation9_spill] sm:$0xff] %v7940_v14 }
  0xad   : > { %2533 = vperm.xlu1 %7283, %v7808_v46  }
  0xae   : > { %v7944_v16 = vpop.permute.xlu1 %1419  ;;  %2313 = vperm.xlu0 %7288, %v7776_v38  }
  0xaf   : > { %12335 = vst [vmem:[#allocation10_spill] sm:$0xff] %v7944_v16 }
  0xb1   : > { %2541 = vperm.xlu1 %7283, %v7818_v49  }
  0xb2   : > { %v7956_v24 = vpop.permute.xlu1 %1429  ;;  %2321 = vperm.xlu0 %7288, %v7792_v42  }
  0xb3   : > { %12336 = vst [vmem:[#allocation11_spill] sm:$0xff] %v7956_v24 }
  0xb5   : > { %7285 = vset.pattern.permute.xlu1 %v12089_v32 }
  0xb6   : > { %2273 = vperm.xlu1 %7285, %v7696_v18   ;;  %v7972_v36 = vpop.permute.xlu1 %1439  ;;  %2325 = vperm.xlu0 %7288, %v7717_v23  }
  0xb7   : > { %12337 = vst [vmem:[#allocation12_spill] sm:$0xff] %v7972_v36 }
  0xba   : > { %2277 = vperm.xlu1 %7285, %v7712_v22   ;;  %v7986_v44 = vpop.permute.xlu1 %1449  ;;  %2329 = vperm.xlu0 %7288, %v7856_v60  }
  0xbb   : > { %12338 = vst [vmem:[#allocation13_spill] sm:$0xff] %v7986_v44 }
  0xbe   : > { %2281 = vperm.xlu1 %7285, %v7637_v0   ;;  %v8000_v50 = vpop.permute.xlu1 %1459  ;;  %2337 = vperm.xlu0 %7288, %v7863_v61  }
  0xbf   : > { %12339 = vst [vmem:[#allocation14_spill] sm:$0xff] %v8000_v50 }
  0xc2   : > { %2285 = vperm.xlu1 %7285, %v7651_v5   ;;  %v8006_v51 = vpop.permute.xlu1 %1469  ;;  %2349 = vperm.xlu0 %7288, %v7765_v35  }
  0xc3   : > { %12340 = vst [vmem:[#allocation15_spill] sm:$0xff] %v8006_v51 }
  0xc6   : > { %7286 = vset.pattern.permute.xlu1 %v12087_v54  ;;  %v8012_v56 = vpop.permute.xlu1 %1479  ;;  %2357 = vperm.xlu0 %7288, %v7781_v39  }
  0xc7   : > { %12341 = vst [vmem:[#allocation16_spill] sm:$0xff] %v8012_v56  ;;  %1784 = vperm.xlu1 %7286, %v7712_v22  }
  0xca   : > { %v8016_v57 = vpop.permute.xlu1 %1489  ;;  %2365 = vperm.xlu0 %7288, %v7797_v43  }
  0xcb   : > { %12342 = vst [vmem:[#allocation17_spill] sm:$0xff] %v8016_v57  ;;  %7287 = vset.pattern.permute.xlu1 %v12089_v32 }
  0xcc   : > { %2289 = vperm.xlu1 %7287, %v7728_v26  }
  0xce   : > { %v8021_v58 = vpop.permute.xlu1 %1499  ;;  %2373 = vperm.xlu0 %7288, %v7808_v46  }
  0xcf   : > { %12343 = vst [vmem:[#allocation18_spill] sm:$0xff] %v8021_v58 }
  0xd0   : > { %7289 = vset.pattern.permute.xlu1 %v12087_v54 }
  0xd1   : > { %1788 = vperm.xlu1 %7289, %v7637_v0  }
  0xd2   : > { %v8026_v2 = vpop.permute.xlu1 %1509  ;;  %2381 = vperm.xlu0 %7288, %v7818_v49  }
  0xd3   : > { %12344 = vst [vmem:[#allocation19_spill] sm:$0xff] %v8026_v2 }
  0xd5   : > { %1792 = vperm.xlu1 %7289, %v7651_v5  }
  0xd6   : > { %v8030_v7 = vpop.permute.xlu1 %1519  ;;  %2389 = vperm.xlu0 %7288, %v7828_v52  }
  0xd7   : > { %12345 = vst [vmem:[#allocation20_spill] sm:$0xff] %v8030_v7 }
  0xd9   : > { %7290 = vset.pattern.permute.xlu1 %v12089_v32 }
  0xda   : > { %2301 = vperm.xlu1 %7290, %v7676_v12   ;;  %2397 = vperm.xlu0 %7288, %v7838_v55  }
  0xdb   : > { %v8036_v17 = vpop.permute.xlu1 %1559 }
  0xdc   : > { %12346 = vst [vmem:[#allocation21_spill] sm:$0xff] %v8036_v17 }
  0xde   : > { %7291 = vset.pattern.permute.xlu1 %v12087_v54 }
  0xdf   : > { %1796 = vperm.xlu1 %7291, %v7728_v26   ;;  %v8041_v20 = vpop.permute.xlu1 %1563 }
  0xe0   : > { %12347 = vst [vmem:[#allocation22_spill] sm:$0xff] %v8041_v20 }
  0xe3   : > { %1800 = vperm.xlu1 %7291, %v7666_v9   ;;  %v8045_v28 = vpop.permute.xlu1 %1571 }
  0xe4   : > { %12348 = vst [vmem:[#allocation23_spill] sm:$0xff] %v8045_v28 }
  0xe7   : > { %7292 = vset.pattern.permute.xlu1 %v12089_v32  ;;  %v8049_v29 = vpop.permute.xlu1 %1579 }
  0xe8   : > { %12349 = vst [vmem:[#allocation24_spill] sm:$0xff] %v8049_v29  ;;  %2309 = vperm.xlu1 %7292, %v7686_v15  }
  0xeb   : > { %v8053_v38 = vpop.permute.xlu1 %1587 }
  0xec   : > { %12350 = vst [vmem:[#allocation25_spill] sm:$0xff] %v8053_v38  ;;  %7293 = vset.pattern.permute.xlu1 %v12087_v54 }
  0xed   : > { %1804 = vperm.xlu1 %7293, %v7744_v30  }
  0xef   : > { %v8058_v37 = vpop.permute.xlu1 %1595 }
  0xf0   : > { %12351 = vst [vmem:[#allocation26_spill] sm:$0xff] %v8058_v37  ;;  %v12091_v37 = vmov 7  }
  0xf1   : > { %1808 = vperm.xlu1 %7293, %v7676_v12  }
  0xf3   : > { %v8062_v40 = vpop.permute.xlu1 %1603 }
  0xf4   : > { %12352 = vst [vmem:[#allocation27_spill] sm:$0xff] %v8062_v40 }
  0xf5   : > { %7294 = vset.pattern.permute.xlu1 %v12089_v32 }
  0xf6   : > { %2317 = vperm.xlu1 %7294, %v7701_v19  }
  0xf8   : > { %v8083_v32 = vpop.permute.xlu1 %2433 }
  0xf9   : > { %v8064_v45 = vpop.f32.mrb[0].mxu0  ;;  %12353 = vst [vmem:[#allocation28_spill] sm:$0xff] %v8083_v32 }
  0xfa   : > { %v834_v47 = vsel %vm832_vm2, %v8064_v45, 0.0  ;;  %v903_v25 = vmul.f32 %v8064_v45, %v8064_v45  ;;  %v8071_v53 = vpop.f32.mrb[1].mxu0 }
  0xfb   : > { %v833_v59 = vsel %vm832_vm2, %v8071_v53, 0.0  ;;  %v902_v54 = vmul.f32 %v8071_v53, %v8071_v53 }
  0xfc   : > { %v935_v7 = vsel %vm832_vm2, %v903_v25, 0.0  ;;  %v835_v2 = vadd.f32 %v834_v47, %v833_v59  ;;  %v12354_v25 = vmov 2   ;;  %v8101_v47 = vpop.permute.xlu1 %2441 }
  0xfd   : > { %v934_v58 = vsel %vm832_vm2, %v902_v54, 0.0  ;;  %v8081_v57 = vpop.f32.mrb[2].mxu0  ;;  %7295 = vset.pattern.permute.xlu1 %v12354_v25  ;;  %12355 = vst [vmem:[#allocation29_spill] sm:$0xff] %v8101_v47 }
  0xfe   : > { %v936_v56 = vadd.f32 %v935_v7, %v934_v58  ;;  %v8085_v51 = vpop.f32.mrb[3].mxu0  ;;  %v905_v50 = vmul.f32 %v8081_v57, %v8081_v57  ;;  %1812 = vperm.xlu1 %7295, %v7760_v34   ;;  %v838_v54 = vsel %vm832_vm2, %v8081_v57, 0.0 }
  0xff   : > { %v836_v44 = vsel %vm832_vm2, %v8085_v51, 0.0  ;;  %v904_v36 = vmul.f32 %v8085_v51, %v8085_v51 }
 0x100   : > { %v837_v59 = vadd.f32 %v836_v44, %v835_v2  ;;  %v939_v11 = vsel %vm832_vm2, %v905_v50, 0.0 }
 0x101   : > { %v937_v58 = vsel %vm832_vm2, %v904_v36, 0.0  ;;  %v8099_v7 = vpop.f32.mrb[4].mxu0 }
 0x102   : > { %v938_v24 = vadd.f32 %v937_v58, %v936_v56  ;;  %v8103_v16 = vpop.f32.mrb[5].mxu0  ;;  %v839_v14 = vadd.f32 %v838_v54, %v837_v59  ;;  %v907_v34 = vmul.f32 %v8099_v7, %v8099_v7  ;;  %1816 = vperm.xlu1 %7295, %v7686_v15   ;;  %v842_v59 = vsel %vm832_vm2, %v8099_v7, 0.0  ;;  %v8121_v58 = vpop.permute.xlu1 %2445 }
 0x103   : > { %v840_v44 = vsel %vm832_vm2, %v8103_v16, 0.0  ;;  %v906_v36 = vmul.f32 %v8103_v16, %v8103_v16  ;;  %12357 = vst [vmem:[#allocation31_spill] sm:$0xff] %v8121_v58 }
 0x104   : > { %v841_v2 = vadd.f32 %v840_v44, %v839_v14  ;;  %v940_v56 = vadd.f32 %v939_v11, %v938_v24  ;;  %v943_v40 = vsel %vm832_vm2, %v907_v34, 0.0 }
 0x105   : > { %v941_v50 = vsel %vm832_vm2, %v906_v36, 0.0  ;;  %v8119_v54 = vpop.f32.mrb[6].mxu0 }
 0x106   : > { %v942_v10 = vadd.f32 %v941_v50, %v940_v56  ;;  %v8123_v8 = vpop.f32.mrb[7].mxu0  ;;  %v843_v13 = vadd.f32 %v842_v59, %v841_v2  ;;  %v909_v11 = vmul.f32 %v8119_v54, %v8119_v54  ;;  %7296 = vset.pattern.permute.xlu1 %v12091_v37  ;;  %v8134_v56 = vpop.permute.xlu0 %1369  ;;  %v846_v34 = vsel %vm832_vm2, %v8119_v54, 0.0 }
 0x107   : > { %v844_v14 = vsel %vm832_vm2, %v8123_v8, 0.0  ;;  %v908_v24 = vmul.f32 %v8123_v8, %v8123_v8  ;;  %12358 = vst [vmem:[#allocation32_spill] sm:$0xff] %v8134_v56  ;;  %3729 = vperm.xlu1 %7296, %v7696_v18   ;;  %v8142_v50 = vpop.permute.xlu1 %2453 }
 0x108   : > { %v845_v44 = vadd.f32 %v844_v14, %v843_v13  ;;  %v944_v36 = vadd.f32 %v943_v40, %v942_v10  ;;  %12359 = vst [vmem:[#allocation33_spill] sm:$0xff] %v8142_v50  ;;  %v947_v13 = vsel %vm832_vm2, %v909_v11, 0.0 }
 0x109   : > { %v945_v2 = vsel %vm832_vm2, %v908_v24, 0.0  ;;  %v8140_v59 = vpop.f32.mrb[8].mxu0 }
 0x10a   : > { %v946_v28 = vadd.f32 %v945_v2, %v944_v36  ;;  %v8144_v38 = vpop.f32.mrb[9].mxu0  ;;  %v847_v10 = vadd.f32 %v846_v34, %v845_v44  ;;  %v911_v40 = vmul.f32 %v8140_v59, %v8140_v59  ;;  %v850_v36 = vsel %vm832_vm2, %v8140_v59, 0.0 }
 0x10b   : > { %v848_v14 = vsel %vm832_vm2, %v8144_v38, 0.0  ;;  %v910_v24 = vmul.f32 %v8144_v38, %v8144_v38  ;;  %v12093_v34 = vmov 8   ;;  %v8160_v2 = vpop.permute.xlu1 %2461 }
 0x10c   : > { %v849_v37 = vadd.f32 %v848_v14, %v847_v10  ;;  %v948_v56 = vadd.f32 %v947_v13, %v946_v28  ;;  %7297 = vset.pattern.permute.xlu1 %v12093_v34  ;;  %12360 = vst [vmem:[#allocation34_spill] sm:$0xff] %v8160_v2  ;;  %v8165_v10 = vpop.permute.xlu0 %1384  ;;  %v951_v28 = vsel %vm832_vm2, %v911_v40, 0.0 }
 0x10d   : > { %v949_v44 = vsel %vm832_vm2, %v910_v24, 0.0  ;;  %v8158_v11 = vpop.f32.mrb[10].mxu0  ;;  %3889 = vperm.xlu1 %7297, %v7696_v18   ;;  %12361 = vst [vmem:[#allocation35_spill] sm:$0xff] %v8165_v10 }
 0x10e   : > { %v950_v29 = vadd.f32 %v949_v44, %v948_v56  ;;  %v8163_v20 = vpop.f32.mrb[11].mxu0  ;;  %v851_v52 = vadd.f32 %v850_v36, %v849_v37  ;;  %v913_v13 = vmul.f32 %v8158_v11, %v8158_v11  ;;  %v854_v37 = vsel %vm832_vm2, %v8158_v11, 0.0 }
 0x10f   : > { %v852_v14 = vsel %vm832_vm2, %v8163_v20, 0.0  ;;  %v912_v24 = vmul.f32 %v8163_v20, %v8163_v20  ;;  %v8180_v40 = vpop.permute.xlu1 %2469 }
 0x110   : > { %v853_v56 = vadd.f32 %v852_v14, %v851_v52  ;;  %v952_v44 = vadd.f32 %v951_v28, %v950_v29  ;;  %12362 = vst [vmem:[#allocation36_spill] sm:$0xff] %v8180_v40  ;;  %v955_v50 = vsel %vm832_vm2, %v913_v13, 0.0  ;;  %v12363_v28 = vmov 1  }
 0x111   : > { %v953_v36 = vsel %vm832_vm2, %v912_v24, 0.0  ;;  %v8178_v34 = vpop.f32.mrb[12].mxu0  ;;  %3893 = vperm.xlu1 %7297, %v7712_v22   ;;  %7341 = vset.pattern.permute.xlu0 %v12363_v28 }
 0x112   : > { %v954_v10 = vadd.f32 %v953_v36, %v952_v44  ;;  %v8183_v17 = vpop.f32.mrb[13].mxu0  ;;  %v855_v2 = vadd.f32 %v854_v37, %v853_v56  ;;  %v915_v55 = vmul.f32 %v8178_v34, %v8178_v34  ;;  %v8193_v44 = vpop.permute.xlu0 %1394  ;;  %1555 = vperm.xlu0 %7341, %v7696_v18   ;;  %v858_v22 = vsel %vm832_vm2, %v8178_v34, 0.0 }
 0x113   : > { %v856_v29 = vsel %vm832_vm2, %v8183_v17, 0.0  ;;  %v914_v52 = vmul.f32 %v8183_v17, %v8183_v17  ;;  %12364 = vst [vmem:[#allocation37_spill] sm:$0xff] %v8193_v44  ;;  %v8201_v37 = vpop.permute.xlu1 %2477 }
 0x114   : > { %v857_v14 = vadd.f32 %v856_v29, %v855_v2  ;;  %v956_v24 = vadd.f32 %v955_v50, %v954_v10  ;;  %12365 = vst [vmem:[#allocation38_spill] sm:$0xff] %v8201_v37  ;;  %v959_v50 = vsel %vm832_vm2, %v915_v55, 0.0 }
 0x115   : > { %v957_v13 = vsel %vm832_vm2, %v914_v52, 0.0  ;;  %v8199_v56 = vpop.f32.mrb[14].mxu0  ;;  %7298 = vset.pattern.permute.xlu1 %v12354_v25 }
 0x116   : > { %v958_v36 = vadd.f32 %v957_v13, %v956_v24  ;;  %v8204_v40 = vpop.f32.mrb[15].mxu0  ;;  %v859_v2 = vadd.f32 %v858_v22, %v857_v14  ;;  %v917_v18 = vmul.f32 %v8199_v56, %v8199_v56  ;;  %1824 = vperm.xlu1 %7298, %v7701_v19   ;;  %1567 = vperm.xlu0 %7341, %v7651_v5   ;;  %v862_v14 = vsel %vm832_vm2, %v8199_v56, 0.0  ;;  %v8224_v47 = vpop.permute.xlu0 %1404 }
 0x117   : > { %v860_v10 = vsel %vm832_vm2, %v8204_v40, 0.0  ;;  %v916_v29 = vmul.f32 %v8204_v40, %v8204_v40  ;;  %v8220_v13 = vpop.permute.xlu1 %2485  ;;  %12369 = vst [vmem:[#allocation42_spill] sm:$0xff] %v8224_v47 }
 0x118   : > { %v861_v52 = vadd.f32 %v860_v10, %v859_v2  ;;  %v960_v24 = vadd.f32 %v959_v50, %v958_v36  ;;  %12367 = vst [vmem:[#allocation40_spill] sm:$0xff] %v8220_v13  ;;  %v963_v2 = vsel %vm832_vm2, %v917_v18, 0.0 }
 0x119   : > { %v961_v55 = vsel %vm832_vm2, %v916_v29, 0.0  ;;  %v8218_v22 = vpop.f32.mrb[16].mxu0  ;;  %v12370_v29 = vmov 7  }
 0x11a   : > { %12366 = vst [vmem:[#allocation39_spill] sm:$0xff] %v8218_v22  ;;  %v962_v44 = vadd.f32 %v961_v55, %v960_v24  ;;  %v8222_v37 = vpop.f32.mrb[17].mxu0  ;;  %v863_v58 = vadd.f32 %v862_v14, %v861_v52  ;;  %v919_v36 = vmul.f32 %v8218_v22, %v8218_v22  ;;  %7299 = vset.pattern.permute.xlu1 %v12370_v29  ;;  %v866_v18 = vsel %vm832_vm2, %v8218_v22, 0.0 }
 0x11b   : > { %12368 = vst [vmem:[#allocation41_spill] sm:$0xff] %v8222_v37  ;;  %v864_v50 = vsel %vm832_vm2, %v8222_v37, 0.0  ;;  %v918_v10 = vmul.f32 %v8222_v37, %v8222_v37  ;;  %3737 = vperm.xlu1 %7299, %v7637_v0   ;;  %1575 = vperm.xlu0 %7341, %v7666_v9   ;;  %v8241_v55 = vpop.permute.xlu1 %2493  ;;  %v12373_v22 = vmov 3  }
 0x11c   : > { %v865_v13 = vadd.f32 %v864_v50, %v863_v58  ;;  %v964_v24 = vadd.f32 %v963_v2, %v962_v44  ;;  %12372 = vst [vmem:[#allocation44_spill] sm:$0xff] %v8241_v55  ;;  %v967_v58 = vsel %vm832_vm2, %v919_v36, 0.0  ;;  %v8253_v55 = vpop.permute.xlu0 %1414 }
 0x11d   : > { %v965_v52 = vsel %vm832_vm2, %v918_v10, 0.0  ;;  %v8239_v14 = vpop.f32.mrb[18].mxu0  ;;  %12374 = vst [vmem:[#allocation45_spill] sm:$0xff] %v8253_v55 }
 0x11e   : > { %12371 = vst [vmem:[#allocation43_spill] sm:$0xff] %v8239_v14  ;;  %v966_v47 = vadd.f32 %v965_v52, %v964_v24  ;;  %v8243_v32 = vpop.f32.mrb[19].mxu0  ;;  %v867_v37 = vadd.f32 %v866_v18, %v865_v13  ;;  %v921_v0 = vmul.f32 %v8239_v14, %v8239_v14  ;;  %v870_v13 = vsel %vm832_vm2, %v8239_v14, 0.0 }
 0x11f   : > { %v868_v44 = vsel %vm832_vm2, %v8243_v32, 0.0  ;;  %v920_v2 = vmul.f32 %v8243_v32, %v8243_v32  ;;  %7300 = vset.pattern.permute.xlu1 %v12373_v22  ;;  %1583 = vperm.xlu0 %7341, %v7676_v12   ;;  %v8262_v18 = vpop.permute.xlu1 %2501 }
 0x120   : > { %v869_v50 = vadd.f32 %v868_v44, %v867_v37  ;;  %v968_v10 = vadd.f32 %v967_v58, %v966_v47  ;;  %2333 = vperm.xlu1 %7300, %v7733_v27   ;;  %12376 = vst [vmem:[#allocation47_spill] sm:$0xff] %v8262_v18  ;;  %v971_v58 = vsel %vm832_vm2, %v921_v0, 0.0 }
 0x121   : > { %v969_v36 = vsel %vm832_vm2, %v920_v2, 0.0  ;;  %v8260_v24 = vpop.f32.mrb[20].mxu0 }
 0x122   : > { %12375 = vst [vmem:[#allocation46_spill] sm:$0xff] %v8260_v24  ;;  %v970_v52 = vadd.f32 %v969_v36, %v968_v10  ;;  %v8264_v37 = vpop.f32.mrb[21].mxu0  ;;  %v871_v47 = vadd.f32 %v870_v13, %v869_v50  ;;  %v923_v12 = vmul.f32 %v8260_v24, %v8260_v24  ;;  %v874_v10 = vsel %vm832_vm2, %v8260_v24, 0.0 }
 0x123   : > { %v872_v44 = vsel %vm832_vm2, %v8264_v37, 0.0  ;;  %v922_v2 = vmul.f32 %v8264_v37, %v8264_v37  ;;  %1591 = vperm.xlu0 %7341, %v7686_v15   ;;  %v8280_v13 = vpop.permute.xlu1 %2509 }
 0x124   : > { %v873_v55 = vadd.f32 %v872_v44, %v871_v47  ;;  %v972_v14 = vadd.f32 %v971_v58, %v970_v52  ;;  %7301 = vset.pattern.permute.xlu1 %v12370_v29  ;;  %12378 = vst [vmem:[#allocation49_spill] sm:$0xff] %v8280_v13  ;;  %v8285_v52 = vpop.permute.xlu0 %1424  ;;  %v975_v15 = vsel %vm832_vm2, %v923_v12, 0.0 }
 0x125   : > { %v973_v50 = vsel %vm832_vm2, %v922_v2, 0.0  ;;  %v8278_v0 = vpop.f32.mrb[22].mxu0  ;;  %3741 = vperm.xlu1 %7301, %v7651_v5   ;;  %12379 = vst [vmem:[#allocation50_spill] sm:$0xff] %v8285_v52 }
 0x126   : > { %12377 = vst [vmem:[#allocation48_spill] sm:$0xff] %v8278_v0  ;;  %v974_v36 = vadd.f32 %v973_v50, %v972_v14  ;;  %v8283_v18 = vpop.f32.mrb[23].mxu0  ;;  %v875_v47 = vadd.f32 %v874_v10, %v873_v55  ;;  %v925_v58 = vmul.f32 %v8278_v0, %v8278_v0  ;;  %v878_v5 = vsel %vm832_vm2, %v8278_v0, 0.0 }
 0x127   : > { %v876_v44 = vsel %vm832_vm2, %v8283_v18, 0.0  ;;  %v924_v2 = vmul.f32 %v8283_v18, %v8283_v18  ;;  %1599 = vperm.xlu0 %7341, %v7701_v19   ;;  %v8300_v12 = vpop.permute.xlu1 %2517 }
 0x128   : > { %v877_v13 = vadd.f32 %v876_v44, %v875_v47  ;;  %v976_v14 = vadd.f32 %v975_v15, %v974_v36  ;;  %12380 = vst [vmem:[#allocation51_spill] sm:$0xff] %v8300_v12  ;;  %v979_v47 = vsel %vm832_vm2, %v925_v58, 0.0 }
 0x129   : > { %v977_v55 = vsel %vm832_vm2, %v924_v2, 0.0  ;;  %v8298_v10 = vpop.f32.mrb[24].mxu0  ;;  %7302 = vset.pattern.permute.xlu1 %v12354_v25 }
 0x12a   : > { %v978_v50 = vadd.f32 %v977_v55, %v976_v14  ;;  %v8303_v52 = vpop.f32.mrb[25].mxu0  ;;  %v879_v24 = vadd.f32 %v878_v5, %v877_v13  ;;  %v927_v19 = vmul.f32 %v8298_v10, %v8298_v10  ;;  %1828 = vperm.xlu1 %7302, %v7792_v42   ;;  %v8313_v14 = vpop.permute.xlu0 %1434  ;;  %v882_v13 = vsel %vm832_vm2, %v8298_v10, 0.0 }
 0x12b   : > { %12381 = vst [vmem:[#allocation52_spill] sm:$0xff] %v8303_v52  ;;  %v880_v36 = vsel %vm832_vm2, %v8303_v52, 0.0  ;;  %v926_v15 = vmul.f32 %v8303_v52, %v8303_v52  ;;  %12382 = vst [vmem:[#allocation53_spill] sm:$0xff] %v8313_v14  ;;  %1607 = vperm.xlu0 %7341, %v7717_v23   ;;  %v8321_v55 = vpop.permute.xlu1 %2525 }
 0x12c   : > { %v881_v44 = vadd.f32 %v880_v36, %v879_v24  ;;  %v980_v2 = vadd.f32 %v979_v47, %v978_v50  ;;  %12383 = vst [vmem:[#allocation54_spill] sm:$0xff] %v8321_v55  ;;  %v983_v42 = vsel %vm832_vm2, %v927_v19, 0.0 }
 0x12d   : > { %v981_v58 = vsel %vm832_vm2, %v926_v15, 0.0  ;;  %v8319_v5 = vpop.f32.mrb[26].mxu0 }
 0x12e   : > { %v982_v12 = vadd.f32 %v981_v58, %v980_v2  ;;  %v8323_v0 = vpop.f32.mrb[27].mxu0  ;;  %v883_v52 = vadd.f32 %v882_v13, %v881_v44  ;;  %v929_v24 = vmul.f32 %v8319_v5, %v8319_v5  ;;  %1832 = vperm.xlu1 %7302, %v7717_v23   ;;  %v886_v44 = vsel %vm832_vm2, %v8319_v5, 0.0 }
 0x12f   : > { %12384 = vst [vmem:[#allocation55_spill] sm:$0xff] %v8323_v0  ;;  %v884_v50 = vsel %vm832_vm2, %v8323_v0, 0.0  ;;  %v928_v47 = vmul.f32 %v8323_v0, %v8323_v0  ;;  %1615 = vperm.xlu0 %7341, %v7733_v27   ;;  %v8339_v13 = vpop.permute.xlu1 %2533  ;;  %v8343_v0 = vpop.permute.xlu0 %1444 }
 0x130   : > { %v885_v36 = vadd.f32 %v884_v50, %v883_v52  ;;  %v984_v15 = vadd.f32 %v983_v42, %v982_v12  ;;  %12385 = vst [vmem:[#allocation56_spill] sm:$0xff] %v8343_v0  ;;  %v987_v23 = vsel %vm832_vm2, %v929_v24, 0.0 }
 0x131   : > { %v985_v19 = vsel %vm832_vm2, %v928_v47, 0.0  ;;  %v8337_v2 = vpop.f32.mrb[28].mxu0 }
 0x132   : > { %v986_v58 = vadd.f32 %v985_v19, %v984_v15  ;;  %v8341_v14 = vpop.f32.mrb[29].mxu0  ;;  %v887_v55 = vadd.f32 %v886_v44, %v885_v36  ;;  %v931_v27 = vmul.f32 %v8337_v2, %v8337_v2  ;;  %7303 = vset.pattern.permute.xlu1 %v12370_v29  ;;  %v890_v24 = vsel %vm832_vm2, %v8337_v2, 0.0 }
 0x133   : > { %v888_v52 = vsel %vm832_vm2, %v8341_v14, 0.0  ;;  %v930_v12 = vmul.f32 %v8341_v14, %v8341_v14  ;;  %3745 = vperm.xlu1 %7303, %v7728_v26   ;;  %1623 = vperm.xlu0 %7341, %v7749_v31   ;;  %v8360_v15 = vpop.permute.xlu1 %2541 }
 0x134   : > { %v889_v42 = vadd.f32 %v888_v52, %v887_v55  ;;  %v988_v50 = vadd.f32 %v987_v23, %v986_v58  ;;  %12386 = vst [vmem:[#allocation57_spill] sm:$0xff] %v8360_v15  ;;  %v991_v55 = vsel %vm832_vm2, %v931_v27, 0.0  ;;  %v8372_v15 = vpop.permute.xlu0 %1454 }
 0x135   : > { %v989_v47 = vsel %vm832_vm2, %v930_v12, 0.0  ;;  %v8358_v36 = vpop.f32.mrb[30].mxu0  ;;  %12387 = vst [vmem:[#allocation58_spill] sm:$0xff] %v8372_v15  ;;  %v7377_v15 = vld [vmem:[%s12079_s13 + $0x60] sm:$0xff] }
 0x136   : > { %v990_v44 = vadd.f32 %v989_v47, %v988_v50  ;;  %v8362_v19 = vpop.f32.mrb[31].mxu0  ;;  %v891_v0 = vadd.f32 %v890_v24, %v889_v42  ;;  %v933_v26 = vmul.f32 %v8358_v36, %v8358_v36  ;;  %v894_v27 = vsel %vm832_vm2, %v8358_v36, 0.0 }
 0x137   : > { %v892_v58 = vsel %vm832_vm2, %v8362_v19, 0.0  ;;  %v932_v23 = vmul.f32 %v8362_v19, %v8362_v19  ;;  %7304 = vset.pattern.permute.xlu1 %v12373_v22  ;;  %1631 = vperm.xlu0 %7341, %v7765_v35   ;;  %v8379_v47 = vpop.permute.xlu1 %2273 }
 0x138   : > { %v893_v52 = vadd.f32 %v892_v58, %v891_v0  ;;  %v992_v12 = vadd.f32 %v991_v55, %v990_v44  ;;  %2341 = vperm.xlu1 %7304, %v7749_v31   ;;  %12388 = vst [vmem:[#allocation59_spill] sm:$0xff] %v8379_v47  ;;  %v995_v0 = vsel %vm832_vm2, %v933_v26, 0.0 }
 0x139   : > { %v993_v42 = vsel %vm832_vm2, %v932_v23, 0.0  ;;  %v8387_v23 = vpop.permute.xlu0 %1464 }
 0x13a   : > { %v895_v50 = vadd.f32 %v894_v27, %v893_v52  ;;  %v994_v24 = vadd.f32 %v993_v42, %v992_v12  ;;  %12390 = vst [vmem:[#allocation61_spill] sm:$0xff] %v8387_v23 }
 0x13b   : > { %1639 = vperm.xlu0 %7341, %v7781_v39   ;;  %v8385_v58 = vpop.permute.xlu1 %2277 }
 0x13c   : > { %v896_v44 = vrot.slane %v895_v50, 4  ;;  %v996_v55 = vadd.f32 %v995_v0, %v994_v24  ;;  %7305 = vset.pattern.permute.xlu1 %v12370_v29  ;;  %12389 = vst [vmem:[#allocation60_spill] sm:$0xff] %v8385_v58  ;;  %v12394_v24 = vmov 8   ;;  %v12395_v0 = vmov 0.0  }
 0x13d   : > { %3749 = vperm.xlu1 %7305, %v7666_v9   ;;  %v8394_v27 = vpop.permute.xlu0 %1474 }
 0x13e   : > { %v897_v35 = vadd.f32 %v896_v44, %v895_v50  ;;  %v997_v52 = vrot.slane %v996_v55, 4  ;;  %12392 = vst [vmem:[#allocation63_spill] sm:$0xff] %v8394_v27 }
 0x13f   : > { %1647 = vperm.xlu0 %7341, %v7797_v43   ;;  %v8391_v12 = vpop.permute.xlu1 %2281  ;;  %v7371_v43 = vld [vmem:[%s12079_s13 + $0x28] sm:$0xff] }
 0x140   : > { %v898_v31 = vrot.slane %v897_v35, 2  ;;  %12391 = vst [vmem:[#allocation62_spill] sm:$0xff] %v8391_v12  ;;  %v998_v9 = vadd.f32 %v997_v52, %v996_v55 }
 0x141   : > { %7306 = vset.pattern.permute.xlu1 %v12363_v28  ;;  %v8408_v55 = vpop.permute.xlu0 %1484 }
 0x142   : > { %v899_v26 = vadd.f32 %v898_v31, %v897_v35  ;;  %1611 = vperm.xlu1 %7306, %v7856_v60   ;;  %v999_v44 = vrot.slane %v998_v9, 2  ;;  %12397 = vst [vmem:[#allocation65_spill] sm:$0xff] %v8408_v55 }
 0x143   : > { %1655 = vperm.xlu0 %7341, %v7808_v46   ;;  %v8397_v50 = vpop.permute.xlu1 %2285  ;;  %v12396_v46 = vmov 0.0|0.0  }
 0x144   : > { %v900_v39 = vrot.slane %v899_v26, 1  ;;  %12393 = vst [vmem:[#allocation64_spill] sm:$0xff] %v8397_v50  ;;  %v1000_v31 = vadd.f32 %v999_v44, %v998_v9 }
 0x146   : > { %v901_v42 = vadd.f32 %v900_v39, %v899_v26  ;;  %7307 = vset.pattern.permute.xlu1 %v12394_v24 }
 0x147   : > { %3909 = vperm.xlu1 %7307, %v7371_v43   ;;  %1663 = vperm.xlu0 %7341, %v7818_v49   ;;  %v8411_v35 = vpop.permute.xlu1 %1784  ;;  %v1001_v49 = vrot.slane %v1000_v31, 1 }
 0x148   : > { %6680 = vmatmul.mubr.msk.f32.vlgmr.msra.gmra.mrb[0].mxu1 %vm832_vm2, %v901_v42  ;;  %12398 = vst [vmem:[#allocation66_spill] sm:$0xff] %v8411_v35  ;;  %v7373_v42 = vld [vmem:[%s12079_s13 + $0x40] sm:$0xff] }
 0x149   : > { %7035 = vmatpush3.bf16.msra.mxu1 %v7954_v21  ;;  %6698 = vmatprep.mubr.msk.f32.mxu1 %vm7499_vm1, %v12395_v0 }
 0x14a   : > { %7036 = vmatprep.subr.bf16.mxu1 %v12396_v46 }
 0x14b   : > { %7308 = vset.pattern.permute.xlu1 %v12354_v25  ;;  %v8417_v21 = vpop.permute.xlu1 %2289 }
 0x14c   : > { %1836 = vperm.xlu1 %7308, %v7856_v60   ;;  %12399 = vst [vmem:[#allocation67_spill] sm:$0xff] %v8417_v21  ;;  %v1002_v60 = vadd.f32 %v1001_v49, %v1000_v31 }
 0x14d   : > { %7038 = vmatpush3.bf16.msra.mxu1 %v7969_v33 }
 0x14e   : > { %7039 = vmatprep.subr.bf16.mxu1 %v12396_v46 }
 0x150   : > { %7309 = vset.pattern.permute.xlu1 %v12373_v22  ;;  %v8424_v52 = vpop.permute.xlu1 %1788 }
 0x151   : > { %7041 = vmatpush3.bf16.msra.mxu1 %v7983_v41  ;;  %2345 = vperm.xlu1 %7309, %v7870_v62   ;;  %12400 = vst [vmem:[#allocation68_spill] sm:$0xff] %v8424_v52  ;;  %v7372_v41 = vld [vmem:[%s12079_s13 + $0x38] sm:$0xff] }
 0x152   : > { %7042 = vmatprep.subr.bf16.mxu1 %v12396_v46 }
 0x154   : > { %v8429_v33 = vpop.permute.xlu1 %1792 }
 0x155   : > { %7044 = vmatpush3.bf16.msra.mxu1 %v7997_v48  ;;  %7310 = vset.pattern.permute.xlu1 %v12370_v29  ;;  %12401 = vst [vmem:[#allocation69_spill] sm:$0xff] %v8429_v33 }
 0x156   : > { %3753 = vperm.xlu1 %7310, %v7744_v30  }
 0x158   : > { %6699 = vmatmul.mubr.msk.f32.vlgmr.msra.gmra.mrb[2].mxu1 %vm832_vm2, %v1002_v60 }
 0x159   : > { %v8434_v26 = vpop.permute.xlu1 %2301 }
 0x15a   : > { %3757 = vperm.xlu1 %7310, %v7372_v41   ;;  %12402 = vst [vmem:[#allocation70_spill] sm:$0xff] %v8434_v26 }
 0x15e   : > { %7311 = vset.pattern.permute.xlu1 %v12363_v28  ;;  %v8438_v48 = vpop.permute.xlu1 %1796 }
 0x15f   : > { %1619 = vperm.xlu1 %7311, %v7863_v61   ;;  %12403 = vst [vmem:[#allocation71_spill] sm:$0xff] %v8438_v48 }
 0x162   : > { %v8441_v30 = vpop.permute.xlu1 %1800 }
 0x163   : > { %7312 = vset.pattern.permute.xlu1 %v12394_v24  ;;  %12404 = vst [vmem:[#allocation72_spill] sm:$0xff] %v8441_v30 }
 0x164   : > { %3917 = vperm.xlu1 %7312, %v7372_v41  }
 0x167   : > { %v8445_v39 = vpop.permute.xlu1 %2309 }
 0x168   : > { %7313 = vset.pattern.permute.xlu1 %v12354_v25  ;;  %12405 = vst [vmem:[#allocation73_spill] sm:$0xff] %v8445_v39 }
 0x169   : > { %1844 = vperm.xlu1 %7313, %v7863_v61   ;;  %v7374_v61 = vld [vmem:[%s12079_s13 + $0x48] sm:$0xff] }
 0x16c   : > { %v8449_v9 = vpop.permute.xlu1 %1804 }
 0x16d   : > { %7314 = vset.pattern.permute.xlu1 %v12373_v22  ;;  %12406 = vst [vmem:[#allocation74_spill] sm:$0xff] %v8449_v9 }
 0x16e   : > { %2353 = vperm.xlu1 %7314, %v7877_v63  }
 0x170   : > { %v8455_v43 = vpop.permute.xlu1 %1808 }
 0x171   : > { %12407 = vst [vmem:[#allocation75_spill] sm:$0xff] %v8455_v43 }
 0x172   : > { %7315 = vset.pattern.permute.xlu1 %v12370_v29 }
 0x173   : > { %3761 = vperm.xlu1 %7315, %v7373_v42   ;;  %v8481_v42 = vld [vmem:[%s12079_s13 + $0x50] sm:$0xff] }
 0x174   : > { %12413 = vst [vmem:[#allocation81_spill] sm:$0xff] %v8481_v42 }
 0x175   : > { %v8460_v44 = vpop.permute.xlu1 %2317 }
 0x176   : > { %12408 = vst [vmem:[#allocation76_spill] sm:$0xff] %v8460_v44 }
 0x177   : > { %3765 = vperm.xlu1 %7315, %v7374_v61  }
 0x17b   : > { %7316 = vset.pattern.permute.xlu1 %v12363_v28 }
 0x17c   : > { %1627 = vperm.xlu1 %7316, %v7870_v62  }
 0x17d   : > { %v8464_v31 = vpop.permute.xlu1 %1812 }
 0x17e   : > { %12409 = vst [vmem:[#allocation77_spill] sm:$0xff] %v8464_v31  ;;  %v8581_v31 = vld [vmem:[%s12079_s13 + $0x88] sm:$0xff] }
 0x17f   : > { %12434 = vst [vmem:[#allocation102_spill] sm:$0xff] %v8581_v31 }
 0x180   : > { %7317 = vset.pattern.permute.xlu1 %v12394_v24 }
 0x181   : > { %3925 = vperm.xlu1 %7317, %v7374_v61   ;;  %v8467_v49 = vpop.permute.xlu1 %1816 }
 0x182   : > { %12410 = vst [vmem:[#allocation78_spill] sm:$0xff] %v8467_v49 }
 0x185   : > { %7318 = vset.pattern.permute.xlu1 %v12354_v25 }
 0x186   : > { %1852 = vperm.xlu1 %7318, %v7870_v62   ;;  %v8471_v60 = vpop.permute.xlu1 %3729  ;;  %v7376_v62 = vld [vmem:[%s12079_s13 + $0x58] sm:$0xff] }
 0x187   : > { %12411 = vst [vmem:[#allocation79_spill] sm:$0xff] %v8471_v60 }
 0x18a   : > { %7319 = vset.pattern.permute.xlu1 %v12373_v22 }
 0x18b   : > { %2361 = vperm.xlu1 %7319, %v7884_v1  }
 0x18c   : > { %v8475_v41 = vpop.permute.xlu1 %3889 }
 0x18d   : > { %12412 = vst [vmem:[#allocation80_spill] sm:$0xff] %v8475_v41 }
 0x18f   : > { %7320 = vset.pattern.permute.xlu1 %v12370_v29 }
 0x190   : > { %3769 = vperm.xlu1 %7320, %v8481_v42   ;;  %v8484_v61 = vpop.permute.xlu1 %3893 }
 0x191   : > { %12414 = vst [vmem:[#allocation82_spill] sm:$0xff] %v8484_v61 }
 0x194   : > { %3773 = vperm.xlu1 %7320, %v7376_v62  }
 0x195   : > { %v8489_v0 = vpop.permute.xlu1 %1824 }
 0x196   : > { %12415 = vst [vmem:[#allocation83_spill] sm:$0xff] %v8489_v0 }
 0x198   : > { %7321 = vset.pattern.permute.xlu1 %v12363_v28 }
 0x199   : > { %1635 = vperm.xlu1 %7321, %v7877_v63  }
 0x19a   : > { %v8493_v55 = vpop.permute.xlu1 %3737 }
 0x19b   : > { %12416 = vst [vmem:[#allocation84_spill] sm:$0xff] %v8493_v55  ;;  %v7378_v55 = vld [vmem:[%s12079_s13 + $0x68] sm:$0xff] }
 0x19d   : > { %7322 = vset.pattern.permute.xlu1 %v12394_v24 }
 0x19e   : > { %3933 = vperm.xlu1 %7322, %v7376_v62  }
 0x19f   : > { %v8496_v27 = vpop.permute.xlu1 %2333 }
 0x1a0   : > { %12417 = vst [vmem:[#allocation85_spill] sm:$0xff] %v8496_v27 }
 0x1a2   : > { %7323 = vset.pattern.permute.xlu1 %v12354_v25 }
 0x1a3   : > { %1860 = vperm.xlu1 %7323, %v7877_v63  }
 0x1a4   : > { %v8501_v23 = vpop.permute.xlu1 %3741 }
 0x1a5   : > { %12418 = vst [vmem:[#allocation86_spill] sm:$0xff] %v8501_v23  ;;  %v8607_v23 = vld [vmem:[%s12079_s13 + $0xf0] sm:$0xff] }
 0x1a6   : > { %12438 = vst [vmem:[#allocation106_spill] sm:$0xff] %v8607_v23 }
 0x1a7   : > { %7324 = vset.pattern.permute.xlu1 %v12373_v22 }
 0x1a8   : > { %2369 = vperm.xlu1 %7324, %v7891_v3  }
 0x1a9   : > { %v8508_v62 = vpop.permute.xlu1 %1828 }
 0x1aa   : > { %12419 = vst [vmem:[#allocation87_spill] sm:$0xff] %v8508_v62  ;;  %v8524_v62 = vpop.permute.xlu0 %1494 }
 0x1ab   : > { %12423 = vst [vmem:[#allocation91_spill] sm:$0xff] %v8524_v62  ;;  %v8543_v62 = vld [vmem:[%s12079_s13 + $0x78] sm:$0xff] }
 0x1ac   : > { %7325 = vset.pattern.permute.xlu1 %v12370_v29  ;;  %12428 = vst [vmem:[#allocation96_spill] sm:$0xff] %v8543_v62 }
 0x1ad   : > { %3777 = vperm.xlu1 %7325, %v7377_v15   ;;  %v8513_v63 = vpop.permute.xlu1 %1832 }
 0x1ae   : > { %12420 = vst [vmem:[#allocation88_spill] sm:$0xff] %v8513_v63  ;;  %v8530_v46 = vpop.permute.xlu0 %1504 }
 0x1af   : > { %12425 = vst [vmem:[#allocation93_spill] sm:$0xff] %v8530_v46 }
 0x1b1   : > { %3781 = vperm.xlu1 %7325, %v7378_v55  }
 0x1b2   : > { %v8517_v0 = vpop.permute.xlu1 %3745 }
 0x1b3   : > { %12421 = vst [vmem:[#allocation89_spill] sm:$0xff] %v8517_v0 }
 0x1b5   : > { %7326 = vset.pattern.permute.xlu1 %v12363_v28 }
 0x1b6   : > { %1643 = vperm.xlu1 %7326, %v7884_v1  }
 0x1b7   : > { %v8521_v15 = vpop.permute.xlu1 %2341 }
 0x1b8   : > { %12422 = vst [vmem:[#allocation90_spill] sm:$0xff] %v8521_v15 }
 0x1ba   : > { %7327 = vset.pattern.permute.xlu1 %v12394_v24 }
 0x1bb   : > { %3941 = vperm.xlu1 %7327, %v7378_v55   ;;  %v7379_v55 = vld [vmem:[%s12079_s13 + $0x70] sm:$0xff] }
 0x1bc   : > { %v8528_v63 = vpop.permute.xlu1 %3749 }
 0x1bd   : > { %12424 = vst [vmem:[#allocation92_spill] sm:$0xff] %v8528_v63 }
 0x1bf   : > { %7328 = vset.pattern.permute.xlu1 %v12354_v25 }
 0x1c0   : > { %1868 = vperm.xlu1 %7328, %v7884_v1   ;;  %v8538_v1 = vpop.permute.xlu0 %1514 }
 0x1c1   : > { %v8536_v0 = vpop.permute.xlu1 %1611  ;;  %12427 = vst [vmem:[#allocation95_spill] sm:$0xff] %v8538_v1 }
 0x1c2   : > { %12426 = vst [vmem:[#allocation94_spill] sm:$0xff] %v8536_v0 }
 0x1c4   : > { %7329 = vset.pattern.permute.xlu1 %v12373_v22  ;;  %v8549_v46 = vpop.permute.xlu0 %2437 }
 0x1c5   : > { %2377 = vperm.xlu1 %7329, %v7898_v4  }
 0x1c6   : > { %v8546_v4 = vpop.permute.xlu1 %3909 }
 0x1c7   : > { %12429 = vst [vmem:[#allocation97_spill] sm:$0xff] %v8546_v4 }
 0x1c8   : > { %v8556_v1 = vpop.permute.xlu0 %2449 }
 0x1c9   : > { %7330 = vset.pattern.permute.xlu1 %v12370_v29 }
 0x1ca   : > { %3785 = vperm.xlu1 %7330, %v7379_v55  }
 0x1cb   : > { %v8553_v55 = vpop.permute.xlu1 %1836 }
 0x1cc   : > { %12430 = vst [vmem:[#allocation98_spill] sm:$0xff] %v8553_v55  ;;  %v8562_v4 = vpop.permute.xlu0 %2457  ;;  %v7381_v55 = vld [vmem:[%s12079_s13 + $0x80] sm:$0xff] }
 0x1ce   : > { %3789 = vperm.xlu1 %7330, %v8543_v62  }
 0x1d0   : > { %v8560_v61 = vpop.permute.xlu1 %2345  ;;  %v8568_v60 = vpop.permute.xlu0 %2465 }
 0x1d1   : > { %12431 = vst [vmem:[#allocation99_spill] sm:$0xff] %v8560_v61 }
 0x1d2   : > { %7331 = vset.pattern.permute.xlu1 %v12363_v28 }
 0x1d3   : > { %1651 = vperm.xlu1 %7331, %v7891_v3  }
 0x1d4   : > { %v8576_v49 = vpop.permute.xlu0 %2473 }
 0x1d5   : > { %v8566_v41 = vpop.permute.xlu1 %3753 }
 0x1d6   : > { %12432 = vst [vmem:[#allocation100_spill] sm:$0xff] %v8566_v41  ;;  %v7383_v41 = vld [vmem:[%s12079_s13 + $0xd0] sm:$0xff] }
 0x1d7   : > { %7332 = vset.pattern.permute.xlu1 %v12394_v24 }
 0x1d8   : > { %3949 = vperm.xlu1 %7332, %v8543_v62  }
 0x1dc   : > { %7333 = vset.pattern.permute.xlu1 %v12354_v25 }
 0x1dd   : > { %1876 = vperm.xlu1 %7333, %v7891_v3   ;;  %v8574_v3 = vpop.permute.xlu1 %3757 }
 0x1de   : > { %12433 = vst [vmem:[#allocation101_spill] sm:$0xff] %v8574_v3 }
 0x1e1   : > { %7334 = vset.pattern.permute.xlu1 %v12373_v22 }
 0x1e2   : > { %2385 = vperm.xlu1 %7334, %v7905_v6   ;;  %v8585_v6 = vpop.permute.xlu1 %1619 }
 0x1e3   : > { %12435 = vst [vmem:[#allocation103_spill] sm:$0xff] %v8585_v6 }
 0x1e6   : > { %7335 = vset.pattern.permute.xlu1 %v12370_v29  ;;  %v8594_v3 = vpop.permute.xlu1 %3917 }
 0x1e7   : > { %3793 = vperm.xlu1 %7335, %v7381_v55   ;;  %v8590_v55 = vpop.permute.xlu0 %2481  ;;  %12436 = vst [vmem:[#allocation104_spill] sm:$0xff] %v8594_v3 }
 0x1ea   : > { %v8599_v63 = vpop.permute.xlu1 %1844 }
 0x1eb   : > { %3797 = vperm.xlu1 %7335, %v8581_v31   ;;  %v8596_v0 = vpop.permute.xlu0 %2489  ;;  %12437 = vst [vmem:[#allocation105_spill] sm:$0xff] %v8599_v63 }
 0x1ee   : > { %v8610_v9 = vpop.permute.xlu1 %2353 }
 0x1ef   : > { %7336 = vset.pattern.permute.xlu1 %v12363_v28  ;;  %v8601_v6 = vpop.permute.xlu0 %2497  ;;  %12439 = vst [vmem:[#allocation107_spill] sm:$0xff] %v8610_v9 }
 0x1f0   : > { %1659 = vperm.xlu1 %7336, %v7383_v41  }
 0x1f2   : > { %v8618_v63 = vpop.permute.xlu1 %3761 }
 0x1f3   : > { %v8612_v3 = vpop.permute.xlu0 %2505  ;;  %12440 = vst [vmem:[#allocation108_spill] sm:$0xff] %v8618_v63 }
 0x1f4   : > { %7337 = vset.pattern.permute.xlu1 %v12394_v24 }
 0x1f5   : > { %3957 = vperm.xlu1 %7337, %v8581_v31   ;;  %v12469_v31 = vld [vmem:[#allocation55_spill] sm:$0xff] }
 0x1f6   : > { %v8629_v33 = vpop.permute.xlu1 %3765 }
 0x1f7   : > { %v8626_v48 = vpop.permute.xlu0 %2513  ;;  %12442 = vst [vmem:[#allocation110_spill] sm:$0xff] %v8629_v33 }
 0x1f9   : > { %7338 = vset.pattern.permute.xlu1 %v12354_v25 }
 0x1fa   : > { %1884 = vperm.xlu1 %7338, %v7383_v41   ;;  %v7385_v41 = vld [vmem:[%s12079_s13 + $0x90] sm:$0xff] }
 0x1fb   : > { %v8631_v52 = vpop.permute.xlu0 %2521  ;;  %v8633_v35 = vpop.permute.xlu1 %1627 }
 0x1fc   : > { %12443 = vst [vmem:[#allocation111_spill] sm:$0xff] %v8633_v35 }
 0x1fe   : > { %7339 = vset.pattern.permute.xlu1 %v12373_v22  ;;  %v8623_v22 = vld [vmem:[%s12079_s13 + $0x98] sm:$0xff] }
 0x1ff   : > { %2393 = vperm.xlu1 %7339, %v8607_v23   ;;  %12441 = vst [vmem:[#allocation109_spill] sm:$0xff] %v8623_v22  ;;  %v12467_v23 = vld [vmem:[#allocation48_spill] sm:$0xff] }
 0x200   : > { %v8637_v63 = vpop.permute.xlu1 %3925 }
 0x201   : > { %12445 = vst [vmem:[#allocation113_spill] sm:$0xff] %v8637_v63 }
 0x203   : > { %7340 = vset.pattern.permute.xlu1 %v12370_v29 }
 0x204   : > { %3801 = vperm.xlu1 %7340, %v7385_v41   ;;  %v8635_v41 = vpop.permute.xlu0 %2529 }
 0x205   : > { %12444 = vst [vmem:[#allocation112_spill] sm:$0xff] %v8635_v41  ;;  %v8641_v61 = vpop.permute.xlu1 %1852 }
 0x206   : > { %12447 = vst [vmem:[#allocation115_spill] sm:$0xff] %v8641_v61 }
 0x208   : > { %3805 = vperm.xlu1 %7340, %v8623_v22   ;;  %v8639_v30 = vpop.permute.xlu0 %2537 }
 0x209   : > { %12446 = vst [vmem:[#allocation114_spill] sm:$0xff] %v8639_v30 }
 0x20a   : > { %v8645_v27 = vpop.permute.xlu1 %2361 }
 0x20b   : > { %12449 = vst [vmem:[#allocation117_spill] sm:$0xff] %v8645_v27 }
 0x20c   : > { %7342 = vset.pattern.permute.xlu1 %v12363_v28  ;;  %v8643_v15 = vpop.permute.xlu0 %2545  ;;  %v12468_v28 = vld [vmem:[#allocation52_spill] sm:$0xff] }
 0x20d   : > { %12448 = vst [vmem:[#allocation116_spill] sm:$0xff] %v8643_v15  ;;  %v12466_v15 = vld [vmem:[#allocation46_spill] sm:$0xff] }
 0x20f   : > { %v8649_v26 = vpop.permute.xlu1 %3769 }
 0x210   : > { %v8647_v44 = vpop.permute.xlu0 %2549  ;;  %12451 = vst [vmem:[#allocation119_spill] sm:$0xff] %v8649_v26 }
 0x211   : > { %12450 = vst [vmem:[#allocation118_spill] sm:$0xff] %v8647_v44 }
 0x213   : > { %v8653_v58 = vpop.permute.xlu1 %3773 }
 0x214   : > { %v8651_v50 = vpop.permute.xlu0 %2553  ;;  %12453 = vst [vmem:[#allocation121_spill] sm:$0xff] %v8653_v58 }
 0x215   : > { %12452 = vst [vmem:[#allocation120_spill] sm:$0xff] %v8651_v50 }
 0x218   : > { %v8655_v61 = vpop.permute.xlu0 %2557  ;;  %v8659_v27 = vpop.permute.xlu1 %1635 }
 0x219   : > { %12454 = vst [vmem:[#allocation122_spill] sm:$0xff] %v8655_v61  ;;  %12455 = vst [vmem:[#allocation123_spill] sm:$0xff] %v8659_v27 }
 0x21b   : > { %v1072_v43 = vpop.f32.mrb[0].mxu1 }
 0x21c   : > { %v6681_v9 = vpop.f32.mrb[1].mxu1  ;;  %v1149_v33 = vmul.f32 %v1072_v43, %v1072_v43  ;;  %v8661_v44 = vpop.permute.xlu0 %2293 }
 0x21d   : > { %v1157_v9 = vlaneseq  ;;  %12456 = vst [vmem:[#allocation124_spill] sm:$0xff] %v8661_v44 }
 0x21f   : > { %v8657_v47 = vshrl.u32 %v1157_v9, 7 }
 0x220   : > { %v8675_v27 = vpop.permute.xlu0 %2297 }
 0x221   : > { %12460 = vst [vmem:[#allocation127_spill] sm:$0xff] %v8675_v27  ;;  %vm1297_vm3 = vcmp.lt.s32.totalorder %v8657_v47, 1  ;;  %vm1746_vm4 = vcmp.lt.s32.totalorder %v8657_v47, 7 }
 0x224   : > { %v8698_v27 = vpop.permute.xlu0 %2305 }
 0x22b   : > { %v1145_v39 = vpop.f32.mrb[2].mxu1 }
 0x22c   : > { %v1150_v35 = vsub.f32 %v1145_v39, %v1149_v33  ;;  %v6700_v21 = vpop.f32.mrb[3].mxu1  ;;  %v8667_v33 = vsub.s32 0, %v8657_v47 }
 0x22d   : > { %v830_v21 = vld [vmem:[%s12457_s2] sm:$0x1] }
 0x22e   : > { %v1151_v63 = vmax.f32 %v1150_v35, 0.0  ;;  %12458 = vst [vmem:[#allocation125_spill] sm:$0xff] %v8667_v33 }
 0x230   : > { %v1152_v12 = vadd.f32 1e-05, %v1151_v63  ;;  %v8669_v63 = vpop.permute.xlu1 %3933 }
 0x231   : > { %12459 = vst [vmem:[#allocation126_spill] sm:$0xff] %v8669_v63 }
 0x232   : > { %7365 = vrsqrt.f32 %v1152_v12  ;;  %v831_v12 = vld [vmem:[%s12069_s3] sm:$0x1] }
 0x23c   : > { %v7366_v35 = vpop.eup %7365 }
 0x23d   : > { %v1154_v39 = vmul.f32 %v7366_v35, %v830_v21 }
 0x23f   : > { %v1155_v9 = vmul.f32 %v1154_v39, %v1072_v43  ;;  %v1160_v26 = vrot.slane %v1154_v39, %v8667_v33 }
 0x241   : > { %v1156_v58 = vsub.f32 %v831_v12, %v1155_v9  ;;  %v1161_v61 = vmul.f32 %v1160_v26, %v8071_v53  ;;  %v1162_v50 = vmul.f32 %v8064_v45, %v1160_v26  ;;  %v1163_v44 = vmul.f32 %v1160_v26, %v8085_v51  ;;  %v8688_v9 = vpop.permute.xlu1 %1860 }
 0x242   : > { %v1164_v21 = vmul.f32 %v8081_v57, %v1160_v26  ;;  %v1165_v35 = vmul.f32 %v1160_v26, %v8103_v16  ;;  %v1166_v63 = vmul.f32 %v8099_v7, %v1160_v26  ;;  %v1167_v30 = vmul.f32 %v1160_v26, %v8123_v8  ;;  %12461 = vst [vmem:[#allocation128_spill] sm:$0xff] %v8688_v9  ;;  %v12465_v9 = vld [vmem:[#allocation43_spill] sm:$0xff] }
 0x243   : > { %v1197_v43 = vrot.slane %v1156_v58, %v8667_v33  ;;  %v1168_v39 = vmul.f32 %v8119_v54, %v1160_v26  ;;  %v1169_v12 = vmul.f32 %v1160_v26, %v8144_v38  ;;  %v1170_v53 = vmul.f32 %v8140_v59, %v1160_v26  ;;  %v12462_v58 = vld [vmem:[#allocation41_spill] sm:$0xff]  ;;  %v12463_v33 = vld [vmem:[#allocation39_spill] sm:$0xff] }
 0x244   : > { %v1171_v51 = vmul.f32 %v1160_v26, %v8163_v20  ;;  %v1172_v57 = vmul.f32 %v8158_v11, %v1160_v26  ;;  %v1173_v16 = vmul.f32 %v1160_v26, %v8183_v17  ;;  %v1174_v45 = vmul.f32 %v8178_v34, %v1160_v26  ;;  %12464 = vst [vmem:[#allocation41_spill] sm:$0xff] %v8698_v27 }
 0x245   : > { %v1175_v8 = vmul.f32 %v1160_v26, %v8204_v40  ;;  %v1176_v7 = vmul.f32 %v8199_v56, %v1160_v26  ;;  %v1177_v54 = vmul.f32 %v1160_v26, %v12462_v58  ;;  %v1178_v38 = vmul.f32 %v12463_v33, %v1160_v26 }
 0x246   : > { %v1179_v59 = vmul.f32 %v1160_v26, %v8243_v32  ;;  %v1180_v20 = vmul.f32 %v12465_v9, %v1160_v26  ;;  %v1181_v11 = vmul.f32 %v1160_v26, %v8264_v37  ;;  %v1182_v17 = vmul.f32 %v12466_v15, %v1160_v26 }
 0x247   : > { %v1183_v34 = vmul.f32 %v1160_v26, %v8283_v18  ;;  %v1184_v40 = vmul.f32 %v12467_v23, %v1160_v26  ;;  %v1185_v56 = vmul.f32 %v1160_v26, %v12468_v28  ;;  %v1186_v58 = vmul.f32 %v8298_v10, %v1160_v26 }
 0x248   : > { %v1187_v33 = vmul.f32 %v1160_v26, %v12469_v31  ;;  %v1188_v27 = vmul.f32 %v8319_v5, %v1160_v26  ;;  %v1189_v32 = vmul.f32 %v1160_v26, %v8341_v14  ;;  %v1190_v9 = vmul.f32 %v8337_v2, %v1160_v26  ;;  %v8726_v5 = vpop.permute.xlu1 %2369 }
 0x249   : > { %v1191_v37 = vmul.f32 %v1160_v26, %v8362_v19  ;;  %v1192_v15 = vmul.f32 %v8358_v36, %v1160_v26  ;;  %v8714_v62 = vadd.f32 %v1197_v43, %v1172_v57  ;;  %v8716_v18 = vadd.f32 %v1197_v43, %v1161_v61  ;;  %12476 = vst [vmem:[#allocation129_spill] sm:$0xff] %v8726_v5  ;;  %v8734_v36 = vpop.permute.xlu0 %2313 }
 0x24a   : > { %v8718_v23 = vadd.f32 %v1197_v43, %v1162_v50  ;;  %v8720_v28 = vadd.f32 %v1197_v43, %v1163_v44  ;;  %v8722_v10 = vadd.f32 %v1197_v43, %v1164_v21  ;;  %v8724_v31 = vadd.f32 %v1197_v43, %v1165_v35  ;;  %12480 = vst [vmem:[#allocation133_spill] sm:$0xff] %v8734_v36 }
 0x24b   : > { %12470 = vst [vmem:[#allocation39_spill] sm:$0xff] %v8714_v62  ;;  %12471 = vst [vmem:[#allocation43_spill] sm:$0xff] %v8716_v18  ;;  %v8728_v14 = vadd.f32 %v1197_v43, %v1166_v63  ;;  %v8730_v2 = vadd.f32 %v1197_v43, %v1167_v30  ;;  %v8732_v19 = vadd.f32 %v1197_v43, %v1168_v39 }
 0x24c   : > { %12472 = vst [vmem:[#allocation46_spill] sm:$0xff] %v8718_v23  ;;  %12473 = vst [vmem:[#allocation48_spill] sm:$0xff] %v8720_v28  ;;  %v8736_v26 = vadd.f32 %v1197_v43, %v1169_v12  ;;  %v8738_v50 = vadd.f32 %v1197_v43, %v1170_v53  ;;  %v8740_v44 = vadd.f32 %v1197_v43, %v1171_v51 }
 0x24d   : > { %12474 = vst [vmem:[#allocation52_spill] sm:$0xff] %v8722_v10  ;;  %12475 = vst [vmem:[#allocation55_spill] sm:$0xff] %v8724_v31  ;;  %v8742_v61 = vadd.f32 %v1197_v43, %v1173_v16  ;;  %v8744_v21 = vadd.f32 %v1197_v43, %v1174_v45  ;;  %v8746_v35 = vadd.f32 %v1197_v43, %v1175_v8 }
 0x24e   : > { %12477 = vst [vmem:[#allocation130_spill] sm:$0xff] %v8728_v14  ;;  %12478 = vst [vmem:[#allocation131_spill] sm:$0xff] %v8730_v2  ;;  %v8748_v63 = vadd.f32 %v1197_v43, %v1176_v7  ;;  %v8750_v30 = vadd.f32 %v1197_v43, %v1177_v54  ;;  %v8752_v39 = vadd.f32 %v1197_v43, %v1178_v38 }
 0x24f   : > { %12479 = vst [vmem:[#allocation132_spill] sm:$0xff] %v8732_v19  ;;  %12481 = vst [vmem:[#allocation134_spill] sm:$0xff] %v8736_v26  ;;  %v8754_v57 = vadd.f32 %v1197_v43, %v1179_v59  ;;  %v8756_v12 = vadd.f32 %v1197_v43, %v1180_v20  ;;  %v8758_v53 = vadd.f32 %v1197_v43, %v1181_v11  ;;  %v8774_v59 = vpop.permute.xlu1 %3777 }
 0x250   : > { %12482 = vst [vmem:[#allocation135_spill] sm:$0xff] %v8738_v50  ;;  %12483 = vst [vmem:[#allocation136_spill] sm:$0xff] %v8740_v44  ;;  %v8760_v51 = vadd.f32 %v1197_v43, %v1182_v17  ;;  %v8762_v16 = vadd.f32 %v1197_v43, %v1183_v34  ;;  %v8764_v45 = vadd.f32 %v1197_v43, %v1184_v40  ;;  %v8784_v40 = vpop.permute.xlu0 %2321  ;;  %v8882_v5 = vmax.f32 %v8752_v39, 0.0 }
 0x251   : > { %12484 = vst [vmem:[#allocation137_spill] sm:$0xff] %v8742_v61  ;;  %12485 = vst [vmem:[#allocation138_spill] sm:$0xff] %v8744_v21  ;;  %v8766_v8 = vadd.f32 %v1197_v43, %v1185_v56  ;;  %v8768_v7 = vadd.f32 %v1197_v43, %v1186_v58  ;;  %v8770_v54 = vadd.f32 %v1197_v43, %v1187_v33  ;;  %v8787_v56 = vmax.f32 %v8716_v18, 0.0 }
 0x252   : > { %12486 = vst [vmem:[#allocation139_spill] sm:$0xff] %v8746_v35  ;;  %12487 = vst [vmem:[#allocation140_spill] sm:$0xff] %v8748_v63  ;;  %v8772_v38 = vadd.f32 %v1197_v43, %v1188_v27  ;;  %v8776_v20 = vadd.f32 %v1197_v43, %v1189_v32  ;;  %v8778_v11 = vadd.f32 %v1197_v43, %v1190_v9  ;;  %v8790_v58 = vmax.f32 %v8720_v28, 0.0 }
 0x253   : > { %12488 = vst [vmem:[#allocation141_spill] sm:$0xff] %v8750_v30  ;;  %12489 = vst [vmem:[#allocation142_spill] sm:$0xff] %v8752_v39  ;;  %v8780_v17 = vadd.f32 %v1197_v43, %v1191_v37  ;;  %v8782_v34 = vadd.f32 %v1197_v43, %v1192_v15  ;;  %2624 = vrot.lane.b32.xlu1 %v8787_v56, %s12286_s21  ;;  %v8797_v27 = vmax.f32 %v8718_v23, 0.0  ;;  %v8799_v43 = vpop.permute.xlu1 %3781  ;;  %v8802_v33 = vmax.f32 %v8724_v31, 0.0 }
 0x254   : > { %12490 = vst [vmem:[#allocation143_spill] sm:$0xff] %v8754_v57  ;;  %12491 = vst [vmem:[#allocation144_spill] sm:$0xff] %v8756_v12  ;;  %2628 = vrot.lane.b32.xlu0 %v8790_v58, %s12286_s21  ;;  %v8804_v32 = vpop.permute.xlu0 %2325  ;;  %v8811_v9 = vmax.f32 %v8722_v10, 0.0  ;;  %v8814_v37 = vmax.f32 %v8730_v2, 0.0  ;;  %v8825_v31 = vmax.f32 %v8728_v14, 0.0  ;;  %v8828_v28 = vmax.f32 %v8740_v44, 0.0 }
 0x255   : > { %12492 = vst [vmem:[#allocation145_spill] sm:$0xff] %v8758_v53  ;;  %12493 = vst [vmem:[#allocation146_spill] sm:$0xff] %v8760_v51  ;;  %v8835_v10 = vmax.f32 %v8732_v19, 0.0  ;;  %v8840_v18 = vmax.f32 %v8742_v61, 0.0  ;;  %v8849_v14 = vmax.f32 %v8736_v26, 0.0  ;;  %v8856_v19 = vmax.f32 %v8780_v17, 0.0 }
 0x256   : > { %12494 = vst [vmem:[#allocation147_spill] sm:$0xff] %v8762_v16  ;;  %12495 = vst [vmem:[#allocation148_spill] sm:$0xff] %v8764_v45  ;;  %v8859_v61 = vmax.f32 %v8782_v34, 0.0  ;;  %v8870_v26 = vmax.f32 %v8744_v21, 0.0  ;;  %v8893_v21 = vmax.f32 %v8746_v35, 0.0  ;;  %v1273_v25 = vrot.slane %v8828_v28, 7 }
 0x257   : > { %12496 = vst [vmem:[#allocation149_spill] sm:$0xff] %v8766_v8  ;;  %12497 = vst [vmem:[#allocation150_spill] sm:$0xff] %v8768_v7  ;;  %2626 = vrot.lane.b32.xlu1 %v8797_v27, %s12286_s21  ;;  %v8816_v15 = vpop.permute.xlu1 %1643  ;;  %v1271_v29 = vrot.slane %v8849_v14, 7  ;;  %v1268_v22 = vrot.slane %v8825_v31, 7  ;;  %v1269_v24 = vrot.slane %v8814_v37, 7 }
 0x258   : > { %12498 = vst [vmem:[#allocation151_spill] sm:$0xff] %v8770_v54  ;;  %12499 = vst [vmem:[#allocation152_spill] sm:$0xff] %v8772_v38  ;;  %2632 = vrot.lane.b32.xlu0 %v8802_v33, %s12286_s21  ;;  %v8822_v23 = vpop.permute.xlu0 %2329  ;;  %v12538_v35 = vrot.slane %v8859_v61, 7 }
 0x259   : > { %12500 = vst [vmem:[#allocation153_spill] sm:$0xff] %v8774_v59  ;;  %12501 = vst [vmem:[#allocation154_spill] sm:$0xff] %v8776_v20  ;;  %v1270_v20 = vrot.slane %v8835_v10, 7 }
 0x25a   : > { %12502 = vst [vmem:[#allocation155_spill] sm:$0xff] %v8778_v11  ;;  %12503 = vst [vmem:[#allocation156_spill] sm:$0xff] %v8780_v17  ;;  %v8876_v17 = vmax.f32 %v8760_v51, 0.0  ;;  %v8896_v51 = vmax.f32 %v8748_v63, 0.0 }
 0x25b   : > { %12504 = vst [vmem:[#allocation157_spill] sm:$0xff] %v8782_v34  ;;  %12505 = vst [vmem:[#allocation158_spill] sm:$0xff] %v8784_v40  ;;  %2630 = vrot.lane.b32.xlu1 %v8811_v9, %s12286_s21  ;;  %v8837_v2 = vpop.permute.xlu1 %3941  ;;  %v8879_v34 = vmax.f32 %v8750_v30, 0.0  ;;  %v1275_v30 = vrot.slane %v8840_v18, 7  ;;  %v1277_v40 = vrot.slane %v8893_v21, 7 }
 0x25c   : > { %12506 = vst [vmem:[#allocation159_spill] sm:$0xff] %v8787_v56  ;;  %12507 = vst [vmem:[#allocation160_spill] sm:$0xff] %v8790_v58  ;;  %2636 = vrot.lane.b32.xlu0 %v8814_v37, %s12286_s21  ;;  %v8842_v59 = vpop.permute.xlu0 %2337 }
 0x25d   : > { %12508 = vst [vmem:[#allocation161_spill] sm:$0xff] %v8797_v27  ;;  %12509 = vst [vmem:[#allocation162_spill] sm:$0xff] %v8799_v43  ;;  %v8867_v43 = vmax.f32 %v8714_v62, 0.0  ;;  %v8888_v62 = vmax.f32 %v8756_v12, 0.0  ;;  %v1279_v63 = vrot.slane %v8879_v34, 7 }
 0x25e   : > { %12510 = vst [vmem:[#allocation163_spill] sm:$0xff] %v8804_v32  ;;  %12511 = vst [vmem:[#allocation164_spill] sm:$0xff] %v8814_v37  ;;  %v1278_v32 = vrot.slane %v8896_v51, 7 }
 0x25f   : > { %12512 = vst [vmem:[#allocation165_spill] sm:$0xff] %v8816_v15  ;;  %12513 = vst [vmem:[#allocation166_spill] sm:$0xff] %v8822_v23  ;;  %2634 = vrot.lane.b32.xlu1 %v8825_v31, %s12286_s21  ;;  %v8851_v44 = vpop.permute.xlu1 %1868  ;;  %v8864_v15 = vmax.f32 %v8738_v50, 0.0  ;;  %v8885_v50 = vmax.f32 %v8754_v57, 0.0  ;;  %v1274_v12 = vrot.slane %v8867_v43, 7  ;;  %v1282_v23 = vrot.slane %v8888_v62, 7 }
 0x260   : > { %12514 = vst [vmem:[#allocation167_spill] sm:$0xff] %v8825_v31  ;;  %12515 = vst [vmem:[#allocation168_spill] sm:$0xff] %v8828_v28  ;;  %2644 = vrot.lane.b32.xlu0 %v8828_v28, %s12286_s21 }
 0x261   : > { %12516 = vst [vmem:[#allocation169_spill] sm:$0xff] %v8835_v10  ;;  %12517 = vst [vmem:[#allocation170_spill] sm:$0xff] %v8837_v2  ;;  %v8861_v2 = vpop.permute.xlu0 %2349  ;;  %v1281_v39 = vrot.slane %v8885_v50, 7  ;;  %v1272_v42 = vrot.slane %v8864_v15, 7 }
 0x262   : > { %12518 = vst [vmem:[#allocation171_spill] sm:$0xff] %v8840_v18  ;;  %12519 = vst [vmem:[#allocation172_spill] sm:$0xff] %v8842_v59 }
 0x263   : > { %2638 = vrot.lane.b32.xlu1 %v8835_v10, %s12286_s21  ;;  %12520 = vst [vmem:[#allocation173_spill] sm:$0xff] %v8849_v14  ;;  %12521 = vst [vmem:[#allocation174_spill] sm:$0xff] %v8851_v44  ;;  %v8873_v44 = vmax.f32 %v8758_v53, 0.0  ;;  %v8901_v57 = vpop.permute.xlu1 %2377  ;;  %v1280_v53 = vrot.slane %v8882_v5, 7  ;;  %v8945_v11 = vsel %vm1297_vm3, %v1281_v39, %v1282_v23 }
 0x264   : > { %2648 = vrot.lane.b32.xlu0 %v8840_v18, %s12286_s21  ;;  %12522 = vst [vmem:[#allocation175_spill] sm:$0xff] %v8856_v19  ;;  %12523 = vst [vmem:[#allocation176_spill] sm:$0xff] %v8859_v61 }
 0x265   : > { %12524 = vst [vmem:[#allocation177_spill] sm:$0xff] %v8861_v2  ;;  %12525 = vst [vmem:[#allocation178_spill] sm:$0xff] %v8864_v15  ;;  %v1283_v2 = vrot.slane %v8873_v44, 7  ;;  %v8907_v59 = vpop.permute.xlu0 %2357  ;;  %v8953_v38 = vsel %vm1297_vm3, %v1279_v63, %v1280_v53 }
 0x266   : > { %12526 = vst [vmem:[#allocation179_spill] sm:$0xff] %v8867_v43  ;;  %12527 = vst [vmem:[#allocation180_spill] sm:$0xff] %v8870_v26 }
 0x267   : > { %2640 = vrot.lane.b32.xlu1 %v8849_v14, %s12286_s21  ;;  %12528 = vst [vmem:[#allocation181_spill] sm:$0xff] %v8873_v44  ;;  %12529 = vst [vmem:[#allocation182_spill] sm:$0xff] %v8876_v17  ;;  %v8955_v41 = vpop.permute.xlu1 %3785 }
 0x268   : > { %12530 = vst [vmem:[#allocation183_spill] sm:$0xff] %v8879_v34  ;;  %12531 = vst [vmem:[#allocation184_spill] sm:$0xff] %v8882_v5 }
 0x269   : > { %12532 = vst [vmem:[#allocation185_spill] sm:$0xff] %v8885_v50  ;;  %12533 = vst [vmem:[#allocation186_spill] sm:$0xff] %v8888_v62 }
 0x26a   : > { %12534 = vst [vmem:[#allocation187_spill] sm:$0xff] %v8893_v21  ;;  %12535 = vst [vmem:[#allocation188_spill] sm:$0xff] %v8896_v51 }
 0x26b   : > { %2642 = vrot.lane.b32.xlu1 %v8864_v15, %s12286_s21  ;;  %12536 = vst [vmem:[#allocation189_spill] sm:$0xff] %v8901_v57  ;;  %12537 = vst [vmem:[#allocation190_spill] sm:$0xff] %v8907_v59  ;;  %v1276_v57 = vrot.slane %v8870_v26, 7  ;;  %v12539_v59 = vrot.slane %v8856_v19, 7  ;;  %v12541_v19 = vrot.slane %v8876_v17, 7 }
 0x26c   : > { %12544 = vst [vmem:[#allocation194_spill] sm:$0xff] %v8945_v11  ;;  %12546 = vst [vmem:[#allocation196_spill] sm:$0xff] %v8953_v38 }
 0x26d   : > { %v8924_v36 = vsel %vm1297_vm3, %v12539_v59, %v12538_v35  ;;  %v8937_v35 = vsel %vm1297_vm3, %v1283_v2, %v12541_v19  ;;  %v8941_v59 = vsel %vm1297_vm3, %v1282_v23, %v1283_v2  ;;  %12547 = vst [vmem:[#allocation197_spill] sm:$0xff] %v8955_v41  ;;  %v8961_v2 = vsel %vm1297_vm3, %v1278_v32, %v1279_v63 }
 0x26e   : > { %12540 = vst [vmem:[#allocation191_spill] sm:$0xff] %v8924_v36  ;;  %12542 = vst [vmem:[#allocation192_spill] sm:$0xff] %v8937_v35  ;;  %v8949_v36 = vsel %vm1297_vm3, %v1280_v53, %v1281_v39  ;;  %v8965_v23 = vsel %vm1297_vm3, %v1277_v40, %v1278_v32  ;;  %v8969_v19 = vsel %vm1297_vm3, %v1276_v57, %v1277_v40  ;;  %v8975_v53 = vpop.permute.xlu0 %2365 }
 0x26f   : > { %2646 = vrot.lane.b32.xlu1 %v8867_v43, %s12286_s21  ;;  %12543 = vst [vmem:[#allocation193_spill] sm:$0xff] %v8941_v59  ;;  %12545 = vst [vmem:[#allocation195_spill] sm:$0xff] %v8949_v36  ;;  %v8973_v39 = vsel %vm1297_vm3, %v1275_v30, %v1276_v57  ;;  %v8979_v41 = vsel %vm1297_vm3, %v1274_v12, %v1275_v30  ;;  %v8983_v63 = vsel %vm1297_vm3, %v1273_v25, %v1274_v12 }
 0x270   : > { %12548 = vst [vmem:[#allocation198_spill] sm:$0xff] %v8961_v2  ;;  %12549 = vst [vmem:[#allocation199_spill] sm:$0xff] %v8965_v23  ;;  %v8987_v32 = vsel %vm1297_vm3, %v1272_v42, %v1273_v25  ;;  %v8991_v40 = vsel %vm1297_vm3, %v1271_v29, %v1272_v42  ;;  %v8995_v57 = vsel %vm1297_vm3, %v1270_v20, %v1271_v29  ;;  %v9013_v42 = vpop.permute.xlu1 %3789  ;;  %v1720_v29 = vrot.slane %v8814_v37, 1 }
 0x271   : > { %12550 = vst [vmem:[#allocation200_spill] sm:$0xff] %v8969_v19  ;;  %12551 = vst [vmem:[#allocation201_spill] sm:$0xff] %v8973_v39  ;;  %v8999_v30 = vsel %vm1297_vm3, %v1269_v24, %v1270_v20  ;;  %v9003_v12 = vsel %vm1297_vm3, %v1268_v22, %v1269_v24  ;;  %v1721_v20 = vrot.slane %v8835_v10, 1  ;;  %v12152_v59 = vrot.slane %v8849_v14, 1 }
 0x272   : > { %12552 = vst [vmem:[#allocation202_spill] sm:$0xff] %v8975_v53  ;;  %12553 = vst [vmem:[#allocation203_spill] sm:$0xff] %v8979_v41  ;;  %v12557_v53 = vrot.slane %v8802_v33, 7  ;;  %v9019_v24 = vpop.permute.xlu0 %2373  ;;  %v1717_v2 = vrot.slane %v8811_v9, 1 }
 0x273   : > { %2650 = vrot.lane.b32.xlu1 %v8870_v26, %s12286_s21  ;;  %12554 = vst [vmem:[#allocation204_spill] sm:$0xff] %v8983_v63  ;;  %12555 = vst [vmem:[#allocation205_spill] sm:$0xff] %v8987_v32  ;;  %v9033_v10 = vsel %vm1746_vm4, %v1720_v29, %v1721_v20 }
 0x274   : > { %12556 = vst [vmem:[#allocation206_spill] sm:$0xff] %v9003_v12  ;;  %v9009_v25 = vsel %vm1297_vm3, %v12557_v53, %v1268_v22  ;;  %12559 = vst [vmem:[#allocation208_spill] sm:$0xff] %v9013_v42  ;;  %v1714_v22 = vrot.slane %v8787_v56, 1  ;;  %v12154_v53 = vrot.slane %v8859_v61, 1  ;;  %v9029_v42 = vsel %vm1746_vm4, %v1721_v20, %v12152_v59  ;;  %v9035_v37 = vpop.permute.xlu1 %1651 }
 0x275   : > { %12558 = vst [vmem:[#allocation207_spill] sm:$0xff] %v9009_v25  ;;  %12560 = vst [vmem:[#allocation209_spill] sm:$0xff] %v9019_v24 }
 0x276   : > { %12561 = vst [vmem:[#allocation210_spill] sm:$0xff] %v9029_v42  ;;  %12562 = vst [vmem:[#allocation211_spill] sm:$0xff] %v9033_v10  ;;  %v9043_v24 = vsel %vm1746_vm4, %v12154_v53, %v1714_v22  ;;  %v9045_v35 = vpop.permute.xlu0 %2381  ;;  %v1716_v53 = vrot.slane %v8790_v58, 1 }
 0x277   : > { %2652 = vrot.lane.b32.xlu1 %v8893_v21, %s12286_s21  ;;  %12563 = vst [vmem:[#allocation212_spill] sm:$0xff] %v9035_v37  ;;  %12564 = vst [vmem:[#allocation213_spill] sm:$0xff] %v9043_v24  ;;  %v1715_v37 = vrot.slane %v8797_v27, 1 }
 0x278   : > { %12565 = vst [vmem:[#allocation214_spill] sm:$0xff] %v9045_v35  ;;  %v9049_v59 = vpop.permute.xlu1 %3949 }
 0x279   : > { %12566 = vst [vmem:[#allocation215_spill] sm:$0xff] %v9049_v59  ;;  %v9063_v35 = vsel %vm1746_vm4, %v1714_v22, %v1715_v37  ;;  %v12571_v59 = vld [vmem:[#allocation28_spill] sm:$0xff] }
 0x27a   : > { %v9051_v20 = vpop.permute.xlu0 %2389  ;;  %12569 = vst [vmem:[#allocation218_spill] sm:$0xff] %v9063_v35 }
 0x27b   : > { %2654 = vrot.lane.b32.xlu1 %v8896_v51, %s12286_s21  ;;  %12567 = vst [vmem:[#allocation216_spill] sm:$0xff] %v9051_v20  ;;  %v2560_v20 = vmul.f32 %v12571_v59, %v9063_v35  ;;  %v1718_v59 = vrot.slane %v8802_v33, 1  ;;  %v9088_v35 = vsel %vm1746_vm4, %v1716_v53, %v1717_v2 }
 0x27c   : > { %v9056_v36 = vpop.permute.xlu1 %1876  ;;  %12574 = vst [vmem:[#allocation221_spill] sm:$0xff] %v9088_v35 }
 0x27d   : > { %12568 = vst [vmem:[#allocation217_spill] sm:$0xff] %v9056_v36  ;;  %v9074_v36 = vsel %vm1746_vm4, %v1715_v37, %v1716_v53  ;;  %2752 = vrot.lane.b32.xlu0 %v2560_v20, %s12165_s25  ;;  %v9091_v37 = vmax.f32 %v8762_v16, 0.0  ;;  %v12576_v20 = vld [vmem:[#allocation29_spill] sm:$0xff]  ;;  %v9108_v16 = vmax.f32 %v8764_v45, 0.0  ;;  %v6209_v45 = vld [vmem:[%s12070_s4 + $0x68] sm:$0xff] }
 0x27e   : > { %v9065_v11 = vpop.permute.xlu0 %2397  ;;  %12572 = vst [vmem:[#allocation28_spill] sm:$0xff] %v9074_v36 }
 0x27f   : > { %2656 = vrot.lane.b32.xlu1 %v8879_v34, %s12286_s21  ;;  %12570 = vst [vmem:[#allocation219_spill] sm:$0xff] %v9065_v11  ;;  %v2561_v11 = vmul.f32 %v8549_v46, %v9074_v36  ;;  %12575 = vst [vmem:[#allocation222_spill] sm:$0xff] %v9091_v37  ;;  %v1719_v46 = vrot.slane %v8825_v31, 1  ;;  %v9103_v36 = vsel %vm1746_vm4, %v1717_v2, %v1718_v59 }
 0x280   : > { %v9077_v38 = vpop.permute.xlu1 %2385  ;;  %12578 = vst [vmem:[#allocation223_spill] sm:$0xff] %v9103_v36  ;;  %12579 = vst [vmem:[#allocation224_spill] sm:$0xff] %v9108_v16 }
 0x281   : > { %12573 = vst [vmem:[#allocation220_spill] sm:$0xff] %v9077_v38  ;;  %2754 = vrot.lane.b32.xlu0 %v2561_v11, %s12165_s25  ;;  %v2562_v38 = vmul.f32 %v12576_v20, %v9088_v35  ;;  %v12580_v11 = vld [vmem:[#allocation31_spill] sm:$0xff]  ;;  %v9120_v2 = vsel %vm1746_vm4, %v1718_v59, %v1719_v46  ;;  %v9132_v35 = vmax.f32 %v8766_v8, 0.0  ;;  %v9145_v39 = vsel %vm1746_vm4, %v1719_v46, %v1720_v29  ;;  %v6213_v8 = vld [vmem:[%s12070_s4 + $0x88] sm:$0xff] }
 0x282   : > { %v9079_v22 = vpop.permute.xlu0 %1555  ;;  %v2563_v20 = vmul.f32 %v12580_v11, %v9103_v36  ;;  %12581 = vst [vmem:[#allocation31_spill] sm:$0xff] %v9120_v2  ;;  %v6211_v11 = vld [vmem:[%s12070_s4 + $0x78] sm:$0xff]  ;;  %v2564_v36 = vmul.f32 %v8556_v1, %v9120_v2  ;;  %12584 = vst [vmem:[#allocation226_spill] sm:$0xff] %v9145_v39  ;;  %v1723_v1 = vrot.slane %v8864_v15, 1  ;;  %v12595_v15 = vld [vmem:[#allocation34_spill] sm:$0xff] }
 0x283   : > { %2658 = vrot.lane.b32.xlu1 %v8882_v5, %s12286_s21  ;;  %v2567_v2 = vmul.f32 %v12595_v15, %v9029_v42  ;;  %v6219_v15 = vld [vmem:[%s12070_s4 + $0xb8] sm:$0xff] }
 0x284   : > { %v9096_v19 = vpop.permute.xlu1 %3793 }
 0x285   : > { %12577 = vst [vmem:[#allocation29_spill] sm:$0xff] %v9096_v19  ;;  %2756 = vrot.lane.b32.xlu0 %v2562_v38, %s12165_s25  ;;  %v6208_v19 = vld [vmem:[%s12070_s4 + $0x60] sm:$0xff]  ;;  %v6210_v38 = vld [vmem:[%s12070_s4 + $0x70] sm:$0xff]  ;;  %s6370_s25 = sshll.u32 %s7607_s17, 12 }
 0x286   : > { %v9105_v53 = vpop.permute.xlu0 %1567  ;;  %v7045_v23 = vpack.c.bf16 %v6209_v45, %v6208_v19  ;;  %v7049_v41 = vpack.c.bf16 %v6211_v11, %v6210_v38  ;;  %v1724_v45 = vrot.slane %v8828_v28, 1  ;;  %v12586_v19 = vld [vmem:[#allocation33_spill] sm:$0xff]  ;;  %v6215_v11 = vld [vmem:[%s12070_s4 + $0x98] sm:$0xff]  ;;  %v12781_v47 = vld [vmem:[#allocation219_spill] sm:$0xff] }
 0x287   : > { %2660 = vrot.lane.b32.xlu1 %v8885_v50, %s12286_s21  ;;  %v2565_v29 = vmul.f32 %v12586_v19, %v9145_v39  ;;  %v1725_v19 = vrot.slane %v8867_v43, 1  ;;  %v12591_v43 = vld [vmem:[#allocation36_spill] sm:$0xff] }
 0x288   : > { %v9135_v31 = vpop.permute.xlu1 %3797  ;;  %7046 = vmatprep.subr.bf16.mxu1 %v7045_v23 }
 0x289   : > { %2758 = vrot.lane.b32.xlu0 %v2563_v20, %s12582_s20  ;;  %12583 = vst [vmem:[#allocation225_spill] sm:$0xff] %v9135_v31  ;;  %v6212_v20 = vld [vmem:[%s12070_s4 + $0x80] sm:$0xff]  ;;  %v9154_v31 = vmax.f32 %v8768_v7, 0.0  ;;  %7048 = vmatpush3.bf16.msra.mxu1 %v7045_v23  ;;  %v9174_v23 = vmax.f32 %v8770_v54, 0.0 }
 0x28a   : > { %v9137_v59 = vpop.permute.xlu0 %1575  ;;  %7050 = vmatprep.subr.bf16.mxu1 %v7049_v41  ;;  %v7053_v38 = vpack.c.bf16 %v6213_v8, %v6212_v20  ;;  %v9180_v8 = vsel %vm1746_vm4, %v1723_v1, %v1724_v45  ;;  %v2566_v20 = vmul.f32 %v8562_v4, %v9033_v10  ;;  %v6216_v54 = vld [vmem:[%s12070_s4 + $0xa0] sm:$0xff]  ;;  %v1727_v4 = vrot.slane %v8870_v26, 1  ;;  %v9475_v26 = vld [vmem:[%s12079_s13 + $0xb8] sm:$0xff] }
 0x28b   : > { %2662 = vrot.lane.b32.xlu1 %v8888_v62, %s12286_s21  ;;  %12585 = vst [vmem:[#allocation227_spill] sm:$0xff] %v9154_v31  ;;  %12589 = vst [vmem:[#allocation229_spill] sm:$0xff] %v9174_v23  ;;  %v2569_v28 = vmul.f32 %v12591_v43, %v9180_v8  ;;  %v1728_v10 = vrot.slane %v8893_v21, 1 }
 0x28c   : > { %v9161_v46 = vpop.permute.xlu1 %1659  ;;  %12590 = vst [vmem:[#allocation230_spill] sm:$0xff] %v9180_v8 }
 0x28d   : > { %2760 = vrot.lane.b32.xlu0 %v2564_v36, %s12582_s20  ;;  %12587 = vst [vmem:[#allocation33_spill] sm:$0xff] %v9161_v46  ;;  %v6214_v36 = vld [vmem:[%s12070_s4 + $0x90] sm:$0xff]  ;;  %7052 = vmatpush3.bf16.msra.mxu1 %v7049_v41 }
 0x28e   : > { %v9171_v7 = vpop.permute.xlu0 %1583  ;;  %7054 = vmatprep.subr.bf16.mxu1 %v7053_v38  ;;  %v7057_v46 = vpack.c.bf16 %v6215_v11, %v6214_v36  ;;  %v9201_v36 = vsel %vm1746_vm4, %v1724_v45, %v1725_v19  ;;  %v6218_v45 = vld [vmem:[%s12070_s4 + $0xb0] sm:$0xff] }
 0x28f   : > { %2664 = vrot.lane.b32.xlu1 %v8873_v44, %s12286_s21  ;;  %12588 = vst [vmem:[#allocation228_spill] sm:$0xff] %v9171_v7  ;;  %12593 = vst [vmem:[#allocation231_spill] sm:$0xff] %v9201_v36 }
 0x290   : > { %v9195_v41 = vpop.permute.xlu1 %3957 }
 0x291   : > { %2762 = vrot.lane.b32.xlu0 %v2565_v29, %s12582_s20  ;;  %v6217_v29 = vld [vmem:[%s12070_s4 + $0xa8] sm:$0xff]  ;;  %12592 = vst [vmem:[#allocation36_spill] sm:$0xff] %v9195_v41  ;;  %7056 = vmatpush3.bf16.msra.mxu1 %v7053_v38  ;;  %v12596_v41 = vrot.slane %v8849_v14, 1  ;;  %v1730_v38 = vrot.slane %v8879_v34, 1  ;;  %v12602_v34 = vld [vmem:[#allocation40_spill] sm:$0xff] }
 0x292   : > { %v9203_v11 = vpop.permute.xlu0 %1591  ;;  %7058 = vmatprep.subr.bf16.mxu1 %v7057_v46  ;;  %v7061_v43 = vpack.c.bf16 %v6217_v29, %v6216_v54  ;;  %v1729_v54 = vrot.slane %v8896_v51, 1  ;;  %v9509_v14 = vld [vmem:[%s12079_s13 + $0xd8] sm:$0xff] }
 0x293   : > { %2666 = vrot.lane.b32.xlu1 %v8876_v17, %s12286_s21  ;;  %12594 = vst [vmem:[#allocation232_spill] sm:$0xff] %v9203_v11  ;;  %v9213_v8 = vsel %vm1746_vm4, %v12596_v41, %v1723_v1  ;;  %v9228_v1 = vsel %vm1746_vm4, %v1727_v4, %v1728_v10  ;;  %v12658_v11 = vrot.slane %v8859_v61, 7 }
 0x294   : > { %12597 = vst [vmem:[#allocation34_spill] sm:$0xff] %v9213_v8  ;;  %12598 = vst [vmem:[#allocation233_spill] sm:$0xff] %v9228_v1  ;;  %v2568_v29 = vmul.f32 %v8568_v60, %v9213_v8  ;;  %v9232_v41 = vpop.permute.xlu1 %1884  ;;  %v2573_v51 = vmul.f32 %v12602_v34, %v9228_v1  ;;  %v1732_v60 = vrot.slane %v8885_v50, 1  ;;  %v1733_v1 = vrot.slane %v8888_v62, 1 }
 0x295   : > { %2764 = vrot.lane.b32.xlu0 %v2566_v20, %s12582_s20  ;;  %v1726_v20 = vrot.slane %v8840_v18, 1  ;;  %7060 = vmatpush3.bf16.msra.mxu1 %v7057_v46  ;;  %12599 = vst [vmem:[#allocation234_spill] sm:$0xff] %v9232_v41  ;;  %v1731_v46 = vrot.slane %v8882_v5, 1  ;;  %v7390_v5 = vld [vmem:[%s12079_s13 + $0xa0] sm:$0xff]  ;;  %v12654_v18 = vld [vmem:[#allocation116_spill] sm:$0xff] }
 0x296   : > { %7062 = vmatprep.subr.bf16.mxu1 %v7061_v43 }
 0x297   : > { %2668 = vrot.lane.b32.xlu1 %v9091_v37, %s12286_s21  ;;  %v9255_v34 = vsel %vm1746_vm4, %v1726_v20, %v1727_v4 }
 0x298   : > { %v9259_v41 = vpop.permute.xlu1 %2393  ;;  %v2572_v4 = vmul.f32 %v8590_v55, %v9255_v34 }
 0x299   : > { %2766 = vrot.lane.b32.xlu0 %v2567_v2, %s12582_s20  ;;  %v9237_v2 = vsel %vm1746_vm4, %v1725_v19, %v1726_v20  ;;  %7064 = vmatpush3.bf16.msra.mxu1 %v7061_v43  ;;  %v1734_v43 = vrot.slane %v8873_v44, 1  ;;  %v9275_v20 = vsel %vm1746_vm4, %v1728_v10, %v1729_v54  ;;  %v9293_v10 = vsel %vm1746_vm4, %v1730_v38, %v1731_v46 }
 0x29a   : > { %12600 = vst [vmem:[#allocation235_spill] sm:$0xff] %v9237_v2  ;;  %12610 = vst [vmem:[#allocation239_spill] sm:$0xff] %v9275_v20  ;;  %v2574_v55 = vmul.f32 %v8596_v0, %v9275_v20 }
 0x29b   : > { %2670 = vrot.lane.b32.xlu1 %v9108_v16, %s12286_s21  ;;  %12614 = vst [vmem:[#allocation241_spill] sm:$0xff] %v9293_v10 }
 0x29d   : > { %2768 = vrot.lane.b32.xlu0 %v2568_v29, %s12582_s20 }
 0x29f   : > { %2672 = vrot.lane.b32.xlu1 %v9132_v35, %s12286_s21 }
 0x2a3   : > { %2674 = vrot.lane.b32.xlu1 %v9154_v31, %s12286_s21 }
 0x2a7   : > { %2676 = vrot.lane.b32.xlu1 %v9174_v23, %s12286_s21 }
 0x2ab   : > { %2770 = vrot.lane.b32.xlu1 %v2569_v28, %s12582_s20  ;;  %v2570_v28 = vmul.f32 %v8576_v49, %v9201_v36  ;;  %v7065_v49 = vpack.c.bf16 %v6219_v15, %v6218_v45  ;;  %v9239_v36 = vpop.permute.xlu0 %1599  ;;  %v12604_v45 = vld [vmem:[#allocation38_spill] sm:$0xff]  ;;  %v12606_v15 = vld [vmem:[#allocation44_spill] sm:$0xff] }
 0x2ac   : > { %12601 = vst [vmem:[#allocation236_spill] sm:$0xff] %v9239_v36  ;;  %v2571_v19 = vmul.f32 %v12604_v45, %v9237_v2  ;;  %12605 = vst [vmem:[#allocation38_spill] sm:$0xff] %v9255_v34  ;;  %v9266_v45 = vsel %vm1746_vm4, %v1731_v46, %v1732_v60  ;;  %v9284_v2 = vsel %vm1746_vm4, %v1733_v1, %v1734_v43  ;;  %v1738_v34 = vrot.slane %v9132_v35, 1  ;;  %v12619_v46 = vld [vmem:[#allocation51_spill] sm:$0xff] }
 0x2ad   : > { %7066 = vmatprep.subr.bf16.mxu1 %v7065_v49  ;;  %12607 = vst [vmem:[#allocation44_spill] sm:$0xff] %v9259_v41  ;;  %12608 = vst [vmem:[#allocation237_spill] sm:$0xff] %v9266_v45  ;;  %v12655_v41 = vrot.slane %v9174_v23, 1 }
 0x2ae   : > { %2774 = vrot.lane.b32.xlu0 %v2571_v19, %s12582_s20  ;;  %7068 = vmatpush3.bf16.msra.mxu1 %v7065_v49  ;;  %v12611_v19 = vld [vmem:[#allocation47_spill] sm:$0xff]  ;;  %v1736_v49 = vrot.slane %v9091_v37, 1 }
 0x2af   : > { %2772 = vrot.lane.b32.xlu1 %v2570_v28, %s12582_s20  ;;  %v9248_v28 = vsel %vm1746_vm4, %v1729_v54, %v1730_v38  ;;  %12612 = vst [vmem:[#allocation47_spill] sm:$0xff] %v9284_v2  ;;  %v9311_v38 = vsel %vm1746_vm4, %v1732_v60, %v1733_v1 }
 0x2b0   : > { %12603 = vst [vmem:[#allocation40_spill] sm:$0xff] %v9248_v28  ;;  %v2575_v29 = vmul.f32 %v12606_v15, %v9248_v28  ;;  %v2577_v15 = vmul.f32 %v12611_v19, %v9266_v45  ;;  %v1735_v28 = vrot.slane %v8876_v17, 1  ;;  %v1737_v45 = vrot.slane %v9108_v16, 1  ;;  %12618 = vst [vmem:[#allocation243_spill] sm:$0xff] %v9311_v38 }
 0x2b2   : > { %2776 = vrot.lane.b32.xlu0 %v2572_v4, %s12582_s20  ;;  %v12616_v4 = vld [vmem:[#allocation49_spill] sm:$0xff]  ;;  %v9304_v0 = vsel %vm1746_vm4, %v1735_v28, %v1736_v49  ;;  %v9331_v60 = vsel %vm1746_vm4, %v1734_v43, %v1735_v28  ;;  %v9349_v28 = vsel %vm1746_vm4, %v1736_v49, %v1737_v45 }
 0x2b3   : > { %2778 = vrot.lane.b32.xlu1 %v2573_v51, %s12582_s20  ;;  %v9268_v51 = vpop.permute.xlu0 %1607  ;;  %v2579_v19 = vmul.f32 %v12616_v4, %v9284_v2  ;;  %12617 = vst [vmem:[#allocation49_spill] sm:$0xff] %v9304_v0  ;;  %12623 = vst [vmem:[#allocation246_spill] sm:$0xff] %v9331_v60 }
 0x2b4   : > { %12609 = vst [vmem:[#allocation238_spill] sm:$0xff] %v9268_v51  ;;  %12627 = vst [vmem:[#allocation247_spill] sm:$0xff] %v9349_v28 }
 0x2b6   : > { %2780 = vrot.lane.b32.xlu0 %v2574_v55, %s12582_s20  ;;  %v2581_v55 = vmul.f32 %v12619_v46, %v9304_v0  ;;  %v9395_v0 = vld [vmem:[%s12079_s13 + $0xe8] sm:$0xff] }
 0x2b7   : > { %2782 = vrot.lane.b32.xlu1 %v2575_v29, %s12582_s20  ;;  %v9288_v29 = vpop.permute.xlu1 %3801  ;;  %v9295_v54 = vpop.permute.xlu0 %1615  ;;  %12639 = vst [vmem:[#allocation254_spill] sm:$0xff] %v9395_v0 }
 0x2b8   : > { %12613 = vst [vmem:[#allocation240_spill] sm:$0xff] %v9288_v29  ;;  %12615 = vst [vmem:[#allocation242_spill] sm:$0xff] %v9295_v54  ;;  %v1739_v29 = vrot.slane %v9154_v31, 1 }
 0x2bb   : > { %2786 = vrot.lane.b32.xlu1 %v2577_v15, %s12582_s20  ;;  %v2576_v15 = vmul.f32 %v8601_v6, %v9293_v10  ;;  %v9315_v4 = vpop.permute.xlu1 %3805  ;;  %v9322_v6 = vsel %vm1746_vm4, %v1737_v45, %v1738_v34  ;;  %v9326_v1 = vpop.permute.xlu0 %1623  ;;  %v9409_v10 = vld [vmem:[%s12079_s13] sm:$0xff] }
 0x2bc   : > { %12620 = vst [vmem:[#allocation51_spill] sm:$0xff] %v9315_v4  ;;  %12621 = vst [vmem:[#allocation244_spill] sm:$0xff] %v9322_v6  ;;  %v12625_v4 = vrot.slane %v9174_v23, 1  ;;  %v1264_v23 = vrot.slane %v8797_v27, 7 }
 0x2bd   : > { %2784 = vrot.lane.b32.xlu0 %v2576_v15, %s12582_s20  ;;  %12622 = vst [vmem:[#allocation245_spill] sm:$0xff] %v9326_v1  ;;  %v12624_v15 = vld [vmem:[#allocation54_spill] sm:$0xff] }
 0x2be   : > { %v2583_v46 = vmul.f32 %v12624_v15, %v9322_v6 }
 0x2bf   : > { %2790 = vrot.lane.b32.xlu1 %v2579_v19, %s12582_s20  ;;  %v2578_v19 = vmul.f32 %v8612_v3, %v9311_v38  ;;  %v9342_v3 = vsel %vm1746_vm4, %v1739_v29, %v12625_v4  ;;  %v2582_v4 = vmul.f32 %v8631_v52, %v9349_v28  ;;  %v12633_v52 = vld [vmem:[#allocation152_spill] sm:$0xff]  ;;  %v12641_v38 = vmov 2  }
 0x2c0   : > { %12626 = vst [vmem:[#allocation54_spill] sm:$0xff] %v9342_v3  ;;  %v2585_v43 = vmul.f32 %v8339_v13, %v9342_v3  ;;  %v12630_v13 = vld [vmem:[#allocation112_spill] sm:$0xff] }
 0x2c1   : > { %2788 = vrot.lane.b32.xlu0 %v2578_v19, %s12582_s20  ;;  %v9353_v19 = vpop.permute.xlu0 %1631 }
 0x2c2   : > { %12628 = vst [vmem:[#allocation248_spill] sm:$0xff] %v9353_v19  ;;  %v12647_v19 = vmov 7  }
 0x2c3   : > { %2794 = vrot.lane.b32.xlu1 %v2581_v55, %s12582_s20  ;;  %v2580_v55 = vmul.f32 %v8626_v48, %v9331_v60  ;;  %v9363_v48 = vsel %vm1746_vm4, %v1738_v34, %v1739_v29  ;;  %v12635_v29 = vld [vmem:[#allocation154_spill] sm:$0xff] }
 0x2c4   : > { %12629 = vst [vmem:[#allocation249_spill] sm:$0xff] %v9363_v48  ;;  %v2584_v49 = vmul.f32 %v12630_v13, %v9363_v48  ;;  %v12637_v13 = vmov 8   ;;  %v12640_v48 = vld [vmem:[#allocation109_spill] sm:$0xff] }
 0x2c5   : > { %v9336_v2 = vpop.permute.xlu1 %2624  ;;  %2792 = vrot.lane.b32.xlu0 %v2580_v55, %s12582_s20  ;;  %v9375_v55 = vld [vmem:[%s12079_s13 + $0xe0] sm:$0xff] }
 0x2c6   : > { %12632 = vst [vmem:[#allocation250_spill] sm:$0xff] %v9375_v55 }
 0x2c7   : > { %2798 = vrot.lane.b32.xlu1 %v2583_v46, %s12582_s20  ;;  %v9370_v46 = vpop.permute.xlu0 %1639 }
 0x2c8   : > { %12631 = vst [vmem:[#allocation112_spill] sm:$0xff] %v9370_v46  ;;  %v12645_v46 = vld [vmem:[#allocation81_spill] sm:$0xff] }
 0x2c9   : > { %v9356_v15 = vpop.permute.xlu1 %2626  ;;  %2796 = vrot.lane.b32.xlu0 %v2582_v4, %s12582_s20  ;;  %v9385_v4 = vmax.f32 %v12635_v29, 0.0 }
 0x2cb   : > { %2802 = vrot.lane.b32.xlu1 %v2585_v43, %s12582_s20  ;;  %v9379_v43 = vmax.f32 %v12633_v52, 0.0  ;;  %12636 = vst [vmem:[#allocation252_spill] sm:$0xff] %v9385_v4  ;;  %v9390_v6 = vpop.permute.xlu0 %1647  ;;  %v1742_v29 = vrot.slane %v9385_v4, 1 }
 0x2cc   : > { %12638 = vst [vmem:[#allocation253_spill] sm:$0xff] %v9390_v6  ;;  %v12644_v6 = vld [vmem:[#allocation57_spill] sm:$0xff] }
 0x2cd   : > { %v9366_v45 = vpop.permute.xlu1 %2630  ;;  %12634 = vst [vmem:[#allocation251_spill] sm:$0xff] %v9379_v43  ;;  %2800 = vrot.lane.b32.xlu0 %v2584_v49, %s12582_s20  ;;  %v1741_v52 = vrot.slane %v9379_v43, 1 }
 0x2cf   : > { %1667 = vperm.xlu1 %7342, %v9375_v55   ;;  %v9414_v60 = vsel %vm1746_vm4, %v1741_v52, %v1742_v29  ;;  %v9416_v20 = vpop.permute.xlu0 %1655  ;;  %v9495_v36 = vsel %vm1746_vm4, %v12655_v41, %v1741_v52  ;;  %v12657_v41 = vld [vmem:[#allocation114_spill] sm:$0xff] }
 0x2d0   : > { %12642 = vst [vmem:[#allocation109_spill] sm:$0xff] %v9414_v60  ;;  %12643 = vst [vmem:[#allocation255_spill] sm:$0xff] %v9416_v20  ;;  %v2587_v44 = vmul.f32 %v12644_v6, %v9414_v60  ;;  %v12648_v20 = vld [vmem:[#allocation96_spill] sm:$0xff]  ;;  %v2586_v52 = vmul.f32 %v12657_v41, %v9495_v36  ;;  %v12660_v41 = vld [vmem:[#allocation59_spill] sm:$0xff] }
 0x2d1   : > { %v9382_v34 = vpop.permute.xlu1 %2634  ;;  %1671 = vperm.xlu0 %7341, %v9395_v0   ;;  %12656 = vst [vmem:[#allocation96_spill] sm:$0xff] %v9495_v36 }
 0x2d3   : > { %2678 = vrot.lane.b32.xlu1 %v9379_v43, %s12286_s21  ;;  %v9426_v62 = vpop.permute.xlu0 %1663 }
 0x2d4   : > { %7343 = vset.pattern.permute.xlu1 %v12637_v13  ;;  %12646 = vst [vmem:[#allocation57_spill] sm:$0xff] %v9426_v62 }
 0x2d5   : > { %v9398_v49 = vpop.permute.xlu1 %2638  ;;  %7344 = vset.pattern.permute.xlu0 %v12641_v38 }
 0x2d6   : > { %1780 = vperm.xlu0 %7344, %v9409_v10  }
 0x2d7   : > { %3965 = vperm.xlu1 %7343, %v12640_v48   ;;  %v9435_v8 = vpop.permute.xlu0 %2628 }
 0x2d9   : > { %v9404_v28 = vpop.permute.xlu1 %2640 }
 0x2da   : > { %1820 = vperm.xlu0 %7344, %v12645_v46   ;;  %v12649_v46 = vld [vmem:[#allocation102_spill] sm:$0xff] }
 0x2db   : > { %7345 = vset.pattern.permute.xlu1 %v12641_v38 }
 0x2dc   : > { %1892 = vperm.xlu1 %7345, %v9375_v55  }
 0x2dd   : > { %v9420_v3 = vpop.permute.xlu1 %2642 }
 0x2de   : > { %1840 = vperm.xlu0 %7344, %v12648_v20   ;;  %v9449_v20 = vpop.permute.xlu0 %2632 }
 0x2e0   : > { %2806 = vrot.lane.b32.xlu1 %v2587_v44, %s12582_s20  ;;  %v12650_v44 = vld [vmem:[#allocation155_spill] sm:$0xff] }
 0x2e1   : > { %v9428_v50 = vpop.permute.xlu1 %2646  ;;  %7347 = vset.pattern.permute.xlu1 %v12647_v19  ;;  %v9441_v60 = vmax.f32 %v12650_v44, 0.0 }
 0x2e2   : > { %1848 = vperm.xlu0 %7344, %v12649_v46   ;;  %v9457_v46 = vld [vmem:[%s12079_s13 + $0xa8] sm:$0xff]  ;;  %v9467_v21 = vpop.permute.xlu0 %2636 }
 0x2e3   : > { %v12247_v1 = vrot.slane %v9441_v60, 1 }
 0x2e4   : > { %3809 = vperm.xlu1 %7347, %v7390_v5  }
 0x2e5   : > { %v9437_v6 = vpop.permute.xlu1 %2650  ;;  %v9464_v44 = vsel %vm1746_vm4, %v1742_v29, %v12247_v1 }
 0x2e6   : > { %1856 = vperm.xlu0 %7344, %v12640_v48   ;;  %12651 = vst [vmem:[#allocation81_spill] sm:$0xff] %v9464_v44  ;;  %v12652_v48 = vmov 1   ;;  %v2588_v51 = vmul.f32 %v12654_v18, %v9464_v44  ;;  %v9489_v1 = vpop.permute.xlu0 %2644  ;;  %v9500_v18 = vld [vmem:[%s12079_s13 + $0xf8] sm:$0xff]  ;;  %v1263_v44 = vrot.slane %v8787_v56, 7 }
 0x2e8   : > { %2680 = vrot.lane.b32.xlu1 %v9385_v4, %s12286_s21  ;;  %v9524_v39 = vsel %vm1297_vm3, %v12658_v11, %v1263_v44  ;;  %v9535_v55 = vsel %vm1297_vm3, %v1263_v44, %v1264_v23  ;;  %v1266_v44 = vrot.slane %v8811_v9, 7 }
 0x2e9   : > { %v9445_v62 = vpop.permute.xlu1 %2652  ;;  %7348 = vset.pattern.permute.xlu1 %v12637_v13  ;;  %12659 = vst [vmem:[#allocation102_spill] sm:$0xff] %v9524_v39  ;;  %v2400_v36 = vmul.f32 %v12660_v41, %v9524_v39  ;;  %v12662_v41 = vld [vmem:[#allocation60_spill] sm:$0xff] }
 0x2ea   : > { %1864 = vperm.xlu0 %7344, %v9457_v46   ;;  %v9514_v4 = vpop.permute.xlu0 %2648  ;;  %v2401_v39 = vmul.f32 %v12662_v41, %v9535_v55 }
 0x2eb   : > { %v2848_v11 = vsel %vm2195_vm5, %v2400_v36, %v9336_v2  ;;  %v9560_v2 = vld [vmem:[%s12079_s13 + $0x8] sm:$0xff] }
 0x2ec   : > { %3969 = vperm.xlu1 %7348, %v7390_v5   ;;  %v12653_v5 = vld [vmem:[#allocation106_spill] sm:$0xff]  ;;  %v2849_v36 = vsel %vm2195_vm5, %v2401_v39, %v9356_v15  ;;  %v9577_v15 = vld [vmem:[%s12079_s13 + $0xb0] sm:$0xff] }
 0x2ed   : > { %v9452_v42 = vpop.permute.xlu1 %2654  ;;  %12661 = vst [vmem:[#allocation106_spill] sm:$0xff] %v9535_v55  ;;  %12665 = vst [vmem:[#allocation114_spill] sm:$0xff] %v9577_v15  ;;  %v12667_v55 = vrot.slane %v8802_v33, 7 }
 0x2ee   : > { %1872 = vperm.xlu0 %7344, %v9475_v26  }
 0x2f0   : > { %7349 = vset.pattern.permute.xlu1 %v12652_v48  ;;  %v9486_v48 = vld [vmem:[%s12079_s13 + $0xc8] sm:$0xff] }
 0x2f1   : > { %1675 = vperm.xlu1 %7349, %v12653_v5   ;;  %v9470_v54 = vpop.permute.xlu1 %2656 }
 0x2f2   : > { %1880 = vperm.xlu0 %7344, %v9486_v48  }
 0x2f5   : > { %2808 = vrot.lane.b32.xlu1 %v2588_v51, %s12582_s20  ;;  %v9481_v29 = vpop.permute.xlu1 %2658 }
 0x2f6   : > { %1888 = vperm.xlu0 %7344, %v9509_v14  }
 0x2f9   : > { %1679 = vperm.xlu1 %7349, %v9500_v18   ;;  %v9503_v51 = vpop.permute.xlu1 %2660 }
 0x2fa   : > { %2804 = vrot.lane.b32.xlu0 %v2586_v52, %s12582_s20 }
 0x2fd   : > { %7350 = vset.pattern.permute.xlu1 %v12641_v38  ;;  %v9517_v43 = vpop.permute.xlu1 %2662  ;;  %v1265_v38 = vrot.slane %v8790_v58, 7 }
 0x2fe   : > { %1900 = vperm.xlu1 %7350, %v12653_v5   ;;  %1896 = vperm.xlu0 %7344, %v9395_v0   ;;  %v2753_v5 = vpop.permute.xlu0 %2752 }
 0x2ff   : > { %v2880_v52 = vsel %vm832_vm2, %v2848_v11, %v2753_v5  ;;  %v9550_v0 = vsel %vm1297_vm3, %v1264_v23, %v1265_v38  ;;  %v12664_v5 = vld [vmem:[#allocation62_spill] sm:$0xff]  ;;  %v9572_v39 = vsel %vm1297_vm3, %v1265_v38, %v1266_v44 }
 0x300   : > { %6725 = vmatprep.mubr.msk.f32.mxu1 %vm2925_vm6, %v2880_v52  ;;  %12663 = vst [vmem:[#allocation116_spill] sm:$0xff] %v9550_v0  ;;  %v2402_v52 = vmul.f32 %v12664_v5, %v9550_v0  ;;  %v12666_v5 = vld [vmem:[#allocation64_spill] sm:$0xff] }
 0x301   : > { %v9530_v7 = vpop.permute.xlu1 %2664  ;;  %v2403_v0 = vmul.f32 %v12666_v5, %v9572_v39 }
 0x302   : > { %1904 = vperm.xlu1 %7350, %v9500_v18   ;;  %7346 = vset.pattern.permute.xlu0 %v12647_v19  ;;  %v2755_v11 = vpop.permute.xlu0 %2754 }
 0x303   : > { %3733 = vperm.xlu0 %7346, %v9560_v2   ;;  %v2881_v23 = vsel %vm832_vm2, %v2849_v36, %v2755_v11  ;;  %v2850_v36 = vsel %vm2195_vm5, %v2402_v52, %v9435_v8  ;;  %v2851_v8 = vsel %vm2195_vm5, %v2403_v0, %v9366_v45  ;;  %v12670_v0 = vld [vmem:[#allocation175_spill] sm:$0xff] }
 0x304   : > { %6726 = vmatmul.mubr.msk.f32.vlgmr.msra.gmra.mrb[4].mxu1 %vm2925_vm6, %v2881_v23 }
 0x305   : > { %v9545_v58 = vpop.permute.xlu1 %2666 }
 0x306   : > { %2686 = vrot.lane.b32.xlu1 %v8859_v61, %s12286_s21  ;;  %v2757_v11 = vpop.permute.xlu0 %2756 }
 0x307   : > { %7351 = vset.pattern.permute.xlu1 %v12647_v19  ;;  %3813 = vperm.xlu0 %7346, %v9457_v46   ;;  %v2882_v23 = vsel %vm832_vm2, %v2850_v36, %v2757_v11  ;;  %v12669_v11 = vld [vmem:[#allocation67_spill] sm:$0xff] }
 0x308   : > { %6728 = vmatprep.mubr.msk.f32.mxu1 %vm2925_vm6, %v2882_v23 }
 0x309   : > { %v9568_v41 = vpop.permute.xlu1 %2668 }
 0x30a   : > { %3817 = vperm.xlu1 %7351, %v9577_v15   ;;  %v9593_v15 = vsel %vm1297_vm3, %v1266_v44, %v12667_v55  ;;  %v2759_v52 = vpop.permute.xlu0 %2758 }
 0x30b   : > { %12668 = vst [vmem:[#allocation59_spill] sm:$0xff] %v9593_v15  ;;  %2682 = vrot.lane.b32.xlu0 %v9441_v60, %s12286_s21  ;;  %v2883_v36 = vsel %vm832_vm2, %v2851_v8, %v2759_v52  ;;  %v2404_v23 = vmul.f32 %v12669_v11, %v9593_v15  ;;  %v1682_v8 = vmul.f32 %v9079_v22, %v12670_v0  ;;  %v12671_v52 = vld [vmem:[#allocation124_spill] sm:$0xff]  ;;  %v1744_v15 = vrot.slane %v12670_v0, 1 }
 0x30c   : > { %6729 = vmatmul.mubr.msk.f32.gmra.mrb[6].mxu1 %vm2925_vm6, %v2883_v36  ;;  %v2405_v36 = vmul.f32 %v12671_v52, %v9009_v25  ;;  %v12674_v52 = vld [vmem:[#allocation127_spill] sm:$0xff] }
 0x30d   : > { %v9587_v38 = vpop.permute.xlu1 %2670  ;;  %v2852_v55 = vsel %vm2195_vm5, %v2404_v23, %v9449_v20  ;;  %v12672_v20 = vld [vmem:[#allocation21_spill] sm:$0xff] }
 0x30e   : > { %3821 = vperm.xlu1 %7351, %v9475_v26   ;;  %v2761_v45 = vpop.permute.xlu0 %2760  ;;  %v1683_v23 = vmul.f32 %v12672_v20, %v8859_v61  ;;  %v2406_v20 = vmul.f32 %v12674_v52, %v9003_v12  ;;  %v12678_v52 = vld [vmem:[#allocation118_spill] sm:$0xff] }
 0x30f   : > { %2684 = vrot.lane.b32.xlu0 %v12670_v0, %s12286_s21  ;;  %v2884_v44 = vsel %vm832_vm2, %v2852_v55, %v2761_v45  ;;  %v12673_v45 = vld [vmem:[#allocation22_spill] sm:$0xff] }
 0x310   : > { %6731 = vmatprep.mubr.msk.f32.mxu1 %vm2925_vm6, %v2884_v44  ;;  %v1684_v44 = vmul.f32 %v12673_v45, %v8787_v56 }
 0x311   : > { %v9604_v5 = vpop.permute.xlu1 %2672 }
 0x312   : > { %7352 = vset.pattern.permute.xlu1 %v12637_v13  ;;  %v2763_v55 = vpop.permute.xlu0 %2762 }
 0x313   : > { %3981 = vperm.xlu1 %7352, %v9475_v26   ;;  %v2853_v26 = vsel %vm2195_vm5, %v2405_v36, %v9382_v34  ;;  %1971 = vrot.lane.b32.xlu0 %v1682_v8, %s12286_s21  ;;  %v12675_v34 = vrot.slane %v9441_v60, 1  ;;  %v2854_v36 = vsel %vm2195_vm5, %v2406_v20, %v9467_v21 }
 0x314   : > { %v2885_v22 = vsel %vm832_vm2, %v2853_v26, %v2763_v55  ;;  %v9648_v26 = vld [vmem:[%s12079_s13 + $0xc0] sm:$0xff] }
 0x315   : > { %v9618_v11 = vpop.permute.xlu1 %2674  ;;  %6732 = vmatmul.mubr.msk.f32.gmra.mrb[8].mxu1 %vm2925_vm6, %v2885_v22  ;;  %v9640_v8 = vsel %vm1746_vm4, %v12675_v34, %v1744_v15  ;;  %v12677_v22 = vld [vmem:[#allocation70_spill] sm:$0xff] }
 0x316   : > { %12676 = vst [vmem:[#allocation60_spill] sm:$0xff] %v9640_v8  ;;  %v2407_v45 = vmul.f32 %v12677_v22, %v8999_v30  ;;  %v2589_v34 = vmul.f32 %v12678_v52, %v9640_v8  ;;  %v12682_v22 = vld [vmem:[#allocation41_spill] sm:$0xff] }
 0x317   : > { %1973 = vrot.lane.b32.xlu1 %v1683_v23, %s12286_s21  ;;  %v2765_v23 = vpop.permute.xlu0 %2764  ;;  %1975 = vrot.lane.b32.xlu0 %v1684_v44, %s12286_s21  ;;  %v12679_v44 = vrot.slane %v8859_v61, 1  ;;  %v2408_v52 = vmul.f32 %v12682_v22, %v8995_v57  ;;  %v12683_v61 = vld [vmem:[#allocation133_spill] sm:$0xff] }
 0x318   : > { %7353 = vset.pattern.permute.xlu1 %v12647_v19  ;;  %v2886_v55 = vsel %vm832_vm2, %v2854_v36, %v2765_v23  ;;  %v2855_v56 = vsel %vm2195_vm5, %v2407_v45, %v9398_v49  ;;  %v12681_v36 = vld [vmem:[#allocation73_spill] sm:$0xff] }
 0x319   : > { %v9634_v25 = vpop.permute.xlu1 %2676  ;;  %6734 = vmatprep.mubr.msk.f32.mxu1 %vm2925_vm6, %v2886_v55  ;;  %v9661_v20 = vsel %vm1746_vm4, %v1744_v15, %v12679_v44  ;;  %v2409_v23 = vmul.f32 %v12681_v36, %v8991_v40  ;;  %v2410_v15 = vmul.f32 %v12683_v61, %v8987_v32  ;;  %v12684_v44 = vld [vmem:[#allocation120_spill] sm:$0xff] }
 0x31a   : > { %12680 = vst [vmem:[#allocation62_spill] sm:$0xff] %v9661_v20  ;;  %v2590_v8 = vmul.f32 %v12684_v44, %v9661_v20 }
 0x31b   : > { %3825 = vperm.xlu1 %7353, %v9648_v26   ;;  %v2767_v12 = vpop.permute.xlu0 %2766  ;;  %2810 = vrot.lane.b32.xlu0 %v2589_v34, %s12582_s20  ;;  %v2857_v45 = vsel %vm2195_vm5, %v2409_v23, %v9420_v3  ;;  %v2858_v34 = vsel %vm2195_vm5, %v2410_v15, %v9489_v1  ;;  %v12685_v3 = vld [vmem:[#allocation122_spill] sm:$0xff] }
 0x31c   : > { %v2887_v55 = vsel %vm832_vm2, %v2855_v56, %v2767_v12  ;;  %v2856_v56 = vsel %vm2195_vm5, %v2408_v52, %v9404_v28  ;;  %v2591_v23 = vmul.f32 %v12685_v3, %v9043_v24  ;;  %v1685_v28 = vmul.f32 %v9105_v53, %v8797_v27  ;;  %v12688_v52 = vld [vmem:[#allocation163_spill] sm:$0xff]  ;;  %v12690_v53 = vld [vmem:[#allocation158_spill] sm:$0xff]  ;;  %v12692_v3 = vld [vmem:[#allocation85_spill] sm:$0xff] }
 0x31d   : > { %v2771_v21 = vpop.permute.xlu1 %2770  ;;  %6735 = vmatmul.mubr.msk.f32.gmra.mrb[10].mxu1 %vm2925_vm6, %v2887_v55 }
 0x31e   : > { %v2889_v61 = vsel %vm832_vm2, %v2857_v45, %v2771_v21 }
 0x31f   : > { %3829 = vperm.xlu1 %7353, %v9486_v48   ;;  %v2769_v12 = vpop.permute.xlu0 %2768  ;;  %2812 = vrot.lane.b32.xlu0 %v2590_v8, %s12582_s20  ;;  %v12686_v8 = vld [vmem:[#allocation76_spill] sm:$0xff] }
 0x320   : > { %v2888_v36 = vsel %vm832_vm2, %v2856_v56, %v2769_v12  ;;  %v2411_v21 = vmul.f32 %v12686_v8, %v8983_v63  ;;  %v12694_v8 = vld [vmem:[#allocation166_spill] sm:$0xff]  ;;  %v12759_v63 = vld [vmem:[#allocation189_spill] sm:$0xff] }
 0x321   : > { %v2773_v49 = vpop.permute.xlu1 %2772  ;;  %6737 = vmatprep.mubr.msk.f32.mxu1 %vm2925_vm6, %v2888_v36 }
 0x322   : > { %v2890_v55 = vsel %vm832_vm2, %v2858_v34, %v2773_v49  ;;  %6738 = vmatmul.mubr.msk.f32.gmra.mrb[12].mxu1 %vm2925_vm6, %v2889_v61  ;;  %v2859_v44 = vsel %vm2195_vm5, %v2411_v21, %v9428_v50  ;;  %v12689_v49 = vld [vmem:[#allocation203_spill] sm:$0xff] }
 0x323   : > { %7354 = vset.pattern.permute.xlu1 %v12637_v13  ;;  %v2775_v22 = vpop.permute.xlu0 %2774  ;;  %2814 = vrot.lane.b32.xlu0 %v2591_v23, %s12582_s20  ;;  %v2412_v45 = vmul.f32 %v12690_v53, %v12689_v49  ;;  %v12696_v53 = vld [vmem:[#allocation90_spill] sm:$0xff] }
 0x324   : > { %3989 = vperm.xlu1 %7354, %v9486_v48   ;;  %6740 = vmatprep.mubr.msk.f32.mxu1 %vm2925_vm6, %v2890_v55  ;;  %v12687_v48 = vld [vmem:[#allocation201_spill] sm:$0xff]  ;;  %v2891_v34 = vsel %vm832_vm2, %v2859_v44, %v2775_v22  ;;  %v12691_v55 = vld [vmem:[#allocation199_spill] sm:$0xff]  ;;  %v12695_v44 = vld [vmem:[#allocation196_spill] sm:$0xff] }
 0x325   : > { %v2779_v1 = vpop.permute.xlu1 %2778  ;;  %v2413_v15 = vmul.f32 %v12688_v52, %v12687_v48  ;;  %v2860_v61 = vsel %vm2195_vm5, %v2412_v45, %v9514_v4  ;;  %v2415_v23 = vmul.f32 %v12692_v3, %v12691_v55  ;;  %v2417_v45 = vmul.f32 %v12696_v53, %v12695_v44  ;;  %v12748_v44 = vld [vmem:[#allocation251_spill] sm:$0xff]  ;;  %v12757_v49 = vld [vmem:[#allocation74_spill] sm:$0xff] }
 0x326   : > { %6741 = vmatmul.mubr.msk.f32.gmra.mrb[14].mxu1 %vm2925_vm6, %v2891_v34  ;;  %v1687_v53 = vmul.f32 %v9137_v59, %v8811_v9  ;;  %v12706_v59 = vld [vmem:[#allocation193_spill] sm:$0xff]  ;;  %v12752_v55 = vrot.slane %v9154_v31, 7  ;;  %v12756_v48 = vld [vmem:[#allocation31_spill] sm:$0xff] }
 0x327   : > { %v2861_v12 = vsel %vm2195_vm5, %v2413_v15, %v9437_v6  ;;  %v2777_v36 = vpop.permute.xlu0 %2776  ;;  %v12693_v6 = vld [vmem:[#allocation200_spill] sm:$0xff] }
 0x328   : > { %1977 = vrot.lane.b32.xlu1 %v1685_v28, %s12286_s21  ;;  %v2893_v50 = vsel %vm832_vm2, %v2861_v12, %v2779_v1  ;;  %v2892_v28 = vsel %vm832_vm2, %v2860_v61, %v2777_v36  ;;  %v2414_v21 = vmul.f32 %v12694_v8, %v12693_v6  ;;  %v2863_v1 = vsel %vm2195_vm5, %v2415_v23, %v9452_v42  ;;  %v12697_v12 = vld [vmem:[#allocation198_spill] sm:$0xff]  ;;  %v12698_v61 = vld [vmem:[#allocation172_spill] sm:$0xff] }
 0x329   : > { %v2783_v56 = vpop.permute.xlu1 %2782  ;;  %7355 = vset.pattern.permute.xlu1 %v12647_v19  ;;  %v9720_v19 = vld [vmem:[%s12079_s13 + $0xd0] sm:$0xff]  ;;  %6743 = vmatprep.mubr.msk.f32.mxu1 %vm2925_vm6, %v2892_v28  ;;  %v2416_v36 = vmul.f32 %v12698_v61, %v12697_v12  ;;  %v12699_v23 = vld [vmem:[#allocation194_spill] sm:$0xff]  ;;  %v12700_v28 = vld [vmem:[#allocation177_spill] sm:$0xff] }
 0x32a   : > { %6744 = vmatmul.mubr.msk.f32.gmra.mrb[16].mxu1 %vm2925_vm6, %v2893_v50  ;;  %v2862_v22 = vsel %vm2195_vm5, %v2414_v21, %v9445_v62  ;;  %v2895_v15 = vsel %vm832_vm2, %v2863_v1, %v2783_v56  ;;  %v2865_v50 = vsel %vm2195_vm5, %v2417_v45, %v9481_v29  ;;  %v2419_v8 = vmul.f32 %v12700_v28, %v12699_v23  ;;  %v12701_v29 = vld [vmem:[#allocation195_spill] sm:$0xff]  ;;  %v7404_v12 = vld [vmem:[%s12079_s13 + $0x28] sm:$0xff] }
 0x32b   : > { %v2781_v52 = vpop.permute.xlu0 %2780  ;;  %v2864_v62 = vsel %vm2195_vm5, %v2416_v36, %v9470_v54  ;;  %v1286_v1 = vrot.slane %v9108_v16, 7  ;;  %v12703_v36 = vld [vmem:[#allocation192_spill] sm:$0xff]  ;;  %v12707_v28 = vld [vmem:[#allocation107_spill] sm:$0xff]  ;;  %v12754_v6 = vld [vmem:[#allocation254_spill] sm:$0xff] }
 0x32c   : > { %3833 = vperm.xlu1 %7355, %v9720_v19   ;;  %v2894_v34 = vsel %vm832_vm2, %v2862_v22, %v2781_v52  ;;  %v1285_v22 = vrot.slane %v9091_v37, 7  ;;  %v12702_v52 = vld [vmem:[#allocation99_spill] sm:$0xff] }
 0x32d   : > { %v2787_v4 = vpop.permute.xlu1 %2786  ;;  %6746 = vmatprep.mubr.msk.f32.mxu1 %vm2925_vm6, %v2894_v34 }
 0x32e   : > { %6747 = vmatmul.mubr.msk.f32.gmra.mrb[18].mxu1 %vm2925_vm6, %v2895_v15  ;;  %v2897_v3 = vsel %vm832_vm2, %v2865_v50, %v2787_v4  ;;  %v2418_v15 = vmul.f32 %v12702_v52, %v12701_v29  ;;  %v2867_v4 = vsel %vm2195_vm5, %v2419_v8, %v9517_v43  ;;  %v12704_v50 = vld [vmem:[#allocation190_spill] sm:$0xff]  ;;  %v12285_v43 = vrot.slane %v9154_v31, 7 }
 0x32f   : > { %v2785_v56 = vpop.permute.xlu0 %2784  ;;  %v2420_v8 = vmul.f32 %v12707_v28, %v12706_v59  ;;  %v12710_v28 = vld [vmem:[#allocation202_spill] sm:$0xff] }
 0x330   : > { %3837 = vperm.xlu1 %7355, %v9509_v14   ;;  %v2896_v21 = vsel %vm832_vm2, %v2864_v62, %v2785_v56  ;;  %v2866_v45 = vsel %vm2195_vm5, %v2418_v15, %v9503_v51  ;;  %v2421_v62 = vmul.f32 %v12704_v50, %v12703_v36  ;;  %v1287_v56 = vrot.slane %v9132_v35, 7  ;;  %v2260_v51 = vld [vmem:[%s12070_s4] sm:$0xff]  ;;  %v12741_v36 = vld [vmem:[#allocation23_spill] sm:$0xff] }
 0x331   : > { %v2791_v42 = vpop.permute.xlu1 %2790  ;;  %6749 = vmatprep.mubr.msk.f32.mxu1 %vm2925_vm6, %v2896_v21  ;;  %v12708_v21 = vrot.slane %v8876_v17, 7 }
 0x332   : > { %6750 = vmatmul.mubr.msk.f32.gmra.mrb[20].mxu1 %vm2925_vm6, %v2897_v3  ;;  %v2899_v61 = vsel %vm832_vm2, %v2867_v4, %v2791_v42  ;;  %v9770_v3 = vsel %vm1297_vm3, %v1285_v22, %v1286_v1  ;;  %v2261_v42 = vld [vmem:[%s12070_s4 + $0x8] sm:$0xff]  ;;  %v2869_v15 = vsel %vm2195_vm5, %v2421_v62, %v9545_v58  ;;  %v9802_v58 = vsel %vm1297_vm3, %v1287_v56, %v12285_v43 }
 0x333   : > { %v2789_v34 = vpop.permute.xlu0 %2788  ;;  %12705 = vst [vmem:[#allocation64_spill] sm:$0xff] %v9770_v3  ;;  %v9786_v52 = vsel %vm1297_vm3, %v12708_v21, %v1285_v22  ;;  %v2423_v22 = vmul.f32 %v12710_v28, %v9770_v3  ;;  %12711 = vst [vmem:[#allocation124_spill] sm:$0xff] %v9802_v58  ;;  %v12738_v3 = vld [vmem:[#allocation169_spill] sm:$0xff] }
 0x334   : > { %7356 = vset.pattern.permute.xlu1 %v12637_v13  ;;  %12709 = vst [vmem:[#allocation67_spill] sm:$0xff] %v9786_v52 }
 0x335   : > { %3997 = vperm.xlu1 %7356, %v9509_v14   ;;  %v2795_v54 = vpop.permute.xlu1 %2794  ;;  %v2898_v14 = vsel %vm832_vm2, %v2866_v45, %v2789_v34  ;;  %v7069_v45 = vpack.c.bf16 %v2261_v42, %v2260_v51  ;;  %v2868_v34 = vsel %vm2195_vm5, %v2420_v8, %v9530_v7  ;;  %v2262_v7 = vld [vmem:[%s12070_s4 + $0x10] sm:$0xff]  ;;  %v9816_v8 = vsel %vm1297_vm3, %v1286_v1, %v1287_v56 }
 0x336   : > { %6752 = vmatprep.mubr.msk.f32.mxu1 %vm2925_vm6, %v2898_v14  ;;  %v2901_v14 = vsel %vm832_vm2, %v2869_v15, %v2795_v54  ;;  %v2263_v54 = vld [vmem:[%s12070_s4 + $0x18] sm:$0xff]  ;;  %12713 = vst [vmem:[#allocation21_spill] sm:$0xff] %v9816_v8  ;;  %v2871_v51 = vsel %vm2195_vm5, %v2423_v22, %v9587_v38  ;;  %v12714_v15 = vld [vmem:[#allocation223_spill] sm:$0xff]  ;;  %v12717_v38 = vld [vmem:[#allocation129_spill] sm:$0xff] }
 0x337   : > { %6753 = vmatmul.mubr.msk.f32.gmra.mrb[22].mxu1 %vm2925_vm6, %v2899_v61  ;;  %v2793_v50 = vpop.permute.xlu0 %2792  ;;  %7070 = vmatprep.subr.bf16.mxu1 %v7069_v45  ;;  %v12712_v61 = vld [vmem:[#allocation117_spill] sm:$0xff]  ;;  %v7073_v42 = vpack.c.bf16 %v2263_v54, %v2262_v7 }
 0x338   : > { %v2900_v21 = vsel %vm832_vm2, %v2868_v34, %v2793_v50  ;;  %v2422_v62 = vmul.f32 %v12712_v61, %v9786_v52  ;;  %7072 = vmatpush3.bf16.msra.mxu1 %v7069_v45  ;;  %v12716_v61 = vld [vmem:[#allocation209_spill] sm:$0xff]  ;;  %v12739_v52 = vld [vmem:[#allocation232_spill] sm:$0xff] }
 0x339   : > { %1981 = vrot.lane.b32.xlu1 %v1687_v53, %s12286_s21  ;;  %v2799_v4 = vpop.permute.xlu1 %2798  ;;  %v12288_v53 = vmov 6   ;;  %6755 = vmatprep.mubr.msk.f32.mxu1 %vm2925_vm6, %v2900_v21  ;;  %v2425_v1 = vmul.f32 %v12716_v61, %v9802_v58  ;;  %v2270_v61 = vld [vmem:[%s12070_s4 + $0x50] sm:$0xff]  ;;  %v1691_v27 = vmul.f32 %v12739_v52, %v12738_v3  ;;  %v7403_v52 = vld [vmem:[%s12079_s13 + $0x20] sm:$0xff]  ;;  %s11893_s21 = sshll.u32 %s458_s0, 8 }
 0x33a   : > { %7357 = vset.pattern.permute.xlu1 %v12288_v53  ;;  %v2870_v50 = vsel %vm2195_vm5, %v2422_v62, %v9568_v41  ;;  %v2903_v21 = vsel %vm832_vm2, %v2871_v51, %v2799_v4  ;;  %7074 = vmatprep.subr.bf16.mxu1 %v7073_v42  ;;  %v2264_v41 = vld [vmem:[%s12070_s4 + $0x20] sm:$0xff]  ;;  %v2265_v4 = vld [vmem:[%s12070_s4 + $0x28] sm:$0xff]  ;;  %s11928_s1 = scalar_lea.vmem [#allocation2], %s11893_s21  ;;  %s7508_s21 = smov [#allocation2]  }
 0x33b   : > { %6756 = vmatmul.mubr.msk.f32.gmra.mrb[24].mxu1 %vm2925_vm6, %v2901_v14  ;;  %v2797_v28 = vpop.permute.xlu0 %2796  ;;  %v2424_v14 = vmul.f32 %v12717_v38, %v9816_v8  ;;  %v2873_v45 = vsel %vm2195_vm5, %v2425_v1, %v9618_v11  ;;  %v7077_v22 = vpack.c.bf16 %v2265_v4, %v2264_v41  ;;  %v2266_v11 = vld [vmem:[%s12070_s4 + $0x30] sm:$0xff]  ;;  %v2271_v1 = vld [vmem:[%s12070_s4 + $0x58] sm:$0xff]  ;;  %v12737_v8 = vmov 6  }
 0x33c   : > { %v2902_v56 = vsel %vm832_vm2, %v2870_v50, %v2797_v28  ;;  %7076 = vmatpush3.bf16.msra.mxu1 %v7073_v42  ;;  %v12718_v42 = vld [vmem:[#allocation250_spill] sm:$0xff]  ;;  %v12719_v50 = vld [vmem:[#allocation24_spill] sm:$0xff]  ;;  %v7089_v41 = vpack.c.bf16 %v2271_v1, %v2270_v61 }
 0x33d   : > { %3569 = vperm.xlu1 %7357, %v9409_v10   ;;  %v12715_v10 = vld [vmem:[#allocation72_spill] sm:$0xff]  ;;  %v2803_v43 = vpop.permute.xlu1 %2802  ;;  %6758 = vmatprep.mubr.msk.f32.mxu1 %vm2925_vm6, %v2902_v56  ;;  %v2872_v62 = vsel %vm2195_vm5, %v2424_v14, %v9604_v5  ;;  %v1688_v28 = vmul.f32 %v12719_v50, %v8802_v33  ;;  %v12722_v56 = vld [vmem:[#allocation167_spill] sm:$0xff]  ;;  %v12729_v1 = vld [vmem:[#allocation218_spill] sm:$0xff] }
 0x33e   : > { %v1912_v34 = vmul.f32 %v12715_v10, %v12714_v15  ;;  %v2905_v54 = vsel %vm832_vm2, %v2873_v45, %v2803_v43  ;;  %7078 = vmatprep.subr.bf16.mxu1 %v7077_v22  ;;  %v2267_v10 = vld [vmem:[%s12070_s4 + $0x38] sm:$0xff]  ;;  %v2268_v43 = vld [vmem:[%s12070_s4 + $0x40] sm:$0xff] }
 0x33f   : > { %6759 = vmatmul.mubr.msk.f32.gmra.mrb[26].mxu1 %vm2925_vm6, %v2903_v21  ;;  %v2801_v7 = vpop.permute.xlu0 %2800  ;;  %v7081_v5 = vpack.c.bf16 %v2267_v10, %v2266_v11  ;;  %v12723_v38 = vld [vmem:[#allocation228_spill] sm:$0xff] }
 0x340   : > { %v2904_v51 = vsel %vm832_vm2, %v2872_v62, %v2801_v7  ;;  %7080 = vmatpush3.bf16.msra.mxu1 %v7077_v22  ;;  %v1689_v14 = vmul.f32 %v12723_v38, %v12722_v56  ;;  %v9885_v22 = vld [vmem:[%s12079_s13 + $0x10] sm:$0xff]  ;;  %v12725_v7 = vld [vmem:[#allocation226_spill] sm:$0xff]  ;;  %v9904_v50 = vld [vmem:[%s12079_s13 + $0x18] sm:$0xff] }
 0x341   : > { %2109 = vrot.lane.b32.xlu1 %v1912_v34, %s12582_s20  ;;  %6761 = vmatprep.mubr.msk.f32.mxu1 %vm2925_vm6, %v2904_v51  ;;  %v12730_v38 = vld [vmem:[#allocation68_spill] sm:$0xff] }
 0x342   : > { %7082 = vmatprep.subr.bf16.mxu1 %v7081_v5 }
 0x343   : > { %6762 = vmatmul.mubr.msk.f32.gmra.mrb[28].mxu1 %vm2925_vm6, %v2905_v54  ;;  %v12726_v54 = vld [vmem:[#allocation75_spill] sm:$0xff] }
 0x344   : > { %7084 = vmatpush3.bf16.msra.mxu1 %v7081_v5  ;;  %v1914_v51 = vmul.f32 %v12726_v54, %v12725_v7 }
 0x345   : > { %3573 = vperm.xlu1 %7357, %v9560_v2   ;;  %v2269_v2 = vld [vmem:[%s12070_s4 + $0x48] sm:$0xff] }
 0x346   : > { %v7085_v34 = vpack.c.bf16 %v2269_v2, %v2268_v43  ;;  %v12728_v2 = vld [vmem:[#allocation66_spill] sm:$0xff] }
 0x348   : > { %7086 = vmatprep.subr.bf16.mxu1 %v7085_v34 }
 0x349   : > { %7358 = vset.pattern.permute.xlu1 %v12637_v13  ;;  %7088 = vmatpush3.bf16.msra.mxu1 %v7085_v34  ;;  %v1908_v34 = vmul.f32 %v12728_v2, %v9043_v24 }
 0x34a   : > { %4001 = vperm.xlu1 %7358, %v12718_v42   ;;  %7090 = vmatprep.subr.bf16.mxu1 %v7089_v41 }
 0x34d   : > { %7092 = vmatpush3.bf16.msra.mxu1 %v7089_v41  ;;  %v9916_v41 = vld [vmem:[%s12079_s13 + $0xf0] sm:$0xff] }
 0x34e   : > { %1983 = vrot.lane.b32.xlu1 %v1688_v28, %s12720_s28  ;;  %v9866_v21 = vpop.permute.xlu1 %1667  ;;  %12731 = vst [vmem:[#allocation118_spill] sm:$0xff] %v9916_v41 }
 0x34f   : > { %12721 = vst [vmem:[#allocation22_spill] sm:$0xff] %v9866_v21  ;;  %7359 = vset.pattern.permute.xlu1 %v12288_v53 }
 0x350   : > { %v9880_v45 = vpop.permute.xlu0 %1671 }
 0x352   : > { %1985 = vrot.lane.b32.xlu1 %v1689_v14, %s12720_s28  ;;  %v9878_v4 = vpop.permute.xlu1 %2678  ;;  %v1909_v14 = vmul.f32 %v12730_v38, %v12729_v1  ;;  %v12736_v38 = vld [vmem:[#allocation69_spill] sm:$0xff]  ;;  %v1913_v1 = vmul.f32 %v12757_v49, %v12756_v48 }
 0x355   : > { %v1781_v11 = vpop.permute.xlu0 %1780 }
 0x356   : > { %3577 = vperm.xlu1 %7359, %v9885_v22   ;;  %v9888_v62 = vpop.permute.xlu1 %3965  ;;  %v1907_v10 = vmul.f32 %v1781_v11, %v9661_v20  ;;  %v12734_v11 = vld [vmem:[#allocation25_spill] sm:$0xff] }
 0x357   : > { %12724 = vst [vmem:[#allocation127_spill] sm:$0xff] %v9888_v62 }
 0x358   : > { %2099 = vrot.lane.b32.xlu0 %v1907_v10, %s12582_s20 }
 0x359   : > { %v9897_v43 = vpop.permute.xlu0 %1820 }
 0x35a   : > { %2113 = vrot.lane.b32.xlu1 %v1914_v51, %s12582_s20  ;;  %v12733_v51 = vld [vmem:[#allocation164_spill] sm:$0xff] }
 0x35b   : > { %v9894_v5 = vpop.permute.xlu1 %1892  ;;  %v1690_v10 = vmul.f32 %v12734_v11, %v12733_v51 }
 0x35c   : > { %12727 = vst [vmem:[#allocation70_spill] sm:$0xff] %v9894_v5  ;;  %2101 = vrot.lane.b32.xlu0 %v1908_v34, %s12582_s20  ;;  %v12735_v34 = vld [vmem:[#allocation28_spill] sm:$0xff] }
 0x35d   : > { %v9908_v61 = vpop.permute.xlu0 %1840  ;;  %v1910_v53 = vmul.f32 %v12736_v38, %v12735_v34  ;;  %v12743_v38 = vld [vmem:[#allocation221_spill] sm:$0xff]  ;;  %v12750_v5 = vld [vmem:[#allocation252_spill] sm:$0xff] }
 0x35e   : > { %3581 = vperm.xlu1 %7359, %v9904_v50  }
 0x35f   : > { %v2807_v28 = vpop.permute.xlu1 %2806 }
 0x360   : > { %2103 = vrot.lane.b32.xlu0 %v1909_v14, %s12582_s20  ;;  %v12740_v14 = vld [vmem:[#allocation160_spill] sm:$0xff] }
 0x361   : > { %v9924_v2 = vpop.permute.xlu0 %1848  ;;  %v1686_v11 = vmul.f32 %v12741_v36, %v12740_v14 }
 0x362   : > { %7361 = vset.pattern.permute.xlu1 %v12637_v13 }
 0x363   : > { %4009 = vperm.xlu1 %7361, %v9916_v41   ;;  %v9919_v54 = vpop.permute.xlu1 %3809 }
 0x364   : > { %12732 = vst [vmem:[#allocation73_spill] sm:$0xff] %v9919_v54  ;;  %2105 = vrot.lane.b32.xlu0 %v1910_v53, %s12582_s20  ;;  %v12744_v53 = vld [vmem:[#allocation71_spill] sm:$0xff] }
 0x365   : > { %v9933_v24 = vpop.permute.xlu0 %1856  ;;  %v1911_v34 = vmul.f32 %v12744_v53, %v12743_v38 }
 0x367   : > { %1987 = vrot.lane.b32.xlu1 %v1690_v10, %s12720_s28  ;;  %v2681_v58 = vpop.permute.xlu1 %2680 }
 0x368   : > { %7362 = vset.pattern.permute.xlu1 %v12737_v8  ;;  %1979 = vrot.lane.b32.xlu0 %v1686_v11, %s12720_s28  ;;  %v1290_v11 = vrot.slane %v12748_v44, 7 }
 0x369   : > { %v9941_v10 = vpop.permute.xlu0 %1864 }
 0x36a   : > { %12742 = vst [vmem:[#allocation41_spill] sm:$0xff] %v9941_v10 }
 0x36b   : > { %1989 = vrot.lane.b32.xlu1 %v1691_v27, %s12720_s28  ;;  %v9938_v59 = vpop.permute.xlu1 %3969  ;;  %v12747_v27 = vld [vmem:[#allocation229_spill] sm:$0xff] }
 0x36c   : > { %2107 = vrot.lane.b32.xlu0 %v1911_v34, %s12582_s20  ;;  %v1289_v29 = vrot.slane %v12747_v27, 7  ;;  %v1291_v34 = vrot.slane %v12750_v5, 7 }
 0x36d   : > { %v9951_v36 = vpop.permute.xlu0 %1872 }
 0x36e   : > { %12746 = vst [vmem:[#allocation120_spill] sm:$0xff] %v9951_v36  ;;  %v9970_v62 = vsel %vm1297_vm3, %v12752_v55, %v1289_v29  ;;  %v9979_v21 = vsel %vm1297_vm3, %v1290_v11, %v1291_v34 }
 0x36f   : > { %3585 = vperm.xlu1 %7362, %v7403_v52   ;;  %12753 = vst [vmem:[#allocation163_spill] sm:$0xff] %v9970_v62  ;;  %12755 = vst [vmem:[#allocation158_spill] sm:$0xff] %v9979_v21  ;;  %v2426_v55 = vmul.f32 %v12759_v63, %v9970_v62  ;;  %v7408_v62 = vld [vmem:[%s12079_s13 + $0x50] sm:$0xff] }
 0x370   : > { %v9949_v23 = vpop.permute.xlu1 %1675  ;;  %3841 = vperm.xlu0 %7346, %v12718_v42  }
 0x371   : > { %12745 = vst [vmem:[#allocation133_spill] sm:$0xff] %v9949_v23  ;;  %v9959_v54 = vpop.permute.xlu0 %1880  ;;  %v9964_v23 = vsel %vm1297_vm3, %v1289_v29, %v1290_v11  ;;  %v12760_v29 = vld [vmem:[#allocation220_spill] sm:$0xff]  ;;  %v2874_v11 = vsel %vm2195_vm5, %v2426_v55, %v9634_v25 }
 0x372   : > { %12749 = vst [vmem:[#allocation122_spill] sm:$0xff] %v9959_v54  ;;  %12751 = vst [vmem:[#allocation76_spill] sm:$0xff] %v9964_v23  ;;  %v12758_v54 = vld [vmem:[#allocation214_spill] sm:$0xff]  ;;  %v2428_v32 = vmul.f32 %v12760_v29, %v9979_v21  ;;  %v12768_v55 = vld [vmem:[#allocation236_spill] sm:$0xff] }
 0x373   : > { %3589 = vperm.xlu1 %7362, %v7404_v12   ;;  %v2427_v20 = vmul.f32 %v12758_v54, %v9964_v23 }
 0x374   : > { %v2809_v53 = vpop.permute.xlu1 %2808  ;;  %3845 = vperm.xlu0 %7346, %v12754_v6   ;;  %v2876_v27 = vsel %vm2195_vm5, %v2428_v32, %v2681_v58 }
 0x375   : > { %v9975_v42 = vpop.permute.xlu0 %1888  ;;  %v2875_v5 = vsel %vm2195_vm5, %v2427_v20, %v9878_v4  ;;  %v2908_v23 = vsel %vm832_vm2, %v2876_v27, %v2809_v53  ;;  %v12767_v53 = vld [vmem:[#allocation178_spill] sm:$0xff] }
 0x376   : > { %v2907_v49 = vsel %vm832_vm2, %v2875_v5, %v2807_v28  ;;  %v1693_v29 = vmul.f32 %v12768_v55, %v12767_v53 }
 0x378   : > { %v9973_v12 = vpop.permute.xlu1 %1679  ;;  %2111 = vrot.lane.b32.xlu0 %v1913_v1, %s12582_s20  ;;  %v12764_v1 = vld [vmem:[#allocation173_spill] sm:$0xff] }
 0x379   : > { %v2805_v36 = vpop.permute.xlu0 %2804 }
 0x37a   : > { %v2906_v63 = vsel %vm832_vm2, %v2874_v11, %v2805_v36 }
 0x37b   : > { %6764 = vmatprep.mubr.msk.f32.mxu1 %vm2925_vm6, %v2906_v63 }
 0x37c   : > { %3849 = vperm.xlu0 %7346, %v9916_v41   ;;  %6765 = vmatmul.mubr.msk.f32.gmra.mrb[30].mxu1 %vm2925_vm6, %v2907_v49  ;;  %v1292_v49 = vrot.slane %v9441_v60, 7 }
 0x37d   : > { %v9996_v54 = vpop.permute.xlu1 %1900  ;;  %v10003_v20 = vpop.permute.xlu0 %1896  ;;  %6767 = vmatprep.mubr.msk.f32.mxu1 %vm2925_vm6, %v2908_v23  ;;  %v12765_v23 = vld [vmem:[#allocation26_spill] sm:$0xff] }
 0x37e   : > { %12761 = vst [vmem:[#allocation85_spill] sm:$0xff] %v9996_v54  ;;  %v1692_v36 = vmul.f32 %v12765_v23, %v12764_v1  ;;  %v7407_v23 = vld [vmem:[%s12079_s13 + $0x38] sm:$0xff]  ;;  %v12776_v54 = vld [vmem:[#allocation27_spill] sm:$0xff] }
 0x380   : > { %3853 = vperm.xlu0 %7346, %v9500_v18  }
 0x381   : > { %v10006_v25 = vpop.permute.xlu1 %1904 }
 0x382   : > { %v3734_v58 = vpop.permute.xlu0 %3733 }
 0x383   : > { %v3857_v4 = vmul.f32 %v3734_v58, %v8811_v9 }
 0x384   : > { %7360 = vset.pattern.permute.xlu0 %v12637_v13 }
 0x385   : > { %v2687_v32 = vpop.permute.xlu1 %2686  ;;  %3897 = vperm.xlu0 %7360, %v9885_v22   ;;  %4082 = vrot.lane.b32.xlu1 %v3857_v4, %s12720_s28  ;;  %v7406_v4 = vld [vmem:[%s12079_s13 + $0x40] sm:$0xff] }
 0x386   : > { %v10015_v28 = vpop.permute.xlu0 %3813 }
 0x387   : > { %12763 = vst [vmem:[#allocation90_spill] sm:$0xff] %v10015_v28 }
 0x389   : > { %v10013_v5 = vpop.permute.xlu1 %3817  ;;  %3901 = vperm.xlu0 %7360, %v9904_v50   ;;  %1991 = vrot.lane.b32.xlu1 %v1692_v36, %s12720_s28  ;;  %v7405_v50 = vld [vmem:[%s12079_s13 + $0x30] sm:$0xff] }
 0x38a   : > { %12762 = vst [vmem:[#allocation166_spill] sm:$0xff] %v10013_v5  ;;  %v2683_v9 = vpop.permute.xlu0 %2682 }
 0x38d   : > { %v10021_v27 = vpop.permute.xlu1 %3821  ;;  %3905 = vperm.xlu0 %7360, %v7403_v52   ;;  %1993 = vrot.lane.b32.xlu1 %v1693_v29, %s12720_s28  ;;  %v10038_v52 = vsel %vm1297_vm3, %v1291_v34, %v1292_v49  ;;  %v12772_v29 = vld [vmem:[#allocation86_spill] sm:$0xff]  ;;  %v12773_v34 = vld [vmem:[#allocation216_spill] sm:$0xff] }
 0x38e   : > { %12766 = vst [vmem:[#allocation172_spill] sm:$0xff] %v10021_v27  ;;  %v2685_v22 = vpop.permute.xlu0 %2684  ;;  %12770 = vst [vmem:[#allocation99_spill] sm:$0xff] %v10038_v52  ;;  %v2429_v21 = vmul.f32 %v12773_v34, %v10038_v52  ;;  %v12775_v27 = vld [vmem:[#allocation168_spill] sm:$0xff] }
 0x38f   : > { %v1694_v28 = vmul.f32 %v12776_v54, %v12775_v27  ;;  %v12779_v52 = vld [vmem:[#allocation44_spill] sm:$0xff]  ;;  %v12780_v54 = vld [vmem:[#allocation191_spill] sm:$0xff] }
 0x390   : > { %v2877_v13 = vsel %vm2195_vm5, %v2429_v21, %v2683_v9  ;;  %v10076_v21 = vld [vmem:[%s12079_s13 + $0x60] sm:$0xff]  ;;  %v2431_v9 = vmul.f32 %v12781_v47, %v12780_v54 }
 0x391   : > { %3913 = vperm.xlu0 %7360, %v7405_v50   ;;  %3593 = vperm.xlu1 %7362, %v7405_v50   ;;  %v3859_v50 = vmul.f32 %v12772_v29, %v12722_v56  ;;  %v12777_v56 = vrot.slane %v12670_v0, 7  ;;  %v12792_v0 = vld [vmem:[#allocation180_spill] sm:$0xff] }
 0x392   : > { %v10026_v11 = vpop.permute.xlu1 %3981  ;;  %v10032_v63 = vpop.permute.xlu0 %1971 }
 0x393   : > { %12769 = vst [vmem:[#allocation177_spill] sm:$0xff] %v10026_v11  ;;  %v10067_v29 = vsel %vm1297_vm3, %v1292_v49, %v12777_v56 }
 0x394   : > { %12778 = vst [vmem:[#allocation202_spill] sm:$0xff] %v10067_v29  ;;  %v2430_v41 = vmul.f32 %v12779_v52, %v10067_v29 }
 0x395   : > { %3921 = vperm.xlu0 %7360, %v7406_v4   ;;  %3597 = vperm.xlu1 %7362, %v7407_v23  }
 0x396   : > { %v10034_v58 = vpop.permute.xlu1 %1973  ;;  %v10046_v36 = vpop.permute.xlu0 %1975  ;;  %v2878_v49 = vsel %vm2195_vm5, %v2430_v41, %v2685_v22 }
 0x399   : > { %3929 = vperm.xlu0 %7360, %v7408_v62   ;;  %4086 = vrot.lane.b32.xlu1 %v3859_v50, %s12720_s28  ;;  %v12782_v50 = vld [vmem:[#allocation179_spill] sm:$0xff] }
 0x39a   : > { %v10048_v55 = vpop.permute.xlu1 %3825  ;;  %v2811_v23 = vpop.permute.xlu0 %2810 }
 0x39b   : > { %12771 = vst [vmem:[#allocation190_spill] sm:$0xff] %v10048_v55  ;;  %v2909_v34 = vsel %vm832_vm2, %v2877_v13, %v2811_v23  ;;  %v12783_v23 = vld [vmem:[#allocation238_spill] sm:$0xff] }
 0x39c   : > { %6768 = vmatmul.mubr.msk.f32.gmra.mrb[32].mxu1 %vm2925_vm6, %v2909_v34  ;;  %v1695_v52 = vmul.f32 %v12783_v23, %v12782_v50 }
 0x39d   : > { %3937 = vperm.xlu0 %7360, %v10076_v21   ;;  %1995 = vrot.lane.b32.xlu1 %v1694_v28, %s12720_s28  ;;  %v10093_v28 = vld [vmem:[%s12079_s13 + $0x70] sm:$0xff] }
 0x39e   : > { %v10059_v11 = vpop.permute.xlu1 %3829  ;;  %v2813_v13 = vpop.permute.xlu0 %2812 }
 0x39f   : > { %12774 = vst [vmem:[#allocation107_spill] sm:$0xff] %v10059_v11  ;;  %v2910_v56 = vsel %vm832_vm2, %v2878_v49, %v2813_v13  ;;  %v2879_v11 = vsel %vm2195_vm5, %v2431_v9, %v2687_v32  ;;  %v10104_v32 = vld [vmem:[%s12079_s13 + $0x80] sm:$0xff]  ;;  %v10112_v49 = vld [vmem:[%s12079_s13 + $0x90] sm:$0xff]  ;;  %v12786_v13 = vld [vmem:[#allocation92_spill] sm:$0xff] }
 0x3a0   : > { %6770 = vmatprep.mubr.msk.f32.mxu1 %vm2925_vm6, %v2910_v56  ;;  %v3861_v23 = vmul.f32 %v12786_v13, %v12738_v3  ;;  %v12789_v56 = vld [vmem:[#allocation94_spill] sm:$0xff] }
 0x3a1   : > { %3945 = vperm.xlu0 %7360, %v10093_v28   ;;  %1997 = vrot.lane.b32.xlu1 %v1695_v52, %s12720_s28 }
 0x3a2   : > { %v2815_v41 = vpop.permute.xlu0 %2814 }
 0x3a3   : > { %v10086_v34 = vpop.permute.xlu1 %3989  ;;  %v2911_v22 = vsel %vm832_vm2, %v2879_v11, %v2815_v41  ;;  %v7413_v11 = vld [vmem:[%s12079_s13 + $0x48] sm:$0xff] }
 0x3a4   : > { %12784 = vst [vmem:[#allocation117_spill] sm:$0xff] %v10086_v34  ;;  %6771 = vmatmul.mubr.msk.f32.gmra.mrb[34].mxu1 %vm2925_vm6, %v2911_v22  ;;  %v12791_v34 = vld [vmem:[#allocation114_spill] sm:$0xff] }
 0x3a5   : > { %3953 = vperm.xlu0 %7360, %v10104_v32   ;;  %3601 = vperm.xlu1 %7362, %v7406_v4   ;;  %v12788_v4 = vld [vmem:[#allocation171_spill] sm:$0xff] }
 0x3a6   : > { %v1696_v41 = vmul.f32 %v12789_v56, %v12788_v4  ;;  %v6287_v56 = vld [vmem:[%s12070_s4 + $0xd8] sm:$0xff] }
 0x3a7   : > { %v10098_v47 = vpop.permute.xlu1 %1977 }
 0x3a9   : > { %3961 = vperm.xlu0 %7360, %v10112_v49   ;;  %3605 = vperm.xlu1 %7362, %v7413_v11   ;;  %v12793_v11 = vld [vmem:[#allocation242_spill] sm:$0xff] }
 0x3ab   : > { %v10107_v9 = vpop.permute.xlu1 %3833 }
 0x3ac   : > { %12785 = vst [vmem:[#allocation223_spill] sm:$0xff] %v10107_v9  ;;  %v1697_v9 = vmul.f32 %v12793_v11, %v12792_v0  ;;  %v12796_v11 = vld [vmem:[#allocation103_spill] sm:$0xff] }
 0x3ad   : > { %3973 = vperm.xlu0 %7360, %v9457_v46   ;;  %4090 = vrot.lane.b32.xlu1 %v3861_v23, %s12720_s28 }
 0x3af   : > { %v10120_v52 = vpop.permute.xlu1 %3837 }
 0x3b0   : > { %12787 = vst [vmem:[#allocation72_spill] sm:$0xff] %v10120_v52 }
 0x3b1   : > { %3977 = vperm.xlu0 %7360, %v12791_v34   ;;  %1999 = vrot.lane.b32.xlu1 %v1696_v41, %s12720_s28  ;;  %v7414_v34 = vld [vmem:[%s12079_s13 + $0x58] sm:$0xff]  ;;  %v12795_v41 = vld [vmem:[#allocation187_spill] sm:$0xff] }
 0x3b4   : > { %v10126_v22 = vpop.permute.xlu1 %3997 }
 0x3b5   : > { %12790 = vst [vmem:[#allocation209_spill] sm:$0xff] %v10126_v22  ;;  %3985 = vperm.xlu0 %7360, %v9648_v26   ;;  %2001 = vrot.lane.b32.xlu1 %v1697_v9, %s12720_s28  ;;  %v6284_v26 = vld [vmem:[%s12070_s4 + $0xc0] sm:$0xff]  ;;  %v6285_v9 = vld [vmem:[%s12070_s4 + $0xc8] sm:$0xff] }
 0x3b6   : > { %v10151_v13 = vpack.c.bf16 %v6285_v9, %v6284_v26  ;;  %v12797_v26 = vld [vmem:[#allocation211_spill] sm:$0xff]  ;;  %v12798_v9 = vld [vmem:[#allocation77_spill] sm:$0xff] }
 0x3b7   : > { %v12803_v22 = vld [vmem:[#allocation245_spill] sm:$0xff] }
 0x3b8   : > { %v10132_v55 = vpop.permute.xlu1 %1981  ;;  %7094 = vmatprep.subr.bf16.mxu0 %v10151_v13  ;;  %7149 = vmatprep.subr.bf16.mxu1 %v10151_v13 }
 0x3b9   : > { %3993 = vperm.xlu0 %7360, %v9720_v19   ;;  %3609 = vperm.xlu1 %7362, %v7408_v62   ;;  %v12794_v19 = vld [vmem:[#allocation101_spill] sm:$0xff] }
 0x3ba   : > { %v3863_v62 = vmul.f32 %v12794_v19, %v12767_v53  ;;  %7096 = vmatpush3.bf16.msra.mxu0 %v10151_v13 }
 0x3bc   : > { %v10136_v46 = vpop.permute.xlu1 %3569 }
 0x3bd   : > { %4005 = vperm.xlu0 %7360, %v12754_v6   ;;  %3613 = vperm.xlu1 %7362, %v7414_v34   ;;  %v6286_v6 = vld [vmem:[%s12070_s4 + $0xd0] sm:$0xff]  ;;  %v1698_v34 = vmul.f32 %v12796_v11, %v12795_v41  ;;  %v12801_v11 = vld [vmem:[#allocation78_spill] sm:$0xff] }
 0x3be   : > { %v10168_v53 = vpack.c.bf16 %v6287_v56, %v6286_v6  ;;  %v6289_v6 = vld [vmem:[%s12070_s4 + $0xe8] sm:$0xff] }
 0x3bf   : > { %v12800_v56 = vld [vmem:[#allocation210_spill] sm:$0xff] }
 0x3c0   : > { %v10139_v3 = vpop.permute.xlu1 %2109  ;;  %7098 = vmatprep.subr.bf16.mxu0 %v10168_v53 }
 0x3c1   : > { %4013 = vperm.xlu0 %7360, %v9500_v18   ;;  %4094 = vrot.lane.b32.xlu1 %v3863_v62, %s12720_s28  ;;  %v1915_v18 = vmul.f32 %v12798_v9, %v12797_v26  ;;  %v6288_v62 = vld [vmem:[%s12070_s4 + $0xe0] sm:$0xff]  ;;  %v1916_v9 = vmul.f32 %v12801_v11, %v12800_v56 }
 0x3c2   : > { %7100 = vmatpush3.bf16.msra.mxu0 %v10168_v53  ;;  %v10191_v52 = vpack.c.bf16 %v6289_v6, %v6288_v62  ;;  %v12805_v62 = vld [vmem:[#allocation79_spill] sm:$0xff] }
 0x3c3   : > { %v3856_v6 = vmul.f32 %v12805_v62, %v12740_v14  ;;  %v6292_v14 = vld [vmem:[%s12070_s4 + $0x100] sm:$0xff]  ;;  %v12807_v62 = vld [vmem:[#allocation80_spill] sm:$0xff] }
 0x3c4   : > { %v10155_v23 = vpop.permute.xlu1 %3573  ;;  %7102 = vmatprep.subr.bf16.mxu0 %v10191_v52 }
 0x3c5   : > { %2115 = vrot.lane.b32.xlu0 %v1915_v18, %s12582_s20  ;;  %2003 = vrot.lane.b32.xlu1 %v1698_v34, %s12720_s28  ;;  %v12802_v18 = vld [vmem:[#allocation188_spill] sm:$0xff] }
 0x3c6   : > { %7363 = vset.pattern.permute.xlu0 %v12737_v8  ;;  %v1699_v34 = vmul.f32 %v12803_v22, %v12802_v18  ;;  %v6290_v22 = vld [vmem:[%s12070_s4 + $0xf0] sm:$0xff]  ;;  %7104 = vmatpush3.bf16.msra.mxu0 %v10191_v52 }
 0x3c9   : > { %v10177_v19 = vpop.permute.xlu1 %4001  ;;  %2117 = vrot.lane.b32.xlu0 %v1916_v9, %s12582_s20  ;;  %2005 = vrot.lane.b32.xlu1 %v1699_v34, %s12720_s28 }
 0x3ca   : > { %12799 = vst [vmem:[#allocation129_spill] sm:$0xff] %v10177_v19  ;;  %v12804_v19 = vld [vmem:[#allocation30_spill] sm:$0xff]  ;;  %v2100_v5 = vpop.permute.xlu0 %2099 }
 0x3cb   : > { %v1522_v41 = vmul.f32 %v12804_v19, %v10067_v29  ;;  %v6291_v19 = vld [vmem:[%s12070_s4 + $0xf8] sm:$0xff]  ;;  %v12814_v29 = vld [vmem:[#allocation6_spill] sm:$0xff] }
 0x3cc   : > { %v10212_v9 = vpack.c.bf16 %v6291_v19, %v6290_v22 }
 0x3cd   : > { %v10197_v10 = vpop.permute.xlu1 %1983  ;;  %v2196_v8 = vsel %vm2195_vm5, %v1522_v41, %v10032_v63  ;;  %v12806_v63 = vld [vmem:[#allocation32_spill] sm:$0xff]  ;;  %4080 = vrot.lane.b32.xlu0 %v3856_v6, %s12720_s28  ;;  %3617 = vperm.xlu1 %7362, %v10076_v21   ;;  %v4016_v21 = vmul.f32 %v12807_v62, %v12743_v38  ;;  %v6294_v38 = vld [vmem:[%s12070_s4 + $0x110] sm:$0xff]  ;;  %v12811_v62 = vld [vmem:[#allocation110_spill] sm:$0xff] }
 0x3ce   : > { %v2228_v11 = vsel %vm832_vm2, %v2196_v8, %v2100_v5  ;;  %v1523_v41 = vmul.f32 %v12806_v63, %v12780_v54  ;;  %v6293_v5 = vld [vmem:[%s12070_s4 + $0x108] sm:$0xff]  ;;  %v2102_v22 = vpop.permute.xlu0 %2101  ;;  %7106 = vmatprep.subr.bf16.mxu0 %v10212_v9  ;;  %v12809_v63 = vld [vmem:[#allocation5_spill] sm:$0xff] }
 0x3cf   : > { %6797 = vmatprep.mubr.msk.f32.mxu1 %vm2925_vm6, %v2228_v11  ;;  %v7109_v19 = vpack.c.bf16 %v6293_v5, %v6292_v14  ;;  %7108 = vmatpush3.bf16.msra.mxu0 %v10212_v9  ;;  %v12808_v11 = vld [vmem:[#allocation102_spill] sm:$0xff]  ;;  %v6295_v14 = vld [vmem:[%s12070_s4 + $0x118] sm:$0xff] }
 0x3d0   : > { %v2197_v8 = vsel %vm2195_vm5, %v1523_v41, %v10034_v58  ;;  %v1524_v54 = vmul.f32 %v12809_v63, %v12808_v11  ;;  %v7415_v58 = vld [vmem:[%s12079_s13 + $0x68] sm:$0xff] }
 0x3d1   : > { %v10219_v34 = vpop.permute.xlu1 %1985  ;;  %v2229_v6 = vsel %vm832_vm2, %v2197_v8, %v2102_v22  ;;  %7110 = vmatprep.subr.bf16.mxu0 %v7109_v19  ;;  %4208 = vrot.lane.b32.xlu0 %v4016_v21, %s12582_s20  ;;  %v7113_v22 = vpack.c.bf16 %v6295_v14, %v6294_v38  ;;  %v3865_v21 = vmul.f32 %v12811_v62, %v12782_v50  ;;  %v12813_v11 = vld [vmem:[#allocation106_spill] sm:$0xff]  ;;  %v12815_v50 = vld [vmem:[#allocation183_spill] sm:$0xff] }
 0x3d2   : > { %6798 = vmatmul.mubr.msk.f32.vlgmr.msra.gmra.mrb[4].mxu1 %vm2925_vm6, %v2229_v6  ;;  %3621 = vperm.xlu1 %7362, %v7415_v58   ;;  %v2198_v5 = vsel %vm2195_vm5, %v1524_v54, %v10046_v36  ;;  %v2104_v8 = vpop.permute.xlu0 %2103  ;;  %v12812_v6 = vld [vmem:[#allocation82_spill] sm:$0xff] }
 0x3d3   : > { %7155 = vmatpush3.bf16.msra.mxu1 %v10151_v13  ;;  %v4017_v63 = vmul.f32 %v12812_v6, %v12714_v15  ;;  %v2230_v58 = vsel %vm832_vm2, %v2198_v5, %v2104_v8  ;;  %7112 = vmatpush3.bf16.msra.mxu0 %v7109_v19  ;;  %v12816_v13 = vld [vmem:[#allocation111_spill] sm:$0xff]  ;;  %v12817_v14 = vld [vmem:[#allocation34_spill] sm:$0xff]  ;;  %v12818_v8 = vmov 0.0|0.0   ;;  %v12822_v6 = vld [vmem:[#allocation248_spill] sm:$0xff] }
 0x3d4   : > { %7150 = vmatprep.subr.bf16.mxu1 %v10168_v53  ;;  %6800 = vmatprep.mubr.msk.f32.mxu1 %vm2925_vm6, %v2230_v58  ;;  %v1700_v38 = vmul.f32 %v12816_v13, %v12815_v50  ;;  %v12823_v58 = vld [vmem:[#allocation7_spill] sm:$0xff] }
 0x3d5   : > { %v10241_v41 = vpop.permute.xlu1 %3577  ;;  %7114 = vmatprep.subr.bf16.mxu0 %v7113_v22  ;;  %4210 = vrot.lane.b32.xlu0 %v4017_v63, %s12582_s20  ;;  %v12825_v13 = vld [vmem:[#allocation35_spill] sm:$0xff] }
 0x3d6   : > { %12810 = vst [vmem:[#allocation250_spill] sm:$0xff] %v10241_v41  ;;  %v1525_v41 = vmul.f32 %v12814_v29, %v12813_v11  ;;  %4098 = vrot.lane.b32.xlu1 %v3865_v21, %s12720_s28  ;;  %v2106_v15 = vpop.permute.xlu0 %2105  ;;  %v1917_v29 = vmul.f32 %v9897_v43, %v12817_v14  ;;  %v12820_v43 = vld [vmem:[#allocation83_spill] sm:$0xff]  ;;  %v12821_v21 = vld [vmem:[#allocation184_spill] sm:$0xff] }
 0x3d7   : > { %7156 = vmatpush3.bf16.msra.mxu1 %v10168_v53  ;;  %7116 = vmatpush3.bf16.msra.mxu0 %v7113_v22  ;;  %v1701_v63 = vmul.f32 %v12822_v6, %v12821_v21  ;;  %v12826_v6 = vld [vmem:[#allocation84_spill] sm:$0xff] }
 0x3d8   : > { %v2199_v54 = vsel %vm2195_vm5, %v1525_v41, %v10098_v47  ;;  %7151 = vmatprep.subr.bf16.mxu1 %v10191_v52  ;;  %7117 = vmatprep.subr.bf16.mxu0 %v12818_v8  ;;  %v12819_v41 = vld [vmem:[#allocation230_spill] sm:$0xff] }
 0x3d9   : > { %v2114_v36 = vpop.permute.xlu1 %2113  ;;  %v2231_v5 = vsel %vm832_vm2, %v2199_v54, %v2106_v15  ;;  %2119 = vrot.lane.b32.xlu0 %v1917_v29, %s12582_s20  ;;  %v1918_v62 = vmul.f32 %v12820_v43, %v12819_v41  ;;  %v1527_v54 = vmul.f32 %v12823_v58, %v9572_v39  ;;  %v12824_v15 = vld [vmem:[#allocation116_spill] sm:$0xff]  ;;  %v3858_v58 = vmul.f32 %v12826_v6, %v8802_v33 }
 0x3da   : > { %6801 = vmatmul.mubr.msk.f32.gmra.mrb[6].mxu1 %vm2925_vm6, %v2231_v5  ;;  %2007 = vrot.lane.b32.xlu1 %v1700_v38, %s12720_s28  ;;  %v1980_v47 = vpop.permute.xlu0 %1979  ;;  %v1526_v29 = vmul.f32 %v12825_v13, %v12824_v15 }
 0x3db   : > { %7157 = vmatpush3.bf16.msra.mxu1 %v10191_v52  ;;  %v2201_v38 = vsel %vm2195_vm5, %v1527_v54, %v10132_v55  ;;  %v7416_v55 = vld [vmem:[%s12079_s13 + $0x78] sm:$0xff] }
 0x3dc   : > { %7152 = vmatprep.subr.bf16.mxu1 %v10212_v9  ;;  %v2200_v52 = vsel %vm2195_vm5, %v1526_v29, %v1980_v47  ;;  %v2233_v43 = vsel %vm832_vm2, %v2201_v38, %v10139_v3  ;;  %v12827_v3 = vld [vmem:[#allocation121_spill] sm:$0xff]  ;;  %v12831_v38 = vld [vmem:[#allocation112_spill] sm:$0xff] }
 0x3dd   : > { %v10276_v53 = vpop.permute.xlu1 %3581  ;;  %2121 = vrot.lane.b32.xlu0 %v1918_v62, %s12582_s20  ;;  %v12828_v47 = vld [vmem:[#allocation185_spill] sm:$0xff] }
 0x3de   : > { %2009 = vrot.lane.b32.xlu1 %v1701_v63, %s12720_s28  ;;  %v2108_v5 = vpop.permute.xlu0 %2107  ;;  %v12829_v63 = vld [vmem:[#allocation123_spill] sm:$0xff] }
 0x3df   : > { %7158 = vmatpush3.bf16.msra.mxu1 %v10212_v9  ;;  %v2232_v13 = vsel %vm832_vm2, %v2200_v52, %v2108_v5  ;;  %v3867_v9 = vmul.f32 %v12827_v3, %v12792_v0  ;;  %v1702_v54 = vmul.f32 %v12829_v63, %v12828_v47  ;;  %v12833_v0 = vld [vmem:[#allocation207_spill] sm:$0xff] }
 0x3e0   : > { %7153 = vmatprep.subr.bf16.mxu1 %v7109_v19  ;;  %6803 = vmatprep.mubr.msk.f32.mxu1 %vm2925_vm6, %v2232_v13  ;;  %v12836_v13 = vld [vmem:[#allocation37_spill] sm:$0xff] }
 0x3e1   : > { %4084 = vrot.lane.b32.xlu0 %v3858_v58, %s12720_s28  ;;  %6804 = vmatmul.mubr.msk.f32.gmra.mrb[8].mxu1 %vm2925_vm6, %v2233_v43  ;;  %v12834_v43 = vld [vmem:[#allocation8_spill] sm:$0xff]  ;;  %v12835_v58 = vld [vmem:[#allocation59_spill] sm:$0xff] }
 0x3e2   : > { %v10300_v62 = vpop.permute.xlu1 %4009  ;;  %3625 = vperm.xlu1 %7362, %v10093_v28   ;;  %v1529_v6 = vmul.f32 %v12834_v43, %v12833_v0 }
 0x3e3   : > { %7159 = vmatpush3.bf16.msra.mxu1 %v7109_v19  ;;  %v12830_v19 = vld [vmem:[#allocation186_spill] sm:$0xff] }
 0x3e4   : > { %7154 = vmatprep.subr.bf16.mxu1 %v7113_v22  ;;  %v1703_v52 = vmul.f32 %v12831_v38, %v12830_v19  ;;  %v2203_v3 = vsel %vm2195_vm5, %v1529_v6, %v10219_v34  ;;  %v7417_v34 = vld [vmem:[%s12079_s13 + $0x88] sm:$0xff] }
 0x3e6   : > { %3629 = vperm.xlu1 %7362, %v7416_v55   ;;  %v10308_v33 = vpop.permute.xlu1 %1987  ;;  %v1528_v55 = vmul.f32 %v12836_v13, %v12835_v58  ;;  %v12839_v13 = vld [vmem:[#allocation181_spill] sm:$0xff] }
 0x3e7   : > { %7160 = vmatpush3.bf16.msra.mxu1 %v7113_v22 }
 0x3ea   : > { %4102 = vrot.lane.b32.xlu1 %v3867_v9, %s12720_s28  ;;  %v10315_v29 = vpop.permute.xlu1 %1989  ;;  %v2202_v9 = vsel %vm2195_vm5, %v1528_v55, %v10197_v10  ;;  %v12837_v10 = vld [vmem:[#allocation162_spill] sm:$0xff]  ;;  %v12840_v55 = vld [vmem:[#allocation165_spill] sm:$0xff] }
 0x3eb   : > { %v3869_v43 = vmul.f32 %v12837_v10, %v12802_v18 }
 0x3ee   : > { %2011 = vrot.lane.b32.xlu1 %v1702_v54, %s12720_s28  ;;  %v10323_v22 = vpop.permute.xlu1 %3585  ;;  %v2235_v54 = vsel %vm832_vm2, %v2203_v3, %v2114_v36  ;;  %v1704_v3 = vmul.f32 %v12840_v55, %v12839_v13 }
 0x3ef   : > { %v10318_v28 = vpop.permute.xlu0 %3841 }
 0x3f2   : > { %2013 = vrot.lane.b32.xlu1 %v1703_v52, %s12720_s28  ;;  %v10338_v52 = vpop.permute.xlu1 %3589 }
 0x3f3   : > { %v10325_v5 = vpop.permute.xlu0 %3845 }
 0x3f4   : > { %12832 = vst [vmem:[#allocation24_spill] sm:$0xff] %v10325_v5 }
 0x3f6   : > { %3633 = vperm.xlu1 %7362, %v10104_v32  }
 0x3f7   : > { %v2112_v63 = vpop.permute.xlu0 %2111  ;;  %v10350_v36 = vpop.permute.xlu1 %4082 }
 0x3f8   : > { %v2234_v38 = vsel %vm832_vm2, %v2202_v9, %v2112_v63  ;;  %v12841_v9 = vld [vmem:[#allocation253_spill] sm:$0xff] }
 0x3f9   : > { %6806 = vmatprep.mubr.msk.f32.mxu1 %vm2925_vm6, %v2234_v38  ;;  %v1705_v63 = vmul.f32 %v12841_v9, %v8876_v17  ;;  %v12843_v9 = vld [vmem:[#allocation87_spill] sm:$0xff] }
 0x3fa   : > { %6807 = vmatmul.mubr.msk.f32.gmra.mrb[10].mxu1 %vm2925_vm6, %v2235_v54  ;;  %3637 = vperm.xlu1 %7362, %v7417_v34  }
 0x3fb   : > { %v10345_v32 = vpop.permute.xlu0 %3849  ;;  %v10359_v38 = vpop.permute.xlu1 %1991 }
 0x3fe   : > { %4106 = vrot.lane.b32.xlu1 %v3869_v43, %s12720_s28 }
 0x3ff   : > { %v10352_v6 = vpop.permute.xlu0 %3853  ;;  %v10366_v43 = vpop.permute.xlu1 %1993 }
 0x400   : > { %12838 = vst [vmem:[#allocation167_spill] sm:$0xff] %v10352_v6 }
 0x402   : > { %2015 = vrot.lane.b32.xlu1 %v1704_v3, %s12720_s28  ;;  %v12842_v3 = vld [vmem:[#allocation231_spill] sm:$0xff] }
 0x403   : > { %v1919_v8 = vmul.f32 %v12843_v9, %v12842_v3  ;;  %v12848_v9 = vld [vmem:[#allocation212_spill] sm:$0xff] }
 0x404   : > { %v3898_v54 = vpop.permute.xlu0 %3897  ;;  %v1706_v11 = vmul.f32 %v12848_v9, %v9091_v37  ;;  %v12857_v37 = vld [vmem:[#allocation233_spill] sm:$0xff] }
 0x405   : > { %v4018_v34 = vmul.f32 %v3898_v54, %v12756_v48  ;;  %v7418_v48 = vld [vmem:[%s12079_s13 + $0x98] sm:$0xff] }
 0x406   : > { %2017 = vrot.lane.b32.xlu1 %v1705_v63, %s12720_s28  ;;  %v12844_v63 = vld [vmem:[#allocation208_spill] sm:$0xff] }
 0x407   : > { %4212 = vrot.lane.b32.xlu0 %v4018_v34, %s12582_s20  ;;  %v12846_v34 = vld [vmem:[#allocation235_spill] sm:$0xff] }
 0x408   : > { %v3902_v18 = vpop.permute.xlu0 %3901 }
 0x409   : > { %v4019_v10 = vmul.f32 %v3902_v18, %v12725_v7  ;;  %v3871_v7 = vmul.f32 %v12844_v63, %v12821_v21  ;;  %v12847_v18 = vld [vmem:[#allocation88_spill] sm:$0xff]  ;;  %v12851_v63 = vld [vmem:[#allocation255_spill] sm:$0xff] }
 0x40a   : > { %3641 = vperm.xlu1 %7362, %v10112_v49  }
 0x40b   : > { %4214 = vrot.lane.b32.xlu0 %v4019_v10, %s12582_s20  ;;  %v1920_v10 = vmul.f32 %v12847_v18, %v12846_v34  ;;  %v1707_v18 = vmul.f32 %v12851_v63, %v9108_v16  ;;  %v7420_v16 = vld [vmem:[%s12079_s13 + $0xa8] sm:$0xff] }
 0x40c   : > { %v3906_v55 = vpop.permute.xlu0 %3905 }
 0x40d   : > { %v4020_v9 = vmul.f32 %v3906_v55, %v12797_v26  ;;  %v12853_v55 = vld [vmem:[#allocation38_spill] sm:$0xff] }
 0x40e   : > { %3645 = vperm.xlu1 %7362, %v7418_v48  }
 0x40f   : > { %2123 = vrot.lane.b32.xlu0 %v1919_v8, %s12582_s20  ;;  %v12850_v8 = vld [vmem:[#allocation89_spill] sm:$0xff] }
 0x410   : > { %v3914_v54 = vpop.permute.xlu0 %3913  ;;  %v10377_v49 = vpop.permute.xlu1 %3593  ;;  %v3860_v21 = vmul.f32 %v12850_v8, %v12733_v51 }
 0x411   : > { %12845 = vst [vmem:[#allocation228_spill] sm:$0xff] %v10377_v49 }
 0x412   : > { %4110 = vrot.lane.b32.xlu1 %v3871_v7, %s12720_s28 }
 0x413   : > { %2125 = vrot.lane.b32.xlu0 %v1920_v10, %s12582_s20 }
 0x414   : > { %v10385_v6 = vpop.permute.xlu0 %3921  ;;  %v10387_v48 = vpop.permute.xlu1 %3597 }
 0x415   : > { %12849 = vst [vmem:[#allocation226_spill] sm:$0xff] %v10387_v48  ;;  %v1922_v48 = vmul.f32 %v9908_v61, %v12857_v37 }
 0x416   : > { %2019 = vrot.lane.b32.xlu1 %v1706_v11, %s12720_s28  ;;  %v12852_v11 = vld [vmem:[#allocation97_spill] sm:$0xff] }
 0x417   : > { %4088 = vrot.lane.b32.xlu0 %v3860_v21, %s12720_s28  ;;  %v4021_v8 = vmul.f32 %v12852_v11, %v12800_v56  ;;  %v7419_v21 = vld [vmem:[%s12079_s13 + $0xa0] sm:$0xff] }
 0x418   : > { %v10395_v7 = vpop.permute.xlu0 %3929  ;;  %v10397_v10 = vpop.permute.xlu1 %4086  ;;  %v12855_v56 = vld [vmem:[#allocation225_spill] sm:$0xff] }
 0x419   : > { %v3873_v11 = vmul.f32 %v12855_v56, %v12830_v19  ;;  %v12861_v56 = vld [vmem:[#allocation57_spill] sm:$0xff] }
 0x41a   : > { %2021 = vrot.lane.b32.xlu1 %v1707_v18, %s12720_s28  ;;  %v12854_v18 = vld [vmem:[#allocation98_spill] sm:$0xff]  ;;  %v1709_v61 = vmul.f32 %v12861_v56, %v9154_v31 }
 0x41b   : > { %4216 = vrot.lane.b32.xlu0 %v4020_v9, %s12582_s20  ;;  %v1921_v9 = vmul.f32 %v12854_v18, %v12853_v55  ;;  %v12858_v18 = vld [vmem:[#allocation33_spill] sm:$0xff] }
 0x41c   : > { %v10402_v5 = vpop.permute.xlu0 %3937  ;;  %v10404_v51 = vpop.permute.xlu1 %1995  ;;  %v1708_v17 = vmul.f32 %v12858_v18, %v9132_v35  ;;  %v12863_v18 = vld [vmem:[#allocation54_spill] sm:$0xff] }
 0x41e   : > { %3649 = vperm.xlu1 %7362, %v7419_v21  }
 0x41f   : > { %4218 = vrot.lane.b32.xlu0 %v4021_v8, %s12582_s20 }
 0x420   : > { %v10412_v63 = vpop.permute.xlu0 %3945  ;;  %v10414_v26 = vpop.permute.xlu1 %1997 }
 0x422   : > { %3653 = vperm.xlu1 %7362, %v7420_v16  }
 0x423   : > { %2127 = vrot.lane.b32.xlu0 %v1921_v9, %s12582_s20  ;;  %v12860_v9 = vld [vmem:[#allocation100_spill] sm:$0xff] }
 0x424   : > { %v10424_v21 = vpop.permute.xlu0 %3953  ;;  %v10426_v8 = vpop.permute.xlu1 %3601  ;;  %v3862_v19 = vmul.f32 %v12860_v9, %v12764_v1  ;;  %v1934_v1 = vmul.f32 %v9975_v42, %v12863_v18  ;;  %v7421_v42 = vld [vmem:[%s12079_s13 + $0xb0] sm:$0xff]  ;;  %v12867_v18 = vld [vmem:[#allocation246_spill] sm:$0xff] }
 0x425   : > { %12856 = vst [vmem:[#allocation75_spill] sm:$0xff] %v10426_v8 }
 0x426   : > { %4114 = vrot.lane.b32.xlu1 %v3873_v11, %s12720_s28 }
 0x427   : > { %2129 = vrot.lane.b32.xlu0 %v1922_v48, %s12582_s20  ;;  %v4022_v48 = vmul.f32 %v3914_v54, %v12817_v14  ;;  %v12865_v54 = vld [vmem:[#allocation239_spill] sm:$0xff] }
 0x428   : > { %v3962_v16 = vpop.permute.xlu0 %3961  ;;  %v10434_v49 = vpop.permute.xlu1 %3605 }
 0x429   : > { %12859 = vst [vmem:[#allocation66_spill] sm:$0xff] %v10434_v49 }
 0x42a   : > { %2023 = vrot.lane.b32.xlu1 %v1708_v17, %s12720_s28 }
 0x42b   : > { %4092 = vrot.lane.b32.xlu0 %v3862_v19, %s12720_s28  ;;  %v12864_v19 = vld [vmem:[#allocation104_spill] sm:$0xff] }
 0x42c   : > { %v10442_v8 = vpop.permute.xlu0 %3973  ;;  %v10444_v11 = vpop.permute.xlu1 %4090  ;;  %v4023_v56 = vmul.f32 %v12864_v19, %v12819_v41  ;;  %v4034_v41 = vmul.f32 %v3962_v16, %v12867_v18  ;;  %v7422_v16 = vld [vmem:[%s12079_s13 + $0xb8] sm:$0xff] }
 0x42d   : > { %12862 = vst [vmem:[#allocation68_spill] sm:$0xff] %v10442_v8 }
 0x42e   : > { %2025 = vrot.lane.b32.xlu1 %v1709_v61, %s12720_s28  ;;  %v12866_v61 = vld [vmem:[#allocation105_spill] sm:$0xff] }
 0x42f   : > { %4220 = vrot.lane.b32.xlu0 %v4022_v48, %s12582_s20  ;;  %v1923_v48 = vmul.f32 %v12866_v61, %v12865_v54 }
 0x430   : > { %v10451_v9 = vpop.permute.xlu0 %3977  ;;  %v10453_v17 = vpop.permute.xlu1 %1999 }
 0x432   : > { %2153 = vrot.lane.b32.xlu1 %v1934_v1, %s12582_s20 }
 0x433   : > { %4222 = vrot.lane.b32.xlu0 %v4023_v56, %s12582_s20  ;;  %v12869_v56 = vld [vmem:[#allocation40_spill] sm:$0xff] }
 0x434   : > { %v10459_v31 = vpop.permute.xlu0 %3985  ;;  %v10461_v14 = vpop.permute.xlu1 %2001  ;;  %v1924_v8 = vmul.f32 %v9924_v2, %v12869_v56  ;;  %v1711_v2 = vmul.f32 %v9880_v45, %v12748_v44  ;;  %v12878_v44 = vld [vmem:[#allocation113_spill] sm:$0xff] }
 0x436   : > { %3657 = vperm.xlu1 %7362, %v7421_v42   ;;  %v12872_v42 = vld [vmem:[#allocation108_spill] sm:$0xff] }
 0x437   : > { %2131 = vrot.lane.b32.xlu0 %v1923_v48, %s12582_s20  ;;  %v3864_v48 = vmul.f32 %v12872_v42, %v12775_v27  ;;  %v12877_v42 = vld [vmem:[#allocation109_spill] sm:$0xff] }
 0x438   : > { %v10470_v19 = vpop.permute.xlu0 %3993  ;;  %v10472_v1 = vpop.permute.xlu1 %3609 }
 0x439   : > { %12868 = vst [vmem:[#allocation164_spill] sm:$0xff] %v10472_v1  ;;  %v12876_v1 = vld [vmem:[#allocation42_spill] sm:$0xff] }
 0x43a   : > { %4244 = vrot.lane.b32.xlu1 %v4034_v41, %s12582_s20 }
 0x43b   : > { %2133 = vrot.lane.b32.xlu0 %v1924_v8, %s12582_s20 }
 0x43c   : > { %v10478_v61 = vpop.permute.xlu0 %4005  ;;  %v10480_v49 = vpop.permute.xlu1 %3613 }
 0x43d   : > { %12870 = vst [vmem:[#allocation25_spill] sm:$0xff] %v10478_v61  ;;  %12871 = vst [vmem:[#allocation69_spill] sm:$0xff] %v10480_v49  ;;  %v4024_v61 = vmul.f32 %v10385_v6, %v12842_v3  ;;  %v12875_v49 = vld [vmem:[#allocation206_spill] sm:$0xff]  ;;  %v12879_v3 = vld [vmem:[#allocation9_spill] sm:$0xff] }
 0x43e   : > { %3661 = vperm.xlu1 %7362, %v7422_v16   ;;  %v1530_v27 = vmul.f32 %v12876_v1, %v12875_v49  ;;  %v1531_v1 = vmul.f32 %v12879_v3, %v8999_v30 }
 0x43f   : > { %4096 = vrot.lane.b32.xlu0 %v3864_v48, %s12720_s28  ;;  %v1936_v48 = vmul.f32 %v10003_v20, %v12877_v42 }
 0x440   : > { %v10490_v41 = vpop.permute.xlu0 %4013  ;;  %v10492_v8 = vpop.permute.xlu1 %4094  ;;  %v2204_v45 = vsel %vm2195_vm5, %v1530_v27, %v10308_v33  ;;  %v2205_v20 = vsel %vm2195_vm5, %v1531_v1, %v10315_v29  ;;  %v12881_v27 = vld [vmem:[#allocation115_spill] sm:$0xff]  ;;  %v3696_v1 = vmul.f32 %v10136_v46, %v12824_v15  ;;  %v7424_v46 = vld [vmem:[%s12079_s13 + $0xc8] sm:$0xff]  ;;  %v1713_v15 = vmul.f32 %v9973_v12, %v9441_v60 }
 0x441   : > { %12873 = vst [vmem:[#allocation169_spill] sm:$0xff] %v10490_v41  ;;  %12874 = vst [vmem:[#allocation232_spill] sm:$0xff] %v10492_v8  ;;  %v4025_v8 = vmul.f32 %v12878_v44, %v12846_v34 }
 0x442   : > { %2029 = vrot.lane.b32.xlu1 %v1711_v2, %s12720_s28  ;;  %v12880_v2 = vld [vmem:[#allocation241_spill] sm:$0xff] }
 0x443   : > { %4224 = vrot.lane.b32.xlu0 %v4024_v61, %s12582_s20  ;;  %v1925_v44 = vmul.f32 %v12881_v27, %v12880_v2  ;;  %v12884_v27 = vld [vmem:[#allocation119_spill] sm:$0xff] }
 0x444   : > { %v2116_v16 = vpop.permute.xlu0 %2115  ;;  %v10504_v41 = vpop.permute.xlu1 %2003 }
 0x445   : > { %v2236_v6 = vsel %vm832_vm2, %v2204_v45, %v2116_v16  ;;  %v7423_v45 = vld [vmem:[%s12079_s13 + $0xc0] sm:$0xff] }
 0x446   : > { %6809 = vmatprep.mubr.msk.f32.mxu1 %vm2925_vm6, %v2236_v6  ;;  %2157 = vrot.lane.b32.xlu1 %v1936_v48, %s12582_s20  ;;  %v12883_v6 = vld [vmem:[#allocation237_spill] sm:$0xff] }
 0x447   : > { %4226 = vrot.lane.b32.xlu0 %v4025_v8, %s12582_s20  ;;  %v12882_v8 = vld [vmem:[#allocation247_spill] sm:$0xff]  ;;  %v1926_v3 = vmul.f32 %v9933_v24, %v12883_v6 }
 0x448   : > { %v2118_v33 = vpop.permute.xlu0 %2117  ;;  %v10516_v61 = vpop.permute.xlu1 %2005  ;;  %v4036_v29 = vmul.f32 %v9938_v59, %v12882_v8 }
 0x449   : > { %v2237_v34 = vsel %vm832_vm2, %v2205_v20, %v2118_v33 }
 0x44a   : > { %6810 = vmatmul.mubr.msk.f32.gmra.mrb[12].mxu1 %vm2925_vm6, %v2237_v34  ;;  %3665 = vperm.xlu1 %7362, %v7423_v45   ;;  %v3697_v34 = vmul.f32 %v10155_v23, %v9572_v39  ;;  %v4026_v39 = vmul.f32 %v10395_v7, %v12853_v55  ;;  %v12887_v7 = vld [vmem:[#allocation126_spill] sm:$0xff] }
 0x44b   : > { %2135 = vrot.lane.b32.xlu0 %v1925_v44, %s12582_s20  ;;  %v3866_v44 = vmul.f32 %v12884_v27, %v12788_v4  ;;  %v4027_v55 = vmul.f32 %v12887_v7, %v12857_v37  ;;  %v12888_v27 = vld [vmem:[#allocation10_spill] sm:$0xff]  ;;  %v12896_v7 = vld [vmem:[#allocation153_spill] sm:$0xff] }
 0x44c   : > { %v4081_v48 = vpop.permute.xlu0 %4080  ;;  %v10528_v16 = vpop.permute.xlu1 %3617  ;;  %v4305_v4 = vsel %vm2195_vm5, %v3697_v34, %v10350_v36  ;;  %v12890_v34 = vld [vmem:[#allocation128_spill] sm:$0xff] }
 0x44d   : > { %v4304_v20 = vsel %vm2195_vm5, %v3696_v1, %v4081_v48 }
 0x44e   : > { %4248 = vrot.lane.b32.xlu1 %v4036_v29, %s12582_s20  ;;  %v12885_v29 = vld [vmem:[#allocation45_spill] sm:$0xff] }
 0x44f   : > { %2137 = vrot.lane.b32.xlu0 %v1926_v3, %s12582_s20  ;;  %v1532_v48 = vmul.f32 %v12885_v29, %v8995_v57  ;;  %v12886_v3 = vld [vmem:[#allocation60_spill] sm:$0xff] }
 0x450   : > { %v4209_v33 = vpop.permute.xlu0 %4208  ;;  %v1938_v12 = vmul.f32 %v10006_v25, %v12886_v3 }
 0x451   : > { %v4336_v59 = vsel %vm832_vm2, %v4304_v20, %v4209_v33  ;;  %v10543_v24 = vpop.permute.xlu1 %3621  ;;  %v2206_v36 = vsel %vm2195_vm5, %v1532_v48, %v10359_v38  ;;  %v12894_v48 = vld [vmem:[#allocation249_spill] sm:$0xff] }
 0x452   : > { %6869 = vmatprep.mubr.msk.f32.mxu0 %vm2925_vm6, %v4336_v59  ;;  %3669 = vperm.xlu1 %7362, %v7424_v46   ;;  %v12889_v59 = vld [vmem:[#allocation243_spill] sm:$0xff] }
 0x453   : > { %4100 = vrot.lane.b32.xlu0 %v3866_v44, %s12720_s28  ;;  %v1533_v44 = vmul.f32 %v12888_v27, %v8991_v40  ;;  %v1927_v46 = vmul.f32 %v12890_v34, %v12889_v59  ;;  %v7426_v27 = vld [vmem:[%s12079_s13 + $0xe0] sm:$0xff] }
 0x454   : > { %v4211_v45 = vpop.permute.xlu0 %4210 }
 0x455   : > { %v4337_v23 = vsel %vm832_vm2, %v4305_v4, %v4211_v45  ;;  %v10565_v20 = vpop.permute.xlu1 %4098  ;;  %v2207_v25 = vsel %vm2195_vm5, %v1533_v44, %v10366_v43  ;;  %v7425_v4 = vld [vmem:[%s12079_s13 + $0xd8] sm:$0xff]  ;;  %v12891_v45 = vld [vmem:[#allocation166_spill] sm:$0xff] }
 0x456   : > { %6870 = vmatmul.mubr.msk.f32.vlgmr.msra.gmra.mrb[32].mxu0 %vm2925_vm6, %v4337_v23  ;;  %2033 = vrot.lane.b32.xlu1 %v1713_v15, %s12720_s28  ;;  %v3878_v43 = vmul.f32 %v12891_v45, %v9132_v35  ;;  %v12893_v23 = vld [vmem:[#allocation41_spill] sm:$0xff]  ;;  %v4028_v35 = vmul.f32 %v10402_v5, %v12865_v54  ;;  %v12898_v44 = vld [vmem:[#allocation190_spill] sm:$0xff]  ;;  %v12900_v5 = vld [vmem:[#allocation96_spill] sm:$0xff] }
 0x457   : > { %4228 = vrot.lane.b32.xlu0 %v4026_v39, %s12582_s20  ;;  %v12892_v39 = vld [vmem:[#allocation47_spill] sm:$0xff]  ;;  %v4040_v54 = vmul.f32 %v10459_v31, %v12900_v5  ;;  %v12902_v45 = vld [vmem:[#allocation49_spill] sm:$0xff] }
 0x458   : > { %v2120_v1 = vpop.permute.xlu0 %2119  ;;  %v1928_v29 = vmul.f32 %v12893_v23, %v12892_v39 }
 0x459   : > { %v2238_v33 = vsel %vm832_vm2, %v2206_v36, %v2120_v1  ;;  %v10581_v15 = vpop.permute.xlu1 %2007  ;;  %v12895_v1 = vld [vmem:[#allocation187_spill] sm:$0xff] }
 0x45a   : > { %6812 = vmatprep.mubr.msk.f32.mxu1 %vm2925_vm6, %v2238_v33  ;;  %2161 = vrot.lane.b32.xlu1 %v1938_v12, %s12582_s20  ;;  %v4038_v12 = vmul.f32 %v10451_v9, %v12894_v48  ;;  %v12897_v9 = vld [vmem:[#allocation229_spill] sm:$0xff] }
 0x45b   : > { %4230 = vrot.lane.b32.xlu0 %v4027_v55, %s12582_s20  ;;  %v3868_v55 = vmul.f32 %v12896_v7, %v12895_v1  ;;  %v12905_v1 = vld [vmem:[#allocation250_spill] sm:$0xff]  ;;  %v12906_v7 = vld [vmem:[#allocation252_spill] sm:$0xff] }
 0x45c   : > { %v2122_v38 = vpop.permute.xlu0 %2121  ;;  %v3698_v31 = vmul.f32 %v12905_v1, %v12835_v58  ;;  %v12909_v58 = vld [vmem:[#allocation81_spill] sm:$0xff] }
 0x45d   : > { %v2239_v37 = vsel %vm832_vm2, %v2207_v25, %v2122_v38  ;;  %v10595_v36 = vpop.permute.xlu1 %2009  ;;  %v3880_v25 = vmul.f32 %v12898_v44, %v12897_v9  ;;  %v12899_v38 = vld [vmem:[#allocation170_spill] sm:$0xff] }
 0x45e   : > { %6813 = vmatmul.mubr.msk.f32.gmra.mrb[14].mxu1 %vm2925_vm6, %v2239_v37  ;;  %3677 = vperm.xlu1 %7362, %v7425_v4   ;;  %v4029_v34 = vmul.f32 %v12899_v38, %v12869_v56  ;;  %v12901_v37 = vld [vmem:[#allocation174_spill] sm:$0xff] }
 0x45f   : > { %2139 = vrot.lane.b32.xlu0 %v1927_v46, %s12582_s20  ;;  %v1929_v4 = vmul.f32 %v12901_v37, %v12867_v18 }
 0x460   : > { %v4085_v56 = vpop.permute.xlu0 %4084 }
 0x461   : > { %v10603_v33 = vpop.permute.xlu1 %3625  ;;  %v4306_v44 = vsel %vm2195_vm5, %v3698_v31, %v4085_v56 }
 0x462   : > { %4124 = vrot.lane.b32.xlu1 %v3878_v43, %s12720_s28  ;;  %v12903_v43 = vld [vmem:[#allocation120_spill] sm:$0xff] }
 0x463   : > { %2141 = vrot.lane.b32.xlu0 %v1928_v29, %s12582_s20  ;;  %v1930_v23 = vmul.f32 %v12903_v43, %v12902_v45 }
 0x465   : > { %v10617_v46 = vpop.permute.xlu1 %3629 }
 0x466   : > { %4252 = vrot.lane.b32.xlu1 %v4038_v12, %s12582_s20  ;;  %v12904_v12 = vld [vmem:[#allocation118_spill] sm:$0xff] }
 0x467   : > { %4104 = vrot.lane.b32.xlu0 %v3868_v55, %s12720_s28  ;;  %v12907_v55 = vld [vmem:[#allocation223_spill] sm:$0xff] }
 0x468   : > { %v3882_v18 = vmul.f32 %v12907_v55, %v12906_v7 }
 0x469   : > { %v10625_v29 = vpop.permute.xlu1 %4102 }
 0x46a   : > { %3681 = vperm.xlu1 %7362, %v7426_v27  }
 0x46b   : > { %4232 = vrot.lane.b32.xlu0 %v4028_v35, %s12582_s20  ;;  %v12908_v35 = vld [vmem:[#allocation197_spill] sm:$0xff] }
 0x46c   : > { %v3870_v27 = vmul.f32 %v12908_v35, %v12815_v50  ;;  %v4030_v50 = vmul.f32 %v10412_v63, %v12880_v2  ;;  %v12913_v63 = vld [vmem:[#allocation215_spill] sm:$0xff] }
 0x46d   : > { %v10644_v37 = vpop.permute.xlu1 %2011  ;;  %v4031_v2 = vmul.f32 %v12913_v63, %v12883_v6  ;;  %v12915_v35 = vld [vmem:[#allocation11_spill] sm:$0xff]  ;;  %v12923_v63 = vld [vmem:[#allocation29_spill] sm:$0xff] }
 0x46e   : > { %4128 = vrot.lane.b32.xlu1 %v3880_v25, %s12720_s28 }
 0x46f   : > { %4234 = vrot.lane.b32.xlu0 %v4029_v34, %s12582_s20  ;;  %v3699_v34 = vmul.f32 %v10276_v53, %v12833_v0  ;;  %v12910_v53 = vld [vmem:[#allocation205_spill] sm:$0xff]  ;;  %v12911_v0 = vld [vmem:[#allocation50_spill] sm:$0xff] }
 0x470   : > { %v1534_v56 = vmul.f32 %v12911_v0, %v12910_v53  ;;  %v12921_v0 = vld [vmem:[#allocation122_spill] sm:$0xff] }
 0x471   : > { %v10663_v55 = vpop.permute.xlu1 %2013 }
 0x472   : > { %4256 = vrot.lane.b32.xlu1 %v4040_v54, %s12582_s20  ;;  %v4042_v54 = vmul.f32 %v10470_v19, %v12909_v58  ;;  %v12912_v19 = vld [vmem:[#allocation175_spill] sm:$0xff] }
 0x473   : > { %2143 = vrot.lane.b32.xlu0 %v1929_v4, %s12582_s20  ;;  %v4307_v4 = vsel %vm2195_vm5, %v3699_v34, %v10397_v10  ;;  %v2208_v10 = vsel %vm2195_vm5, %v1534_v56, %v10404_v51 }
 0x476   : > { %3689 = vperm.xlu1 %7362, %v12904_v12   ;;  %v3884_v12 = vmul.f32 %v10318_v28, %v12912_v19  ;;  %v12916_v28 = vld [vmem:[#allocation62_spill] sm:$0xff] }
 0x477   : > { %2145 = vrot.lane.b32.xlu0 %v1930_v23, %s12582_s20  ;;  %v12922_v19 = vld [vmem:[#allocation218_spill] sm:$0xff] }
 0x479   : > { %v4213_v25 = vpop.permute.xlu0 %4212 }
 0x47a   : > { %v4338_v38 = vsel %vm832_vm2, %v4306_v44, %v4213_v25  ;;  %4132 = vrot.lane.b32.xlu1 %v3882_v18, %s12720_s28  ;;  %v12914_v18 = vld [vmem:[#allocation204_spill] sm:$0xff]  ;;  %v12917_v44 = vld [vmem:[#allocation129_spill] sm:$0xff] }
 0x47b   : > { %4108 = vrot.lane.b32.xlu0 %v3870_v27, %s12720_s28  ;;  %6872 = vmatprep.mubr.msk.f32.mxu0 %vm2925_vm6, %v4338_v38  ;;  %v1535_v27 = vmul.f32 %v12915_v35, %v12914_v18  ;;  %v4044_v6 = vmul.f32 %v12917_v44, %v12916_v28  ;;  %v12918_v25 = vld [vmem:[#allocation217_spill] sm:$0xff]  ;;  %v12925_v28 = vld [vmem:[#allocation203_spill] sm:$0xff] }
 0x47c   : > { %v1931_v51 = vmul.f32 %v12918_v25, %v12882_v8  ;;  %v12926_v44 = vld [vmem:[#allocation53_spill] sm:$0xff] }
 0x47d   : > { %v4215_v43 = vpop.permute.xlu0 %4214  ;;  %v2209_v38 = vsel %vm2195_vm5, %v1535_v27, %v10414_v26  ;;  %v3700_v26 = vmul.f32 %v10323_v22, %v12875_v49  ;;  %v3701_v22 = vmul.f32 %v10338_v52, %v8999_v30  ;;  %v12924_v27 = vld [vmem:[#allocation43_spill] sm:$0xff]  ;;  %v1536_v30 = vmul.f32 %v12926_v44, %v12925_v28  ;;  %v12940_v44 = vld [vmem:[#allocation22_spill] sm:$0xff] }
 0x47e   : > { %v4339_v23 = vsel %vm832_vm2, %v4307_v4, %v4215_v43  ;;  %4260 = vrot.lane.b32.xlu1 %v4042_v54, %s12582_s20  ;;  %v10682_v43 = vpop.permute.xlu1 %3633 }
 0x47f   : > { %4236 = vrot.lane.b32.xlu0 %v4030_v50, %s12582_s20  ;;  %6873 = vmatmul.mubr.msk.f32.gmra.mrb[34].mxu0 %vm2925_vm6, %v4339_v23  ;;  %v12919_v50 = vld [vmem:[#allocation159_spill] sm:$0xff]  ;;  %v12920_v23 = vld [vmem:[#allocation244_spill] sm:$0xff] }
 0x480   : > { %v3886_v4 = vmul.f32 %v10345_v32, %v12919_v50  ;;  %v1932_v8 = vmul.f32 %v12921_v0, %v12920_v23  ;;  %v12931_v50 = vld [vmem:[#allocation234_spill] sm:$0xff] }
 0x481   : > { %v2124_v1 = vpop.permute.xlu0 %2123 }
 0x482   : > { %v2240_v31 = vsel %vm832_vm2, %v2208_v10, %v2124_v1  ;;  %4136 = vrot.lane.b32.xlu1 %v3884_v12, %s12720_s28  ;;  %v4046_v12 = vmul.f32 %v10300_v62, %v12922_v19  ;;  %v4032_v62 = vmul.f32 %v10424_v21, %v12889_v59  ;;  %v12927_v21 = vld [vmem:[#allocation36_spill] sm:$0xff] }
 0x483   : > { %4238 = vrot.lane.b32.xlu0 %v4031_v2, %s12582_s20  ;;  %6815 = vmatprep.mubr.msk.f32.mxu1 %vm2925_vm6, %v2240_v31  ;;  %v3872_v2 = vmul.f32 %v12923_v63, %v12828_v47  ;;  %v10696_v31 = vpop.permute.xlu1 %3637  ;;  %v4309_v47 = vsel %vm2195_vm5, %v3701_v22, %v10444_v11  ;;  %v4033_v59 = vmul.f32 %v12927_v21, %v12892_v39  ;;  %v12941_v21 = vld [vmem:[#allocation232_spill] sm:$0xff] }
 0x484   : > { %v2210_v11 = vsel %vm2195_vm5, %v1536_v30, %v10453_v17  ;;  %v1710_v30 = vmul.f32 %v12940_v44, %v12897_v9  ;;  %v12945_v9 = vld [vmem:[#allocation127_spill] sm:$0xff] }
 0x485   : > { %v2126_v34 = vpop.permute.xlu0 %2125 }
 0x486   : > { %v2241_v54 = vsel %vm832_vm2, %v2209_v38, %v2126_v34  ;;  %4264 = vrot.lane.b32.xlu1 %v4044_v6, %s12582_s20  ;;  %v12929_v38 = vld [vmem:[#allocation201_spill] sm:$0xff]  ;;  %v12930_v34 = vld [vmem:[#allocation12_spill] sm:$0xff] }
 0x487   : > { %2147 = vrot.lane.b32.xlu0 %v1931_v51, %s12582_s20  ;;  %6816 = vmatmul.mubr.msk.f32.gmra.mrb[16].mxu1 %vm2925_vm6, %v2241_v54  ;;  %v10714_v52 = vpop.permute.xlu1 %4106  ;;  %v12928_v51 = vld [vmem:[#allocation48_spill] sm:$0xff]  ;;  %v1537_v54 = vmul.f32 %v12930_v34, %v12929_v38 }
 0x488   : > { %v12944_v34 = vld [vmem:[#allocation56_spill] sm:$0xff] }
 0x489   : > { %v4089_v56 = vpop.permute.xlu0 %4088  ;;  %v2211_v39 = vsel %vm2195_vm5, %v1537_v54, %v10461_v14  ;;  %v12935_v14 = vld [vmem:[#allocation228_spill] sm:$0xff] }
 0x48a   : > { %4140 = vrot.lane.b32.xlu1 %v3886_v4, %s12720_s28  ;;  %v4308_v32 = vsel %vm2195_vm5, %v3700_v26, %v4089_v56  ;;  %v1933_v4 = vmul.f32 %v12931_v50, %v12894_v48  ;;  %v12932_v56 = vld [vmem:[#allocation55_spill] sm:$0xff]  ;;  %v12933_v26 = vld [vmem:[#allocation240_spill] sm:$0xff]  ;;  %v3702_v63 = vmul.f32 %v12935_v14, %v8995_v57  ;;  %v4035_v50 = vmul.f32 %v12945_v9, %v12902_v45  ;;  %v12958_v9 = vld [vmem:[#allocation66_spill] sm:$0xff] }
 0x48b   : > { %2149 = vrot.lane.b32.xlu0 %v1932_v8, %s12582_s20  ;;  %v10731_v0 = vpop.permute.xlu1 %2015  ;;  %v3874_v19 = vmul.f32 %v12933_v26, %v12839_v13  ;;  %v12934_v48 = vld [vmem:[#allocation131_spill] sm:$0xff]  ;;  %v12938_v13 = vld [vmem:[#allocation134_spill] sm:$0xff]  ;;  %v12948_v26 = vld [vmem:[#allocation13_spill] sm:$0xff] }
 0x48d   : > { %v4217_v10 = vpop.permute.xlu0 %4216 }
 0x48e   : > { %v4340_v1 = vsel %vm832_vm2, %v4308_v32, %v4217_v10  ;;  %4268 = vrot.lane.b32.xlu1 %v4046_v12, %s12582_s20  ;;  %v12936_v32 = vld [vmem:[#allocation182_spill] sm:$0xff]  ;;  %v12937_v10 = vld [vmem:[#allocation51_spill] sm:$0xff] }
 0x48f   : > { %4112 = vrot.lane.b32.xlu0 %v3872_v2, %s12720_s28  ;;  %6875 = vmatprep.mubr.msk.f32.mxu0 %vm2925_vm6, %v4340_v1  ;;  %v10745_v2 = vpop.permute.xlu1 %2017  ;;  %v3875_v1 = vmul.f32 %v12937_v10, %v12936_v32 }
 0x491   : > { %v4219_v49 = vpop.permute.xlu0 %4218 }
 0x492   : > { %v4341_v35 = vsel %vm832_vm2, %v4309_v47, %v4219_v49  ;;  %5931 = vrot.lane.b32.xlu1 %v12924_v27, %s7507_s26  ;;  %v12939_v49 = vld [vmem:[#allocation226_spill] sm:$0xff] }
 0x493   : > { %4240 = vrot.lane.b32.xlu0 %v4032_v62, %s12582_s20  ;;  %6876 = vmatmul.mubr.msk.f32.gmra.mrb[36].mxu0 %vm2925_vm6, %v4341_v35  ;;  %v3703_v35 = vmul.f32 %v12939_v49, %v8991_v40  ;;  %v12942_v40 = vld [vmem:[#allocation136_spill] sm:$0xff] }
 0x495   : > { %v2128_v6 = vpop.permute.xlu0 %2127 }
 0x496   : > { %v2242_v25 = vsel %vm832_vm2, %v2210_v11, %v2128_v6  ;;  %5935 = vrot.lane.b32.xlu1 %v12928_v51, %s7507_s26  ;;  %v10765_v6 = vpop.permute.xlu1 %3641  ;;  %v12943_v51 = vld [vmem:[#allocation200_spill] sm:$0xff] }
 0x497   : > { %4242 = vrot.lane.b32.xlu0 %v4033_v59, %s12582_s20  ;;  %6818 = vmatprep.mubr.msk.f32.mxu1 %vm2925_vm6, %v2242_v25  ;;  %v4311_v59 = vsel %vm2195_vm5, %v3703_v35, %v12941_v21  ;;  %v1538_v54 = vmul.f32 %v12944_v34, %v12943_v51  ;;  %v12956_v21 = vld [vmem:[#allocation90_spill] sm:$0xff] }
 0x499   : > { %v2130_v17 = vpop.permute.xlu0 %2129 }
 0x49a   : > { %v2243_v8 = vsel %vm832_vm2, %v2211_v39, %v2130_v17  ;;  %5939 = vrot.lane.b32.xlu1 %v12932_v56, %s7507_s26  ;;  %v12947_v56 = vld [vmem:[#allocation199_spill] sm:$0xff] }
 0x49b   : > { %2151 = vrot.lane.b32.xlu0 %v1933_v4, %s12582_s20  ;;  %6819 = vmatmul.mubr.msk.f32.gmra.mrb[18].mxu1 %vm2925_vm6, %v2243_v8  ;;  %v2212_v4 = vsel %vm2195_vm5, %v1538_v54, %v10504_v41  ;;  %v12946_v8 = vld [vmem:[#allocation137_spill] sm:$0xff]  ;;  %v12949_v41 = vld [vmem:[#allocation70_spill] sm:$0xff]  ;;  %v12957_v54 = vld [vmem:[#allocation143_spill] sm:$0xff] }
 0x49c   : > { %v1935_v14 = vmul.f32 %v12949_v41, %v12900_v5  ;;  %v12953_v5 = vld [vmem:[#allocation141_spill] sm:$0xff]  ;;  %v12961_v41 = vld [vmem:[#allocation198_spill] sm:$0xff] }
 0x49d   : > { %v4093_v12 = vpop.permute.xlu0 %4092 }
 0x49e   : > { %5943 = vrot.lane.b32.xlu1 %v12934_v48, %s7507_s26  ;;  %v4310_v22 = vsel %vm2195_vm5, %v3702_v63, %v4093_v12  ;;  %v10787_v48 = vpop.permute.xlu1 %3645 }
 0x49f   : > { %4116 = vrot.lane.b32.xlu0 %v3874_v19, %s12720_s28  ;;  %v1539_v19 = vmul.f32 %v12948_v26, %v12947_v56 }
 0x4a1   : > { %v4221_v62 = vpop.permute.xlu0 %4220  ;;  %v2213_v63 = vsel %vm2195_vm5, %v1539_v19, %v10516_v61  ;;  %v12954_v61 = vld [vmem:[#allocation75_spill] sm:$0xff]  ;;  %v12960_v19 = vld [vmem:[#allocation145_spill] sm:$0xff] }
 0x4a2   : > { %v4342_v47 = vsel %vm832_vm2, %v4310_v22, %v4221_v62  ;;  %5947 = vrot.lane.b32.xlu1 %v12938_v13, %s7507_s26  ;;  %v12951_v22 = vld [vmem:[#allocation222_spill] sm:$0xff]  ;;  %v12952_v62 = vld [vmem:[#allocation73_spill] sm:$0xff]  ;;  %v10802_v49 = vpop.permute.xlu1 %4110  ;;  %v3704_v35 = vmul.f32 %v12954_v61, %v12910_v53  ;;  %v3705_v53 = vmul.f32 %v12958_v9, %v12914_v18 }
 0x4a3   : > { %4118 = vrot.lane.b32.xlu0 %v3875_v1, %s12720_s28  ;;  %6878 = vmatprep.mubr.msk.f32.mxu0 %vm2925_vm6, %v4342_v47  ;;  %v12950_v1 = vld [vmem:[#allocation139_spill] sm:$0xff]  ;;  %v3876_v47 = vmul.f32 %v12952_v62, %v12951_v22  ;;  %v12962_v18 = vld [vmem:[#allocation58_spill] sm:$0xff]  ;;  %v12965_v62 = vld [vmem:[#allocation196_spill] sm:$0xff] }
 0x4a4   : > { %v12964_v22 = vld [vmem:[#allocation147_spill] sm:$0xff] }
 0x4a5   : > { %v10756_v57 = vpop.f32.mrb[4].mxu1  ;;  %v4223_v11 = vpop.permute.xlu0 %4222 }
 0x4a6   : > { %v10759_v27 = vpop.f32.mrb[5].mxu1  ;;  %v4343_v25 = vsel %vm832_vm2, %v4311_v59, %v4223_v11  ;;  %5951 = vrot.lane.b32.xlu1 %v12942_v40, %s7507_s26 }
 0x4a7   : > { %2027 = vrot.lane.b32.xlu0 %v1710_v30, %s12720_s28  ;;  %6879 = vmatmul.mubr.msk.f32.gmra.mrb[38].mxu0 %vm2925_vm6, %v4343_v25  ;;  %v12955_v30 = vld [vmem:[#allocation224_spill] sm:$0xff] }
 0x4a8   : > { %v3877_v59 = vmul.f32 %v12956_v21, %v12955_v30  ;;  %v12968_v30 = vld [vmem:[#allocation149_spill] sm:$0xff] }
 0x4a9   : > { %v2132_v39 = vpop.permute.xlu0 %2131 }
 0x4aa   : > { %v2244_v17 = vsel %vm832_vm2, %v2212_v4, %v2132_v39  ;;  %5955 = vrot.lane.b32.xlu1 %v12946_v8, %s7507_s26  ;;  %v12959_v4 = vld [vmem:[#allocation133_spill] sm:$0xff] }
 0x4ab   : > { %4246 = vrot.lane.b32.xlu0 %v4035_v50, %s12582_s20  ;;  %6821 = vmatprep.mubr.msk.f32.mxu1 %vm2925_vm6, %v2244_v17  ;;  %v10823_v50 = vpop.permute.xlu1 %2019  ;;  %v1712_v39 = vmul.f32 %v12959_v4, %v12906_v7  ;;  %v4313_v17 = vsel %vm2195_vm5, %v3705_v53, %v10565_v20 }
 0x4ad   : > { %v10784_v12 = vpop.f32.mrb[6].mxu1  ;;  %v2134_v32 = vpop.permute.xlu0 %2133 }
 0x4ae   : > { %v10789_v45 = vpop.f32.mrb[7].mxu1  ;;  %v2245_v10 = vsel %vm832_vm2, %v2213_v63, %v2134_v32  ;;  %5959 = vrot.lane.b32.xlu1 %v12950_v1, %s7507_s26  ;;  %v12963_v63 = vld [vmem:[#allocation68_spill] sm:$0xff] }
 0x4af   : > { %2155 = vrot.lane.b32.xlu0 %v1935_v14, %s12582_s20  ;;  %6822 = vmatmul.mubr.msk.f32.gmra.mrb[20].mxu1 %vm2925_vm6, %v2245_v10  ;;  %v1540_v14 = vmul.f32 %v12962_v18, %v12961_v41  ;;  %v4037_v32 = vmul.f32 %v12963_v63, %v12920_v23  ;;  %v10840_v10 = vpop.permute.xlu1 %2021  ;;  %v12967_v23 = vld [vmem:[#allocation85_spill] sm:$0xff] }
 0x4b0   : > { %v12976_v18 = vld [vmem:[#allocation177_spill] sm:$0xff] }
 0x4b1   : > { %v4097_v13 = vpop.permute.xlu0 %4096  ;;  %v2214_v7 = vsel %vm2195_vm5, %v1540_v14, %v10581_v15 }
 0x4b2   : > { %5963 = vrot.lane.b32.xlu1 %v12953_v5, %s7507_s26  ;;  %v4312_v11 = vsel %vm2195_vm5, %v3704_v35, %v4097_v13  ;;  %v1937_v5 = vmul.f32 %v12967_v23, %v12909_v58  ;;  %v12970_v58 = vld [vmem:[#allocation164_spill] sm:$0xff] }
 0x4b3   : > { %4120 = vrot.lane.b32.xlu0 %v3876_v47, %s12720_s28  ;;  %v12966_v47 = vld [vmem:[#allocation14_spill] sm:$0xff]  ;;  %v10858_v21 = vpop.permute.xlu1 %3649 }
 0x4b4   : > { %v10809_v44 = vpop.f32.mrb[8].mxu1  ;;  %v1541_v13 = vmul.f32 %v12966_v47, %v12965_v62  ;;  %v12979_v47 = vld [vmem:[#allocation61_spill] sm:$0xff] }
 0x4b5   : > { %v4225_v25 = vpop.permute.xlu0 %4224  ;;  %v10814_v40 = vpop.f32.mrb[9].mxu1 }
 0x4b6   : > { %v4344_v34 = vsel %vm832_vm2, %v4312_v11, %v4225_v25  ;;  %5967 = vrot.lane.b32.xlu1 %v12957_v54, %s7507_s26  ;;  %v2215_v15 = vsel %vm2195_vm5, %v1541_v13, %v10595_v36  ;;  %v12969_v11 = vld [vmem:[#allocation151_spill] sm:$0xff]  ;;  %v3706_v25 = vmul.f32 %v12970_v58, %v12925_v28  ;;  %v12972_v54 = vld [vmem:[#allocation172_spill] sm:$0xff]  ;;  %v12974_v28 = vld [vmem:[#allocation69_spill] sm:$0xff] }
 0x4b7   : > { %4122 = vrot.lane.b32.xlu0 %v3877_v59, %s12720_s28  ;;  %6881 = vmatprep.mubr.msk.f32.mxu0 %vm2925_vm6, %v4344_v34  ;;  %v7427_v36 = vld [vmem:[%s12079_s13 + $0xd0] sm:$0xff] }
 0x4b8   : > { %v12971_v34 = vld [vmem:[#allocation227_spill] sm:$0xff] }
 0x4b9   : > { %v4227_v8 = vpop.permute.xlu0 %4226  ;;  %v3879_v9 = vmul.f32 %v12972_v54, %v12971_v34  ;;  %v12983_v58 = vld [vmem:[#allocation107_spill] sm:$0xff] }
 0x4ba   : > { %v4345_v26 = vsel %vm832_vm2, %v4313_v17, %v4227_v8  ;;  %5971 = vrot.lane.b32.xlu1 %v12960_v19, %s7507_s26  ;;  %v12973_v8 = vld [vmem:[#allocation154_spill] sm:$0xff] }
 0x4bb   : > { %2031 = vrot.lane.b32.xlu0 %v1712_v39, %s12720_s28  ;;  %6882 = vmatmul.mubr.msk.f32.gmra.mrb[40].mxu0 %vm2925_vm6, %v4345_v26  ;;  %v10870_v39 = vpop.permute.xlu1 %3653  ;;  %v3707_v26 = vmul.f32 %v12974_v28, %v12929_v38  ;;  %v12975_v19 = vld [vmem:[#allocation54_spill] sm:$0xff]  ;;  %v12978_v38 = vld [vmem:[#allocation195_spill] sm:$0xff] }
 0x4bc   : > { %v4039_v14 = vmul.f32 %v12976_v18, %v12975_v19  ;;  %v1542_v13 = vmul.f32 %v12979_v47, %v12978_v38  ;;  %v3709_v19 = vmul.f32 %v10543_v24, %v12947_v56  ;;  %v12987_v24 = vld [vmem:[#allocation63_spill] sm:$0xff]  ;;  %v12989_v47 = vld [vmem:[#allocation209_spill] sm:$0xff] }
 0x4bd   : > { %v2136_v20 = vpop.permute.xlu0 %2135  ;;  %v4315_v63 = vsel %vm2195_vm5, %v3707_v26, %v10625_v29 }
 0x4be   : > { %v2246_v1 = vsel %vm832_vm2, %v2214_v7, %v2136_v20  ;;  %5975 = vrot.lane.b32.xlu1 %v12964_v22, %s7507_s26  ;;  %v12977_v22 = vld [vmem:[#allocation156_spill] sm:$0xff]  ;;  %v2216_v29 = vsel %vm2195_vm5, %v1542_v13, %v10644_v37  ;;  %v4317_v18 = vsel %vm2195_vm5, %v3709_v19, %v10714_v52 }
 0x4bf   : > { %4250 = vrot.lane.b32.xlu0 %v4037_v32, %s12582_s20  ;;  %6824 = vmatprep.mubr.msk.f32.mxu1 %vm2925_vm6, %v2246_v1  ;;  %v10894_v23 = vpop.permute.xlu1 %4114 }
 0x4c1   : > { %v2138_v61 = vpop.permute.xlu0 %2137 }
 0x4c2   : > { %v2247_v35 = vsel %vm832_vm2, %v2215_v15, %v2138_v61  ;;  %5979 = vrot.lane.b32.xlu1 %v12968_v30, %s7507_s26  ;;  %v12980_v61 = vld [vmem:[#allocation194_spill] sm:$0xff] }
 0x4c3   : > { %2159 = vrot.lane.b32.xlu0 %v1937_v5, %s12582_s20  ;;  %6825 = vmatmul.mubr.msk.f32.gmra.mrb[22].mxu1 %vm2925_vm6, %v2247_v35  ;;  %v12981_v35 = vld [vmem:[#allocation15_spill] sm:$0xff]  ;;  %v10909_v34 = vpop.permute.xlu1 %2023 }
 0x4c4   : > { %v1543_v30 = vmul.f32 %v12981_v35, %v12980_v61 }
 0x4c5   : > { %v4101_v59 = vpop.permute.xlu0 %4100 }
 0x4c6   : > { %5983 = vrot.lane.b32.xlu1 %v12969_v11, %s7507_s26  ;;  %v4314_v53 = vsel %vm2195_vm5, %v3706_v25, %v4101_v59  ;;  %v7428_v59 = vld [vmem:[%s12079_s13 + $0xe8] sm:$0xff]  ;;  %v12982_v11 = vld [vmem:[#allocation251_spill] sm:$0xff] }
 0x4c7   : > { %3673 = vperm.xlu0 %7363, %v7427_v36   ;;  %v3881_v25 = vmul.f32 %v12983_v58, %v12982_v11  ;;  %v2217_v36 = vsel %vm2195_vm5, %v1543_v30, %v10663_v55  ;;  %v12993_v11 = vld [vmem:[#allocation24_spill] sm:$0xff] }
 0x4c9   : > { %v4229_v4 = vpop.permute.xlu0 %4228 }
 0x4ca   : > { %v4346_v17 = vsel %vm832_vm2, %v4314_v53, %v4229_v4  ;;  %5987 = vrot.lane.b32.xlu1 %v12973_v8, %s7507_s26  ;;  %v10919_v8 = vpop.permute.xlu1 %2025 }
 0x4cb   : > { %4126 = vrot.lane.b32.xlu0 %v3879_v9, %s12720_s28  ;;  %6884 = vmatprep.mubr.msk.f32.mxu0 %vm2925_vm6, %v4346_v17  ;;  %v12984_v9 = vld [vmem:[#allocation117_spill] sm:$0xff]  ;;  %v3708_v17 = vmul.f32 %v10528_v16, %v12943_v51  ;;  %v12985_v16 = vld [vmem:[#allocation72_spill] sm:$0xff] }
 0x4cc   : > { %v4041_v53 = vmul.f32 %v12984_v9, %v12877_v42  ;;  %v7429_v42 = vld [vmem:[%s12079_s13 + $0xf8] sm:$0xff]  ;;  %v3883_v51 = vmul.f32 %v12985_v16, %v9441_v60  ;;  %v4043_v60 = vmul.f32 %v12989_v47, %v12886_v3 }
 0x4cd   : > { %v4231_v32 = vpop.permute.xlu0 %4230  ;;  %v10883_v7 = vpop.f32.mrb[10].mxu1 }
 0x4ce   : > { %v4347_v20 = vsel %vm832_vm2, %v4315_v63, %v4231_v32  ;;  %v10886_v1 = vpop.f32.mrb[11].mxu1  ;;  %5991 = vrot.lane.b32.xlu1 %v12977_v22, %s7507_s26  ;;  %v10933_v63 = vpop.permute.xlu1 %2153  ;;  %v12988_v22 = vmov 8  }
 0x4cf   : > { %4254 = vrot.lane.b32.xlu0 %v4039_v14, %s12582_s20  ;;  %6885 = vmatmul.mubr.msk.f32.gmra.mrb[42].mxu0 %vm2925_vm6, %v4347_v20  ;;  %v12986_v20 = vld [vmem:[#allocation193_spill] sm:$0xff] }
 0x4d0   : > { %v1544_v56 = vmul.f32 %v12987_v24, %v12986_v20  ;;  %v13000_v24 = vld [vmem:[#allocation67_spill] sm:$0xff] }
 0x4d1   : > { %v2140_v5 = vpop.permute.xlu0 %2139 }
 0x4d2   : > { %v2248_v15 = vsel %vm832_vm2, %v2216_v29, %v2140_v5  ;;  %v2218_v52 = vsel %vm2195_vm5, %v1544_v56, %v10731_v0  ;;  %v12990_v5 = vld [vmem:[#allocation192_spill] sm:$0xff]  ;;  %v10950_v30 = vpop.permute.xlu1 %3657  ;;  %v13001_v56 = vld [vmem:[#allocation65_spill] sm:$0xff] }
 0x4d3   : > { %3685 = vperm.xlu0 %7363, %v7428_v59   ;;  %6827 = vmatprep.mubr.msk.f32.mxu1 %vm2925_vm6, %v2248_v15  ;;  %v12991_v15 = vld [vmem:[#allocation16_spill] sm:$0xff] }
 0x4d4   : > { %v1545_v35 = vmul.f32 %v12991_v15, %v12990_v5  ;;  %v12992_v59 = vld [vmem:[#allocation176_spill] sm:$0xff] }
 0x4d5   : > { %v2142_v37 = vpop.permute.xlu0 %2141  ;;  %v3885_v58 = vmul.f32 %v12993_v11, %v12992_v59 }
 0x4d6   : > { %v2249_v54 = vsel %vm832_vm2, %v2217_v36, %v2142_v37  ;;  %v2219_v3 = vsel %vm2195_vm5, %v1545_v35, %v10745_v2  ;;  %v12994_v36 = vld [vmem:[#allocation213_spill] sm:$0xff]  ;;  %v12997_v2 = vld [vmem:[#allocation167_spill] sm:$0xff] }
 0x4d7   : > { %4130 = vrot.lane.b32.xlu0 %v3881_v25, %s12720_s28  ;;  %6828 = vmatmul.mubr.msk.f32.gmra.mrb[24].mxu1 %vm2925_vm6, %v2249_v54  ;;  %v12995_v37 = vld [vmem:[#allocation25_spill] sm:$0xff] }
 0x4d8   : > { %v4045_v54 = vmul.f32 %v12995_v37, %v12994_v36 }
 0x4d9   : > { %v4105_v4 = vpop.permute.xlu0 %4104 }
 0x4da   : > { %v4316_v55 = vsel %vm2195_vm5, %v3708_v17, %v4105_v4  ;;  %v3710_v4 = vmul.f32 %v10603_v33, %v12961_v41  ;;  %v12996_v17 = vld [vmem:[#allocation161_spill] sm:$0xff]  ;;  %v12998_v33 = vld [vmem:[#allocation28_spill] sm:$0xff] }
 0x4db   : > { %4258 = vrot.lane.b32.xlu0 %v4041_v53, %s12582_s20  ;;  %v10961_v53 = vpop.permute.xlu1 %4244  ;;  %v12999_v41 = vld [vmem:[#allocation169_spill] sm:$0xff] }
 0x4dd   : > { %v4233_v28 = vpop.permute.xlu0 %4232 }
 0x4de   : > { %v4348_v26 = vsel %vm832_vm2, %v4316_v55, %v4233_v28  ;;  %v3887_v55 = vmul.f32 %v12997_v2, %v12996_v17  ;;  %v13008_v17 = vld [vmem:[#allocation21_spill] sm:$0xff]  ;;  %v13009_v2 = vld [vmem:[#allocation91_spill] sm:$0xff] }
 0x4df   : > { %3693 = vperm.xlu0 %7363, %v7429_v42   ;;  %6887 = vmatprep.mubr.msk.f32.mxu0 %vm2925_vm6, %v4348_v26  ;;  %v3711_v42 = vmul.f32 %v10617_v46, %v12965_v62  ;;  %v10974_v16 = vpop.permute.xlu1 %3661 }
 0x4e1   : > { %v4235_v14 = vpop.permute.xlu0 %4234 }
 0x4e2   : > { %v4349_v32 = vsel %vm832_vm2, %v4317_v18, %v4235_v14  ;;  %v4319_v18 = vsel %vm2195_vm5, %v3711_v42, %v10802_v49  ;;  %v13003_v49 = vld [vmem:[#allocation17_spill] sm:$0xff] }
 0x4e3   : > { %4134 = vrot.lane.b32.xlu0 %v3883_v51, %s12720_s28  ;;  %6888 = vmatmul.mubr.msk.f32.gmra.mrb[44].mxu0 %vm2925_vm6, %v4349_v32  ;;  %v4047_v51 = vmul.f32 %v12999_v41, %v12998_v33  ;;  %v10987_v47 = vpop.permute.xlu1 %2029 }
 0x4e4   : > { %7364 = vset.pattern.permute.xlu0 %v12988_v22  ;;  %v1546_v22 = vmul.f32 %v13001_v56, %v13000_v24  ;;  %v13014_v56 = vld [vmem:[#allocation138_spill] sm:$0xff] }
 0x4e5   : > { %v2144_v13 = vpop.permute.xlu0 %2143 }
 0x4e6   : > { %v2250_v29 = vsel %vm832_vm2, %v2218_v52, %v2144_v13  ;;  %v2220_v46 = vsel %vm2195_vm5, %v1546_v22, %v10823_v50  ;;  %v13002_v52 = vld [vmem:[#allocation64_spill] sm:$0xff] }
 0x4e7   : > { %4262 = vrot.lane.b32.xlu0 %v4043_v60, %s12582_s20  ;;  %6830 = vmatprep.mubr.msk.f32.mxu1 %vm2925_vm6, %v2250_v29  ;;  %v1547_v13 = vmul.f32 %v13003_v49, %v13002_v52  ;;  %v13004_v29 = vld [vmem:[#allocation46_spill] sm:$0xff]  ;;  %v13005_v50 = vld [vmem:[#allocation52_spill] sm:$0xff]  ;;  %v2158_v11 = vpop.permute.xlu1 %2157 }
 0x4e9   : > { %v2146_v25 = vpop.permute.xlu0 %2145  ;;  %v2221_v15 = vsel %vm2195_vm5, %v1547_v13, %v10840_v10 }
 0x4ea   : > { %v2251_v0 = vsel %vm832_vm2, %v2219_v3, %v2146_v25  ;;  %v3712_v3 = vmul.f32 %v10682_v43, %v12978_v38  ;;  %v13006_v25 = vld [vmem:[#allocation130_spill] sm:$0xff] }
 0x4eb   : > { %4138 = vrot.lane.b32.xlu0 %v3885_v58, %s12720_s28  ;;  %6831 = vmatmul.mubr.msk.f32.gmra.mrb[26].mxu1 %vm2925_vm6, %v2251_v0  ;;  %v11006_v10 = vpop.permute.xlu1 %3665 }
 0x4ed   : > { %v4109_v9 = vpop.permute.xlu0 %4108 }
 0x4ee   : > { %v4318_v28 = vsel %vm2195_vm5, %v3710_v4, %v4109_v9  ;;  %v13007_v9 = vld [vmem:[#allocation132_spill] sm:$0xff] }
 0x4ef   : > { %4266 = vrot.lane.b32.xlu0 %v4045_v54, %s12582_s20  ;;  %v3713_v54 = vmul.f32 %v10696_v31, %v12980_v61  ;;  %v13011_v31 = vld [vmem:[#allocation124_spill] sm:$0xff]  ;;  %v13012_v61 = vld [vmem:[#allocation18_spill] sm:$0xff] }
 0x4f1   : > { %v4237_v26 = vpop.permute.xlu0 %4236  ;;  %v4321_v43 = vsel %vm2195_vm5, %v3713_v54, %v10894_v23 }
 0x4f2   : > { %v4350_v19 = vsel %vm832_vm2, %v4318_v28, %v4237_v26  ;;  %v13010_v28 = vld [vmem:[#allocation135_spill] sm:$0xff]  ;;  %v1549_v26 = vmul.f32 %v13012_v61, %v13011_v31 }
 0x4f3   : > { %4142 = vrot.lane.b32.xlu0 %v3887_v55, %s12720_s28  ;;  %6890 = vmatprep.mubr.msk.f32.mxu0 %vm2925_vm6, %v4350_v19  ;;  %v1548_v55 = vmul.f32 %v13009_v2, %v13008_v17  ;;  %v4249_v19 = vpop.permute.xlu1 %4248 }
 0x4f4   : > { %v2223_v23 = vsel %vm2195_vm5, %v1549_v26, %v10919_v8 }
 0x4f5   : > { %v4239_v14 = vpop.permute.xlu0 %4238  ;;  %v2222_v42 = vsel %vm2195_vm5, %v1548_v55, %v10909_v34 }
 0x4f6   : > { %v4351_v32 = vsel %vm832_vm2, %v4319_v18, %v4239_v14  ;;  %v13013_v18 = vld [vmem:[#allocation39_spill] sm:$0xff]  ;;  %v3714_v14 = vmul.f32 %v10765_v6, %v12986_v20 }
 0x4f7   : > { %4270 = vrot.lane.b32.xlu0 %v4047_v51, %s12582_s20  ;;  %6891 = vmatmul.mubr.msk.f32.gmra.mrb[46].mxu0 %vm2925_vm6, %v4351_v32  ;;  %v2255_v51 = vsel %vm832_vm2, %v2223_v23, %v10933_v63  ;;  %v11037_v32 = vpop.permute.xlu1 %3669  ;;  %s6105_s20 = sshll.u32 %s11928_s1, 4  ;;  %s11999_s20 = int_to_ptr.vmem [resolvable:$true] %s6105_s20 }
 0x4f8   : > { %s7430_s18 = scalar_lea.vmem %s11999_s20, 4096 }
 0x4f9   : > { %v2148_v62 = vpop.permute.xlu0 %2147  ;;  %p7431_p11 = scmp.ne.s32.totalorder %s11999_s20, %s7430_s18 }
 0x4fa   : > { %v2252_v60 = vsel %vm832_vm2, %v2220_v46, %v2148_v62  ;;  %v13015_v46 = vld [vmem:[#allocation140_spill] sm:$0xff]  ;;  %v3715_v62 = vmul.f32 %v10787_v48, %v12990_v5  ;;  %v13021_v5 = vld [vmem:[#allocation19_spill] sm:$0xff] }
 0x4fb   : > { %5933 = vrot.lane.b32.xlu0 %v13004_v29, %s7507_s26  ;;  %6833 = vmatprep.mubr.msk.f32.mxu1 %vm2925_vm6, %v2252_v60  ;;  %v2034_v6 = vpop.permute.xlu1 %2033  ;;  %v13016_v60 = vld [vmem:[#allocation142_spill] sm:$0xff]  ;;  %v13020_v48 = vld [vmem:[#allocation76_spill] sm:$0xff]  ;;  %p7432_p12 = pnand %p7431_p11, %p7624_p5 }
 0x4fd   : > { %v2150_v35 = vpop.permute.xlu0 %2149  ;;  %p7433_p13 = pneg %p7432_p12 }
 0x4fe   : > { %v2253_v59 = vsel %vm832_vm2, %v2221_v15, %v2150_v35 }
 0x4ff   : > { %5937 = vrot.lane.b32.xlu0 %v13005_v50, %s7507_s26  ;;  %6834 = vmatmul.mubr.msk.f32.gmra.mrb[28].mxu1 %vm2925_vm6, %v2253_v59  ;;  %v13017_v59 = vld [vmem:[#allocation163_spill] sm:$0xff]  ;;  %v13018_v50 = vld [vmem:[#allocation93_spill] sm:$0xff] }
 0x501   : > { %v4113_v58 = vpop.permute.xlu0 %4112 }
 0x502   : > { %v4320_v0 = vsel %vm2195_vm5, %v3712_v3, %v4113_v58  ;;  %v1550_v58 = vmul.f32 %v13018_v50, %v13017_v59  ;;  %v13019_v3 = vld [vmem:[#allocation144_spill] sm:$0xff] }
 0x503   : > { %5941 = vrot.lane.b32.xlu0 %v13006_v25, %s7507_s26  ;;  %v1551_v25 = vmul.f32 %v13021_v5, %v13020_v48  ;;  %v13032_v5 = vld [vmem:[#allocation157_spill] sm:$0xff] }
 0x505   : > { %v4241_v36 = vpop.permute.xlu0 %4240 }
 0x506   : > { %v4352_v37 = vsel %vm832_vm2, %v4320_v0, %v4241_v36 }
 0x507   : > { %5945 = vrot.lane.b32.xlu0 %v13007_v9, %s7507_s26  ;;  %6893 = vmatprep.mubr.msk.f32.mxu0 %vm2925_vm6, %v4352_v37  ;;  %v2225_v37 = vsel %vm2195_vm5, %v1551_v25, %v10987_v47  ;;  %v13023_v47 = vld [vmem:[#allocation148_spill] sm:$0xff] }
 0x508   : > { %v2257_v9 = vsel %vm832_vm2, %v2225_v37, %v2158_v11  ;;  %v3720_v37 = vmul.f32 %v11006_v10, %v13017_v59 }
 0x509   : > { %v4243_v38 = vpop.permute.xlu0 %4242 }
 0x50a   : > { %v4353_v4 = vsel %vm832_vm2, %v4321_v43, %v4243_v38  ;;  %v13022_v43 = vld [vmem:[#allocation146_spill] sm:$0xff]  ;;  %v3716_v38 = vmul.f32 %v10858_v21, %v13000_v24 }
 0x50b   : > { %5949 = vrot.lane.b32.xlu0 %v13010_v28, %s7507_s26  ;;  %6894 = vmatmul.mubr.msk.f32.gmra.mrb[48].mxu0 %vm2925_vm6, %v4353_v4 }
 0x50d   : > { %v2152_v33 = vpop.permute.xlu0 %2151 }
 0x50e   : > { %v2254_v41 = vsel %vm832_vm2, %v2222_v42, %v2152_v33  ;;  %v13024_v33 = vld [vmem:[#allocation150_spill] sm:$0xff] }
 0x50f   : > { %5953 = vrot.lane.b32.xlu0 %v13013_v18, %s7507_s26  ;;  %6836 = vmatprep.mubr.msk.f32.mxu1 %vm2925_vm6, %v2254_v41  ;;  %v3717_v41 = vmul.f32 %v10870_v39, %v13002_v52  ;;  %v13029_v39 = vld [vmem:[#allocation99_spill] sm:$0xff]  ;;  %v13030_v52 = vld [vmem:[#allocation20_spill] sm:$0xff] }
 0x510   : > { %6837 = vmatmul.mubr.msk.f32.gmra.mrb[30].mxu1 %vm2925_vm6, %v2255_v51 }
 0x511   : > { %v4117_v34 = vpop.permute.xlu0 %4116 }
 0x512   : > { %v4322_v8 = vsel %vm2195_vm5, %v3714_v14, %v4117_v34 }
 0x513   : > { %5957 = vrot.lane.b32.xlu0 %v13014_v56, %s7507_s26  ;;  %v4354_v63 = vsel %vm832_vm2, %v4322_v8, %v10961_v53  ;;  %v2162_v53 = vpop.permute.xlu1 %2161  ;;  %v13026_v8 = vld [vmem:[#allocation158_spill] sm:$0xff]  ;;  %v13027_v56 = vld [vmem:[#allocation95_spill] sm:$0xff] }
 0x514   : > { %6896 = vmatprep.mubr.msk.f32.mxu0 %vm2925_vm6, %v4354_v63  ;;  %v1552_v63 = vmul.f32 %v13027_v56, %v13026_v8 }
 0x515   : > { %v4119_v22 = vpop.permute.xlu0 %4118 }
 0x516   : > { %v4323_v49 = vsel %vm2195_vm5, %v3715_v62, %v4119_v22  ;;  %v13028_v22 = vld [vmem:[#allocation155_spill] sm:$0xff]  ;;  %v3718_v62 = vmul.f32 %v10950_v30, %v13008_v17 }
 0x517   : > { %5961 = vrot.lane.b32.xlu0 %v13015_v46, %s7507_s26  ;;  %v11074_v4 = vpop.permute.xlu1 %3677  ;;  %v1553_v46 = vmul.f32 %v13030_v52, %v13029_v39 }
 0x519   : > { %v2028_v20 = vpop.permute.xlu0 %2027 }
 0x51a   : > { %v2224_v0 = vsel %vm2195_vm5, %v1550_v58, %v2028_v20  ;;  %v13031_v20 = vmov 0.0  }
 0x51b   : > { %5965 = vrot.lane.b32.xlu0 %v13016_v60, %s7507_s26  ;;  %v4125_v26 = vpop.permute.xlu1 %4124 }
 0x51c   : > { %v4326_v58 = vsel %vm2195_vm5, %v3718_v62, %v4125_v26  ;;  %v3721_v26 = vmul.f32 %v11037_v32, %v13020_v48 }
 0x51d   : > { %v4247_v13 = vpop.permute.xlu0 %4246  ;;  %v11052_v29 = vpop.f32.mrb[12].mxu1 }
 0x51e   : > { %v4355_v15 = vsel %vm832_vm2, %v4323_v49, %v4247_v13  ;;  %v11055_v35 = vpop.f32.mrb[13].mxu1  ;;  %v2227_v13 = vsel %vm2195_vm5, %v1553_v46, %v2034_v6 }
 0x51f   : > { %5969 = vrot.lane.b32.xlu0 %v13019_v3, %s7507_s26  ;;  %6897 = vmatmul.mubr.msk.f32.gmra.mrb[50].mxu0 %vm2925_vm6, %v4355_v15  ;;  %v4253_v51 = vpop.permute.xlu1 %4252  ;;  %v2259_v50 = vsel %vm832_vm2, %v2227_v13, %v2162_v53  ;;  %v3719_v53 = vmul.f32 %v10974_v16, %v13011_v31 }
 0x520   : > { %v4358_v25 = vsel %vm832_vm2, %v4326_v58, %v4253_v51  ;;  %v13035_v58 = vld [vmem:[#allocation102_spill] sm:$0xff] }
 0x521   : > { %v2156_v36 = vpop.permute.xlu0 %2155 }
 0x522   : > { %v2256_v54 = vsel %vm832_vm2, %v2224_v0, %v2156_v36 }
 0x523   : > { %5973 = vrot.lane.b32.xlu0 %v13022_v43, %s7507_s26  ;;  %6839 = vmatprep.mubr.msk.f32.mxu1 %vm2925_vm6, %v2256_v54  ;;  %v3682_v3 = vpop.permute.xlu1 %3681 }
 0x524   : > { %6840 = vmatmul.mubr.msk.f32.gmra.mrb[32].mxu1 %vm2925_vm6, %v2257_v9 }
 0x525   : > { %v4121_v2 = vpop.permute.xlu0 %4120 }
 0x526   : > { %v4324_v55 = vsel %vm2195_vm5, %v3716_v38, %v4121_v2 }
 0x527   : > { %5977 = vrot.lane.b32.xlu0 %v13023_v47, %s7507_s26  ;;  %v4356_v11 = vsel %vm832_vm2, %v4324_v55, %v4249_v19  ;;  %v13025_v19 = vld [vmem:[#allocation152_spill] sm:$0xff]  ;;  %v4129_v30 = vpop.permute.xlu1 %4128 }
 0x528   : > { %6899 = vmatprep.mubr.msk.f32.mxu0 %vm2925_vm6, %v4356_v11  ;;  %v4328_v43 = vsel %vm2195_vm5, %v3720_v37, %v4129_v30  ;;  %v13036_v37 = vld [vmem:[#allocation106_spill] sm:$0xff] }
 0x529   : > { %v6871_v28 = vpop.f32.mrb[32].mxu0  ;;  %v4123_v61 = vpop.permute.xlu0 %4122 }
 0x52a   : > { %v11083_v42 = vadd.f32 %v6871_v28, %v10756_v57  ;;  %v4543_v21 = vpop.f32.mrb[33].mxu0  ;;  %v4325_v18 = vsel %vm2195_vm5, %v3717_v41, %v4123_v61 }
 0x52b   : > { %v11086_v24 = vadd.f32 %v4543_v21, %v10759_v27  ;;  %5981 = vrot.lane.b32.xlu0 %v13024_v33, %s7507_s26  ;;  %v4257_v17 = vpop.permute.xlu1 %4256 }
 0x52c   : > { %v4360_v55 = vsel %vm832_vm2, %v4328_v43, %v4257_v17 }
 0x52d   : > { %v2032_v23 = vpop.permute.xlu0 %2031 }
 0x52e   : > { %v2226_v60 = vsel %vm2195_vm5, %v1552_v63, %v2032_v23 }
 0x52f   : > { %5985 = vrot.lane.b32.xlu0 %v13025_v19, %s7507_s26  ;;  %v3690_v0 = vpop.permute.xlu1 %3689 }
 0x531   : > { %v4251_v14 = vpop.permute.xlu0 %4250  ;;  %v11095_v57 = vpop.f32.mrb[14].mxu1 }
 0x532   : > { %v4357_v34 = vsel %vm832_vm2, %v4325_v18, %v4251_v14  ;;  %v11098_v27 = vpop.f32.mrb[15].mxu1  ;;  %v3723_v14 = vmul.f32 %v11074_v4, %v13029_v39  ;;  %v13034_v39 = vld [vmem:[#allocation191_spill] sm:$0xff] }
 0x533   : > { %5989 = vrot.lane.b32.xlu0 %v13028_v22, %s7507_s26  ;;  %6900 = vmatmul.mubr.msk.f32.gmra.mrb[52].mxu0 %vm2925_vm6, %v4357_v34  ;;  %v4133_v38 = vpop.permute.xlu1 %4132  ;;  %v13033_v34 = vld [vmem:[#allocation202_spill] sm:$0xff] }
 0x534   : > { %6925 = vmatprep.mubr.msk.f32.mxu0 %vm7499_vm1, %v13031_v20 }
 0x535   : > { %v2160_v49 = vpop.permute.xlu0 %2159 }
 0x536   : > { %v2258_v15 = vsel %vm832_vm2, %v2226_v60, %v2160_v49 }
 0x537   : > { %5993 = vrot.lane.b32.xlu0 %v13032_v5, %s7507_s26  ;;  %6842 = vmatprep.mubr.msk.f32.mxu1 %vm2925_vm6, %v2258_v15  ;;  %v4261_v59 = vpop.permute.xlu1 %4260  ;;  %s11997_s26 = scalar_lea.hbm %s12080_s14, %s6370_s25  ;;  %s7434_s25 = sshll.u32 %s7508_s21, 4  ;;  %s7435_s25 = int_to_ptr.vmem [resolvable:$false] %s7434_s25 }
 0x538   : > { %6843 = vmatmul.mubr.msk.f32.gmra.mrb[34].mxu1 %vm2925_vm6, %v2259_v50  ;;  %s7436_s17 = scalar_lea.vmem %s7435_s25, 8192  ;;  %p7437_p0 = scmp.lt.s32.totalorder %s11999_s20, %s7435_s25 }
 0x539   : > { %6902 = vmatprep.mubr.msk.f32.mxu1 %vm2925_vm6, %v4358_v25  ;;  %p7438_p1 = scmp.lt.s32.totalorder %s7436_s17, %s7430_s18 }
 0x53b   : > { %p7439_p2 = por %p7438_p1, %p7437_p0 }
 0x53d   : > { %p7440_p3 = pnand %p7439_p2, %p7433_p13 }
 0x546   : > { %v3674_v6 = vpop.permute.xlu0 %3673 }
 0x547   : > { %v3722_v28 = vmul.f32 %v3674_v6, %v13026_v8  ;;  %v3724_v8 = vmul.f32 %v3682_v3, %v13033_v34  ;;  %v3726_v3 = vmul.f32 %v3690_v0, %v13035_v58  ;;  %v4736_v34 = vld [vmem:[%s12077_s11 + $0x10] sm:$0xff] }
 0x549   : > { %v4330_v21 = vsel %vm2195_vm5, %v3722_v28, %v4133_v38 }
 0x54a   : > { %v4127_v36 = vpop.permute.xlu0 %4126 }
 0x54b   : > { %v4327_v54 = vsel %vm2195_vm5, %v3719_v53, %v4127_v36 }
 0x54e   : > { %v4255_v9 = vpop.permute.xlu0 %4254 }
 0x54f   : > { %v4359_v2 = vsel %vm832_vm2, %v4327_v54, %v4255_v9 }
 0x550   : > { %6903 = vmatmul.mubr.msk.f32.vlgmr.msra.gmra.mrb[26].mxu1 %vm2925_vm6, %v4359_v2 }
 0x551   : > { %6905 = vmatprep.mubr.msk.f32.mxu1 %vm2925_vm6, %v4360_v55 }
 0x552   : > { %v6874_v47 = vpop.f32.mrb[34].mxu0  ;;  %v3686_v11 = vpop.permute.xlu0 %3685 }
 0x553   : > { %v11133_v16 = vadd.f32 %v6874_v47, %v10784_v12  ;;  %v4553_v10 = vpop.f32.mrb[35].mxu0  ;;  %v4137_v12 = vpop.permute.xlu1 %4136  ;;  %v3725_v50 = vmul.f32 %v3686_v11, %v13034_v39  ;;  %v4741_v39 = vsel %vm2195_vm5, %v11083_v42, 0.0 }
 0x554   : > { %v11136_v31 = vadd.f32 %v4553_v10, %v10789_v45  ;;  %v4362_v45 = vsel %vm832_vm2, %v4330_v21, %v4261_v59  ;;  %v4332_v52 = vsel %vm2195_vm5, %v3724_v8, %v4137_v12  ;;  %v4737_v8 = vld [vmem:[%s12077_s11 + $0x18] sm:$0xff] }
 0x556   : > { %v4131_v61 = vpop.permute.xlu0 %4130  ;;  %v4811_v58 = vmul.f32 %v11136_v31, %v11136_v31 }
 0x557   : > { %v4329_v33 = vsel %vm2195_vm5, %v3721_v26, %v4131_v61  ;;  %v4265_v32 = vpop.permute.xlu1 %4264 }
 0x558   : > { %v4364_v13 = vsel %vm832_vm2, %v4332_v52, %v4265_v32 }
 0x55a   : > { %v4259_v23 = vpop.permute.xlu0 %4258  ;;  %v11143_v41 = vpop.f32.mrb[16].mxu1 }
 0x55b   : > { %v4361_v19 = vsel %vm832_vm2, %v4329_v33, %v4259_v23  ;;  %v11146_v51 = vpop.f32.mrb[17].mxu1  ;;  %v4141_v46 = vpop.permute.xlu1 %4140 }
 0x55c   : > { %6906 = vmatmul.mubr.msk.f32.gmra.mrb[28].mxu1 %vm2925_vm6, %v4361_v19  ;;  %v4334_v17 = vsel %vm2195_vm5, %v3726_v3, %v4141_v46 }
 0x55d   : > { %6908 = vmatprep.mubr.msk.f32.mxu1 %vm2925_vm6, %v4362_v45 }
 0x55e   : > { %v3694_v18 = vpop.permute.xlu0 %3693 }
 0x55f   : > { %v4269_v5 = vpop.permute.xlu1 %4268  ;;  %v3727_v54 = vmul.f32 %v3694_v18, %v13036_v37  ;;  %v4745_v37 = vsel %vm2195_vm5, %v11133_v16, 0.0 }
 0x560   : > { %v4366_v36 = vsel %vm832_vm2, %v4334_v17, %v4269_v5 }
 0x562   : > { %v4135_v48 = vpop.permute.xlu0 %4134 }
 0x563   : > { %v4331_v56 = vsel %vm2195_vm5, %v3723_v14, %v4135_v48  ;;  %v13037_v14 = vmov 0.0|0.0  }
 0x566   : > { %v6877_v63 = vpop.f32.mrb[36].mxu0  ;;  %v4263_v22 = vpop.permute.xlu0 %4262 }
 0x567   : > { %v11157_v62 = vadd.f32 %v6877_v63, %v10809_v44  ;;  %v4363_v60 = vsel %vm832_vm2, %v4331_v56, %v4263_v22  ;;  %v4563_v49 = vpop.f32.mrb[37].mxu0  ;;  %v11222_v56 = vpack.c.bf16 %v4737_v8, %v4736_v34 }
 0x568   : > { %v11162_v15 = vadd.f32 %v4563_v49, %v10814_v40  ;;  %6909 = vmatmul.mubr.msk.f32.gmra.mrb[30].mxu1 %vm2925_vm6, %v4363_v60 }
 0x569   : > { %6911 = vmatprep.mubr.msk.f32.mxu1 %vm2925_vm6, %v4364_v13  ;;  %v4810_v13 = vmul.f32 %v11083_v42, %v11083_v42 }
 0x56a   : > { %v4139_v4 = vpop.permute.xlu0 %4138 }
 0x56b   : > { %v4333_v44 = vsel %vm2195_vm5, %v3725_v50, %v4139_v4  ;;  %v4809_v4 = vmul.f32 %v11086_v24, %v11086_v24  ;;  %v4740_v50 = vsel %vm2195_vm5, %v11086_v24, 0.0  ;;  %v4842_v3 = vsel %vm2195_vm5, %v4810_v13, 0.0 }
 0x56d   : > { %v4841_v5 = vsel %vm2195_vm5, %v4809_v4, 0.0 }
 0x56e   : > { %v4267_v25 = vpop.permute.xlu0 %4266  ;;  %v6820_v30 = vpop.f32.mrb[18].mxu1  ;;  %v4843_v17 = vadd.f32 %v4842_v3, %v4841_v5 }
 0x56f   : > { %v4365_v6 = vsel %vm832_vm2, %v4333_v44, %v4267_v25  ;;  %v3479_v40 = vpop.f32.mrb[19].mxu1  ;;  %v4743_v44 = vsel %vm2195_vm5, %v11136_v31, 0.0  ;;  %v4742_v25 = vadd.f32 %v4741_v39, %v4740_v50 }
 0x570   : > { %6912 = vmatmul.mubr.msk.f32.gmra.mrb[32].mxu1 %vm2925_vm6, %v4365_v6 }
 0x571   : > { %6914 = vmatprep.mubr.msk.f32.mxu1 %vm2925_vm6, %v4366_v36  ;;  %v4744_v6 = vadd.f32 %v4743_v44, %v4742_v25  ;;  %v4813_v36 = vmul.f32 %v11162_v15, %v11162_v15 }
 0x572   : > { %v4143_v53 = vpop.permute.xlu0 %4142 }
 0x573   : > { %v4335_v0 = vsel %vm2195_vm5, %v3727_v54, %v4143_v53  ;;  %v4747_v54 = vsel %vm2195_vm5, %v11162_v15, 0.0 }
 0x576   : > { %v4271_v9 = vpop.permute.xlu0 %4270 }
 0x577   : > { %v4367_v43 = vsel %vm832_vm2, %v4335_v0, %v4271_v9  ;;  %v4746_v0 = vadd.f32 %v4745_v37, %v4744_v6 }
 0x578   : > { %6915 = vmatmul.mubr.msk.f32.gmra.mrb[34].mxu1 %vm2925_vm6, %v4367_v43  ;;  %v4848_v43 = vsel %vm2195_vm5, %v4813_v36, 0.0 }
 0x57a   : > { %v6880_v38 = vpop.f32.mrb[38].mxu0 }
 0x57b   : > { %v11179_v2 = vadd.f32 %v6880_v38, %v10883_v7  ;;  %v4573_v55 = vpop.f32.mrb[39].mxu0  ;;  %v4748_v38 = vadd.f32 %v4747_v54, %v4746_v0 }
 0x57c   : > { %v11182_v47 = vadd.f32 %v4573_v55, %v10886_v1 }
 0x582   : > { %v6823_v11 = vpop.f32.mrb[20].mxu1 }
 0x583   : > { %v3489_v10 = vpop.f32.mrb[21].mxu1 }
 0x58e   : > { %v6883_v59 = vpop.f32.mrb[40].mxu0 }
 0x58f   : > { %v11185_v28 = vadd.f32 %v6883_v59, %v11052_v29  ;;  %v4583_v61 = vpop.f32.mrb[41].mxu0  ;;  %v4734_v29 = vld [vmem:[%s12077_s11] sm:$0xff] }
 0x590   : > { %v11188_v26 = vadd.f32 %v4583_v61, %v11055_v35  ;;  %v4735_v35 = vld [vmem:[%s12077_s11 + $0x8] sm:$0xff] }
 0x591   : > { %v11206_v18 = vpack.c.bf16 %v4735_v35, %v4734_v29  ;;  %v4818_v5 = vmul.f32 %v11185_v28, %v11185_v28 }
 0x593   : > { %7119 = vmatpush3.bf16.msra.mxu0 %v11206_v18 }
 0x594   : > { %7120 = vmatprep.subr.bf16.mxu0 %v13037_v14 }
 0x596   : > { %v6826_v21 = vpop.f32.mrb[22].mxu1 }
 0x597   : > { %v3499_v33 = vpop.f32.mrb[23].mxu1  ;;  %7122 = vmatpush3.bf16.msra.mxu0 %v11222_v56 }
 0x598   : > { %7123 = vmatprep.subr.bf16.mxu0 %v13037_v14 }
 0x5a2   : > { %v6886_v23 = vpop.f32.mrb[42].mxu0 }
 0x5a3   : > { %v11191_v7 = vadd.f32 %v6886_v23, %v11095_v57  ;;  %v4593_v12 = vpop.f32.mrb[43].mxu0  ;;  %v4749_v23 = vsel %vm2195_vm5, %v11157_v62, 0.0 }
 0x5a4   : > { %v11194_v1 = vadd.f32 %v4593_v12, %v11098_v27  ;;  %v4751_v12 = vsel %vm2195_vm5, %v11182_v47, 0.0 }
 0x5a5   : > { %v4820_v54 = vmul.f32 %v11191_v7, %v11191_v7 }
 0x5a6   : > { %v4819_v44 = vmul.f32 %v11194_v1, %v11194_v1 }
 0x5a8   : > { %v4860_v36 = vsel %vm2195_vm5, %v4819_v44, 0.0 }
 0x5aa   : > { %v11196_v19 = vpop.f32.mrb[24].mxu1 }
 0x5ab   : > { %v11198_v45 = vpop.f32.mrb[25].mxu1 }
 0x5b6   : > { %v6889_v57 = vpop.f32.mrb[44].mxu0 }
 0x5b7   : > { %v11209_v32 = vadd.f32 %v6889_v57, %v11143_v41  ;;  %v4603_v27 = vpop.f32.mrb[45].mxu0  ;;  %v4750_v57 = vadd.f32 %v4749_v23, %v4748_v38 }
 0x5b8   : > { %v11213_v48 = vadd.f32 %v4603_v27, %v11146_v51 }
 0x5ba   : > { %v4821_v0 = vmul.f32 %v11213_v48, %v11213_v48  ;;  %v4763_v38 = vsel %vm2195_vm5, %v11213_v48, 0.0 }
 0x5ca   : > { %v6892_v41 = vpop.f32.mrb[46].mxu0 }
 0x5cb   : > { %v11224_v63 = vadd.f32 %v6892_v41, %v6820_v30  ;;  %v4613_v22 = vpop.f32.mrb[47].mxu0  ;;  %v4844_v30 = vsel %vm2195_vm5, %v4811_v58, 0.0  ;;  %v4752_v41 = vadd.f32 %v4751_v12, %v4750_v57 }
 0x5cc   : > { %v11227_v51 = vadd.f32 %v4613_v22, %v3479_v40  ;;  %v4812_v40 = vmul.f32 %v11133_v16, %v11133_v16  ;;  %v4845_v53 = vadd.f32 %v4844_v30, %v4843_v17  ;;  %v4757_v30 = vsel %vm2195_vm5, %v11185_v28, 0.0 }
 0x5cd   : > { %v4759_v17 = vsel %vm2195_vm5, %v11194_v1, 0.0 }
 0x5ce   : > { %v4846_v9 = vsel %vm2195_vm5, %v4812_v40, 0.0  ;;  %v4858_v40 = vsel %vm2195_vm5, %v4818_v5, 0.0 }
 0x5cf   : > { %v4847_v55 = vadd.f32 %v4846_v9, %v4845_v53 }
 0x5d1   : > { %v4849_v59 = vadd.f32 %v4848_v43, %v4847_v55  ;;  %v4761_v43 = vsel %vm2195_vm5, %v11191_v7, 0.0 }
 0x5de   : > { %v6895_v52 = vpop.f32.mrb[48].mxu0 }
 0x5df   : > { %v11230_v46 = vadd.f32 %v6895_v52, %v6823_v11  ;;  %v4623_v60 = vpop.f32.mrb[49].mxu0  ;;  %v4814_v11 = vmul.f32 %v11157_v62, %v11157_v62  ;;  %v4816_v52 = vmul.f32 %v11179_v2, %v11179_v2 }
 0x5e0   : > { %v11232_v49 = vadd.f32 %v4623_v60, %v3489_v10  ;;  %v4815_v10 = vmul.f32 %v11182_v47, %v11182_v47  ;;  %v4817_v60 = vmul.f32 %v11188_v26, %v11188_v26 }
 0x5e1   : > { %v4850_v34 = vsel %vm2195_vm5, %v4814_v11, 0.0  ;;  %v4854_v39 = vsel %vm2195_vm5, %v4816_v52, 0.0 }
 0x5e2   : > { %v4852_v8 = vsel %vm2195_vm5, %v4815_v10, 0.0  ;;  %v4851_v22 = vadd.f32 %v4850_v34, %v4849_v59  ;;  %v4856_v50 = vsel %vm2195_vm5, %v4817_v60, 0.0  ;;  %v4862_v10 = vsel %vm2195_vm5, %v4820_v54, 0.0 }
 0x5e3   : > { %v4864_v59 = vsel %vm2195_vm5, %v4821_v0, 0.0  ;;  %v4822_v34 = vmul.f32 %v11209_v32, %v11209_v32 }
 0x5e4   : > { %v4853_v13 = vadd.f32 %v4852_v8, %v4851_v22  ;;  %v4823_v8 = vmul.f32 %v11227_v51, %v11227_v51  ;;  %v4765_v22 = vsel %vm2195_vm5, %v11209_v32, 0.0 }
 0x5e5   : > { %v4866_v60 = vsel %vm2195_vm5, %v4822_v34, 0.0 }
 0x5e6   : > { %v4855_v3 = vadd.f32 %v4854_v39, %v4853_v13  ;;  %v4868_v13 = vsel %vm2195_vm5, %v4823_v8, 0.0 }
 0x5e8   : > { %v4857_v25 = vadd.f32 %v4856_v50, %v4855_v3  ;;  %v4769_v50 = vsel %vm2195_vm5, %v11224_v63, 0.0 }
 0x5ea   : > { %v4859_v37 = vadd.f32 %v4858_v40, %v4857_v25 }
 0x5ec   : > { %v4861_v9 = vadd.f32 %v4860_v36, %v4859_v37  ;;  %v4773_v36 = vsel %vm2195_vm5, %v11230_v46, 0.0 }
 0x5f2   : > { %v6898_v61 = vpop.f32.mrb[50].mxu0 }
 0x5f3   : > { %v11267_v29 = vadd.f32 %v6898_v61, %v6826_v21  ;;  %v4633_v35 = vpop.f32.mrb[51].mxu0  ;;  %v4753_v21 = vsel %vm2195_vm5, %v11179_v2, 0.0 }
 0x5f4   : > { %v11269_v27 = vadd.f32 %v4633_v35, %v3499_v33  ;;  %v4755_v33 = vsel %vm2195_vm5, %v11188_v26, 0.0  ;;  %v4754_v4 = vadd.f32 %v4753_v21, %v4752_v41  ;;  %v4863_v35 = vadd.f32 %v4862_v10, %v4861_v9 }
 0x5f5   : > { %v4777_v10 = vsel %vm2195_vm5, %v11267_v29, 0.0 }
 0x5f6   : > { %v4756_v58 = vadd.f32 %v4755_v33, %v4754_v4  ;;  %v4865_v41 = vadd.f32 %v4864_v59, %v4863_v35  ;;  %v4824_v33 = vmul.f32 %v11224_v63, %v11224_v63  ;;  %v4825_v4 = vmul.f32 %v11232_v49, %v11232_v49 }
 0x5f8   : > { %v4758_v6 = vadd.f32 %v4757_v30, %v4756_v58  ;;  %v4867_v21 = vadd.f32 %v4866_v60, %v4865_v41  ;;  %v4771_v58 = vsel %vm2195_vm5, %v11232_v49, 0.0  ;;  %v4870_v5 = vsel %vm2195_vm5, %v4824_v33, 0.0 }
 0x5f9   : > { %v4872_v44 = vsel %vm2195_vm5, %v4825_v4, 0.0 }
 0x5fa   : > { %v4760_v53 = vadd.f32 %v4759_v17, %v4758_v6  ;;  %v4869_v39 = vadd.f32 %v4868_v13, %v4867_v21  ;;  %v4826_v17 = vmul.f32 %v11230_v46, %v11230_v46  ;;  %v4827_v6 = vmul.f32 %v11269_v27, %v11269_v27 }
 0x5fc   : > { %v4762_v55 = vadd.f32 %v4761_v43, %v4760_v53  ;;  %v4871_v30 = vadd.f32 %v4870_v5, %v4869_v39  ;;  %v4775_v53 = vsel %vm2195_vm5, %v11269_v27, 0.0  ;;  %v4874_v54 = vsel %vm2195_vm5, %v4826_v17, 0.0 }
 0x5fd   : > { %v4876_v0 = vsel %vm2195_vm5, %v4827_v6, 0.0 }
 0x5fe   : > { %v4764_v12 = vadd.f32 %v4763_v38, %v4762_v55  ;;  %v4873_v40 = vadd.f32 %v4872_v44, %v4871_v30  ;;  %v4828_v38 = vmul.f32 %v11267_v29, %v11267_v29 }
 0x600   : > { %v4766_v52 = vadd.f32 %v4765_v22, %v4764_v12  ;;  %v4875_v43 = vadd.f32 %v4874_v54, %v4873_v40  ;;  %v4878_v12 = vsel %vm2195_vm5, %v4828_v38, 0.0 }
 0x606   : > { %v6901_v11 = vpop.f32.mrb[52].mxu0 }
 0x607   : > { %v11304_v61 = vadd.f32 %v6901_v11, %v11196_v19  ;;  %v4643_v23 = vpop.f32.mrb[53].mxu0  ;;  %v4767_v19 = vsel %vm2195_vm5, %v11227_v51, 0.0  ;;  %v4877_v11 = vadd.f32 %v4876_v0, %v4875_v43 }
 0x608   : > { %v11307_v57 = vadd.f32 %v4643_v23, %v11198_v45  ;;  %v4768_v45 = vadd.f32 %v4767_v19, %v4766_v52 }
 0x609   : > { %v4879_v8 = vadd.f32 %v4878_v12, %v4877_v11  ;;  %v4830_v41 = vmul.f32 %v11304_v61, %v11304_v61  ;;  %v4781_v19 = vsel %vm2195_vm5, %v11304_v61, 0.0 }
 0x60a   : > { %v4770_v3 = vadd.f32 %v4769_v50, %v4768_v45  ;;  %v4829_v55 = vmul.f32 %v11307_v57, %v11307_v57  ;;  %v4779_v59 = vsel %vm2195_vm5, %v11307_v57, 0.0 }
 0x60b   : > { %v4882_v45 = vsel %vm2195_vm5, %v4830_v41, 0.0 }
 0x60c   : > { %v4772_v25 = vadd.f32 %v4771_v58, %v4770_v3  ;;  %v4880_v35 = vsel %vm2195_vm5, %v4829_v55, 0.0 }
 0x60d   : > { %v4881_v22 = vadd.f32 %v4880_v35, %v4879_v8 }
 0x60e   : > { %v4774_v37 = vadd.f32 %v4773_v36, %v4772_v25 }
 0x60f   : > { %v4883_v50 = vadd.f32 %v4882_v45, %v4881_v22 }
 0x610   : > { %v4776_v9 = vadd.f32 %v4775_v53, %v4774_v37 }
 0x612   : > { %v4778_v23 = vadd.f32 %v4777_v10, %v4776_v9 }
 0x614   : > { %v4780_v34 = vadd.f32 %v4779_v59, %v4778_v23 }
 0x616   : > { %v4782_v13 = vadd.f32 %v4781_v19, %v4780_v34 }
 0x623   : > { %v11353_v52 = vpop.f32.mrb[26].mxu1 }
 0x624   : > { %v11355_v60 = vpop.f32.mrb[27].mxu1  ;;  %v4832_v21 = vmul.f32 %v11353_v52, %v11353_v52  ;;  %v4785_v58 = vsel %vm2195_vm5, %v11353_v52, 0.0 }
 0x625   : > { %v4783_v33 = vsel %vm2195_vm5, %v11355_v60, 0.0  ;;  %v4831_v4 = vmul.f32 %v11355_v60, %v11355_v60 }
 0x626   : > { %v4784_v39 = vadd.f32 %v4783_v33, %v4782_v13  ;;  %v4886_v25 = vsel %vm2195_vm5, %v4832_v21, 0.0 }
 0x627   : > { %v4884_v3 = vsel %vm2195_vm5, %v4831_v4, 0.0 }
 0x628   : > { %v4885_v5 = vadd.f32 %v4884_v3, %v4883_v50  ;;  %v4786_v44 = vadd.f32 %v4785_v58, %v4784_v39 }
 0x62a   : > { %v4887_v30 = vadd.f32 %v4886_v25, %v4885_v5 }
 0x62f   : > { %v11368_v17 = vpop.f32.mrb[28].mxu1 }
 0x630   : > { %v11370_v6 = vpop.f32.mrb[29].mxu1  ;;  %v4834_v40 = vmul.f32 %v11368_v17, %v11368_v17  ;;  %v4789_v54 = vsel %vm2195_vm5, %v11368_v17, 0.0 }
 0x631   : > { %v4787_v36 = vsel %vm2195_vm5, %v11370_v6, 0.0  ;;  %v4833_v53 = vmul.f32 %v11370_v6, %v11370_v6 }
 0x632   : > { %v4788_v37 = vadd.f32 %v4787_v36, %v4786_v44  ;;  %v4890_v38 = vsel %vm2195_vm5, %v4834_v40, 0.0 }
 0x633   : > { %v4888_v0 = vsel %vm2195_vm5, %v4833_v53, 0.0 }
 0x634   : > { %v4889_v9 = vadd.f32 %v4888_v0, %v4887_v30  ;;  %v4790_v43 = vadd.f32 %v4789_v54, %v4788_v37 }
 0x636   : > { %v4891_v55 = vadd.f32 %v4890_v38, %v4889_v9 }
 0x63b   : > { %v11382_v11 = vpop.f32.mrb[30].mxu1 }
 0x63c   : > { %v11384_v10 = vpop.f32.mrb[31].mxu1  ;;  %v4836_v59 = vmul.f32 %v11382_v11, %v11382_v11  ;;  %v4793_v34 = vsel %vm2195_vm5, %v11382_v11, 0.0 }
 0x63d   : > { %v4791_v23 = vsel %vm2195_vm5, %v11384_v10, 0.0  ;;  %v4835_v12 = vmul.f32 %v11384_v10, %v11384_v10 }
 0x63e   : > { %v4792_v35 = vadd.f32 %v4791_v23, %v4790_v43  ;;  %v4894_v19 = vsel %vm2195_vm5, %v4836_v59, 0.0 }
 0x63f   : > { %v4892_v8 = vsel %vm2195_vm5, %v4835_v12, 0.0 }
 0x640   : > { %v4893_v41 = vadd.f32 %v4892_v8, %v4891_v55  ;;  %v4794_v22 = vadd.f32 %v4793_v34, %v4792_v35 }
 0x642   : > { %v4895_v13 = vadd.f32 %v4894_v19, %v4893_v41 }
 0x643   : > { %v11396_v45 = vpop.f32.mrb[32].mxu1 }
 0x644   : > { %v11398_v21 = vpop.f32.mrb[33].mxu1  ;;  %v4838_v33 = vmul.f32 %v11396_v45, %v11396_v45  ;;  %v4797_v58 = vsel %vm2195_vm5, %v11396_v45, 0.0 }
 0x645   : > { %v4795_v4 = vsel %vm2195_vm5, %v11398_v21, 0.0  ;;  %v4837_v39 = vmul.f32 %v11398_v21, %v11398_v21 }
 0x646   : > { %v4796_v50 = vadd.f32 %v4795_v4, %v4794_v22  ;;  %v4898_v25 = vsel %vm2195_vm5, %v4838_v33, 0.0 }
 0x647   : > { %v4896_v3 = vsel %vm2195_vm5, %v4837_v39, 0.0 }
 0x648   : > { %v4897_v5 = vadd.f32 %v4896_v3, %v4895_v13  ;;  %v4798_v44 = vadd.f32 %v4797_v58, %v4796_v50  ;;  %v5170_v58 = vld [vmem:[%s12073_s7] sm:$0xff]  ;;  %v5171_v3 = vld [vmem:[%s12073_s7 + $0x8] sm:$0xff] }
 0x64a   : > { %v4899_v30 = vadd.f32 %v4898_v25, %v4897_v5  ;;  %v7129_v5 = vpack.c.bf16 %v5171_v3, %v5170_v58 }
 0x64b   : > { %v11410_v40 = vpop.f32.mrb[34].mxu1 }
 0x64c   : > { %v11412_v36 = vpop.f32.mrb[35].mxu1  ;;  %v4840_v53 = vmul.f32 %v11410_v40, %v11410_v40  ;;  %v4801_v9 = vsel %vm2195_vm5, %v11410_v40, 0.0 }
 0x64d   : > { %v4799_v37 = vsel %vm2195_vm5, %v11412_v36, 0.0  ;;  %v4839_v54 = vmul.f32 %v11412_v36, %v11412_v36 }
 0x64e   : > { %v4800_v0 = vadd.f32 %v4799_v37, %v4798_v44  ;;  %v4902_v59 = vsel %vm2195_vm5, %v4840_v53, 0.0 }
 0x64f   : > { %v4900_v43 = vsel %vm2195_vm5, %v4839_v54, 0.0 }
 0x650   : > { %v4802_v38 = vadd.f32 %v4801_v9, %v4800_v0  ;;  %v4901_v55 = vadd.f32 %v4900_v43, %v4899_v30 }
 0x652   : > { %v4803_v23 = vrot.slane %v4802_v38, 4  ;;  %v4903_v12 = vadd.f32 %v4902_v59, %v4901_v55 }
 0x654   : > { %v4804_v35 = vadd.f32 %v4803_v23, %v4802_v38  ;;  %v4904_v34 = vrot.slane %v4903_v12, 4  ;;  %v4738_v38 = vld [vmem:[%s12071_s5] sm:$0x1] }
 0x655   : > { %v4739_v23 = vld [vmem:[%s12072_s6] sm:$0x1] }
 0x656   : > { %v4805_v8 = vrot.slane %v4804_v35, 2  ;;  %v4905_v41 = vadd.f32 %v4904_v34, %v4903_v12 }
 0x658   : > { %v4806_v22 = vadd.f32 %v4805_v8, %v4804_v35  ;;  %v4906_v19 = vrot.slane %v4905_v41, 2  ;;  %v13038_v35 = vld [vmem:[#allocation125_spill] sm:$0xff] }
 0x65a   : > { %v4807_v13 = vrot.slane %v4806_v22, 1  ;;  %v4907_v4 = vadd.f32 %v4906_v19, %v4905_v41 }
 0x65c   : > { %v4808_v33 = vadd.f32 %v4807_v13, %v4806_v22  ;;  %v4908_v39 = vrot.slane %v4907_v4, 1 }
 0x65e   : > { %6926 = vmatmul.mubr.msk.f32.vlgmr.msra.gmra.mrb[54].mxu0 %vm2195_vm5, %v4808_v33  ;;  %v4909_v50 = vadd.f32 %v4908_v39, %v4907_v4 }
 0x65f   : > { %7125 = vmatpush3.bf16.msra.mxu0 %v11206_v18  ;;  %6936 = vmatprep.mubr.msk.f32.mxu0 %vm7499_vm1, %v13031_v20  ;;  %v5172_v18 = vld [vmem:[%s12073_s7 + $0x10] sm:$0xff] }
 0x660   : > { %7126 = vmatprep.subr.bf16.mxu0 %v13037_v14 }
 0x663   : > { %7128 = vmatpush3.bf16.msra.mxu0 %v11222_v56  ;;  %v5173_v56 = vld [vmem:[%s12073_s7 + $0x18] sm:$0xff] }
 0x664   : > { %v7133_v44 = vpack.c.bf16 %v5173_v56, %v5172_v18  ;;  %7130 = vmatprep.subr.bf16.mxu0 %v7129_v5 }
 0x666   : > { %6937 = vmatmul.mubr.msk.f32.vlgmr.msra.gmra.mrb[56].mxu0 %vm2195_vm5, %v4909_v50 }
 0x667   : > { %7132 = vmatpush3.bf16.msra.mxu0 %v7129_v5 }
 0x668   : > { %7134 = vmatprep.subr.bf16.mxu0 %v7133_v44 }
 0x66b   : > { %7136 = vmatpush3.bf16.msra.mxu0 %v7133_v44 }
 0x66c   : > { %7137 = vmatprep.subr.bf16.mxu0 %v13037_v14 }
 0x731   : > { %v4979_v25 = vpop.f32.mrb[54].mxu0 }
 0x732   : > { %v6927_v30 = vpop.f32.mrb[55].mxu0  ;;  %v5056_v53 = vmul.f32 %v4979_v25, %v4979_v25 }
 0x739   : > { %v5052_v37 = vpop.f32.mrb[56].mxu0 }
 0x73a   : > { %v5057_v54 = vsub.f32 %v5052_v37, %v5056_v53  ;;  %v6938_v0 = vpop.f32.mrb[57].mxu0 }
 0x73c   : > { %v5058_v9 = vmax.f32 %v5057_v54, 0.0 }
 0x73e   : > { %v5059_v43 = vadd.f32 1e-05, %v5058_v9 }
 0x740   : > { %7367 = vrsqrt.f32 %v5059_v43 }
 0x74a   : > { %v7368_v55 = vpop.eup %7367 }
 0x74b   : > { %v5061_v59 = vmul.f32 %v7368_v55, %v4738_v38 }
 0x74d   : > { %v5062_v12 = vmul.f32 %v5061_v59, %v4979_v25  ;;  %v5067_v34 = vrot.slane %v5061_v59, %v13038_v35 }
 0x74f   : > { %v5063_v8 = vsub.f32 %v4739_v23, %v5062_v12  ;;  %v5068_v41 = vmul.f32 %v11086_v24, %v5067_v34  ;;  %v5069_v22 = vmul.f32 %v11083_v42, %v5067_v34  ;;  %v5070_v19 = vmul.f32 %v11136_v31, %v5067_v34 }
 0x750   : > { %v5071_v13 = vmul.f32 %v11133_v16, %v5067_v34  ;;  %v5072_v33 = vmul.f32 %v11162_v15, %v5067_v34  ;;  %v5073_v4 = vmul.f32 %v11157_v62, %v5067_v34  ;;  %v5074_v39 = vmul.f32 %v11182_v47, %v5067_v34 }
 0x751   : > { %v5104_v50 = vrot.slane %v5063_v8, %v13038_v35  ;;  %v5075_v58 = vmul.f32 %v11179_v2, %v5067_v34  ;;  %v5076_v3 = vmul.f32 %v11188_v26, %v5067_v34  ;;  %v5077_v24 = vmul.f32 %v11185_v28, %v5067_v34 }
 0x752   : > { %v5078_v42 = vmul.f32 %v11194_v1, %v5067_v34  ;;  %v5079_v31 = vmul.f32 %v11191_v7, %v5067_v34  ;;  %v5080_v16 = vmul.f32 %v11213_v48, %v5067_v34  ;;  %v5081_v15 = vmul.f32 %v11209_v32, %v5067_v34 }
 0x753   : > { %v5082_v62 = vmul.f32 %v11227_v51, %v5067_v34  ;;  %v5083_v47 = vmul.f32 %v11224_v63, %v5067_v34  ;;  %v5084_v18 = vmul.f32 %v11232_v49, %v5067_v34  ;;  %v5085_v2 = vmul.f32 %v11230_v46, %v5067_v34 }
 0x754   : > { %v5086_v26 = vmul.f32 %v11269_v27, %v5067_v34  ;;  %v5087_v28 = vmul.f32 %v11267_v29, %v5067_v34  ;;  %v5088_v1 = vmul.f32 %v11307_v57, %v5067_v34  ;;  %v5089_v7 = vmul.f32 %v11304_v61, %v5067_v34 }
 0x755   : > { %v5090_v48 = vmul.f32 %v5067_v34, %v11355_v60  ;;  %v5091_v32 = vmul.f32 %v11353_v52, %v5067_v34  ;;  %v5092_v51 = vmul.f32 %v5067_v34, %v11370_v6  ;;  %v5093_v63 = vmul.f32 %v11368_v17, %v5067_v34 }
 0x756   : > { %v5094_v49 = vmul.f32 %v5067_v34, %v11384_v10  ;;  %v5095_v46 = vmul.f32 %v11382_v11, %v5067_v34  ;;  %v5096_v27 = vmul.f32 %v5067_v34, %v11398_v21  ;;  %v5097_v29 = vmul.f32 %v11396_v45, %v5067_v34 }
 0x757   : > { %v5098_v57 = vmul.f32 %v5067_v34, %v11412_v36  ;;  %v5099_v61 = vmul.f32 %v11410_v40, %v5067_v34  ;;  %v5106_v5 = vadd.f32 %v5104_v50, %v5068_v41  ;;  %v5107_v60 = vadd.f32 %v5104_v50, %v5069_v22 }
 0x758   : > { %v5108_v56 = vadd.f32 %v5104_v50, %v5070_v19  ;;  %v5109_v52 = vadd.f32 %v5104_v50, %v5071_v13  ;;  %v5110_v44 = vadd.f32 %v5104_v50, %v5072_v33  ;;  %v5111_v6 = vadd.f32 %v5104_v50, %v5073_v4 }
 0x759   : > { %v5112_v25 = vadd.f32 %v5104_v50, %v5074_v39  ;;  %v5113_v17 = vadd.f32 %v5104_v50, %v5075_v58  ;;  %v5114_v30 = vadd.f32 %v5104_v50, %v5076_v3  ;;  %v5115_v10 = vadd.f32 %v5104_v50, %v5077_v24 }
 0x75a   : > { %v5116_v53 = vadd.f32 %v5104_v50, %v5078_v42  ;;  %v5117_v11 = vadd.f32 %v5104_v50, %v5079_v31  ;;  %v5118_v37 = vadd.f32 %v5104_v50, %v5080_v16  ;;  %v5119_v21 = vadd.f32 %v5104_v50, %v5081_v15 }
 0x75b   : > { %v5120_v54 = vadd.f32 %v5104_v50, %v5082_v62  ;;  %v5121_v45 = vadd.f32 %v5104_v50, %v5083_v47  ;;  %v5122_v0 = vadd.f32 %v5104_v50, %v5084_v18  ;;  %v5123_v36 = vadd.f32 %v5104_v50, %v5085_v2 }
 0x75c   : > { %v5124_v9 = vadd.f32 %v5104_v50, %v5086_v26  ;;  %v5125_v40 = vadd.f32 %v5104_v50, %v5087_v28  ;;  %v5126_v43 = vadd.f32 %v5104_v50, %v5088_v1  ;;  %v5127_v38 = vadd.f32 %v5104_v50, %v5089_v7 }
 0x75d   : > { %v5128_v55 = vadd.f32 %v5104_v50, %v5090_v48  ;;  %v5129_v59 = vadd.f32 %v5104_v50, %v5091_v32  ;;  %v5130_v23 = vadd.f32 %v5104_v50, %v5092_v51  ;;  %v5131_v12 = vadd.f32 %v5104_v50, %v5093_v63 }
 0x75e   : > { %v5132_v34 = vadd.f32 %v5104_v50, %v5094_v49  ;;  %v5133_v8 = vadd.f32 %v5104_v50, %v5095_v46  ;;  %v5134_v41 = vadd.f32 %v5104_v50, %v5096_v27  ;;  %v11484_v22 = vadd.f32 %v5104_v50, %v5097_v29 }
 0x75f   : > { %v11486_v19 = vadd.f32 %v5104_v50, %v5098_v57  ;;  %v11488_v13 = vadd.f32 %v5104_v50, %v5099_v61  ;;  %v5139_v33 = vmax.f32 %v5107_v60, 0.0  ;;  %v5138_v4 = vmax.f32 %v5106_v5, 0.0 }
 0x760   : > { %v5140_v39 = vmax.f32 %v5108_v56, 0.0  ;;  %v5141_v58 = vmax.f32 %v5109_v52, 0.0  ;;  %v5142_v3 = vmax.f32 %v5110_v44, 0.0  ;;  %v5143_v24 = vmax.f32 %v5111_v6, 0.0  ;;  %v5495_v52 = vld [vmem:[%s12078_s12] sm:$0xff]  ;;  %v5496_v44 = vld [vmem:[%s12078_s12 + $0x8] sm:$0xff] }
 0x761   : > { %6947 = vmatprep.mubr.msk.f32.mxu0 %vm2195_vm5, %v5138_v4  ;;  %v5144_v42 = vmax.f32 %v5112_v25, 0.0  ;;  %v5145_v50 = vmax.f32 %v5113_v17, 0.0  ;;  %v5146_v31 = vmax.f32 %v5114_v30, 0.0  ;;  %v5147_v16 = vmax.f32 %v5115_v10, 0.0  ;;  %v5497_v25 = vld [vmem:[%s12078_s12 + $0x10] sm:$0xff]  ;;  %v5498_v17 = vld [vmem:[%s12078_s12 + $0x18] sm:$0xff] }
 0x762   : > { %6948 = vmatmul.mubr.msk.f32.vlgmr.msra.gmra.mrb[58].mxu0 %vm2195_vm5, %v5139_v33  ;;  %v5148_v15 = vmax.f32 %v5116_v53, 0.0  ;;  %v5149_v62 = vmax.f32 %v5117_v11, 0.0  ;;  %v5150_v47 = vmax.f32 %v5118_v37, 0.0  ;;  %v5151_v18 = vmax.f32 %v5119_v21, 0.0 }
 0x763   : > { %6950 = vmatprep.mubr.msk.f32.mxu0 %vm2195_vm5, %v5140_v39  ;;  %v5152_v2 = vmax.f32 %v5120_v54, 0.0  ;;  %v5153_v26 = vmax.f32 %v5121_v45, 0.0  ;;  %v5154_v28 = vmax.f32 %v5122_v0, 0.0  ;;  %v5155_v1 = vmax.f32 %v5123_v36, 0.0 }
 0x764   : > { %v5156_v7 = vmax.f32 %v5124_v9, 0.0  ;;  %v5157_v48 = vmax.f32 %v5125_v40, 0.0  ;;  %v5158_v32 = vmax.f32 %v5126_v43, 0.0  ;;  %v5159_v51 = vmax.f32 %v5127_v38, 0.0 }
 0x765   : > { %v5160_v63 = vmax.f32 %v5128_v55, 0.0  ;;  %v5161_v49 = vmax.f32 %v5129_v59, 0.0  ;;  %v5162_v46 = vmax.f32 %v5130_v23, 0.0  ;;  %v5163_v27 = vmax.f32 %v5131_v12, 0.0 }
 0x766   : > { %6951 = vmatmul.mubr.msk.f32.gmra.mrb[60].mxu0 %vm2195_vm5, %v5141_v58  ;;  %v5164_v29 = vmax.f32 %v5132_v34, 0.0  ;;  %v5165_v57 = vmax.f32 %v5133_v8, 0.0  ;;  %v5166_v61 = vmax.f32 %v5134_v41, 0.0  ;;  %v5167_v5 = vmax.f32 %v11484_v22, 0.0 }
 0x767   : > { %6953 = vmatprep.mubr.msk.f32.mxu0 %vm2195_vm5, %v5142_v3  ;;  %v5168_v60 = vmax.f32 %v11486_v19, 0.0  ;;  %v5169_v56 = vmax.f32 %v11488_v13, 0.0  ;;  %v11533_v6 = vpack.c.bf16 %v5496_v44, %v5495_v52  ;;  %v11543_v30 = vpack.c.bf16 %v5498_v17, %v5497_v25 }
 0x769   : > { %7139 = vmatpush3.bf16.msra.mxu0 %v11533_v6 }
 0x76a   : > { %6954 = vmatmul.mubr.msk.f32.gmra.mrb[62].mxu0 %vm2195_vm5, %v5143_v24  ;;  %7140 = vmatprep.subr.bf16.mxu0 %v13037_v14 }
 0x76b   : > { %6956 = vmatprep.mubr.msk.f32.mxu0 %vm2195_vm5, %v5144_v42 }
 0x76d   : > { %7142 = vmatpush3.bf16.msra.mxu0 %v11543_v30 }
 0x76e   : > { %6957 = vmatmul.mubr.msk.f32.gmra.mrb[64].mxu0 %vm2195_vm5, %v5145_v50  ;;  %7143 = vmatprep.subr.bf16.mxu0 %v13037_v14 }
 0x76f   : > { %6959 = vmatprep.mubr.msk.f32.mxu0 %vm2195_vm5, %v5146_v31 }
 0x772   : > { %6960 = vmatmul.mubr.msk.f32.gmra.mrb[66].mxu0 %vm2195_vm5, %v5147_v16 }
 0x773   : > { %6962 = vmatprep.mubr.msk.f32.mxu0 %vm2195_vm5, %v5148_v15 }
 0x776   : > { %6963 = vmatmul.mubr.msk.f32.gmra.mrb[68].mxu0 %vm2195_vm5, %v5149_v62 }
 0x777   : > { %6965 = vmatprep.mubr.msk.f32.mxu0 %vm2195_vm5, %v5150_v47 }
 0x77a   : > { %6966 = vmatmul.mubr.msk.f32.gmra.mrb[70].mxu0 %vm2195_vm5, %v5151_v18 }
 0x77b   : > { %6968 = vmatprep.mubr.msk.f32.mxu0 %vm2195_vm5, %v5152_v2 }
 0x77e   : > { %6969 = vmatmul.mubr.msk.f32.gmra.mrb[72].mxu0 %vm2195_vm5, %v5153_v26 }
 0x77f   : > { %6971 = vmatprep.mubr.msk.f32.mxu0 %vm2195_vm5, %v5154_v28 }
 0x782   : > { %6972 = vmatmul.mubr.msk.f32.gmra.mrb[74].mxu0 %vm2195_vm5, %v5155_v1 }
 0x783   : > { %6974 = vmatprep.mubr.msk.f32.mxu0 %vm2195_vm5, %v5156_v7 }
 0x786   : > { %6975 = vmatmul.mubr.msk.f32.gmra.mrb[76].mxu0 %vm2195_vm5, %v5157_v48 }
 0x787   : > { %6977 = vmatprep.mubr.msk.f32.mxu0 %vm2195_vm5, %v5158_v32 }
 0x78a   : > { %6978 = vmatmul.mubr.msk.f32.gmra.mrb[78].mxu0 %vm2195_vm5, %v5159_v51 }
 0x78b   : > { %6980 = vmatprep.mubr.msk.f32.mxu0 %vm2195_vm5, %v5160_v63 }
 0x78e   : > { %6981 = vmatmul.mubr.msk.f32.gmra.mrb[80].mxu0 %vm2195_vm5, %v5161_v49 }
 0x78f   : > { %6983 = vmatprep.mubr.msk.f32.mxu0 %vm2195_vm5, %v5162_v46 }
 0x792   : > { %6984 = vmatmul.mubr.msk.f32.gmra.mrb[82].mxu0 %vm2195_vm5, %v5163_v27 }
 0x793   : > { %6986 = vmatprep.mubr.msk.f32.mxu0 %vm2195_vm5, %v5164_v29 }
 0x796   : > { %6987 = vmatmul.mubr.msk.f32.gmra.mrb[84].mxu0 %vm2195_vm5, %v5165_v57 }
 0x797   : > { %6989 = vmatprep.mubr.msk.f32.mxu0 %vm2195_vm5, %v5166_v61 }
 0x79a   : > { %6990 = vmatmul.mubr.msk.f32.gmra.mrb[86].mxu0 %vm2195_vm5, %v5167_v5 }
 0x79b   : > { %6992 = vmatprep.mubr.msk.f32.mxu0 %vm2195_vm5, %v5168_v60 }
 0x79e   : > { %6993 = vmatmul.mubr.msk.f32.gmra.mrb[88].mxu0 %vm2195_vm5, %v5169_v56 }
 0x79f   : > { %7003 = vmatprep.mubr.msk.f32.mxu0 %vm7499_vm1, %v13031_v20 }
 0x835   : > { %v11547_v10 = vpop.f32.mrb[58].mxu0 }
 0x836   : > { %v5502_v53 = vsel %vm2195_vm5, %v11547_v10, 0.0  ;;  %v5571_v11 = vmul.f32 %v11547_v10, %v11547_v10  ;;  %v11553_v37 = vpop.f32.mrb[59].mxu0 }
 0x837   : > { %v5501_v21 = vsel %vm2195_vm5, %v11553_v37, 0.0  ;;  %v5570_v54 = vmul.f32 %v11553_v37, %v11553_v37 }
 0x838   : > { %v5603_v45 = vsel %vm2195_vm5, %v5571_v11, 0.0  ;;  %v5503_v0 = vadd.f32 %v5502_v53, %v5501_v21 }
 0x839   : > { %v5602_v36 = vsel %vm2195_vm5, %v5570_v54, 0.0  ;;  %v11561_v9 = vpop.f32.mrb[60].mxu0 }
 0x83a   : > { %v5604_v40 = vadd.f32 %v5603_v45, %v5602_v36  ;;  %v11563_v43 = vpop.f32.mrb[61].mxu0  ;;  %v5573_v38 = vmul.f32 %v11561_v9, %v11561_v9  ;;  %v5506_v12 = vsel %vm2195_vm5, %v11561_v9, 0.0 }
 0x83b   : > { %v5504_v55 = vsel %vm2195_vm5, %v11563_v43, 0.0  ;;  %v5572_v59 = vmul.f32 %v11563_v43, %v11563_v43 }
 0x83c   : > { %v5505_v23 = vadd.f32 %v5504_v55, %v5503_v0  ;;  %v5607_v13 = vsel %vm2195_vm5, %v5573_v38, 0.0 }
 0x83d   : > { %v5605_v34 = vsel %vm2195_vm5, %v5572_v59, 0.0  ;;  %v11574_v8 = vpop.f32.mrb[62].mxu0 }
 0x83e   : > { %v5606_v41 = vadd.f32 %v5605_v34, %v5604_v40  ;;  %v11576_v22 = vpop.f32.mrb[63].mxu0  ;;  %v5507_v19 = vadd.f32 %v5506_v12, %v5505_v23  ;;  %v5575_v33 = vmul.f32 %v11574_v8, %v11574_v8  ;;  %v5510_v24 = vsel %vm2195_vm5, %v11574_v8, 0.0 }
 0x83f   : > { %v5508_v4 = vsel %vm2195_vm5, %v11576_v22, 0.0  ;;  %v5574_v39 = vmul.f32 %v11576_v22, %v11576_v22 }
 0x840   : > { %v5509_v58 = vadd.f32 %v5508_v4, %v5507_v19  ;;  %v5608_v3 = vadd.f32 %v5607_v13, %v5606_v41  ;;  %v5611_v62 = vsel %vm2195_vm5, %v5575_v33, 0.0 }
 0x841   : > { %v5609_v42 = vsel %vm2195_vm5, %v5574_v39, 0.0  ;;  %v11588_v50 = vpop.f32.mrb[64].mxu0 }
 0x842   : > { %v5610_v31 = vadd.f32 %v5609_v42, %v5608_v3  ;;  %v11590_v16 = vpop.f32.mrb[65].mxu0  ;;  %v5511_v15 = vadd.f32 %v5510_v24, %v5509_v58  ;;  %v5577_v47 = vmul.f32 %v11588_v50, %v11588_v50  ;;  %v5514_v1 = vsel %vm2195_vm5, %v11588_v50, 0.0 }
 0x843   : > { %v5512_v18 = vsel %vm2195_vm5, %v11590_v16, 0.0  ;;  %v5576_v2 = vmul.f32 %v11590_v16, %v11590_v16 }
 0x844   : > { %v5513_v26 = vadd.f32 %v5512_v18, %v5511_v15  ;;  %v5612_v28 = vadd.f32 %v5611_v62, %v5610_v31  ;;  %v5615_v49 = vsel %vm2195_vm5, %v5577_v47, 0.0 }
 0x845   : > { %v5613_v7 = vsel %vm2195_vm5, %v5576_v2, 0.0  ;;  %v11602_v48 = vpop.f32.mrb[66].mxu0 }
 0x846   : > { %v5614_v32 = vadd.f32 %v5613_v7, %v5612_v28  ;;  %v11604_v51 = vpop.f32.mrb[67].mxu0  ;;  %v5515_v63 = vadd.f32 %v5514_v1, %v5513_v26  ;;  %v5579_v46 = vmul.f32 %v11602_v48, %v11602_v48  ;;  %v5518_v5 = vsel %vm2195_vm5, %v11602_v48, 0.0 }
 0x847   : > { %v5516_v27 = vsel %vm2195_vm5, %v11604_v51, 0.0  ;;  %v5578_v29 = vmul.f32 %v11604_v51, %v11604_v51 }
 0x848   : > { %v5517_v57 = vadd.f32 %v5516_v27, %v5515_v63  ;;  %v5616_v61 = vadd.f32 %v5615_v49, %v5614_v32  ;;  %v5619_v17 = vsel %vm2195_vm5, %v5579_v46, 0.0 }
 0x849   : > { %v5617_v60 = vsel %vm2195_vm5, %v5578_v29, 0.0  ;;  %v11616_v56 = vpop.f32.mrb[68].mxu0 }
 0x84a   : > { %v5618_v52 = vadd.f32 %v5617_v60, %v5616_v61  ;;  %v11618_v44 = vpop.f32.mrb[69].mxu0  ;;  %v5519_v25 = vadd.f32 %v5518_v5, %v5517_v57  ;;  %v5581_v53 = vmul.f32 %v11616_v56, %v11616_v56  ;;  %v5522_v0 = vsel %vm2195_vm5, %v11616_v56, 0.0 }
 0x84b   : > { %v5520_v11 = vsel %vm2195_vm5, %v11618_v44, 0.0  ;;  %v5580_v21 = vmul.f32 %v11618_v44, %v11618_v44 }
 0x84c   : > { %v5521_v54 = vadd.f32 %v5520_v11, %v5519_v25  ;;  %v5620_v45 = vadd.f32 %v5619_v17, %v5618_v52  ;;  %v5623_v23 = vsel %vm2195_vm5, %v5581_v53, 0.0 }
 0x84d   : > { %v5621_v36 = vsel %vm2195_vm5, %v5580_v21, 0.0  ;;  %v11630_v40 = vpop.f32.mrb[70].mxu0 }
 0x84e   : > { %v5622_v38 = vadd.f32 %v5621_v36, %v5620_v45  ;;  %v11632_v55 = vpop.f32.mrb[71].mxu0  ;;  %v5523_v59 = vadd.f32 %v5522_v0, %v5521_v54  ;;  %v5583_v12 = vmul.f32 %v11630_v40, %v11630_v40  ;;  %v5526_v33 = vsel %vm2195_vm5, %v11630_v40, 0.0 }
 0x84f   : > { %v5524_v34 = vsel %vm2195_vm5, %v11632_v55, 0.0  ;;  %v5582_v41 = vmul.f32 %v11632_v55, %v11632_v55 }
 0x850   : > { %v5525_v19 = vadd.f32 %v5524_v34, %v5523_v59  ;;  %v5624_v13 = vadd.f32 %v5623_v23, %v5622_v38  ;;  %v5627_v42 = vsel %vm2195_vm5, %v5583_v12, 0.0 }
 0x851   : > { %v5625_v4 = vsel %vm2195_vm5, %v5582_v41, 0.0  ;;  %v11644_v39 = vpop.f32.mrb[72].mxu0 }
 0x852   : > { %v5626_v58 = vadd.f32 %v5625_v4, %v5624_v13  ;;  %v11646_v3 = vpop.f32.mrb[73].mxu0  ;;  %v5527_v24 = vadd.f32 %v5526_v33, %v5525_v19  ;;  %v5585_v31 = vmul.f32 %v11644_v39, %v11644_v39  ;;  %v5530_v2 = vsel %vm2195_vm5, %v11644_v39, 0.0 }
 0x853   : > { %v5528_v15 = vsel %vm2195_vm5, %v11646_v3, 0.0  ;;  %v5584_v62 = vmul.f32 %v11646_v3, %v11646_v3 }
 0x854   : > { %v5529_v47 = vadd.f32 %v5528_v15, %v5527_v24  ;;  %v5628_v18 = vadd.f32 %v5627_v42, %v5626_v58  ;;  %v5631_v63 = vsel %vm2195_vm5, %v5585_v31, 0.0 }
 0x855   : > { %v5629_v26 = vsel %vm2195_vm5, %v5584_v62, 0.0  ;;  %v11658_v28 = vpop.f32.mrb[74].mxu0 }
 0x856   : > { %v5630_v1 = vadd.f32 %v5629_v26, %v5628_v18  ;;  %v11660_v7 = vpop.f32.mrb[75].mxu0  ;;  %v5531_v32 = vadd.f32 %v5530_v2, %v5529_v47  ;;  %v5587_v49 = vmul.f32 %v11658_v28, %v11658_v28  ;;  %v5534_v61 = vsel %vm2195_vm5, %v11658_v28, 0.0 }
 0x857   : > { %v5532_v46 = vsel %vm2195_vm5, %v11660_v7, 0.0  ;;  %v5586_v27 = vmul.f32 %v11660_v7, %v11660_v7 }
 0x858   : > { %v5533_v29 = vadd.f32 %v5532_v46, %v5531_v32  ;;  %v5632_v57 = vadd.f32 %v5631_v63, %v5630_v1  ;;  %v5635_v53 = vsel %vm2195_vm5, %v5587_v49, 0.0 }
 0x859   : > { %v5633_v5 = vsel %vm2195_vm5, %v5586_v27, 0.0  ;;  %v11672_v60 = vpop.f32.mrb[76].mxu0 }
 0x85a   : > { %v5634_v52 = vadd.f32 %v5633_v5, %v5632_v57  ;;  %v11674_v25 = vpop.f32.mrb[77].mxu0  ;;  %v5535_v17 = vadd.f32 %v5534_v61, %v5533_v29  ;;  %v5589_v11 = vmul.f32 %v11672_v60, %v11672_v60  ;;  %v5538_v36 = vsel %vm2195_vm5, %v11672_v60, 0.0 }
 0x85b   : > { %v5536_v21 = vsel %vm2195_vm5, %v11674_v25, 0.0  ;;  %v5588_v54 = vmul.f32 %v11674_v25, %v11674_v25 }
 0x85c   : > { %v5537_v45 = vadd.f32 %v5536_v21, %v5535_v17  ;;  %v5636_v0 = vadd.f32 %v5635_v53, %v5634_v52  ;;  %v5639_v41 = vsel %vm2195_vm5, %v5589_v11, 0.0 }
 0x85d   : > { %v5637_v38 = vsel %vm2195_vm5, %v5588_v54, 0.0  ;;  %v11686_v59 = vpop.f32.mrb[78].mxu0 }
 0x85e   : > { %v5638_v23 = vadd.f32 %v5637_v38, %v5636_v0  ;;  %v11688_v12 = vpop.f32.mrb[79].mxu0  ;;  %v5539_v34 = vadd.f32 %v5538_v36, %v5537_v45  ;;  %v5591_v19 = vmul.f32 %v11686_v59, %v11686_v59  ;;  %v5542_v24 = vsel %vm2195_vm5, %v11686_v59, 0.0 }
 0x85f   : > { %v5540_v13 = vsel %vm2195_vm5, %v11688_v12, 0.0  ;;  %v5590_v33 = vmul.f32 %v11688_v12, %v11688_v12 }
 0x860   : > { %v5541_v4 = vadd.f32 %v5540_v13, %v5539_v34  ;;  %v5640_v58 = vadd.f32 %v5639_v41, %v5638_v23  ;;  %v5643_v18 = vsel %vm2195_vm5, %v5591_v19, 0.0 }
 0x861   : > { %v5641_v42 = vsel %vm2195_vm5, %v5590_v33, 0.0  ;;  %v11700_v31 = vpop.f32.mrb[80].mxu0 }
 0x862   : > { %v5642_v15 = vadd.f32 %v5641_v42, %v5640_v58  ;;  %v11702_v62 = vpop.f32.mrb[81].mxu0  ;;  %v5543_v47 = vadd.f32 %v5542_v24, %v5541_v4  ;;  %v5593_v2 = vmul.f32 %v11700_v31, %v11700_v31  ;;  %v5546_v49 = vsel %vm2195_vm5, %v11700_v31, 0.0 }
 0x863   : > { %v5544_v26 = vsel %vm2195_vm5, %v11702_v62, 0.0  ;;  %v5592_v1 = vmul.f32 %v11702_v62, %v11702_v62 }
 0x864   : > { %v5545_v32 = vadd.f32 %v5544_v26, %v5543_v47  ;;  %v5644_v63 = vadd.f32 %v5643_v18, %v5642_v15  ;;  %v5647_v5 = vsel %vm2195_vm5, %v5593_v2, 0.0 }
 0x865   : > { %v5645_v46 = vsel %vm2195_vm5, %v5592_v1, 0.0  ;;  %v11714_v27 = vpop.f32.mrb[82].mxu0 }
 0x866   : > { %v5646_v29 = vadd.f32 %v5645_v46, %v5644_v63  ;;  %v11716_v57 = vpop.f32.mrb[83].mxu0  ;;  %v5547_v61 = vadd.f32 %v5546_v49, %v5545_v32  ;;  %v5595_v52 = vmul.f32 %v11714_v27, %v11714_v27  ;;  %v5550_v54 = vsel %vm2195_vm5, %v11714_v27, 0.0 }
 0x867   : > { %v5548_v17 = vsel %vm2195_vm5, %v11716_v57, 0.0  ;;  %v5594_v53 = vmul.f32 %v11716_v57, %v11716_v57 }
 0x868   : > { %v5549_v11 = vadd.f32 %v5548_v17, %v5547_v61  ;;  %v5648_v21 = vadd.f32 %v5647_v5, %v5646_v29  ;;  %v5651_v34 = vsel %vm2195_vm5, %v5595_v52, 0.0 }
 0x869   : > { %v5649_v45 = vsel %vm2195_vm5, %v5594_v53, 0.0  ;;  %v11728_v0 = vpop.f32.mrb[84].mxu0 }
 0x86a   : > { %v5650_v36 = vadd.f32 %v5649_v45, %v5648_v21  ;;  %v11730_v38 = vpop.f32.mrb[85].mxu0  ;;  %v5551_v23 = vadd.f32 %v5550_v54, %v5549_v11  ;;  %v5597_v41 = vmul.f32 %v11728_v0, %v11728_v0  ;;  %v5554_v58 = vsel %vm2195_vm5, %v11728_v0, 0.0 }
 0x86b   : > { %v5552_v19 = vsel %vm2195_vm5, %v11730_v38, 0.0  ;;  %v5596_v13 = vmul.f32 %v11730_v38, %v11730_v38 }
 0x86c   : > { %v5553_v33 = vadd.f32 %v5552_v19, %v5551_v23  ;;  %v5652_v4 = vadd.f32 %v5651_v34, %v5650_v36  ;;  %v5655_v2 = vsel %vm2195_vm5, %v5597_v41, 0.0 }
 0x86d   : > { %v5653_v24 = vsel %vm2195_vm5, %v5596_v13, 0.0  ;;  %v11742_v42 = vpop.f32.mrb[86].mxu0 }
 0x86e   : > { %v5654_v15 = vadd.f32 %v5653_v24, %v5652_v4  ;;  %v11744_v47 = vpop.f32.mrb[87].mxu0  ;;  %v5555_v18 = vadd.f32 %v5554_v58, %v5553_v33  ;;  %v5599_v26 = vmul.f32 %v11742_v42, %v11742_v42  ;;  %v5558_v46 = vsel %vm2195_vm5, %v11742_v42, 0.0 }
 0x86f   : > { %v5556_v1 = vsel %vm2195_vm5, %v11744_v47, 0.0  ;;  %v5598_v32 = vmul.f32 %v11744_v47, %v11744_v47 }
 0x870   : > { %v5557_v63 = vadd.f32 %v5556_v1, %v5555_v18  ;;  %v5656_v49 = vadd.f32 %v5655_v2, %v5654_v15  ;;  %v5659_v53 = vsel %vm2195_vm5, %v5599_v26, 0.0 }
 0x871   : > { %v5657_v29 = vsel %vm2195_vm5, %v5598_v32, 0.0  ;;  %v11756_v61 = vpop.f32.mrb[88].mxu0 }
 0x872   : > { %v5658_v5 = vadd.f32 %v5657_v29, %v5656_v49  ;;  %v11758_v52 = vpop.f32.mrb[89].mxu0  ;;  %v5559_v17 = vadd.f32 %v5558_v46, %v5557_v63  ;;  %v5601_v11 = vmul.f32 %v11756_v61, %v11756_v61  ;;  %v5562_v23 = vsel %vm2195_vm5, %v11756_v61, 0.0  ;;  %v11778_v29 = vpop.permute.xlu1 %5931 }
 0x873   : > { %v5560_v21 = vsel %vm2195_vm5, %v11758_v52, 0.0  ;;  %v5600_v54 = vmul.f32 %v11758_v52, %v11758_v52 }
 0x874   : > { %v5561_v45 = vadd.f32 %v5560_v21, %v5559_v17  ;;  %v5660_v36 = vadd.f32 %v5659_v53, %v5658_v5  ;;  %v5663_v13 = vsel %vm2195_vm5, %v5601_v11, 0.0  ;;  %v11780_v5 = vpop.permute.xlu0 %5933 }
 0x875   : > { %v5661_v34 = vsel %vm2195_vm5, %v5600_v54, 0.0 }
 0x876   : > { %v5563_v41 = vadd.f32 %v5562_v23, %v5561_v45  ;;  %v5662_v19 = vadd.f32 %v5661_v34, %v5660_v36  ;;  %v11782_v17 = vpop.permute.xlu1 %5935 }
 0x878   : > { %v5564_v33 = vrot.slane %v5563_v41, 4  ;;  %v5664_v4 = vadd.f32 %v5663_v13, %v5662_v19  ;;  %v11784_v53 = vpop.permute.xlu0 %5937 }
 0x87a   : > { %v5565_v58 = vadd.f32 %v5564_v33, %v5563_v41  ;;  %v5665_v24 = vrot.slane %v5664_v4, 4 }
 0x87c   : > { %v5566_v15 = vrot.slane %v5565_v58, 2  ;;  %v5666_v18 = vadd.f32 %v5665_v24, %v5664_v4  ;;  %v11788_v11 = vpop.permute.xlu0 %5941 }
 0x87e   : > { %v5567_v2 = vadd.f32 %v5566_v15, %v5565_v58  ;;  %v5667_v26 = vrot.slane %v5666_v18, 2 }
 0x880   : > { %v5568_v1 = vrot.slane %v5567_v2, 1  ;;  %v5668_v63 = vadd.f32 %v5667_v26, %v5666_v18 }
 0x882   : > { %v5569_v32 = vadd.f32 %v5568_v1, %v5567_v2  ;;  %v5669_v49 = vrot.slane %v5668_v63, 1 }
 0x884   : > { %7004 = vmatmul.mubr.msk.f32.vlgmr.msra.gmra.mrb[90].mxu0 %vm2195_vm5, %v5569_v32  ;;  %v5670_v46 = vadd.f32 %v5669_v49, %v5668_v63 }
 0x885   : > { %7145 = vmatpush3.bf16.msra.mxu0 %v11533_v6  ;;  %7014 = vmatprep.mubr.msk.f32.mxu0 %vm7499_vm1, %v13031_v20  ;;  %v11786_v6 = vpop.permute.xlu1 %5939 }
 0x886   : > { %7146 = vmatprep.subr.bf16.mxu0 %v13037_v14  ;;  %v11792_v14 = vpop.permute.xlu0 %5945 }
 0x889   : > { %7148 = vmatpush3.bf16.msra.mxu0 %v11543_v30  ;;  %v11790_v20 = vpop.permute.xlu1 %5943 }
 0x88a   : > { %v11796_v21 = vpop.permute.xlu0 %5949 }
 0x88c   : > { %7015 = vmatmul.mubr.msk.f32.vlgmr.msra.gmra.mrb[92].mxu0 %vm2195_vm5, %v5670_v46  ;;  %v5499_v46 = vld [vmem:[%s12074_s8] sm:$0x1] }
 0x88d   : > { %v11794_v30 = vpop.permute.xlu1 %5947 }
 0x88e   : > { %v11800_v45 = vpop.permute.xlu0 %5953 }
 0x891   : > { %v11798_v54 = vpop.permute.xlu1 %5951 }
 0x892   : > { %v11804_v23 = vpop.permute.xlu0 %5957 }
 0x895   : > { %v11802_v36 = vpop.permute.xlu1 %5955 }
 0x896   : > { %v11808_v13 = vpop.permute.xlu0 %5961 }
 0x899   : > { %v11806_v19 = vpop.permute.xlu1 %5959 }
 0x89a   : > { %v11812_v18 = vpop.permute.xlu0 %5965 }
 0x89b   : > { %13039 = vst [vmem:[#allocation160_spill] sm:$0xff] %v11812_v18 }
 0x89d   : > { %v11810_v15 = vpop.permute.xlu1 %5963 }
 0x89e   : > { %v11816_v32 = vpop.permute.xlu0 %5969 }
 0x89f   : > { %13041 = vst [vmem:[#allocation221_spill] sm:$0xff] %v11816_v32 }
 0x8a1   : > { %v11814_v1 = vpop.permute.xlu1 %5967 }
 0x8a2   : > { %13040 = vst [vmem:[#allocation23_spill] sm:$0xff] %v11814_v1  ;;  %v11820_v49 = vpop.permute.xlu0 %5973 }
 0x8a3   : > { %13043 = vst [vmem:[#allocation254_spill] sm:$0xff] %v11820_v49 }
 0x8a5   : > { %v11818_v63 = vpop.permute.xlu1 %5971 }
 0x8a6   : > { %13042 = vst [vmem:[#allocation71_spill] sm:$0xff] %v11818_v63 }
 0x957   : > { %v5740_v34 = vpop.f32.mrb[90].mxu0 }
 0x958   : > { %v7005_v41 = vpop.f32.mrb[91].mxu0  ;;  %v5817_v33 = vmul.f32 %v5740_v34, %v5740_v34 }
 0x95f   : > { %v5813_v4 = vpop.f32.mrb[92].mxu0 }
 0x960   : > { %v5818_v58 = vsub.f32 %v5813_v4, %v5817_v33  ;;  %v7016_v24 = vpop.f32.mrb[93].mxu0  ;;  %v5500_v4 = vld [vmem:[%s12075_s9] sm:$0x1] }
 0x962   : > { %v5819_v2 = vmax.f32 %v5818_v58, 0.0 }
 0x964   : > { %v5820_v26 = vadd.f32 1e-05, %v5819_v2  ;;  %v11829_v2 = vpop.permute.xlu1 %5975 }
 0x966   : > { %7369 = vrsqrt.f32 %v5820_v26  ;;  %v11831_v26 = vpop.permute.xlu0 %5977 }
 0x967   : > { %13044 = vst [vmem:[#allocation31_spill] sm:$0xff] %v11831_v26 }
 0x970   : > { %v7370_v41 = vpop.eup %7369 }
 0x971   : > { %v5822_v33 = vmul.f32 %v7370_v41, %v5499_v46 }
 0x973   : > { %v5823_v58 = vmul.f32 %v5822_v33, %v5740_v34  ;;  %v5828_v24 = vrot.slane %v5822_v33, %v13038_v35 }
 0x975   : > { %v5824_v63 = vsub.f32 %v5500_v4, %v5823_v58  ;;  %v5829_v49 = vmul.f32 %v5828_v24, %v11553_v37  ;;  %v5830_v32 = vmul.f32 %v11547_v10, %v5828_v24  ;;  %v5831_v1 = vmul.f32 %v5828_v24, %v11563_v43 }
 0x976   : > { %v5832_v46 = vmul.f32 %v11561_v9, %v5828_v24  ;;  %v5833_v41 = vmul.f32 %v5828_v24, %v11576_v22  ;;  %v5834_v18 = vmul.f32 %v11574_v8, %v5828_v24  ;;  %v5835_v34 = vmul.f32 %v5828_v24, %v11590_v16 }
 0x977   : > { %v11841_v33 = vrot.slane %v5824_v63, %v13038_v35  ;;  %v5836_v26 = vmul.f32 %v11588_v50, %v5828_v24  ;;  %v5837_v4 = vmul.f32 %v5828_v24, %v11604_v51  ;;  %v5838_v37 = vmul.f32 %v11602_v48, %v5828_v24  ;;  %v11854_v63 = vpop.permute.xlu1 %5979  ;;  %v11856_v51 = vpop.permute.xlu0 %5981 }
 0x978   : > { %v5839_v10 = vmul.f32 %v5828_v24, %v11618_v44  ;;  %v5840_v43 = vmul.f32 %v11616_v56, %v5828_v24  ;;  %v5841_v9 = vmul.f32 %v5828_v24, %v11632_v55  ;;  %v5842_v22 = vmul.f32 %v11630_v40, %v5828_v24 }
 0x979   : > { %v5843_v8 = vmul.f32 %v5828_v24, %v11646_v3  ;;  %v5844_v16 = vmul.f32 %v11644_v39, %v5828_v24  ;;  %v5845_v35 = vmul.f32 %v5828_v24, %v11660_v7  ;;  %v5846_v50 = vmul.f32 %v11658_v28, %v5828_v24 }
 0x97a   : > { %v5847_v48 = vmul.f32 %v5828_v24, %v11674_v25  ;;  %v5848_v56 = vmul.f32 %v11672_v60, %v5828_v24  ;;  %v5849_v44 = vmul.f32 %v5828_v24, %v11688_v12  ;;  %v5850_v40 = vmul.f32 %v11686_v59, %v5828_v24 }
 0x97b   : > { %v5851_v55 = vmul.f32 %v5828_v24, %v11702_v62  ;;  %v5852_v39 = vmul.f32 %v11700_v31, %v5828_v24  ;;  %v5853_v3 = vmul.f32 %v5828_v24, %v11716_v57  ;;  %v5854_v28 = vmul.f32 %v11714_v27, %v5828_v24 }
 0x97c   : > { %v5855_v7 = vmul.f32 %v5828_v24, %v11730_v38  ;;  %v5856_v58 = vmul.f32 %v11728_v0, %v5828_v24  ;;  %v5857_v25 = vmul.f32 %v5828_v24, %v11744_v47  ;;  %v5858_v60 = vmul.f32 %v11742_v42, %v5828_v24 }
 0x97d   : > { %v5859_v12 = vmul.f32 %v5828_v24, %v11758_v52  ;;  %v5860_v59 = vmul.f32 %v11756_v61, %v5828_v24  ;;  %v5867_v62 = vadd.f32 %v11841_v33, %v5829_v49  ;;  %v5868_v31 = vadd.f32 %v11841_v33, %v5830_v32  ;;  %v11883_v49 = vpop.permute.xlu1 %5983  ;;  %v11885_v32 = vpop.permute.xlu0 %5985 }
 0x97e   : > { %v5869_v27 = vadd.f32 %v11841_v33, %v5831_v1  ;;  %v5870_v57 = vadd.f32 %v11841_v33, %v5832_v46  ;;  %v5871_v0 = vadd.f32 %v11841_v33, %v5833_v41  ;;  %v5872_v38 = vadd.f32 %v11841_v33, %v5834_v18  ;;  %13045 = vst [vmem:[#allocation74_spill] sm:$0xff] %v11885_v32 }
 0x97f   : > { %v5873_v42 = vadd.f32 %v11841_v33, %v5835_v34  ;;  %v5874_v47 = vadd.f32 %v11841_v33, %v5836_v26  ;;  %v5875_v61 = vadd.f32 %v11841_v33, %v5837_v4  ;;  %v5876_v52 = vadd.f32 %v11841_v33, %v5838_v37 }
 0x980   : > { %v5877_v1 = vadd.f32 %v11841_v33, %v5839_v10  ;;  %v5878_v24 = vadd.f32 %v11841_v33, %v5840_v43  ;;  %v5879_v46 = vadd.f32 %v11841_v33, %v5841_v9  ;;  %v5880_v18 = vadd.f32 %v11841_v33, %v5842_v22 }
 0x981   : > { %v5881_v26 = vadd.f32 %v11841_v33, %v5843_v8  ;;  %v5882_v41 = vadd.f32 %v11841_v33, %v5844_v16  ;;  %v5883_v34 = vadd.f32 %v11841_v33, %v5845_v35  ;;  %v5884_v4 = vadd.f32 %v11841_v33, %v5846_v50 }
 0x982   : > { %v5885_v37 = vadd.f32 %v11841_v33, %v5847_v48  ;;  %v5886_v10 = vadd.f32 %v11841_v33, %v5848_v56  ;;  %v5887_v43 = vadd.f32 %v11841_v33, %v5849_v44  ;;  %v5888_v9 = vadd.f32 %v11841_v33, %v5850_v40 }
 0x983   : > { %v5889_v22 = vadd.f32 %v11841_v33, %v5851_v55  ;;  %v5890_v32 = vadd.f32 %v11841_v33, %v5852_v39  ;;  %v5891_v8 = vadd.f32 %v11841_v33, %v5853_v3  ;;  %v5892_v16 = vadd.f32 %v11841_v33, %v5854_v28  ;;  %v5988_v3 = vpop.permute.xlu1 %5987  ;;  %v5990_v28 = vpop.permute.xlu0 %5989 }
 0x984   : > { %v5893_v35 = vadd.f32 %v11841_v33, %v5855_v7  ;;  %v5894_v50 = vadd.f32 %v11841_v33, %v5856_v58  ;;  %v5895_v48 = vadd.f32 %v11841_v33, %v5857_v25  ;;  %v5896_v56 = vadd.f32 %v11841_v33, %v5858_v60 }
 0x985   : > { %v11912_v44 = vadd.f32 %v11841_v33, %v5859_v12  ;;  %v11915_v40 = vadd.f32 %v11841_v33, %v5860_v59  ;;  %v6027_v55 = vadd.f32 %v11778_v29, %v5867_v62  ;;  %v6028_v39 = vadd.f32 %v11780_v5, %v5868_v31  ;;  %v13052_v31 = vld [vmem:[#allocation31_spill] sm:$0xff] }
 0x986   : > { %v6029_v7 = vadd.f32 %v11782_v17, %v5869_v27  ;;  %v6030_v58 = vadd.f32 %v11784_v53, %v5870_v57  ;;  %v6031_v25 = vadd.f32 %v11786_v6, %v5871_v0  ;;  %v6032_v60 = vadd.f32 %v11788_v11, %v5872_v38 }
 0x987   : > { %13046 = vst [vmem:[#allocation214_spill] sm:$0xff] %v11912_v44  ;;  %v6033_v12 = vadd.f32 %v11790_v20, %v5873_v42  ;;  %v6034_v44 = vadd.f32 %v11792_v14, %v5874_v47  ;;  %v6035_v33 = vadd.f32 %v11794_v30, %v5875_v61  ;;  %v6036_v29 = vadd.f32 %v11796_v21, %v5876_v52  ;;  %v13047_v30 = vld [vmem:[#allocation160_spill] sm:$0xff]  ;;  %v5992_v38 = vpop.permute.xlu1 %5991  ;;  %v13053_v47 = vld [vmem:[#allocation74_spill] sm:$0xff] }
 0x988   : > { %6059 = vst.msk [vmem:[%s11928_s1] sm:$0xff] %vm2195_vm5, %v6027_v55  ;;  %6060 = vst.msk [vmem:[%s11928_s1 + $0x8] sm:$0xff] %vm2195_vm5, %v6028_v39  ;;  %v6037_v5 = vadd.f32 %v11798_v54, %v5877_v1  ;;  %v6038_v17 = vadd.f32 %v11800_v45, %v5878_v24  ;;  %v6039_v53 = vadd.f32 %v11802_v36, %v5879_v46  ;;  %v13048_v54 = vld [vmem:[#allocation23_spill] sm:$0xff]  ;;  %v13049_v36 = vld [vmem:[#allocation221_spill] sm:$0xff] }
 0x989   : > { %v6040_v6 = vadd.f32 %v11804_v23, %v5880_v18  ;;  %6061 = vst.msk [vmem:[%s11928_s1 + $0x10] sm:$0xff] %vm2195_vm5, %v6029_v7  ;;  %6062 = vst.msk [vmem:[%s11928_s1 + $0x18] sm:$0xff] %vm2195_vm5, %v6030_v58  ;;  %v6041_v11 = vadd.f32 %v11806_v19, %v5881_v26  ;;  %v6042_v20 = vadd.f32 %v11808_v13, %v5882_v41  ;;  %v13050_v19 = vld [vmem:[#allocation71_spill] sm:$0xff] }
 0x98a   : > { %6063 = vst.msk [vmem:[%s11928_s1 + $0x20] sm:$0xff] %vm2195_vm5, %v6031_v25  ;;  %6064 = vst.msk [vmem:[%s11928_s1 + $0x28] sm:$0xff] %vm2195_vm5, %v6032_v60  ;;  %v6043_v14 = vadd.f32 %v11810_v15, %v5883_v34  ;;  %v6044_v21 = vadd.f32 %v13047_v30, %v5884_v4  ;;  %v6045_v45 = vadd.f32 %v13048_v54, %v5885_v37  ;;  %v13051_v15 = vld [vmem:[#allocation254_spill] sm:$0xff] }
 0x98b   : > { %6065 = vst.msk [vmem:[%s11928_s1 + $0x30] sm:$0xff] %vm2195_vm5, %v6033_v12  ;;  %6066 = vst.msk [vmem:[%s11928_s1 + $0x38] sm:$0xff] %vm2195_vm5, %v6034_v44  ;;  %v6046_v23 = vadd.f32 %v13049_v36, %v5886_v10  ;;  %v6047_v13 = vadd.f32 %v13050_v19, %v5887_v43  ;;  %v6048_v59 = vadd.f32 %v13051_v15, %v5888_v9 }
 0x98c   : > { %6067 = vst.msk [vmem:[%s11928_s1 + $0x40] sm:$0xff] %vm2195_vm5, %v6035_v33  ;;  %6068 = vst.msk [vmem:[%s11928_s1 + $0x48] sm:$0xff] %vm2195_vm5, %v6036_v29  ;;  %v6049_v62 = vadd.f32 %v11829_v2, %v5889_v22  ;;  %v6050_v27 = vadd.f32 %v13052_v31, %v5890_v32  ;;  %v6051_v57 = vadd.f32 %v11854_v63, %v5891_v8  ;;  %v5994_v2 = vpop.permute.xlu0 %5993 }
 0x98d   : > { %6069 = vst.msk [vmem:[%s11928_s1 + $0x50] sm:$0xff] %vm2195_vm5, %v6037_v5  ;;  %6070 = vst.msk [vmem:[%s11928_s1 + $0x58] sm:$0xff] %vm2195_vm5, %v6038_v17  ;;  %v6052_v0 = vadd.f32 %v11856_v51, %v5892_v16  ;;  %v6053_v42 = vadd.f32 %v11883_v49, %v5893_v35  ;;  %v6054_v63 = vadd.f32 %v13053_v47, %v5894_v50 }
 0x98e   : > { %6071 = vst.msk [vmem:[%s11928_s1 + $0x60] sm:$0xff] %vm2195_vm5, %v6039_v53  ;;  %6072 = vst.msk [vmem:[%s11928_s1 + $0x68] sm:$0xff] %vm2195_vm5, %v6040_v6  ;;  %v6055_v51 = vadd.f32 %v5988_v3, %v5895_v48  ;;  %v6056_v61 = vadd.f32 %v5990_v28, %v5896_v56  ;;  %v13054_v52 = vld [vmem:[#allocation214_spill] sm:$0xff]  ;;  %v6058_v32 = vadd.f32 %v5994_v2, %v11915_v40 }
 0x98f   : > { %6073 = vst.msk [vmem:[%s11928_s1 + $0x70] sm:$0xff] %vm2195_vm5, %v6041_v11  ;;  %6074 = vst.msk [vmem:[%s11928_s1 + $0x78] sm:$0xff] %vm2195_vm5, %v6042_v20  ;;  %v6057_v49 = vadd.f32 %v5992_v38, %v13054_v52 }
 0x990   : > { %6075 = vst.msk [vmem:[%s11928_s1 + $0x80] sm:$0xff] %vm2195_vm5, %v6043_v14  ;;  %6076 = vst.msk [vmem:[%s11928_s1 + $0x88] sm:$0xff] %vm2195_vm5, %v6044_v21 }
 0x991   : > { %6077 = vst.msk [vmem:[%s11928_s1 + $0x90] sm:$0xff] %vm2195_vm5, %v6045_v45  ;;  %6078 = vst.msk [vmem:[%s11928_s1 + $0x98] sm:$0xff] %vm2195_vm5, %v6046_v23 }
 0x992   : > { %6079 = vst.msk [vmem:[%s11928_s1 + $0xa0] sm:$0xff] %vm2195_vm5, %v6047_v13  ;;  %6080 = vst.msk [vmem:[%s11928_s1 + $0xa8] sm:$0xff] %vm2195_vm5, %v6048_v59 }
 0x993   : > { %6081 = vst.msk [vmem:[%s11928_s1 + $0xb0] sm:$0xff] %vm2195_vm5, %v6049_v62  ;;  %6082 = vst.msk [vmem:[%s11928_s1 + $0xb8] sm:$0xff] %vm2195_vm5, %v6050_v27 }
 0x994   : > { %6083 = vst.msk [vmem:[%s11928_s1 + $0xc0] sm:$0xff] %vm2195_vm5, %v6051_v57  ;;  %6084 = vst.msk [vmem:[%s11928_s1 + $0xc8] sm:$0xff] %vm2195_vm5, %v6052_v0 }
 0x995   : > { %6085 = vst.msk [vmem:[%s11928_s1 + $0xd0] sm:$0xff] %vm2195_vm5, %v6053_v42  ;;  %6086 = vst.msk [vmem:[%s11928_s1 + $0xd8] sm:$0xff] %vm2195_vm5, %v6054_v63 }
 0x996   : > { %6087 = vst.msk [vmem:[%s11928_s1 + $0xe0] sm:$0xff] %vm2195_vm5, %v6055_v51  ;;  %6088 = vst.msk [vmem:[%s11928_s1 + $0xe8] sm:$0xff] %vm2195_vm5, %v6056_v61 }
 0x997   : > { %6089 = vst.msk [vmem:[%s11928_s1 + $0xf0] sm:$0xff] %vm2195_vm5, %v6057_v49  ;;  %6090 = vst.msk [vmem:[%s11928_s1 + $0xf8] sm:$0xff] %vm2195_vm5, %v6058_v32 }
 0x998   : > { %7443 = shalt.err (!%p7440_p3)
}
 0x999   : > { %s7444_s0 = scalar_lea.hbm %s11997_s26, 4096  ;;  %s7448_s21 = scalar_lea.hbm %s12080_s14, 8192 }
 0x99a   : > { %p7445_p4 = scmp.ne.s32.totalorder %s11997_s26, %s7444_s0  ;;  %p7449_p9 = scmp.lt.u32.totalorder %s11997_s26, %s12080_s14 }
 0x99b   : > { %p7450_p10 = scmp.lt.u32.totalorder %s7448_s21, %s7444_s0  ;;  %p7452_p12 = scmp.lt.u32.totalorder %s7444_s0, %s11997_s26 }
 0x99c   : > { %p7446_p7 = pnand %p7445_p4, %p7624_p5 }
 0x99d   : > { %p7451_p11 = por %p7450_p10, %p7449_p9 }
 0x99e   : > { %p7447_p8 = pneg %p7446_p7 }
 0x99f   : > { %p7453_p13 = por %p7452_p12, %p7451_p11 }
 0x9a1   : > { %p7454_p0 = pnand %p7453_p13, %p7447_p8 }
 0x9a3   : > { %7457 = shalt.err (!%p7454_p0)
}
 0x9a4   : > { %s7509_s18 = smov 128   ;;  %s7510_s17 = smov 8  }
 0x9a5   : > { %7225 = dma.vmem_to_hbm [thread:$0]  (%p7624_p5), %s11999_s20, 4096, %s11997_s26, %s12025_s27, %s7509_s18, %s7509_s18, %s7510_s17  }
 0x9a6 PF: > { %p7231_p1 = scmp.ge.s32.totalorder %s7492_s16, 2  ;;  %s6120_s2 = sand.u32 1, %s7480_s29  }
 0x9a7   : > { %s6121_s0 = scalar_lea.sflag [#allocation3], %s6120_s2 }
 0x9a8   : > { %p7228_p2 = pnand %p7231_p1, %p7628_p6 }
 0x9aa   : > { %7475 = dma.done.wait (!%p7228_p2), %s6121_s0, 4096  }
 0x9ab   : > { %7477 = vsyncadd (!%p7228_p2), %s6121_s0, 4294963200  ;;  %p24_p3 = scmp.ge.s32.totalorder %s7611_s19, 4   ;;  %s13055_s29 = smov %s7484_s30 }
 0x9ac   : > { %s13056_s30 = smov %s7488_s15  ;;  %s13057_s15 = smov %s7622_s22 }
 0x9ad   : > { %s13058_s16 = smov %s7611_s19  ;;  %26 = sbr.rel (!%p24_p3) target bundleno = 7 (0x7), region = 113 }
 0x9b4   :  { %6126 = vsyncpa [#allocation3], 1 }
 0x9b5   :  { %6128 = vsyncpa [#allocation3 + $0x1], 1 }

</bundles_post_ra>
